<compile_context>
chip_gen: v7x
topology: tpu7x:2x2x1
jax: 0.10.0
libtpu: 0.0.40
codegen_flags: <defaults>
</compile_context>

<pallas_src>
import functools
import numpy as np

import jax
import jax.numpy as jnp
from jax import lax
from jax.experimental import pallas as pl
from jax.experimental.pallas import tpu as pltpu

LN_EPS = 1e-6
DIM = 288          # `dim` in the reference module (token_dim must equal it for the .view)


# ----------------------------------------------------------------------------
# Fused kernel: conv1-as-patch-matmul + LN1 + GELU  ->  conv2-as-9-slab-matmuls + LN2
# ----------------------------------------------------------------------------
def tokenizer_kernel(p_ref, mask_ref, w1_ref, b1_ref, g1_ref, bt1_ref,
                     w2_ref, b2_ref, g2_ref, bt2_ref, o_ref, a_ref, *, wp, h2):
    mo = h2 * wp                     # rows of the (padded-width) conv2 output domain
    d = o_ref.shape[2]
    inv_sqrt2 = 0.7071067811865476

    def layernorm(v, g, bt):
        mu = jnp.mean(v, axis=-1, keepdims=True)
        var = jnp.mean(jnp.square(v - mu), axis=-1, keepdims=True)
        return (v - mu) * lax.rsqrt(var + LN_EPS) * g + bt

    # Stage 1: conv1 + LN1 + GELU, computed per output-parity phase so that stage 2 only
    # needs contiguous slices.  Invalid (padding-ring) rows are zeroed with `mask` so the
    # zero-padding semantics of conv2 are exact.
    for ph in range(4):
        patches = p_ref[0, ph]                                   # (Ma, 27) bf16
        h = jnp.dot(patches, w1_ref[...],
                    preferred_element_type=jnp.float32) + b1_ref[...]   # (Ma, D/2) f32
        h = layernorm(h, g1_ref[...], bt1_ref[...])
        h = 0.5 * h * (1.0 + lax.erf(h * inv_sqrt2))             # exact (erf) GELU
        a_ref[ph] = (h * mask_ref[ph]).astype(jnp.bfloat16)

    # Stage 2: conv2 as nine shifted-slab matmuls over the phase buffers, f32 accumulate.
    acc = jnp.zeros((mo, d), jnp.float32)
    for ky in range(3):
        for kx in range(3):
            ph = (ky % 2) * 2 + (kx % 2)
            off = (ky // 2) * wp + (kx // 2)
            slab = a_ref[ph, off:off + mo, :]                    # (Mo, D/2) bf16
            acc = acc + jnp.dot(slab, w2_ref[ky * 3 + kx],
                                preferred_element_type=jnp.float32)
    acc = acc + b2_ref[...]
    o_ref[0] = layernorm(acc, g2_ref[...], bt2_ref[...]).astype(o_ref.dtype)


# ----------------------------------------------------------------------------
# Wrapper: layout plumbing (patch extraction / phase split) + pallas_call
# ----------------------------------------------------------------------------
def _const_spec(shape):
    nd = len(shape)
    return pl.BlockSpec(tuple(shape), lambda b, _nd=nd: (0,) * _nd)


def _ceil_div(a, b):
    return -(-a // b)


def tokenizer_forward(ret, params):
    """Mirror of Tokenizer.forward (dropout defined but unused in forward)."""
    if not isinstance(ret, dict):
        ret = {'x': ret}
    x = ret['x']                                   # (n, 3, H, W)  NCHW, like torch
    n, c, h, w = x.shape
    h1, w1 = _ceil_div(h, 2), _ceil_div(w, 2)      # conv1 output spatial
    h2, w2 = _ceil_div(h1, 2), _ceil_div(w1, 2)    # conv2 output spatial
    ha, wp = h2 + 2, w2 + 1                        # phase-buffer height / padded width

    d2 = params['w1'].shape[-1]
    d = params['w2'].shape[-1]
    k1 = 9 * c

    # --- conv1 patches (im2col over the 3-channel input), pure layout ops ---
    xh = jnp.transpose(x, (0, 2, 3, 1))                            # NHWC
    xp = jnp.pad(xh, ((0, 0), (1, 1), (1, 1), (0, 0)))
    taps = [xp[:, ky:ky + 2 * h1 - 1:2, kx:kx + 2 * w1 - 1:2, :]
            for ky in range(3) for kx in range(3)]
    pp = jnp.stack(taps, axis=3).reshape(n, h1, w1, k1)            # patch per conv1 output

    # --- phase split of the conv1-output grid (zero padding ring included) ---
    ppad = jnp.pad(pp, ((0, 0), (1, 2 * ha - h1 - 1), (1, 2 * wp - w1 - 1), (0, 0)))
    phases = [ppad[:, py:py + 2 * ha - 1:2, px:px + 2 * wp - 1:2, :]
              for py in range(2) for px in range(2)]
    p = jnp.stack(phases, axis=1).reshape(n, 4, ha * wp, k1).astype(jnp.bfloat16)

    # --- validity mask: padding-ring rows of the phase buffers must be exactly zero ---
    a_idx, b_idx = np.arange(ha), np.arange(wp)
    masks = []
    for py in (0, 1):
        for px in (0, 1):
            u = 2 * a_idx + py - 1
            v = 2 * b_idx + px - 1
            m = ((u >= 0) & (u < h1))[:, None] & ((v >= 0) & (v < w1))[None, :]
            masks.append(m.astype(np.float32))
    mask = jnp.asarray(np.stack(masks, 0).reshape(4, ha * wp, 1))

    # --- parameters reshaped for the kernel (weights pre-cast to bf16) ---
    w1r = params['w1'].reshape(k1, d2).astype(jnp.bfloat16)
    w2r = params['w2'].reshape(9, d2, d).astype(jnp.bfloat16)
    b1 = params['b1'].reshape(1, d2)
    g1 = params['g1'].reshape(1, d2)
    bt1 = params['bt1'].reshape(1, d2)
    b2 = params['b2'].reshape(1, d)
    g2 = params['g2'].reshape(1, d)
    bt2 = params['bt2'].reshape(1, d)

    ma, mo = ha * wp, h2 * wp
    kernel = functools.partial(tokenizer_kernel, wp=wp, h2=h2)
    out_pad = pl.pallas_call(
        kernel,
        out_shape=jax.ShapeDtypeStruct((n, mo, d), x.dtype),
        grid=(n,),
        in_specs=[
            pl.BlockSpec((1, 4, ma, k1), lambda b: (b, 0, 0, 0)),
            _const_spec((4, ma, 1)),
            _const_spec((k1, d2)),
            _const_spec((1, d2)),
            _const_spec((1, d2)),
            _const_spec((1, d2)),
            _const_spec((9, d2, d)),
            _const_spec((1, d)),
            _const_spec((1, d)),
            _const_spec((1, d)),
        ],
        out_specs=pl.BlockSpec((1, mo, d), lambda b: (b, 0, 0)),
        scratch_shapes=[pltpu.VMEM((4, ma, d2), jnp.bfloat16)],
        compiler_params=pltpu.CompilerParams(
            dimension_semantics=("parallel",),
            vmem_limit_bytes=64 * 1024 * 1024),
    )(p, mask, w1r, b1, g1, bt1, w2r, b2, g2, bt2)

    # strip the padded output column and flatten to (n, h2*w2, D)
    out = out_pad.reshape(n, h2, wp, d)[:, :, :w2, :].reshape(n, h2 * w2, d)

    out_ret = dict(ret)
    out_ret['h'] = h2
    out_ret['w'] = w2
    out_ret['x'] = out
    out_ret['tok0'] = out
    return out_ret


# ----------------------------------------------------------------------------
# Deterministic parameter init (shapes follow Tokenizer.__init__, HWIO layout)
# ----------------------------------------------------------------------------
def init_params(key, token_dim=DIM, in_ch=3):
    d2 = token_dim // 2
    ks = jax.random.split(key, 8)
    f32 = jnp.float32
    return {
        'w1': jax.random.normal(ks[0], (3, 3, in_ch, d2), f32) / np.sqrt(9 * in_ch),
        'b1': jax.random.normal(ks[1], (d2,), f32) * 0.05,
        'g1': 1.0 + 0.1 * jax.random.normal(ks[2], (d2,), f32),
        'bt1': 0.1 * jax.random.normal(ks[3], (d2,), f32),
        'w2': jax.random.normal(ks[4], (3, 3, d2, token_dim), f32) / np.sqrt(9 * d2),
        'b2': jax.random.normal(ks[5], (token_dim,), f32) * 0.05,
        'g2': 1.0 + 0.1 * jax.random.normal(ks[6], (token_dim,), f32),
        'bt2': 0.1 * jax.random.normal(ks[7], (token_dim,), f32),
    }


# ----------------------------------------------------------------------------
# Pure-JAX reference (for correctness check)
# ----------------------------------------------------------------------------
def _ln_ref(v, g, b):
    mu = v.mean(-1, keepdims=True)
    var = ((v - mu) ** 2).mean(-1, keepdims=True)
    return (v - mu) / jnp.sqrt(var + LN_EPS) * g + b


def reference_forward(x_nchw, params):
    x = jnp.transpose(x_nchw, (0, 2, 3, 1))        # NHWC
    y = lax.conv_general_dilated(x, params['w1'], (2, 2), ((1, 1), (1, 1)),
                                 dimension_numbers=('NHWC', 'HWIO', 'NHWC'))
    y = y + params['b1']
    y = _ln_ref(y, params['g1'], params['bt1'])
    y = jax.nn.gelu(y, approximate=False)
    z = lax.conv_general_dilated(y, params['w2'], (2, 2), ((1, 1), (1, 1)),
                                 dimension_numbers=('NHWC', 'HWIO', 'NHWC'))
    z = z + params['b2']
    z = _ln_ref(z, params['g2'], params['bt2'])
    n, h2, w2, d = z.shape
    return z.reshape(n, h2 * w2, d)


if __name__ == "__main__":
    n, c, h, w = 2, 3, 32, 32
    token_dim = DIM
    key = jax.random.PRNGKey(0)
    kx, kp = jax.random.split(key)
    x = jax.random.normal(kx, (n, c, h, w), jnp.float32)
    params = init_params(kp, token_dim, c)

    out_ret = tokenizer_forward({'x': x}, params)
    res = jax.block_until_ready(out_ret['x'])

    ref = reference_forward(x, params)
    np.testing.assert_allclose(np.asarray(res), np.asarray(ref), rtol=2e-2, atol=2e-2)
    assert out_ret['h'] == 8 and out_ret['w'] == 8
    assert 'tok0' in out_ret and out_ret['tok0'].shape == (n, 64, token_dim)
    assert bool(jnp.all(jnp.isfinite(res)))
    print("KERNEL_OK")
</pallas_src>

<mosaic_0001>
module attributes {stable_mosaic.version = 11 : i64} {
  func.func @tokenizer_kernel(%arg0: i32, %arg1: memref<1x4x90x27xbf16, #tpu.memory_space<vmem>>, %arg2: memref<4x90x1xf32, #tpu.memory_space<vmem>>, %arg3: memref<27x144xbf16, #tpu.memory_space<vmem>>, %arg4: memref<1x144xf32, #tpu.memory_space<vmem>>, %arg5: memref<1x144xf32, #tpu.memory_space<vmem>>, %arg6: memref<1x144xf32, #tpu.memory_space<vmem>>, %arg7: memref<9x144x288xbf16, #tpu.memory_space<vmem>>, %arg8: memref<1x288xf32, #tpu.memory_space<vmem>>, %arg9: memref<1x288xf32, #tpu.memory_space<vmem>>, %arg10: memref<1x288xf32, #tpu.memory_space<vmem>>, %arg11: memref<1x72x288xf32, #tpu.memory_space<vmem>>, %arg12: memref<4x90x144xbf16, #tpu.memory_space<vmem>>) attributes {dimension_semantics = [#tpu.dimension_semantics<parallel>], iteration_bounds = array<i64: 2>, scalar_prefetch = 0 : i64, scratch_operands = 1 : i64, tpu.core_type = #tpu.core_type<tc>, window_params = [{transform_indices = @transform_0, window_bounds = array<i64: 1, 4, 90, 27>}, {pipeline_mode = #tpu.pipeline_mode<synchronous>, transform_indices = @transform_1, window_bounds = array<i64: 4, 90, 1>}, {pipeline_mode = #tpu.pipeline_mode<synchronous>, transform_indices = @transform_2, window_bounds = array<i64: 27, 144>}, {pipeline_mode = #tpu.pipeline_mode<synchronous>, transform_indices = @transform_3, window_bounds = array<i64: 1, 144>}, {pipeline_mode = #tpu.pipeline_mode<synchronous>, transform_indices = @transform_4, window_bounds = array<i64: 1, 144>}, {pipeline_mode = #tpu.pipeline_mode<synchronous>, transform_indices = @transform_5, window_bounds = array<i64: 1, 144>}, {pipeline_mode = #tpu.pipeline_mode<synchronous>, transform_indices = @transform_6, window_bounds = array<i64: 9, 144, 288>}, {pipeline_mode = #tpu.pipeline_mode<synchronous>, transform_indices = @transform_7, window_bounds = array<i64: 1, 288>}, {pipeline_mode = #tpu.pipeline_mode<synchronous>, transform_indices = @transform_8, window_bounds = array<i64: 1, 288>}, {pipeline_mode = #tpu.pipeline_mode<synchronous>, transform_indices = @transform_9, window_bounds = array<i64: 1, 288>}, {transform_indices = @transform_10, window_bounds = array<i64: 1, 72, 288>}]} {
    %c0 = arith.constant 0 : index
    %c0_0 = arith.constant 0 : index
    %c0_1 = arith.constant 0 : index
    %c0_2 = arith.constant 0 : index
    %0 = vector.load %arg1[%c0, %c0_0, %c0_1, %c0_2] : memref<1x4x90x27xbf16, #tpu.memory_space<vmem>>, vector<1x1x90x27xbf16>
    %1 = vector.shape_cast %0 : vector<1x1x90x27xbf16> to vector<90x27xbf16>
    %c0_3 = arith.constant 0 : index
    %c0_4 = arith.constant 0 : index
    %2 = vector.load %arg3[%c0_3, %c0_4] : memref<27x144xbf16, #tpu.memory_space<vmem>>, vector<27x144xbf16>
    %cst = arith.constant dense<0.000000e+00> : vector<90x144xf32>
    %3 = tpu.matmul %1, %2, %cst {dimension_numbers = #tpu.dot_dimension_numbers<[1], [0], [0], [1], [0, 0, 1, 1], [], []>} : vector<90x27xbf16>, vector<27x144xbf16>, vector<90x144xf32> -> vector<90x144xf32>
    %c0_5 = arith.constant 0 : index
    %c0_6 = arith.constant 0 : index
    %4 = vector.load %arg4[%c0_5, %c0_6] : memref<1x144xf32, #tpu.memory_space<vmem>>, vector<1x144xf32>
    %5 = vector.broadcast %4 : vector<1x144xf32> to vector<90x144xf32>
    %6 = arith.addf %3, %5 : vector<90x144xf32>
    %c0_7 = arith.constant 0 : index
    %c0_8 = arith.constant 0 : index
    %7 = vector.load %arg5[%c0_7, %c0_8] : memref<1x144xf32, #tpu.memory_space<vmem>>, vector<1x144xf32>
    %c0_9 = arith.constant 0 : index
    %c0_10 = arith.constant 0 : index
    %8 = vector.load %arg6[%c0_9, %c0_10] : memref<1x144xf32, #tpu.memory_space<vmem>>, vector<1x144xf32>
    %cst_11 = arith.constant dense<0.000000e+00> : vector<90xf32>
    %9 = vector.multi_reduction <add>, %6, %cst_11 [1] : vector<90x144xf32> to vector<90xf32>
    %10 = vector.shape_cast %9 : vector<90xf32> to vector<90x1xf32>
    %cst_12 = arith.constant 1.440000e+02 : f32
    %11 = vector.broadcast %cst_12 : f32 to vector<90x1xf32>
    %12 = arith.divf %10, %11 : vector<90x1xf32>
    %13 = vector.broadcast %12 : vector<90x1xf32> to vector<90x144xf32>
    %14 = arith.subf %6, %13 : vector<90x144xf32>
    %15 = arith.mulf %14, %14 : vector<90x144xf32>
    %cst_13 = arith.constant dense<0.000000e+00> : vector<90xf32>
    %16 = vector.multi_reduction <add>, %15, %cst_13 [1] : vector<90x144xf32> to vector<90xf32>
    %17 = vector.shape_cast %16 : vector<90xf32> to vector<90x1xf32>
    %cst_14 = arith.constant 1.440000e+02 : f32
    %18 = vector.broadcast %cst_14 : f32 to vector<90x1xf32>
    %19 = arith.divf %17, %18 : vector<90x1xf32>
    %20 = vector.broadcast %12 : vector<90x1xf32> to vector<90x144xf32>
    %21 = arith.subf %6, %20 : vector<90x144xf32>
    %cst_15 = arith.constant 9.99999997E-7 : f32
    %22 = vector.broadcast %cst_15 : f32 to vector<90x1xf32>
    %23 = arith.addf %19, %22 : vector<90x1xf32>
    %24 = math.rsqrt %23 : vector<90x1xf32>
    %25 = vector.broadcast %24 : vector<90x1xf32> to vector<90x144xf32>
    %26 = arith.mulf %21, %25 : vector<90x144xf32>
    %27 = vector.broadcast %7 : vector<1x144xf32> to vector<90x144xf32>
    %28 = arith.mulf %26, %27 : vector<90x144xf32>
    %29 = vector.broadcast %8 : vector<1x144xf32> to vector<90x144xf32>
    %30 = arith.addf %28, %29 : vector<90x144xf32>
    %cst_16 = arith.constant 5.000000e-01 : f32
    %31 = vector.broadcast %cst_16 : f32 to vector<90x144xf32>
    %32 = arith.mulf %31, %30 : vector<90x144xf32>
    %cst_17 = arith.constant 0.707106769 : f32
    %33 = vector.broadcast %cst_17 : f32 to vector<90x144xf32>
    %34 = arith.mulf %30, %33 : vector<90x144xf32>
    %35 = math.erf %34 : vector<90x144xf32>
    %cst_18 = arith.constant 1.000000e+00 : f32
    %36 = vector.broadcast %cst_18 : f32 to vector<90x144xf32>
    %37 = arith.addf %36, %35 : vector<90x144xf32>
    %38 = arith.mulf %32, %37 : vector<90x144xf32>
    %c0_19 = arith.constant 0 : index
    %c0_20 = arith.constant 0 : index
    %c0_21 = arith.constant 0 : index
    %39 = vector.load %arg2[%c0_19, %c0_20, %c0_21] : memref<4x90x1xf32, #tpu.memory_space<vmem>>, vector<1x90x1xf32>
    %40 = vector.shape_cast %39 : vector<1x90x1xf32> to vector<90x1xf32>
    %41 = vector.broadcast %40 : vector<90x1xf32> to vector<90x144xf32>
    %42 = arith.mulf %38, %41 : vector<90x144xf32>
    %43 = arith.truncf %42 : vector<90x144xf32> to vector<90x144xbf16>
    %c0_22 = arith.constant 0 : index
    %c0_23 = arith.constant 0 : index
    %c0_24 = arith.constant 0 : index
    %44 = vector.load %arg12[%c0_22, %c0_23, %c0_24] : memref<4x90x144xbf16, #tpu.memory_space<vmem>>, vector<1x90x144xbf16>
    %45 = vector.shape_cast %44 : vector<1x90x144xbf16> to vector<90x144xbf16>
    %46 = vector.shape_cast %43 : vector<90x144xbf16> to vector<1x90x144xbf16>
    tpu.vector_store %arg12[%c0_22, %c0_23, %c0_24], %46 {strides = array<i32>} : memref<4x90x144xbf16, #tpu.memory_space<vmem>>, vector<1x90x144xbf16>,
    %c0_25 = arith.constant 0 : index
    %c1 = arith.constant 1 : index
    %c0_26 = arith.constant 0 : index
    %c0_27 = arith.constant 0 : index
    %47 = vector.load %arg1[%c0_25, %c1, %c0_26, %c0_27] : memref<1x4x90x27xbf16, #tpu.memory_space<vmem>>, vector<1x1x90x27xbf16>
    %48 = vector.shape_cast %47 : vector<1x1x90x27xbf16> to vector<90x27xbf16>
    %c0_28 = arith.constant 0 : index
    %c0_29 = arith.constant 0 : index
    %49 = vector.load %arg3[%c0_28, %c0_29] : memref<27x144xbf16, #tpu.memory_space<vmem>>, vector<27x144xbf16>
    %cst_30 = arith.constant dense<0.000000e+00> : vector<90x144xf32>
    %50 = tpu.matmul %48, %49, %cst_30 {dimension_numbers = #tpu.dot_dimension_numbers<[1], [0], [0], [1], [0, 0, 1, 1], [], []>} : vector<90x27xbf16>, vector<27x144xbf16>, vector<90x144xf32> -> vector<90x144xf32>
    %c0_31 = arith.constant 0 : index
    %c0_32 = arith.constant 0 : index
    %51 = vector.load %arg4[%c0_31, %c0_32] : memref<1x144xf32, #tpu.memory_space<vmem>>, vector<1x144xf32>
    %52 = vector.broadcast %51 : vector<1x144xf32> to vector<90x144xf32>
    %53 = arith.addf %50, %52 : vector<90x144xf32>
    %c0_33 = arith.constant 0 : index
    %c0_34 = arith.constant 0 : index
    %54 = vector.load %arg5[%c0_33, %c0_34] : memref<1x144xf32, #tpu.memory_space<vmem>>, vector<1x144xf32>
    %c0_35 = arith.constant 0 : index
    %c0_36 = arith.constant 0 : index
    %55 = vector.load %arg6[%c0_35, %c0_36] : memref<1x144xf32, #tpu.memory_space<vmem>>, vector<1x144xf32>
    %cst_37 = arith.constant dense<0.000000e+00> : vector<90xf32>
    %56 = vector.multi_reduction <add>, %53, %cst_37 [1] : vector<90x144xf32> to vector<90xf32>
    %57 = vector.shape_cast %56 : vector<90xf32> to vector<90x1xf32>
    %cst_38 = arith.constant 1.440000e+02 : f32
    %58 = vector.broadcast %cst_38 : f32 to vector<90x1xf32>
    %59 = arith.divf %57, %58 : vector<90x1xf32>
    %60 = vector.broadcast %59 : vector<90x1xf32> to vector<90x144xf32>
    %61 = arith.subf %53, %60 : vector<90x144xf32>
    %62 = arith.mulf %61, %61 : vector<90x144xf32>
    %cst_39 = arith.constant dense<0.000000e+00> : vector<90xf32>
    %63 = vector.multi_reduction <add>, %62, %cst_39 [1] : vector<90x144xf32> to vector<90xf32>
    %64 = vector.shape_cast %63 : vector<90xf32> to vector<90x1xf32>
    %cst_40 = arith.constant 1.440000e+02 : f32
    %65 = vector.broadcast %cst_40 : f32 to vector<90x1xf32>
    %66 = arith.divf %64, %65 : vector<90x1xf32>
    %67 = vector.broadcast %59 : vector<90x1xf32> to vector<90x144xf32>
    %68 = arith.subf %53, %67 : vector<90x144xf32>
    %cst_41 = arith.constant 9.99999997E-7 : f32
    %69 = vector.broadcast %cst_41 : f32 to vector<90x1xf32>
    %70 = arith.addf %66, %69 : vector<90x1xf32>
    %71 = math.rsqrt %70 : vector<90x1xf32>
    %72 = vector.broadcast %71 : vector<90x1xf32> to vector<90x144xf32>
    %73 = arith.mulf %68, %72 : vector<90x144xf32>
    %74 = vector.broadcast %54 : vector<1x144xf32> to vector<90x144xf32>
    %75 = arith.mulf %73, %74 : vector<90x144xf32>
    %76 = vector.broadcast %55 : vector<1x144xf32> to vector<90x144xf32>
    %77 = arith.addf %75, %76 : vector<90x144xf32>
    %cst_42 = arith.constant 5.000000e-01 : f32
    %78 = vector.broadcast %cst_42 : f32 to vector<90x144xf32>
    %79 = arith.mulf %78, %77 : vector<90x144xf32>
    %cst_43 = arith.constant 0.707106769 : f32
    %80 = vector.broadcast %cst_43 : f32 to vector<90x144xf32>
    %81 = arith.mulf %77, %80 : vector<90x144xf32>
    %82 = math.erf %81 : vector<90x144xf32>
    %cst_44 = arith.constant 1.000000e+00 : f32
    %83 = vector.broadcast %cst_44 : f32 to vector<90x144xf32>
    %84 = arith.addf %83, %82 : vector<90x144xf32>
    %85 = arith.mulf %79, %84 : vector<90x144xf32>
    %c1_45 = arith.constant 1 : index
    %c0_46 = arith.constant 0 : index
    %c0_47 = arith.constant 0 : index
    %86 = vector.load %arg2[%c1_45, %c0_46, %c0_47] : memref<4x90x1xf32, #tpu.memory_space<vmem>>, vector<1x90x1xf32>
    %87 = vector.shape_cast %86 : vector<1x90x1xf32> to vector<90x1xf32>
    %88 = vector.broadcast %87 : vector<90x1xf32> to vector<90x144xf32>
    %89 = arith.mulf %85, %88 : vector<90x144xf32>
    %90 = arith.truncf %89 : vector<90x144xf32> to vector<90x144xbf16>
    %c1_48 = arith.constant 1 : index
    %c0_49 = arith.constant 0 : index
    %c0_50 = arith.constant 0 : index
    %91 = vector.load %arg12[%c1_48, %c0_49, %c0_50] : memref<4x90x144xbf16, #tpu.memory_space<vmem>>, vector<1x90x144xbf16>
    %92 = vector.shape_cast %91 : vector<1x90x144xbf16> to vector<90x144xbf16>
    %93 = vector.shape_cast %90 : vector<90x144xbf16> to vector<1x90x144xbf16>
    tpu.vector_store %arg12[%c1_48, %c0_49, %c0_50], %93 {strides = array<i32>} : memref<4x90x144xbf16, #tpu.memory_space<vmem>>, vector<1x90x144xbf16>,
    %c0_51 = arith.constant 0 : index
    %c2 = arith.constant 2 : index
    %c0_52 = arith.constant 0 : index
    %c0_53 = arith.constant 0 : index
    %94 = vector.load %arg1[%c0_51, %c2, %c0_52, %c0_53] : memref<1x4x90x27xbf16, #tpu.memory_space<vmem>>, vector<1x1x90x27xbf16>
    %95 = vector.shape_cast %94 : vector<1x1x90x27xbf16> to vector<90x27xbf16>
    %c0_54 = arith.constant 0 : index
    %c0_55 = arith.constant 0 : index
    %96 = vector.load %arg3[%c0_54, %c0_55] : memref<27x144xbf16, #tpu.memory_space<vmem>>, vector<27x144xbf16>
    %cst_56 = arith.constant dense<0.000000e+00> : vector<90x144xf32>
    %97 = tpu.matmul %95, %96, %cst_56 {dimension_numbers = #tpu.dot_dimension_numbers<[1], [0], [0], [1], [0, 0, 1, 1], [], []>} : vector<90x27xbf16>, vector<27x144xbf16>, vector<90x144xf32> -> vector<90x144xf32>
    %c0_57 = arith.constant 0 : index
    %c0_58 = arith.constant 0 : index
    %98 = vector.load %arg4[%c0_57, %c0_58] : memref<1x144xf32, #tpu.memory_space<vmem>>, vector<1x144xf32>
    %99 = vector.broadcast %98 : vector<1x144xf32> to vector<90x144xf32>
    %100 = arith.addf %97, %99 : vector<90x144xf32>
    %c0_59 = arith.constant 0 : index
    %c0_60 = arith.constant 0 : index
    %101 = vector.load %arg5[%c0_59, %c0_60] : memref<1x144xf32, #tpu.memory_space<vmem>>, vector<1x144xf32>
    %c0_61 = arith.constant 0 : index
    %c0_62 = arith.constant 0 : index
    %102 = vector.load %arg6[%c0_61, %c0_62] : memref<1x144xf32, #tpu.memory_space<vmem>>, vector<1x144xf32>
    %cst_63 = arith.constant dense<0.000000e+00> : vector<90xf32>
    %103 = vector.multi_reduction <add>, %100, %cst_63 [1] : vector<90x144xf32> to vector<90xf32>
    %104 = vector.shape_cast %103 : vector<90xf32> to vector<90x1xf32>
    %cst_64 = arith.constant 1.440000e+02 : f32
    %105 = vector.broadcast %cst_64 : f32 to vector<90x1xf32>
    %106 = arith.divf %104, %105 : vector<90x1xf32>
    %107 = vector.broadcast %106 : vector<90x1xf32> to vector<90x144xf32>
    %108 = arith.subf %100, %107 : vector<90x144xf32>
    %109 = arith.mulf %108, %108 : vector<90x144xf32>
    %cst_65 = arith.constant dense<0.000000e+00> : vector<90xf32>
    %110 = vector.multi_reduction <add>, %109, %cst_65 [1] : vector<90x144xf32> to vector<90xf32>
    %111 = vector.shape_cast %110 : vector<90xf32> to vector<90x1xf32>
    %cst_66 = arith.constant 1.440000e+02 : f32
    %112 = vector.broadcast %cst_66 : f32 to vector<90x1xf32>
    %113 = arith.divf %111, %112 : vector<90x1xf32>
    %114 = vector.broadcast %106 : vector<90x1xf32> to vector<90x144xf32>
    %115 = arith.subf %100, %114 : vector<90x144xf32>
    %cst_67 = arith.constant 9.99999997E-7 : f32
    %116 = vector.broadcast %cst_67 : f32 to vector<90x1xf32>
    %117 = arith.addf %113, %116 : vector<90x1xf32>
    %118 = math.rsqrt %117 : vector<90x1xf32>
    %119 = vector.broadcast %118 : vector<90x1xf32> to vector<90x144xf32>
    %120 = arith.mulf %115, %119 : vector<90x144xf32>
    %121 = vector.broadcast %101 : vector<1x144xf32> to vector<90x144xf32>
    %122 = arith.mulf %120, %121 : vector<90x144xf32>
    %123 = vector.broadcast %102 : vector<1x144xf32> to vector<90x144xf32>
    %124 = arith.addf %122, %123 : vector<90x144xf32>
    %cst_68 = arith.constant 5.000000e-01 : f32
    %125 = vector.broadcast %cst_68 : f32 to vector<90x144xf32>
    %126 = arith.mulf %125, %124 : vector<90x144xf32>
    %cst_69 = arith.constant 0.707106769 : f32
    %127 = vector.broadcast %cst_69 : f32 to vector<90x144xf32>
    %128 = arith.mulf %124, %127 : vector<90x144xf32>
    %129 = math.erf %128 : vector<90x144xf32>
    %cst_70 = arith.constant 1.000000e+00 : f32
    %130 = vector.broadcast %cst_70 : f32 to vector<90x144xf32>
    %131 = arith.addf %130, %129 : vector<90x144xf32>
    %132 = arith.mulf %126, %131 : vector<90x144xf32>
    %c2_71 = arith.constant 2 : index
    %c0_72 = arith.constant 0 : index
    %c0_73 = arith.constant 0 : index
    %133 = vector.load %arg2[%c2_71, %c0_72, %c0_73] : memref<4x90x1xf32, #tpu.memory_space<vmem>>, vector<1x90x1xf32>
    %134 = vector.shape_cast %133 : vector<1x90x1xf32> to vector<90x1xf32>
    %135 = vector.broadcast %134 : vector<90x1xf32> to vector<90x144xf32>
    %136 = arith.mulf %132, %135 : vector<90x144xf32>
    %137 = arith.truncf %136 : vector<90x144xf32> to vector<90x144xbf16>
    %c2_74 = arith.constant 2 : index
    %c0_75 = arith.constant 0 : index
    %c0_76 = arith.constant 0 : index
    %138 = vector.load %arg12[%c2_74, %c0_75, %c0_76] : memref<4x90x144xbf16, #tpu.memory_space<vmem>>, vector<1x90x144xbf16>
    %139 = vector.shape_cast %138 : vector<1x90x144xbf16> to vector<90x144xbf16>
    %140 = vector.shape_cast %137 : vector<90x144xbf16> to vector<1x90x144xbf16>
    tpu.vector_store %arg12[%c2_74, %c0_75, %c0_76], %140 {strides = array<i32>} : memref<4x90x144xbf16, #tpu.memory_space<vmem>>, vector<1x90x144xbf16>,
    %c0_77 = arith.constant 0 : index
    %c3 = arith.constant 3 : index
    %c0_78 = arith.constant 0 : index
    %c0_79 = arith.constant 0 : index
    %141 = vector.load %arg1[%c0_77, %c3, %c0_78, %c0_79] : memref<1x4x90x27xbf16, #tpu.memory_space<vmem>>, vector<1x1x90x27xbf16>
    %142 = vector.shape_cast %141 : vector<1x1x90x27xbf16> to vector<90x27xbf16>
    %c0_80 = arith.constant 0 : index
    %c0_81 = arith.constant 0 : index
    %143 = vector.load %arg3[%c0_80, %c0_81] : memref<27x144xbf16, #tpu.memory_space<vmem>>, vector<27x144xbf16>
    %cst_82 = arith.constant dense<0.000000e+00> : vector<90x144xf32>
    %144 = tpu.matmul %142, %143, %cst_82 {dimension_numbers = #tpu.dot_dimension_numbers<[1], [0], [0], [1], [0, 0, 1, 1], [], []>} : vector<90x27xbf16>, vector<27x144xbf16>, vector<90x144xf32> -> vector<90x144xf32>
    %c0_83 = arith.constant 0 : index
    %c0_84 = arith.constant 0 : index
    %145 = vector.load %arg4[%c0_83, %c0_84] : memref<1x144xf32, #tpu.memory_space<vmem>>, vector<1x144xf32>
    %146 = vector.broadcast %145 : vector<1x144xf32> to vector<90x144xf32>
    %147 = arith.addf %144, %146 : vector<90x144xf32>
    %c0_85 = arith.constant 0 : index
    %c0_86 = arith.constant 0 : index
    %148 = vector.load %arg5[%c0_85, %c0_86] : memref<1x144xf32, #tpu.memory_space<vmem>>, vector<1x144xf32>
    %c0_87 = arith.constant 0 : index
    %c0_88 = arith.constant 0 : index
    %149 = vector.load %arg6[%c0_87, %c0_88] : memref<1x144xf32, #tpu.memory_space<vmem>>, vector<1x144xf32>
    %cst_89 = arith.constant dense<0.000000e+00> : vector<90xf32>
    %150 = vector.multi_reduction <add>, %147, %cst_89 [1] : vector<90x144xf32> to vector<90xf32>
    %151 = vector.shape_cast %150 : vector<90xf32> to vector<90x1xf32>
    %cst_90 = arith.constant 1.440000e+02 : f32
    %152 = vector.broadcast %cst_90 : f32 to vector<90x1xf32>
    %153 = arith.divf %151, %152 : vector<90x1xf32>
    %154 = vector.broadcast %153 : vector<90x1xf32> to vector<90x144xf32>
    %155 = arith.subf %147, %154 : vector<90x144xf32>
    %156 = arith.mulf %155, %155 : vector<90x144xf32>
    %cst_91 = arith.constant dense<0.000000e+00> : vector<90xf32>
    %157 = vector.multi_reduction <add>, %156, %cst_91 [1] : vector<90x144xf32> to vector<90xf32>
    %158 = vector.shape_cast %157 : vector<90xf32> to vector<90x1xf32>
    %cst_92 = arith.constant 1.440000e+02 : f32
    %159 = vector.broadcast %cst_92 : f32 to vector<90x1xf32>
    %160 = arith.divf %158, %159 : vector<90x1xf32>
    %161 = vector.broadcast %153 : vector<90x1xf32> to vector<90x144xf32>
    %162 = arith.subf %147, %161 : vector<90x144xf32>
    %cst_93 = arith.constant 9.99999997E-7 : f32
    %163 = vector.broadcast %cst_93 : f32 to vector<90x1xf32>
    %164 = arith.addf %160, %163 : vector<90x1xf32>
    %165 = math.rsqrt %164 : vector<90x1xf32>
    %166 = vector.broadcast %165 : vector<90x1xf32> to vector<90x144xf32>
    %167 = arith.mulf %162, %166 : vector<90x144xf32>
    %168 = vector.broadcast %148 : vector<1x144xf32> to vector<90x144xf32>
    %169 = arith.mulf %167, %168 : vector<90x144xf32>
    %170 = vector.broadcast %149 : vector<1x144xf32> to vector<90x144xf32>
    %171 = arith.addf %169, %170 : vector<90x144xf32>
    %cst_94 = arith.constant 5.000000e-01 : f32
    %172 = vector.broadcast %cst_94 : f32 to vector<90x144xf32>
    %173 = arith.mulf %172, %171 : vector<90x144xf32>
    %cst_95 = arith.constant 0.707106769 : f32
    %174 = vector.broadcast %cst_95 : f32 to vector<90x144xf32>
    %175 = arith.mulf %171, %174 : vector<90x144xf32>
    %176 = math.erf %175 : vector<90x144xf32>
    %cst_96 = arith.constant 1.000000e+00 : f32
    %177 = vector.broadcast %cst_96 : f32 to vector<90x144xf32>
    %178 = arith.addf %177, %176 : vector<90x144xf32>
    %179 = arith.mulf %173, %178 : vector<90x144xf32>
    %c3_97 = arith.constant 3 : index
    %c0_98 = arith.constant 0 : index
    %c0_99 = arith.constant 0 : index
    %180 = vector.load %arg2[%c3_97, %c0_98, %c0_99] : memref<4x90x1xf32, #tpu.memory_space<vmem>>, vector<1x90x1xf32>
    %181 = vector.shape_cast %180 : vector<1x90x1xf32> to vector<90x1xf32>
    %182 = vector.broadcast %181 : vector<90x1xf32> to vector<90x144xf32>
    %183 = arith.mulf %179, %182 : vector<90x144xf32>
    %184 = arith.truncf %183 : vector<90x144xf32> to vector<90x144xbf16>
    %c3_100 = arith.constant 3 : index
    %c0_101 = arith.constant 0 : index
    %c0_102 = arith.constant 0 : index
    %185 = vector.load %arg12[%c3_100, %c0_101, %c0_102] : memref<4x90x144xbf16, #tpu.memory_space<vmem>>, vector<1x90x144xbf16>
    %186 = vector.shape_cast %185 : vector<1x90x144xbf16> to vector<90x144xbf16>
    %187 = vector.shape_cast %184 : vector<90x144xbf16> to vector<1x90x144xbf16>
    tpu.vector_store %arg12[%c3_100, %c0_101, %c0_102], %187 {strides = array<i32>} : memref<4x90x144xbf16, #tpu.memory_space<vmem>>, vector<1x90x144xbf16>,
    %cst_103 = arith.constant 0.000000e+00 : f32
    %188 = vector.broadcast %cst_103 : f32 to vector<72x288xf32>
    %c0_104 = arith.constant 0 : index
    %c0_105 = arith.constant 0 : index
    %c0_106 = arith.constant 0 : index
    %189 = vector.load %arg12[%c0_104, %c0_105, %c0_106] : memref<4x90x144xbf16, #tpu.memory_space<vmem>>, vector<1x72x144xbf16>
    %190 = vector.shape_cast %189 : vector<1x72x144xbf16> to vector<72x144xbf16>
    %c0_107 = arith.constant 0 : index
    %c0_108 = arith.constant 0 : index
    %c0_109 = arith.constant 0 : index
    %191 = vector.load %arg7[%c0_107, %c0_108, %c0_109] : memref<9x144x288xbf16, #tpu.memory_space<vmem>>, vector<1x144x288xbf16>
    %192 = vector.shape_cast %191 : vector<1x144x288xbf16> to vector<144x288xbf16>
    %cst_110 = arith.constant dense<0.000000e+00> : vector<72x288xf32>
    %193 = tpu.matmul %190, %192, %cst_110 {dimension_numbers = #tpu.dot_dimension_numbers<[1], [0], [0], [1], [0, 0, 1, 1], [], []>} : vector<72x144xbf16>, vector<144x288xbf16>, vector<72x288xf32> -> vector<72x288xf32>
    %194 = arith.addf %188, %193 : vector<72x288xf32>
    %c1_111 = arith.constant 1 : index
    %c0_112 = arith.constant 0 : index
    %c0_113 = arith.constant 0 : index
    %195 = vector.load %arg12[%c1_111, %c0_112, %c0_113] : memref<4x90x144xbf16, #tpu.memory_space<vmem>>, vector<1x72x144xbf16>
    %196 = vector.shape_cast %195 : vector<1x72x144xbf16> to vector<72x144xbf16>
    %c1_114 = arith.constant 1 : index
    %c0_115 = arith.constant 0 : index
    %c0_116 = arith.constant 0 : index
    %197 = vector.load %arg7[%c1_114, %c0_115, %c0_116] : memref<9x144x288xbf16, #tpu.memory_space<vmem>>, vector<1x144x288xbf16>
    %198 = vector.shape_cast %197 : vector<1x144x288xbf16> to vector<144x288xbf16>
    %cst_117 = arith.constant dense<0.000000e+00> : vector<72x288xf32>
    %199 = tpu.matmul %196, %198, %cst_117 {dimension_numbers = #tpu.dot_dimension_numbers<[1], [0], [0], [1], [0, 0, 1, 1], [], []>} : vector<72x144xbf16>, vector<144x288xbf16>, vector<72x288xf32> -> vector<72x288xf32>
    %200 = arith.addf %194, %199 : vector<72x288xf32>
    %c0_118 = arith.constant 0 : index
    %c1_119 = arith.constant 1 : index
    %c0_120 = arith.constant 0 : index
    %201 = vector.load %arg12[%c0_118, %c1_119, %c0_120] : memref<4x90x144xbf16, #tpu.memory_space<vmem>>, vector<1x72x144xbf16>
    %202 = vector.shape_cast %201 : vector<1x72x144xbf16> to vector<72x144xbf16>
    %c2_121 = arith.constant 2 : index
    %c0_122 = arith.constant 0 : index
    %c0_123 = arith.constant 0 : index
    %203 = vector.load %arg7[%c2_121, %c0_122, %c0_123] : memref<9x144x288xbf16, #tpu.memory_space<vmem>>, vector<1x144x288xbf16>
    %204 = vector.shape_cast %203 : vector<1x144x288xbf16> to vector<144x288xbf16>
    %cst_124 = arith.constant dense<0.000000e+00> : vector<72x288xf32>
    %205 = tpu.matmul %202, %204, %cst_124 {dimension_numbers = #tpu.dot_dimension_numbers<[1], [0], [0], [1], [0, 0, 1, 1], [], []>} : vector<72x144xbf16>, vector<144x288xbf16>, vector<72x288xf32> -> vector<72x288xf32>
    %206 = arith.addf %200, %205 : vector<72x288xf32>
    %c2_125 = arith.constant 2 : index
    %c0_126 = arith.constant 0 : index
    %c0_127 = arith.constant 0 : index
    %207 = vector.load %arg12[%c2_125, %c0_126, %c0_127] : memref<4x90x144xbf16, #tpu.memory_space<vmem>>, vector<1x72x144xbf16>
    %208 = vector.shape_cast %207 : vector<1x72x144xbf16> to vector<72x144xbf16>
    %c3_128 = arith.constant 3 : index
    %c0_129 = arith.constant 0 : index
    %c0_130 = arith.constant 0 : index
    %209 = vector.load %arg7[%c3_128, %c0_129, %c0_130] : memref<9x144x288xbf16, #tpu.memory_space<vmem>>, vector<1x144x288xbf16>
    %210 = vector.shape_cast %209 : vector<1x144x288xbf16> to vector<144x288xbf16>
    %cst_131 = arith.constant dense<0.000000e+00> : vector<72x288xf32>
    %211 = tpu.matmul %208, %210, %cst_131 {dimension_numbers = #tpu.dot_dimension_numbers<[1], [0], [0], [1], [0, 0, 1, 1], [], []>} : vector<72x144xbf16>, vector<144x288xbf16>, vector<72x288xf32> -> vector<72x288xf32>
    %212 = arith.addf %206, %211 : vector<72x288xf32>
    %c3_132 = arith.constant 3 : index
    %c0_133 = arith.constant 0 : index
    %c0_134 = arith.constant 0 : index
    %213 = vector.load %arg12[%c3_132, %c0_133, %c0_134] : memref<4x90x144xbf16, #tpu.memory_space<vmem>>, vector<1x72x144xbf16>
    %214 = vector.shape_cast %213 : vector<1x72x144xbf16> to vector<72x144xbf16>
    %c4 = arith.constant 4 : index
    %c0_135 = arith.constant 0 : index
    %c0_136 = arith.constant 0 : index
    %215 = vector.load %arg7[%c4, %c0_135, %c0_136] : memref<9x144x288xbf16, #tpu.memory_space<vmem>>, vector<1x144x288xbf16>
    %216 = vector.shape_cast %215 : vector<1x144x288xbf16> to vector<144x288xbf16>
    %cst_137 = arith.constant dense<0.000000e+00> : vector<72x288xf32>
    %217 = tpu.matmul %214, %216, %cst_137 {dimension_numbers = #tpu.dot_dimension_numbers<[1], [0], [0], [1], [0, 0, 1, 1], [], []>} : vector<72x144xbf16>, vector<144x288xbf16>, vector<72x288xf32> -> vector<72x288xf32>
    %218 = arith.addf %212, %217 : vector<72x288xf32>
    %c2_138 = arith.constant 2 : index
    %c1_139 = arith.constant 1 : index
    %c0_140 = arith.constant 0 : index
    %219 = vector.load %arg12[%c2_138, %c1_139, %c0_140] : memref<4x90x144xbf16, #tpu.memory_space<vmem>>, vector<1x72x144xbf16>
    %220 = vector.shape_cast %219 : vector<1x72x144xbf16> to vector<72x144xbf16>
    %c5 = arith.constant 5 : index
    %c0_141 = arith.constant 0 : index
    %c0_142 = arith.constant 0 : index
    %221 = vector.load %arg7[%c5, %c0_141, %c0_142] : memref<9x144x288xbf16, #tpu.memory_space<vmem>>, vector<1x144x288xbf16>
    %222 = vector.shape_cast %221 : vector<1x144x288xbf16> to vector<144x288xbf16>
    %cst_143 = arith.constant dense<0.000000e+00> : vector<72x288xf32>
    %223 = tpu.matmul %220, %222, %cst_143 {dimension_numbers = #tpu.dot_dimension_numbers<[1], [0], [0], [1], [0, 0, 1, 1], [], []>} : vector<72x144xbf16>, vector<144x288xbf16>, vector<72x288xf32> -> vector<72x288xf32>
    %224 = arith.addf %218, %223 : vector<72x288xf32>
    %c0_144 = arith.constant 0 : index
    %c9 = arith.constant 9 : index
    %c0_145 = arith.constant 0 : index
    %225 = vector.load %arg12[%c0_144, %c9, %c0_145] : memref<4x90x144xbf16, #tpu.memory_space<vmem>>, vector<1x72x144xbf16>
    %226 = vector.shape_cast %225 : vector<1x72x144xbf16> to vector<72x144xbf16>
    %c6 = arith.constant 6 : index
    %c0_146 = arith.constant 0 : index
    %c0_147 = arith.constant 0 : index
    %227 = vector.load %arg7[%c6, %c0_146, %c0_147] : memref<9x144x288xbf16, #tpu.memory_space<vmem>>, vector<1x144x288xbf16>
    %228 = vector.shape_cast %227 : vector<1x144x288xbf16> to vector<144x288xbf16>
    %cst_148 = arith.constant dense<0.000000e+00> : vector<72x288xf32>
    %229 = tpu.matmul %226, %228, %cst_148 {dimension_numbers = #tpu.dot_dimension_numbers<[1], [0], [0], [1], [0, 0, 1, 1], [], []>} : vector<72x144xbf16>, vector<144x288xbf16>, vector<72x288xf32> -> vector<72x288xf32>
    %230 = arith.addf %224, %229 : vector<72x288xf32>
    %c1_149 = arith.constant 1 : index
    %c9_150 = arith.constant 9 : index
    %c0_151 = arith.constant 0 : index
    %231 = vector.load %arg12[%c1_149, %c9_150, %c0_151] : memref<4x90x144xbf16, #tpu.memory_space<vmem>>, vector<1x72x144xbf16>
    %232 = vector.shape_cast %231 : vector<1x72x144xbf16> to vector<72x144xbf16>
    %c7 = arith.constant 7 : index
    %c0_152 = arith.constant 0 : index
    %c0_153 = arith.constant 0 : index
    %233 = vector.load %arg7[%c7, %c0_152, %c0_153] : memref<9x144x288xbf16, #tpu.memory_space<vmem>>, vector<1x144x288xbf16>
    %234 = vector.shape_cast %233 : vector<1x144x288xbf16> to vector<144x288xbf16>
    %cst_154 = arith.constant dense<0.000000e+00> : vector<72x288xf32>
    %235 = tpu.matmul %232, %234, %cst_154 {dimension_numbers = #tpu.dot_dimension_numbers<[1], [0], [0], [1], [0, 0, 1, 1], [], []>} : vector<72x144xbf16>, vector<144x288xbf16>, vector<72x288xf32> -> vector<72x288xf32>
    %236 = arith.addf %230, %235 : vector<72x288xf32>
    %c0_155 = arith.constant 0 : index
    %c10 = arith.constant 10 : index
    %c0_156 = arith.constant 0 : index
    %237 = vector.load %arg12[%c0_155, %c10, %c0_156] : memref<4x90x144xbf16, #tpu.memory_space<vmem>>, vector<1x72x144xbf16>
    %238 = vector.shape_cast %237 : vector<1x72x144xbf16> to vector<72x144xbf16>
    %c8 = arith.constant 8 : index
    %c0_157 = arith.constant 0 : index
    %c0_158 = arith.constant 0 : index
    %239 = vector.load %arg7[%c8, %c0_157, %c0_158] : memref<9x144x288xbf16, #tpu.memory_space<vmem>>, vector<1x144x288xbf16>
    %240 = vector.shape_cast %239 : vector<1x144x288xbf16> to vector<144x288xbf16>
    %cst_159 = arith.constant dense<0.000000e+00> : vector<72x288xf32>
    %241 = tpu.matmul %238, %240, %cst_159 {dimension_numbers = #tpu.dot_dimension_numbers<[1], [0], [0], [1], [0, 0, 1, 1], [], []>} : vector<72x144xbf16>, vector<144x288xbf16>, vector<72x288xf32> -> vector<72x288xf32>
    %242 = arith.addf %236, %241 : vector<72x288xf32>
    %c0_160 = arith.constant 0 : index
    %c0_161 = arith.constant 0 : index
    %243 = vector.load %arg8[%c0_160, %c0_161] : memref<1x288xf32, #tpu.memory_space<vmem>>, vector<1x288xf32>
    %244 = vector.broadcast %243 : vector<1x288xf32> to vector<72x288xf32>
    %245 = arith.addf %242, %244 : vector<72x288xf32>
    %c0_162 = arith.constant 0 : index
    %c0_163 = arith.constant 0 : index
    %246 = vector.load %arg9[%c0_162, %c0_163] : memref<1x288xf32, #tpu.memory_space<vmem>>, vector<1x288xf32>
    %c0_164 = arith.constant 0 : index
    %c0_165 = arith.constant 0 : index
    %247 = vector.load %arg10[%c0_164, %c0_165] : memref<1x288xf32, #tpu.memory_space<vmem>>, vector<1x288xf32>
    %cst_166 = arith.constant dense<0.000000e+00> : vector<72xf32>
    %248 = vector.multi_reduction <add>, %245, %cst_166 [1] : vector<72x288xf32> to vector<72xf32>
    %249 = vector.shape_cast %248 : vector<72xf32> to vector<72x1xf32>
    %cst_167 = arith.constant 2.880000e+02 : f32
    %250 = vector.broadcast %cst_167 : f32 to vector<72x1xf32>
    %251 = arith.divf %249, %250 : vector<72x1xf32>
    %252 = vector.broadcast %251 : vector<72x1xf32> to vector<72x288xf32>
    %253 = arith.subf %245, %252 : vector<72x288xf32>
    %254 = arith.mulf %253, %253 : vector<72x288xf32>
    %cst_168 = arith.constant dense<0.000000e+00> : vector<72xf32>
    %255 = vector.multi_reduction <add>, %254, %cst_168 [1] : vector<72x288xf32> to vector<72xf32>
    %256 = vector.shape_cast %255 : vector<72xf32> to vector<72x1xf32>
    %cst_169 = arith.constant 2.880000e+02 : f32
    %257 = vector.broadcast %cst_169 : f32 to vector<72x1xf32>
    %258 = arith.divf %256, %257 : vector<72x1xf32>
    %259 = vector.broadcast %251 : vector<72x1xf32> to vector<72x288xf32>
    %260 = arith.subf %245, %259 : vector<72x288xf32>
    %cst_170 = arith.constant 9.99999997E-7 : f32
    %261 = vector.broadcast %cst_170 : f32 to vector<72x1xf32>
    %262 = arith.addf %258, %261 : vector<72x1xf32>
    %263 = math.rsqrt %262 : vector<72x1xf32>
    %264 = vector.broadcast %263 : vector<72x1xf32> to vector<72x288xf32>
    %265 = arith.mulf %260, %264 : vector<72x288xf32>
    %266 = vector.broadcast %246 : vector<1x288xf32> to vector<72x288xf32>
    %267 = arith.mulf %265, %266 : vector<72x288xf32>
    %268 = vector.broadcast %247 : vector<1x288xf32> to vector<72x288xf32>
    %269 = arith.addf %267, %268 : vector<72x288xf32>
    %c0_171 = arith.constant 0 : index
    %c0_172 = arith.constant 0 : index
    %c0_173 = arith.constant 0 : index
    %270 = vector.load %arg11[%c0_171, %c0_172, %c0_173] : memref<1x72x288xf32, #tpu.memory_space<vmem>>, vector<1x72x288xf32>
    %271 = vector.shape_cast %270 : vector<1x72x288xf32> to vector<72x288xf32>
    %272 = vector.shape_cast %269 : vector<72x288xf32> to vector<1x72x288xf32>
    tpu.vector_store %arg11[%c0_171, %c0_172, %c0_173], %272 {strides = array<i32>} : memref<1x72x288xf32, #tpu.memory_space<vmem>>, vector<1x72x288xf32>,
    return
  }
  func.func @transform_0(%arg0: i32) -> (i32, i32, i32, i32) {
    %c0_i32 = arith.constant 0 : i32
    %c0_i32_0 = arith.constant 0 : i32
    %c0_i32_1 = arith.constant 0 : i32
    %c0_i32_2 = arith.constant 0 : i32
    return %arg0, %c0_i32, %c0_i32_0, %c0_i32_1 : i32, i32, i32, i32
  }
  func.func @transform_1(%arg0: i32) -> (i32, i32, i32) {
    %c0_i32 = arith.constant 0 : i32
    %c0_i32_0 = arith.constant 0 : i32
    %c0_i32_1 = arith.constant 0 : i32
    %c0_i32_2 = arith.constant 0 : i32
    return %c0_i32, %c0_i32_0, %c0_i32_1 : i32, i32, i32
  }
  func.func @transform_2(%arg0: i32) -> (i32, i32) {
    %c0_i32 = arith.constant 0 : i32
    %c0_i32_0 = arith.constant 0 : i32
    %c0_i32_1 = arith.constant 0 : i32
    return %c0_i32, %c0_i32_0 : i32, i32
  }
  func.func @transform_3(%arg0: i32) -> (i32, i32) {
    %c0_i32 = arith.constant 0 : i32
    %c0_i32_0 = arith.constant 0 : i32
    %c0_i32_1 = arith.constant 0 : i32
    return %c0_i32, %c0_i32_0 : i32, i32
  }
  func.func @transform_4(%arg0: i32) -> (i32, i32) {
    %c0_i32 = arith.constant 0 : i32
    %c0_i32_0 = arith.constant 0 : i32
    %c0_i32_1 = arith.constant 0 : i32
    return %c0_i32, %c0_i32_0 : i32, i32
  }
  func.func @transform_5(%arg0: i32) -> (i32, i32) {
    %c0_i32 = arith.constant 0 : i32
    %c0_i32_0 = arith.constant 0 : i32
    %c0_i32_1 = arith.constant 0 : i32
    return %c0_i32, %c0_i32_0 : i32, i32
  }
  func.func @transform_6(%arg0: i32) -> (i32, i32, i32) {
    %c0_i32 = arith.constant 0 : i32
    %c0_i32_0 = arith.constant 0 : i32
    %c0_i32_1 = arith.constant 0 : i32
    %c0_i32_2 = arith.constant 0 : i32
    return %c0_i32, %c0_i32_0, %c0_i32_1 : i32, i32, i32
  }
  func.func @transform_7(%arg0: i32) -> (i32, i32) {
    %c0_i32 = arith.constant 0 : i32
    %c0_i32_0 = arith.constant 0 : i32
    %c0_i32_1 = arith.constant 0 : i32
    return %c0_i32, %c0_i32_0 : i32, i32
  }
  func.func @transform_8(%arg0: i32) -> (i32, i32) {
    %c0_i32 = arith.constant 0 : i32
    %c0_i32_0 = arith.constant 0 : i32
    %c0_i32_1 = arith.constant 0 : i32
    return %c0_i32, %c0_i32_0 : i32, i32
  }
  func.func @transform_9(%arg0: i32) -> (i32, i32) {
    %c0_i32 = arith.constant 0 : i32
    %c0_i32_0 = arith.constant 0 : i32
    %c0_i32_1 = arith.constant 0 : i32
    return %c0_i32, %c0_i32_0 : i32, i32
  }
  func.func @transform_10(%arg0: i32) -> (i32, i32, i32) {
    %c0_i32 = arith.constant 0 : i32
    %c0_i32_0 = arith.constant 0 : i32
    %c0_i32_1 = arith.constant 0 : i32
    return %arg0, %c0_i32, %c0_i32_0 : i32, i32, i32
  }
}

</mosaic_0001>

<bundles_post_ra>
// kernel: tpu_custom_call.1
= control target key start
LH: loop header
LB: loop body
LE: loop exit
PB: predicated region body
PF: predicated region fallthrough
CT: control target
= control target key end

     0   :  { %s13852_s0 = inlined_call_operand.hbm [shape: bf16[2,4,90,27], index: 0, kind: input, shape index: {}]   ;;  %s13853_s1 = inlined_call_operand.hbm [shape: f32[4,90,1], index: 1, kind: input, shape index: {}]   ;;  %s13854_s2 = inlined_call_operand.hbm [shape: bf16[27,144], index: 2, kind: input, shape index: {}]   ;;  %s13855_s3 = inlined_call_operand.hbm [shape: f32[1,144], index: 3, kind: input, shape index: {}]   ;;  %s13856_s4 = inlined_call_operand.hbm [shape: f32[1,144], index: 4, kind: input, shape index: {}]   ;;  %s13857_s5 = inlined_call_operand.hbm [shape: f32[1,144], index: 5, kind: input, shape index: {}]   ;;  %s13858_s6 = inlined_call_operand.hbm [shape: bf16[9,144,288], index: 6, kind: input, shape index: {}]   ;;  %s13859_s7 = inlined_call_operand.hbm [shape: f32[1,288], index: 7, kind: input, shape index: {}]   ;;  %s13860_s8 = inlined_call_operand.hbm [shape: f32[1,288], index: 8, kind: input, shape index: {}]   ;;  %s13861_s9 = inlined_call_operand.hbm [shape: f32[1,288], index: 9, kind: input, shape index: {}]   ;;  %s13862_s10 = inlined_call_operand.hbm [shape: f32[2,72,288], index: 10, kind: output, shape index: {}]  }
   0x1   :  { %14045 = sst [smem:[#allocation122_spill]] %s13853_s1 }
   0x2   :  { %14046 = sst [smem:[#allocation123_spill]] %s13854_s2 }
   0x3   :  { %14047 = sst [smem:[#allocation124_spill]] %s13862_s10 }
   0x4   :  { %15 = vsyncpa [#allocation4], 0 }
   0x5   :  { %17 = vsyncpa [#allocation4 + $0x1], 0 }
   0x6   :  { %18 = vsyncpa [#allocation7], 0 }
   0x7   :  { %19 = vsyncpa [#allocation10], 0 }
   0x8   :  { %20 = vsyncpa [#allocation13], 0 }
   0x9   :  { %21 = vsyncpa [#allocation16], 0 }
   0xa   :  { %22 = vsyncpa [#allocation19], 0 }
   0xb   :  { %23 = vsyncpa [#allocation5], 0 }
   0xc   :  { %25 = vsyncpa [#allocation5 + $0x1], 0  ;;  %s10426_s13 = smov 0   ;;  %s10428_s14 = smov 0  }
   0xd   :  { %s10430_s15 = smov 0   ;;  %s10432_s16 = smov 0  }
   0xe LB: > { %s10350_s17 = smov [#allocation6]   ;;  %s10447_s19 = sadd.s32 4294967295, %s10348_s16   ;;  %s10348_s16 = sphi %s10432_s16, %s14414_s16   ;;  %s10344_s15 = sphi %s10430_s15, %s14413_s15   ;;  %s10340_s14 = sphi %s10428_s14, %s14412_s14   ;;  %s10336_s13 = sphi %s10426_s13, %s14411_s13  }
   0xf   : > { %s289_s18 = sshll.u32 %s10350_s17, 4  ;;  %p8292_p0 = scmp.ge.s32.totalorder %s10348_s16, 1  ;;  %s10452_s18 = int_to_ptr.vmem [resolvable:$true] %s289_s18 }
  0x10   : > { %p13866_p1 = scmp.eq.s32.totalorder %s10447_s19, 0  ;;  %p277_p2 = scmp.lt.s32.totalorder %s10348_s16, 3 }
  0x11   : > { %s10351_s21 = smov [#allocation9]   ;;  %s10352_s24 = smov [#allocation12]  }
  0x12   : > { %p10454_p3 = pnand %p8292_p0, %p277_p2  ;;  %s316_s22 = sshll.u32 %s10351_s21, 4  ;;  %s10467_s22 = int_to_ptr.vmem [resolvable:$true] %s316_s22 }
  0x13   : > { %s338_s25 = sshll.u32 %s10352_s24, 4  ;;  %s14051_s1 = sld [smem:[#allocation122_spill]]  ;;  %s10469_s25 = int_to_ptr.vmem [resolvable:$true] %s338_s25 }
  0x14   : > { %s14048_s20 = scalar_select %p10454_p3, 1, 0 }
  0x15   : > { %p9101_p5 = pneg %p10454_p3 }
  0x16   : > { %14049 = sst [smem:[#allocation28_spill]] %s14048_s20 }
  0x17   : > { %p10463_p6 = pnand %p9101_p5, %p13866_p1 }
  0x19   : > { %s9980_s28 = scalar_lea.hbm %s14051_s1, 6144  ;;  %p10479_p8 = pneg %p10463_p6 }
  0x1a   : > { %p9981_p7 = scmp.ne.s32.totalorder %s14051_s1, %s9980_s28  ;;  %p9987_p11 = scmp.lt.u32.totalorder %s9980_s28, %s14051_s1 }
  0x1c   : > { %p9983_p9 = pnand %p10479_p8, %p9981_p7 }
  0x1e   : > { %p9984_p10 = pneg %p9983_p9 }
  0x20   : > { %p9989_p12 = pnand %p9987_p11, %p9984_p10 }
  0x22   : > { %9992 = shalt.err (!%p9989_p12)
}
  0x23   : > { %s9993_s21 = scalar_lea.vmem %s10452_s18, 6144  ;;  %p10001_p5 = scmp.lt.s32.totalorder %s10452_s18, %s10452_s18 }
  0x24   : > { %p9994_p13 = scmp.ne.s32.totalorder %s10452_s18, %s9993_s21  ;;  %p10002_p4 = scmp.lt.s32.totalorder %s9993_s21, %s9993_s21 }
  0x26   : > { %p9996_p0 = pnand %p9994_p13, %p10479_p8  ;;  %p10003_p7 = por %p10002_p4, %p10001_p5 }
  0x28   : > { %p9997_p2 = pneg %p9996_p0 }
  0x2a   : > { %p10004_p9 = pnand %p10003_p7, %p9997_p2 }
  0x2c   : > { %10007 = shalt.err (!%p10004_p9)
}
  0x2d   : > { %s13865_s24 = smov 128   ;;  %s10354_s26 = smov 8  }
  0x2e   : > { %9104 = dma.hbm_to_vmem [thread:$0]  (!%p10463_p6), %s14051_s1, 6144, %s10452_s18, [#allocation7], %s13865_s24, %s13865_s24, %s10354_s26  }
  0x2f   : > { %s10008_s12 = scalar_lea.hbm %s13855_s3, 32 }
  0x30   : > { %p10009_p4 = scmp.ne.s32.totalorder %s13855_s3, %s10008_s12  ;;  %p10015_p12 = scmp.lt.u32.totalorder %s10008_s12, %s13855_s3 }
  0x32   : > { %p10011_p10 = pnand %p10009_p4, %p10479_p8 }
  0x34   : > { %p10012_p11 = pneg %p10011_p10 }
  0x36   : > { %p10017_p13 = pnand %p10015_p12, %p10012_p11 }
  0x38   : > { %10020 = shalt.err (!%p10017_p13)
}
  0x39   : > { %s10021_s18 = scalar_lea.vmem %s10467_s22, 32  ;;  %p10029_p7 = scmp.lt.s32.totalorder %s10467_s22, %s10467_s22 }
  0x3a   : > { %p10022_p0 = scmp.ne.s32.totalorder %s10467_s22, %s10021_s18  ;;  %p10030_p9 = scmp.lt.s32.totalorder %s10021_s18, %s10021_s18 }
  0x3c   : > { %p10024_p2 = pnand %p10022_p0, %p10479_p8  ;;  %p10031_p4 = por %p10030_p9, %p10029_p7 }
  0x3e   : > { %p10025_p5 = pneg %p10024_p2 }
  0x40   : > { %p10032_p10 = pnand %p10031_p4, %p10025_p5 }
  0x42   : > { %10035 = shalt.err (!%p10032_p10)
}
  0x43   : > { %9110 = dma.hbm_to_vmem [thread:$0]  (!%p10463_p6), %s13855_s3, 32, %s10467_s22, [#allocation10]  }
  0x44   : > { %s10036_s29 = scalar_lea.hbm %s13857_s5, 32 }
  0x45   : > { %p10037_p11 = scmp.ne.s32.totalorder %s13857_s5, %s10036_s29  ;;  %p10043_p0 = scmp.lt.u32.totalorder %s10036_s29, %s13857_s5 }
  0x47   : > { %p10039_p12 = pnand %p10037_p11, %p10479_p8 }
  0x49   : > { %p10040_p13 = pneg %p10039_p12 }
  0x4b   : > { %p10045_p2 = pnand %p10043_p0, %p10040_p13 }
  0x4d   : > { %10048 = shalt.err (!%p10045_p2)
}
  0x4e   : > { %s10049_s22 = scalar_lea.vmem %s10469_s25, 32  ;;  %p10057_p4 = scmp.lt.s32.totalorder %s10469_s25, %s10469_s25 }
  0x4f   : > { %p10050_p5 = scmp.ne.s32.totalorder %s10469_s25, %s10049_s22  ;;  %p10058_p10 = scmp.lt.s32.totalorder %s10049_s22, %s10049_s22 }
  0x51   : > { %p10052_p7 = pnand %p10050_p5, %p10479_p8  ;;  %p10059_p11 = por %p10058_p10, %p10057_p4 }
  0x53   : > { %p10053_p9 = pneg %p10052_p7 }
  0x55   : > { %p10060_p12 = pnand %p10059_p11, %p10053_p9 }
  0x57   : > { %10063 = shalt.err (!%p10060_p12)
}
  0x58   : > { %9116 = dma.hbm_to_vmem [thread:$0]  (!%p10463_p6), %s13857_s5, 32, %s10469_s25, [#allocation13]  }
  0x59   : > { %s10355_s20 = smov [#allocation15]   ;;  %s10356_s28 = smov [#allocation8]  }
  0x5a   : > { %s362_s27 = sshll.u32 %s10355_s20, 4  ;;  %s302_s29 = sshll.u32 %s10356_s28, 4  ;;  %s363_s27 = int_to_ptr.vmem [resolvable:$true] %s362_s27  ;;  %s303_s29 = int_to_ptr.vmem [resolvable:$true] %s302_s29 }
  0x5b   : > { %s10064_s17 = scalar_lea.hbm %s13859_s7, 48 }
  0x5c   : > { %p10065_p13 = scmp.ne.s32.totalorder %s13859_s7, %s10064_s17  ;;  %p10071_p5 = scmp.lt.u32.totalorder %s10064_s17, %s13859_s7 }
  0x5e   : > { %p10067_p0 = pnand %p10065_p13, %p10479_p8 }
  0x60   : > { %p10068_p2 = pneg %p10067_p0 }
  0x62   : > { %p10073_p7 = pnand %p10071_p5, %p10068_p2 }
  0x64   : > { %10076 = shalt.err (!%p10073_p7)
}
  0x65   : > { %s10077_s25 = scalar_lea.vmem %s363_s27, 48  ;;  %s10084_s10 = scalar_lea.vmem %s363_s27, 64 }
  0x66   : > { %p10078_p9 = scmp.ne.s32.totalorder %s363_s27, %s10077_s25  ;;  %p10085_p11 = scmp.lt.s32.totalorder %s363_s27, %s363_s27 }
  0x67   : > { %p10086_p12 = scmp.lt.s32.totalorder %s10084_s10, %s10077_s25 }
  0x68   : > { %p10080_p4 = pnand %p10078_p9, %p10479_p8 }
  0x69   : > { %p10087_p1 = por %p10086_p12, %p10085_p11 }
  0x6a   : > { %p10081_p10 = pneg %p10080_p4 }
  0x6c   : > { %p10088_p3 = pnand %p10087_p1, %p10081_p10 }
  0x6e   : > { %10091 = shalt.err (!%p10088_p3)
}
  0x6f   : > { %9122 = dma.hbm_to_vmem [thread:$0]  (!%p10463_p6), %s13859_s7, 48, %s363_s27, [#allocation16]  }
  0x70   : > { %s14053_s2 = sld [smem:[#allocation123_spill]] }
  0x76   : > { %s10092_s12 = scalar_lea.hbm %s14053_s2, 512 }
  0x77   : > { %p10093_p13 = scmp.ne.s32.totalorder %s14053_s2, %s10092_s12  ;;  %p10099_p3 = scmp.lt.u32.totalorder %s10092_s12, %s14053_s2 }
  0x79   : > { %p10095_p0 = pnand %p10093_p13, %p10479_p8 }
  0x7b   : > { %p10096_p1 = pneg %p10095_p0 }
  0x7d   : > { %p10101_p2 = pnand %p10099_p3, %p10096_p1 }
  0x7f   : > { %10104 = shalt.err (!%p10101_p2)
}
  0x80   : > { %s10105_s25 = scalar_lea.vmem %s303_s29, 512  ;;  %p10113_p4 = scmp.lt.s32.totalorder %s303_s29, %s303_s29 }
  0x81   : > { %p10106_p5 = scmp.ne.s32.totalorder %s303_s29, %s10105_s25  ;;  %p10114_p10 = scmp.lt.s32.totalorder %s10105_s25, %s10105_s25 }
  0x83   : > { %p10108_p7 = pnand %p10106_p5, %p10479_p8  ;;  %p10115_p11 = por %p10114_p10, %p10113_p4 }
  0x85   : > { %p10109_p9 = pneg %p10108_p7 }
  0x87   : > { %p10116_p12 = pnand %p10115_p11, %p10109_p9 }
  0x89   : > { %10119 = shalt.err (!%p10116_p12)
}
  0x8a   : > { %s14054_s27 = smov 128   ;;  %s10357_s28 = smov [#allocation11]  }
  0x8b   : > { %9107 = dma.hbm_to_vmem [thread:$0]  (!%p10463_p6), %s14053_s2, 512, %s303_s29, [#allocation7], %s14054_s27, %s14054_s27, %s10354_s26  }
  0x8c   : > { %s327_s24 = sshll.u32 %s10357_s28, 4  ;;  %s10358_s30 = smov [#allocation14]   ;;  %s328_s24 = int_to_ptr.vmem [resolvable:$true] %s327_s24 }
  0x8d   : > { %s348_s12 = sshll.u32 %s10358_s30, 4  ;;  %s10120_s22 = scalar_lea.hbm %s13856_s4, 32  ;;  %s349_s12 = int_to_ptr.vmem [resolvable:$true] %s348_s12 }
  0x8e   : > { %p10121_p13 = scmp.ne.s32.totalorder %s13856_s4, %s10120_s22  ;;  %p10127_p3 = scmp.lt.u32.totalorder %s10120_s22, %s13856_s4 }
  0x90   : > { %p10123_p0 = pnand %p10121_p13, %p10479_p8 }
  0x92   : > { %p10124_p1 = pneg %p10123_p0 }
  0x94   : > { %p10129_p2 = pnand %p10127_p3, %p10124_p1 }
  0x96   : > { %10132 = shalt.err (!%p10129_p2)
}
  0x97   : > { %s10133_s26 = scalar_lea.vmem %s328_s24, 32  ;;  %p10141_p4 = scmp.lt.s32.totalorder %s328_s24, %s328_s24 }
  0x98   : > { %p10134_p5 = scmp.ne.s32.totalorder %s328_s24, %s10133_s26  ;;  %p10142_p10 = scmp.lt.s32.totalorder %s10133_s26, %s10133_s26 }
  0x9a   : > { %p10136_p7 = pnand %p10134_p5, %p10479_p8  ;;  %p10143_p11 = por %p10142_p10, %p10141_p4 }
  0x9c   : > { %p10137_p9 = pneg %p10136_p7 }
  0x9e   : > { %p10144_p12 = pnand %p10143_p11, %p10137_p9 }
  0xa0   : > { %10147 = shalt.err (!%p10144_p12)
}
  0xa1   : > { %9113 = dma.hbm_to_vmem [thread:$0]  (!%p10463_p6), %s13856_s4, 32, %s328_s24, [#allocation10]  }
  0xa2   : > { %s10148_s28 = scalar_lea.hbm %s13858_s6, 31104 }
  0xa3   : > { %p10149_p13 = scmp.ne.s32.totalorder %s13858_s6, %s10148_s28  ;;  %p10155_p3 = scmp.lt.u32.totalorder %s10148_s28, %s13858_s6 }
  0xa5   : > { %p10151_p0 = pnand %p10149_p13, %p10479_p8 }
  0xa7   : > { %p10152_p1 = pneg %p10151_p0 }
  0xa9   : > { %p10157_p2 = pnand %p10155_p3, %p10152_p1 }
  0xab   : > { %10160 = shalt.err (!%p10157_p2)
}
  0xac   : > { %s10161_s18 = scalar_lea.vmem %s349_s12, 31104  ;;  %p10169_p4 = scmp.lt.s32.totalorder %s349_s12, %s349_s12 }
  0xad   : > { %p10162_p5 = scmp.ne.s32.totalorder %s349_s12, %s10161_s18  ;;  %p10170_p10 = scmp.lt.s32.totalorder %s10161_s18, %s10161_s18 }
  0xaf   : > { %p10164_p7 = pnand %p10162_p5, %p10479_p8  ;;  %p10171_p11 = por %p10170_p10, %p10169_p4 }
  0xb1   : > { %p10165_p9 = pneg %p10164_p7 }
  0xb3   : > { %p10172_p12 = pnand %p10171_p11, %p10165_p9 }
  0xb5   : > { %10175 = shalt.err (!%p10172_p12)
}
  0xb6   : > { %s10359_s24 = smov 192   ;;  %s10360_s25 = smov 12  }
  0xb7   : > { %9119 = dma.hbm_to_vmem [thread:$0]  (!%p10463_p6), %s13858_s6, 31104, %s349_s12, [#allocation13], %s10359_s24, %s10359_s24, %s10360_s25  }
  0xb8   : > { %s10361_s29 = smov [#allocation17]   ;;  %s10362_s1 = smov [#allocation18]  }
  0xb9   : > { %s373_s27 = sshll.u32 %s10361_s29, 4  ;;  %s384_s20 = sshll.u32 %s10362_s1, 4  ;;  %s374_s27 = int_to_ptr.vmem [resolvable:$true] %s373_s27  ;;  %s385_s20 = int_to_ptr.vmem [resolvable:$true] %s384_s20 }
  0xba   : > { %s10176_s17 = scalar_lea.hbm %s13860_s8, 48 }
  0xbb   : > { %p10177_p13 = scmp.ne.s32.totalorder %s13860_s8, %s10176_s17  ;;  %p10183_p3 = scmp.lt.u32.totalorder %s10176_s17, %s13860_s8 }
  0xbd   : > { %p10179_p0 = pnand %p10177_p13, %p10479_p8 }
  0xbf   : > { %p10180_p1 = pneg %p10179_p0 }
  0xc1   : > { %p10185_p2 = pnand %p10183_p3, %p10180_p1 }
  0xc3   : > { %10188 = shalt.err (!%p10185_p2)
}
  0xc4   : > { %s10189_s12 = scalar_lea.vmem %s374_s27, 48  ;;  %s10196_s24 = scalar_lea.vmem %s374_s27, 64 }
  0xc5   : > { %p10190_p5 = scmp.ne.s32.totalorder %s374_s27, %s10189_s12  ;;  %p10197_p4 = scmp.lt.s32.totalorder %s374_s27, %s374_s27 }
  0xc6   : > { %p10198_p10 = scmp.lt.s32.totalorder %s10196_s24, %s10189_s12 }
  0xc7   : > { %p10192_p7 = pnand %p10190_p5, %p10479_p8 }
  0xc8   : > { %p10199_p11 = por %p10198_p10, %p10197_p4 }
  0xc9   : > { %p10193_p9 = pneg %p10192_p7 }
  0xcb   : > { %p10200_p12 = pnand %p10199_p11, %p10193_p9 }
  0xcd   : > { %10203 = shalt.err (!%p10200_p12)
}
  0xce   : > { %9125 = dma.hbm_to_vmem [thread:$0]  (!%p10463_p6), %s13860_s8, 48, %s374_s27, [#allocation16]  }
  0xcf   : > { %s10204_s29 = scalar_lea.hbm %s13861_s9, 48 }
  0xd0   : > { %p10205_p13 = scmp.ne.s32.totalorder %s13861_s9, %s10204_s29  ;;  %p10211_p3 = scmp.lt.u32.totalorder %s10204_s29, %s13861_s9 }
  0xd2   : > { %p10207_p0 = pnand %p10205_p13, %p10479_p8 }
  0xd4   : > { %p10208_p1 = pneg %p10207_p0 }
  0xd6   : > { %p10213_p2 = pnand %p10211_p3, %p10208_p1 }
  0xd8   : > { %10216 = shalt.err (!%p10213_p2)
}
  0xd9   : > { %s10217_s21 = scalar_lea.vmem %s385_s20, 48  ;;  %s10224_s27 = scalar_lea.vmem %s385_s20, 64 }
  0xda   : > { %p10218_p5 = scmp.ne.s32.totalorder %s385_s20, %s10217_s21  ;;  %p10225_p4 = scmp.lt.s32.totalorder %s385_s20, %s385_s20 }
  0xdb   : > { %p10226_p10 = scmp.lt.s32.totalorder %s10224_s27, %s10217_s21 }
  0xdc   : > { %p10220_p7 = pnand %p10218_p5, %p10479_p8 }
  0xdd   : > { %p10227_p11 = por %p10226_p10, %p10225_p4 }
  0xde   : > { %p10221_p9 = pneg %p10220_p7 }
  0xe0   : > { %p10228_p12 = pnand %p10227_p11, %p10221_p9 }
  0xe2   : > { %10231 = shalt.err (!%p10228_p12)
}
  0xe3   : > { %9128 = dma.hbm_to_vmem [thread:$0]  (!%p10463_p6), %s13861_s9, 48, %s385_s20, [#allocation19]  }
  0xe4   : > { %s8291_s11 = sadd.s32 4294967294, %s10348_s16   ;;  %s10662_s23 = sadd.s32 1, %s10348_s16  }
  0xe5   : > { %s38_s12 = sadd.s32 1, %s10344_s15  ;;  %s35_s24 = ssub.s32 %s10348_s16, %s10662_s23 }
  0xe6   : > { %p45_p8 = scmp.ne.s32.totalorder %s10344_s15, %s10340_s14  ;;  %p36_p13 = scmp.eq.s32.totalorder %s35_s24, 0 }
  0xe7   : > { %p46_p0 = scmp.eq.s32.totalorder %s10348_s16, 0  ;;  %p51_p1 = scmp.ne.s32.totalorder %s10340_s14, %s10336_s13 }
  0xe8   : > { %p264_p3 = scmp.eq.s32.totalorder %s10447_s19, 1  ;;  %p14055_p5 = scmp.eq.s32.totalorder %s10447_s19, 0 }
  0xe9   : > { %s10674_s25 = scalar_select %p36_p13, %s10344_s15, %s38_s12  }
  0xea   : > { %p47_p2 = por %p46_p0, %p45_p8  ;;  %p10678_p7 = por %p14055_p5, %p51_p1 }
  0xeb   : > { %p10682_p6 = por %p264_p3, %p45_p8  ;;  %p270_p9 = scmp.eq.s32.totalorder %s8291_s11, 1 }
  0xec   : > { %p9146_p4 = scmp.lt.s32.totalorder %s10348_s16, 2  ;;  %s395_s2 = sand.u32 1, %s10344_s15  }
  0xed   : > { %s14057_s20 = scalar_select %p10682_p6, 1, 0 }
  0xee   : > { %p10688_p10 = por %p270_p9, %p51_p1  ;;  %s9056_s29 = smul.u32 192, %s395_s2 }
  0xef   : > { %p10692_p11 = pnand %p9146_p4, %p47_p2  ;;  %s9057_s28 = smul.u32 3072, %s10348_s16 }
  0xf0   : > { %s14058_s26 = scalar_select %p10688_p10, 1, 0 }
  0xf1   : > { %s10700_s21 = scalar_lea.hbm %s13852_s0, %s9057_s28  ;;  %s399_s27 = scalar_lea.vmem [#allocation3], %s9056_s29 }
  0xf2   : > { %s406_s22 = sshll.u32 %s399_s27, 4  ;;  %s10704_s18 = scalar_lea.sflag [#allocation4], %s395_s2  ;;  %s10702_s22 = int_to_ptr.vmem [resolvable:$true] %s406_s22 }
  0xf3   : > { %s10232_s11 = scalar_lea.hbm %s10700_s21, 3072  ;;  %p10234_p8 = pneg %p10692_p11 }
  0xf4   : > { %p10233_p12 = scmp.ne.s32.totalorder %s10700_s21, %s10232_s11  ;;  %s10237_s28 = scalar_lea.hbm %s13852_s0, 6144 }
  0xf5   : > { %p10238_p1 = scmp.lt.u32.totalorder %s10700_s21, %s13852_s0  ;;  %p10239_p3 = scmp.lt.u32.totalorder %s10237_s28, %s10232_s11 }
  0xf6   : > { %p10235_p13 = pnand %p10234_p8, %p10233_p12  ;;  %p10241_p5 = scmp.lt.u32.totalorder %s10232_s11, %s10700_s21 }
  0xf7   : > { %p10240_p2 = por %p10239_p3, %p10238_p1 }
  0xf8   : > { %p10236_p0 = pneg %p10235_p13 }
  0xf9   : > { %p10242_p9 = por %p10241_p5, %p10240_p2 }
  0xfb   : > { %p10243_p4 = pnand %p10242_p9, %p10236_p0 }
  0xfd   : > { %10246 = shalt.err (!%p10243_p4)
}
  0xfe   : > { %s10247_s2 = scalar_lea.vmem %s10702_s22, 3072  ;;  %s10363_s29 = smov [#allocation3]  }
  0xff   : > { %p10248_p12 = scmp.ne.s32.totalorder %s10702_s22, %s10247_s2  ;;  %s10252_s27 = sshll.u32 %s10363_s29, 4  ;;  %s10253_s27 = int_to_ptr.vmem [resolvable:$false] %s10252_s27 }
 0x100   : > { %s10254_s12 = scalar_lea.vmem %s10253_s27, 6144  ;;  %p10255_p6 = scmp.lt.s32.totalorder %s10702_s22, %s10253_s27 }
 0x101   : > { %p10250_p13 = pnand %p10248_p12, %p10234_p8  ;;  %p10256_p1 = scmp.lt.s32.totalorder %s10254_s12, %s10247_s2 }
 0x103   : > { %p10251_p10 = pneg %p10250_p13  ;;  %p10257_p3 = por %p10256_p1, %p10255_p6 }
 0x105   : > { %p10258_p2 = pnand %p10257_p3, %p10251_p10 }
 0x107   : > { %10261 = shalt.err (!%p10258_p2)
}
 0x108   : > { %s10364_s11 = smov 64   ;;  %s10365_s24 = smov 4  }
 0x109   : > { %9132 = dma.hbm_to_vmem [thread:$0]  (!%p10692_p11), %s10700_s21, 3072, %s10702_s22, %s10704_s18, %s10364_s11, %s10364_s11, %s10365_s24  }
 0x10a   : > { %s14060_s28 = sld [smem:[#allocation28_spill]] }
 0x110   : > { %p14061_p8 = scmp.ne.s32.totalorder %s14060_s28, 0 }
 0x112   : > { %418 = sbr.rel (%p14061_p8) target bundleno = 1927 (0x787), region = 60 }
 0x119   : > { %s10735_s30 = sand.u32 1, %s10340_s14  }
 0x11a   : > { %s9058_s17 = smul.u32 192, %s10735_s30  ;;  %s421_s2 = scalar_lea.sflag [#allocation4], %s10735_s30 }
 0x11c   : > { %s10739_s29 = scalar_lea.vmem [#allocation3], %s9058_s17 }
 0x11d   : > { %10307 = dma.done.wait (%p10678_p7), %s421_s2, 3072  }
 0x11e   : > { %10309 = vsyncadd (%p10678_p7), %s421_s2, 4294964224  ;;  %p14062_p6 = scmp.eq.s32.totalorder %s10447_s19, 0 }
 0x120   : > { %10311 = dma.done.wait (%p14062_p6), [#allocation7], 6656   ;;  %p14063_p10 = pmov %p14062_p6 }
 0x121   : > { %p14064_p11 = pmov %p14062_p6 }
 0x122   : > { %10313 = vsyncadd (%p14063_p10), [#allocation7], 4294960640 }
 0x123   : > { %10315 = dma.done.wait (%p14064_p11), [#allocation10], 64   ;;  %p14065_p0 = pmov %p14062_p6 }
 0x125   : > { %10317 = vsyncadd (%p14065_p0), [#allocation10], 4294967232  ;;  %p14066_p5 = pmov %p14065_p0 }
 0x126   : > { %p14067_p9 = pmov %p14065_p0 }
 0x127   : > { %10319 = dma.done.wait (%p14066_p5), [#allocation13], 31136  }
 0x128   : > { %10321 = vsyncadd (%p14067_p9), [#allocation13], 4294936160  ;;  %p14068_p7 = pmov %p14065_p0 }
 0x129   : > { %p14069_p4 = pmov %p14065_p0 }
 0x12a   : > { %10323 = dma.done.wait (%p14068_p7), [#allocation16], 96  }
 0x12b   : > { %10325 = vsyncadd (%p14069_p4), [#allocation16], 4294967200  ;;  %p14070_p12 = pmov %p14065_p0 }
 0x12c   : > { %p14071_p13 = pmov %p14065_p0 }
 0x12d   : > { %10327 = dma.done.wait (%p14070_p12), [#allocation19], 48  }
 0x12e   : > { %10329 = vsyncadd (%p14071_p13), [#allocation19], 4294967248  ;;  %v13869_v0 = vmov 0   ;;  %vm593_vm0 = vcmask 1044480   ;;  %vm594_vm1 = vcmask 1045504   ;;  %v10367_v1 = vmov 65535  }
 0x12f   : > { %635 = vmatprep.mubr.bf16.mxu0 %v13869_v0  ;;  %1429 = vmatprep.mubr.bf16.mxu1 %v13869_v0  ;;  %v595_v2 = vsel %vm593_vm0, 4294967295, %v10367_v1  ;;  %v9210_v3 = vld [vmem:[#allocation8 + $0x4] ss:$8 sps:$4 sm:$0xff]   ;;  %v9212_v4 = vld [vmem:[#allocation8] ss:$8 sps:$4 sm:$0xff]   ;;  %v512_v5 = vld [vmem:[#allocation8 + $0x10] sm:$0xff]  ;;  %v516_v58 = vlaneseq }
 0x130   : > { %9208 = vset.pattern.permute.xlu0 %v13869_v0  ;;  %9209 = vset.pattern.permute.xlu1 %v13869_v0  ;;  %v513_v6 = vld [vmem:[#allocation8 + $0x18] sm:$0x33]  ;;  %v596_v7 = vsel %vm594_vm1, %v595_v2, 0  ;;  %v9217_v17 = vld [vmem:[%s10739_s29] sm:$0xff]   ;;  %vm574_vm2 = vcmask 220160   ;;  %v9218_v18 = vld [vmem:[%s10739_s29 + $0x30] sm:$0xff]  }
 0x131   : > { %603 = vmatprep.subr.bf16.mxu0 %v9210_v3  ;;  %1397 = vmatprep.subr.bf16.mxu1 %v9210_v3  ;;  %v8323_v8 = vcombine.high %v512_v5, %v513_v6  ;;  %v1312_v9 = vld [vmem:[#allocation8 + $0x18] sm:$0x33]  ;;  %v8322_v10 = vcombine.low %v512_v5, %v513_v6  ;;  %v9219_v19 = vld [vmem:[%s10739_s29 + $0x8] sm:$0xff]   ;;  %v9221_v31 = vld [vmem:[%s10739_s29 + $0x10] sm:$0xff]   ;;  %v10836_v59 = vshrl.u32 %v516_v58, 7  ;;  %vm698_vm3 = vcmask 130048  }
 0x132   : > { %604 = vmatpush1.bf16.msra.mxu0 %v9212_v4  ;;  %1398 = vmatpush1.bf16.msra.mxu1 %v9212_v4  ;;  %v8363_v11 = vcombine.high %v512_v5, %v1312_v9  ;;  %v8362_v12 = vcombine.low %v512_v5, %v1312_v9  ;;  %v2098_v20 = vld [vmem:[#allocation8 + $0x18] sm:$0x33]  ;;  %v9222_v32 = vld [vmem:[%s10739_s29 + $0x40] sm:$0xff]   ;;  %v1902_v34 = vld [vmem:[#allocation6 + $0x68] sm:$0xff]  ;;  %vm1278_vm4 = vcmask 1043456   ;;  %vm1279_vm5 = vcmask 130052  }
 0x133   : > { %v601_v13 = vand.u32 %v8323_v8, %v596_v7  ;;  %v598_v14 = vand.u32 %v8322_v10, %v596_v7  ;;  %v2884_v21 = vld [vmem:[#allocation8 + $0x18] sm:$0x33]  ;;  %v8402_v23 = vcombine.low %v512_v5, %v2098_v20  ;;  %v8403_v24 = vcombine.high %v512_v5, %v2098_v20  ;;  %v1901_v33 = vld [vmem:[#allocation6 + $0x60] sm:$0xff]  ;;  %1920 = vperm.xlu1 %9209, %v1902_v34   ;;  %v1903_v36 = vld [vmem:[#allocation6 + $0x70] sm:$0xff]  ;;  %s9059_s10 = smul.u32 216, %s10735_s30  ;;  %s14407_s27 = sld [smem:[#allocation124_spill]] }
 0x134   : > { %v1395_v15 = vand.u32 %v8363_v11, %v596_v7  ;;  %v1392_v16 = vand.u32 %v8362_v12, %v596_v7  ;;  %v9220_v22 = vld [vmem:[%s10739_s29 + $0x38] sm:$0xff]   ;;  %v8442_v25 = vcombine.low %v512_v5, %v2884_v21  ;;  %v8443_v26 = vcombine.high %v512_v5, %v2884_v21  ;;  %1915 = vperm.xlu0 %9208, %v1901_v33   ;;  %v1906_v38 = vld [vmem:[#allocation6 + $0x88] sm:$0xff]  ;;  %v1905_v40 = vld [vmem:[#allocation6 + $0x80] sm:$0xff]  ;;  %s9060_s21 = smul.u32 3456, %s10447_s19  ;;  %s8119_s11 = scalar_lea.sflag [#allocation5], %s10735_s30 }
 0x135   : > { %605 = vmatprep.subr.bf16.mxu0 %v601_v13  ;;  %v2181_v27 = vand.u32 %v8403_v24, %v596_v7  ;;  %v2178_v29 = vand.u32 %v8402_v23, %v596_v7  ;;  %v1904_v35 = vld [vmem:[#allocation6 + $0x78] sm:$0xff]  ;;  %v9224_v39 = vld [vmem:[%s10739_s29 + $0x48] sm:$0xff]   ;;  %v1907_v41 = vld [vmem:[#allocation6 + $0x90] sm:$0xff]  ;;  %14072 = vst [vmem:[#allocation29_spill] sm:$0xff] %v10836_v59  ;;  %v10839_v61 = vsub.s32 1, %v10836_v59  ;;  %v10842_v62 = vsub.s32 0, %v10836_v59 }
 0x136   : > { %1399 = vmatprep.subr.bf16.mxu1 %v1395_v15  ;;  %606 = vmatpush1.bf16.msra.mxu0 %v598_v14  ;;  %v2967_v28 = vand.u32 %v8443_v26, %v596_v7  ;;  %v2964_v30 = vand.u32 %v8442_v25, %v596_v7  ;;  %v9223_v37 = vld [vmem:[%s10739_s29 + $0x18] sm:$0xff]   ;;  %v9225_v43 = vld [vmem:[%s10739_s29 + $0x20] sm:$0xff]   ;;  %v9226_v45 = vld [vmem:[%s10739_s29 + $0x50] sm:$0xff]   ;;  %vm4540_vm7 = vsmask.f32 7424  ;;  %vm7387_vm8 = vcmask 1046528  }
 0x137   : > { %1400 = vmatpush1.bf16.msra.mxu1 %v1392_v16  ;;  %2183 = vmatprep.subr.bf16.mxu0 %v9210_v3  ;;  %v1908_v42 = vld [vmem:[#allocation6 + $0x98] sm:$0xff]  ;;  %v1909_v44 = vld [vmem:[#allocation6 + $0xa0] sm:$0xff]  ;;  %v9227_v46 = vld [vmem:[%s10739_s29 + $0x28] sm:$0x1f]   ;;  %14073 = vst [vmem:[#allocation30_spill] sm:$0xff] %v10839_v61  ;;  %vm743_vm9 = vcmask 1041408  }
 0x138   : > { %2969 = vmatprep.subr.bf16.mxu1 %v9210_v3  ;;  %1930 = vperm.xlu0 %9208, %v1904_v35   ;;  %v9228_v47 = vld [vmem:[%s10739_s29 + $0x58] sm:$0x1f]   ;;  %v9233_v48 = vld [vmem:[%s10739_s29 + $0x60] sm:$0xff]   ;;  %v9234_v49 = vld [vmem:[%s10739_s29 + $0x90] sm:$0xff]   ;;  %14074 = vst [vmem:[#allocation31_spill] sm:$0xff] %v10842_v62  ;;  %vm745_vm10 = vcmask 123904  }
 0x139   : > { %8324 = vmatmul.mubr.msk.bf16.vlgmr.msra.gmra.mrb[0].mxu0 %vm574_vm2, %v9217_v17  ;;  %1925 = vperm.xlu1 %9209, %v1903_v36   ;;  %v9235_v50 = vld [vmem:[%s10739_s29 + $0x68] sm:$0xff]   ;;  %v9236_v51 = vld [vmem:[%s10739_s29 + $0x98] sm:$0xff]   ;;  %v9237_v52 = vld [vmem:[%s10739_s29 + $0x70] sm:$0xff]   ;;  %vm7797_vm11 = vcmask 261120   ;;  %s13697_s1 = scalar_lea.vmem [#allocation20], %s9059_s10  ;;  %s13799_s12 = scalar_lea.hbm %s14407_s27, %s9060_s21 }
 0x13a   : > { %8364 = vmatmul.mubr.msk.bf16.vlgmr.msra.gmra.mrb[0].mxu1 %vm574_vm2, %v9218_v18  ;;  %645 = vmatprep.mubr.bf16.mxu0 %v13869_v0  ;;  %v9240_v53 = vld [vmem:[%s10739_s29 + $0xa0] sm:$0xff]   ;;  %v9238_v54 = vld [vmem:[%s10739_s29 + $0x78] sm:$0xff]   ;;  %v9241_v55 = vld [vmem:[%s10739_s29 + $0xa8] sm:$0xff]   ;;  %s8132_s22 = sshll.u32 %s13697_s1, 4  ;;  %p14408_p3 = scmp.ne.s32.totalorder %s14057_s20, 0  ;;  %s13804_s22 = int_to_ptr.vmem [resolvable:$true] %s8132_s22 }
 0x13b   : > { %1439 = vmatprep.mubr.bf16.mxu1 %v13869_v0  ;;  %2184 = vmatpush1.bf16.msra.mxu0 %v9212_v4  ;;  %v9239_v56 = vld [vmem:[%s10739_s29 + $0x80] sm:$0xff]   ;;  %v9242_v57 = vld [vmem:[%s10739_s29 + $0xb0] sm:$0xff]   ;;  %vm11825_vm6 = vmor %vm1279_vm5, %vm1278_vm4  ;;  %s10262_s24 = scalar_lea.vmem %s13804_s22, 3456  ;;  %s10368_s28 = smov [#allocation20]  }
 0x13c   : > { %2970 = vmatpush1.bf16.msra.mxu1 %v9212_v4  ;;  %2185 = vmatprep.subr.bf16.mxu0 %v2181_v27  ;;  %v514_v60 = vld [vmem:[#allocation9] sm:$0x3]  ;;  %p10263_p1 = scmp.ne.s32.totalorder %s13804_s22, %s10262_s24  ;;  %s10266_s17 = sshll.u32 %s10368_s28, 4  ;;  %s10267_s17 = int_to_ptr.vmem [resolvable:$false] %s10266_s17 }
 0x13d   : > { %2971 = vmatprep.subr.bf16.mxu1 %v2967_v28  ;;  %1940 = vperm.xlu0 %9208, %v1906_v38   ;;  %v1313_v63 = vld [vmem:[#allocation9] sm:$0x3]  ;;  %v10845_v1 = vrot.slane %v514_v60, %v10842_v62  ;;  %v10848_v2 = vrot.slane %v514_v60, %v10839_v61  ;;  %s10268_s2 = scalar_lea.vmem %s10267_s17, 6912  ;;  %p10269_p6 = scmp.lt.s32.totalorder %s13804_s22, %s10267_s17 }
 0x13e   : > { %1935 = vperm.xlu1 %9209, %v1905_v40   ;;  %v10851_v3 = vrot.slane %v1313_v63, %v10839_v61  ;;  %v10854_v5 = vrot.slane %v1313_v63, %v10842_v62  ;;  %p10264_p2 = pnand %p10263_p1, %p14408_p3  ;;  %p10270_p10 = scmp.lt.s32.totalorder %s10268_s2, %s10262_s24 }
 0x13f   : > { %2186 = vmatpush1.bf16.msra.mxu0 %v2178_v29 }
 0x140   : > { %2972 = vmatpush1.bf16.msra.mxu1 %v2964_v30  ;;  %p10265_p8 = pneg %p10264_p2  ;;  %p10271_p11 = por %p10270_p10, %p10269_p6 }
 0x141   : > { %8325 = vmatmul.mubr.msk.bf16.gmra.mrb[4].mxu0 %vm574_vm2, %v9219_v19  ;;  %4027 = vmatprep.subr.bf16.mxu1 %v13869_v0 }
 0x142   : > { %8365 = vmatmul.mubr.msk.bf16.gmra.mrb[4].mxu1 %vm574_vm2, %v9220_v22  ;;  %655 = vmatprep.mubr.bf16.mxu0 %v13869_v0  ;;  %p10272_p0 = pnand %p10271_p11, %p10265_p8 }
 0x143   : > { %1449 = vmatprep.mubr.bf16.mxu1 %v13869_v0  ;;  %1945 = vperm.xlu0 %9208, %v1907_v41  }
 0x144   : > { %1950 = vperm.xlu1 %9209, %v1908_v42  }
 0x147   : > { %1955 = vperm.xlu0 %9208, %v1909_v44  }
 0x149   : > { %8326 = vmatmul.mubr.msk.bf16.gmra.mrb[8].mxu0 %vm574_vm2, %v9221_v31 }
 0x14a   : > { %8366 = vmatmul.mubr.msk.bf16.gmra.mrb[8].mxu1 %vm574_vm2, %v9222_v32  ;;  %665 = vmatprep.mubr.bf16.mxu0 %v13869_v0 }
 0x14b   : > { %1459 = vmatprep.mubr.bf16.mxu1 %v13869_v0 }
 0x151   : > { %8327 = vmatmul.mubr.msk.bf16.gmra.mrb[12].mxu0 %vm574_vm2, %v9223_v37 }
 0x152   : > { %8367 = vmatmul.mubr.msk.bf16.gmra.mrb[12].mxu1 %vm574_vm2, %v9224_v39  ;;  %675 = vmatprep.mubr.bf16.mxu0 %v13869_v0 }
 0x153   : > { %1469 = vmatprep.mubr.bf16.mxu1 %v13869_v0 }
 0x159   : > { %8328 = vmatmul.mubr.msk.bf16.gmra.mrb[16].mxu0 %vm574_vm2, %v9225_v43 }
 0x15a   : > { %8368 = vmatmul.mubr.msk.bf16.gmra.mrb[16].mxu1 %vm574_vm2, %v9226_v45  ;;  %685 = vmatprep.mubr.bf16.mxu0 %v13869_v0 }
 0x15b   : > { %1479 = vmatprep.mubr.bf16.mxu1 %v13869_v0 }
 0x161   : > { %8329 = vmatmul.mubr.msk.bf16.gmra.mrb[20].mxu0 %vm574_vm2, %v9227_v46 }
 0x162   : > { %8369 = vmatmul.mubr.msk.bf16.gmra.mrb[20].mxu1 %vm574_vm2, %v9228_v47  ;;  %2215 = vmatprep.mubr.bf16.mxu0 %v13869_v0 }
 0x163   : > { %3001 = vmatprep.mubr.bf16.mxu1 %v13869_v0 }
 0x169   : > { %8404 = vmatmul.mubr.msk.bf16.vlgmr.msra.gmra.mrb[24].mxu0 %vm574_vm2, %v9233_v48 }
 0x16a   : > { %8444 = vmatmul.mubr.msk.bf16.vlgmr.msra.gmra.mrb[24].mxu1 %vm574_vm2, %v9234_v49  ;;  %2225 = vmatprep.mubr.bf16.mxu0 %v13869_v0 }
 0x16b   : > { %3011 = vmatprep.mubr.bf16.mxu1 %v13869_v0 }
 0x171   : > { %8405 = vmatmul.mubr.msk.bf16.gmra.mrb[28].mxu0 %vm574_vm2, %v9235_v50 }
 0x172   : > { %8445 = vmatmul.mubr.msk.bf16.gmra.mrb[28].mxu1 %vm574_vm2, %v9236_v51  ;;  %2235 = vmatprep.mubr.bf16.mxu0 %v13869_v0 }
 0x173   : > { %3021 = vmatprep.mubr.bf16.mxu1 %v13869_v0 }
 0x179   : > { %8406 = vmatmul.mubr.msk.bf16.gmra.mrb[32].mxu0 %vm574_vm2, %v9237_v52 }
 0x17a   : > { %2245 = vmatprep.mubr.bf16.mxu0 %v13869_v0  ;;  %8446 = vmatmul.mubr.msk.bf16.gmra.mrb[32].mxu1 %vm574_vm2, %v9240_v53 }
 0x17b   : > { %3031 = vmatprep.mubr.bf16.mxu1 %v13869_v0 }
 0x181   : > { %8407 = vmatmul.mubr.msk.bf16.gmra.mrb[36].mxu0 %vm574_vm2, %v9238_v54 }
 0x182   : > { %2255 = vmatprep.mubr.bf16.mxu0 %v13869_v0  ;;  %8447 = vmatmul.mubr.msk.bf16.gmra.mrb[36].mxu1 %vm574_vm2, %v9241_v55 }
 0x183   : > { %3041 = vmatprep.mubr.bf16.mxu1 %v13869_v0 }
 0x189   : > { %8408 = vmatmul.mubr.msk.bf16.gmra.mrb[40].mxu0 %vm574_vm2, %v9239_v56 }
 0x18a   : > { %2265 = vmatprep.mubr.bf16.mxu0 %v13869_v0  ;;  %8448 = vmatmul.mubr.msk.bf16.gmra.mrb[40].mxu1 %vm574_vm2, %v9242_v57 }
 0x18b   : > { %3051 = vmatprep.mubr.bf16.mxu1 %v13869_v0 }
 0x20c   : > { %v637_v4 = vpop.f32.mrb[0].mxu0 }
 0x20d   : > { %v10857_v6 = vadd.f32 %v637_v4, %v10845_v1  ;;  %v1431_v7 = vpop.f32.mrb[0].mxu1  ;;  %v639_v8 = vpop.f32.mrb[1].mxu0 }
 0x20e   : > { %v10860_v9 = vadd.f32 %v639_v8, %v10848_v2  ;;  %v1433_v10 = vpop.f32.mrb[1].mxu1  ;;  %v641_v11 = vpop.f32.mrb[2].mxu0  ;;  %v10866_v15 = vadd.f32 %v1431_v7, %v10854_v5 }
 0x20f   : > { %v10863_v12 = vadd.f32 %v1433_v10, %v10851_v3  ;;  %v1435_v13 = vpop.f32.mrb[2].mxu1  ;;  %v643_v14 = vpop.f32.mrb[3].mxu0  ;;  %v10895_v36 = vadd.f32 %v641_v11, %v10845_v1 }
 0x210   : > { %v1437_v16 = vpop.f32.mrb[3].mxu1  ;;  %v699_v17 = vsel %vm698_vm3, %v10860_v9, 0.0  ;;  %v10878_v22 = vadd.f32 %v643_v14, %v10848_v2  ;;  %v10883_v24 = vadd.f32 %v1435_v13, %v10854_v5 }
 0x211   : > { %v10871_v18 = vadd.f32 %v1437_v16, %v10851_v3  ;;  %v1492_v19 = vsel %vm698_vm3, %v10863_v12, 0.0  ;;  %v700_v20 = vadd.f32 %v699_v17, %v10857_v6 }
 0x212   : > { %v1493_v21 = vadd.f32 %v1492_v19, %v10866_v15  ;;  %v703_v35 = vsel %vm698_vm3, %v10878_v22, 0.0 }
 0x213   : > { %701 = vadd.xlane.f32.xlu1 %v700_v20  ;;  %v1496_v23 = vsel %vm698_vm3, %v10871_v18, 0.0  ;;  %v704_v42 = vadd.f32 %v703_v35, %v10895_v36 }
 0x214   : > { %1494 = vadd.xlane.f32.xlu0 %v1493_v21  ;;  %v647_v25 = vpop.f32.mrb[4].mxu0  ;;  %v1497_v30 = vadd.f32 %v1496_v23, %v10883_v24 }
 0x215   : > { %v1441_v26 = vpop.f32.mrb[4].mxu1  ;;  %v649_v27 = vpop.f32.mrb[5].mxu0  ;;  %v10906_v41 = vadd.f32 %v647_v25, %v10845_v1 }
 0x216   : > { %v1443_v28 = vpop.f32.mrb[5].mxu1  ;;  %v651_v29 = vpop.f32.mrb[6].mxu0  ;;  %v10887_v31 = vadd.f32 %v649_v27, %v10848_v2  ;;  %v10898_v37 = vadd.f32 %v1441_v26, %v10854_v5 }
 0x217   : > { %v10890_v32 = vadd.f32 %v1443_v28, %v10851_v3  ;;  %v1445_v33 = vpop.f32.mrb[6].mxu1  ;;  %v653_v34 = vpop.f32.mrb[7].mxu0  ;;  %v10918_v47 = vadd.f32 %v651_v29, %v10845_v1 }
 0x218   : > { %v1447_v38 = vpop.f32.mrb[7].mxu1  ;;  %1498 = vadd.xlane.f32.xlu0 %v1497_v30  ;;  %v10901_v39 = vadd.f32 %v653_v34, %v10848_v2  ;;  %v707_v46 = vsel %vm698_vm3, %v10887_v31, 0.0  ;;  %v10931_v63 = vadd.f32 %v1445_v33, %v10854_v5 }
 0x219   : > { %v1500_v40 = vsel %vm698_vm3, %v10890_v32, 0.0  ;;  %v10911_v44 = vadd.f32 %v1447_v38, %v10851_v3  ;;  %v708_v54 = vadd.f32 %v707_v46, %v10906_v41 }
 0x21a   : > { %v1501_v43 = vadd.f32 %v1500_v40, %v10898_v37  ;;  %v711_v45 = vsel %vm698_vm3, %v10901_v39, 0.0 }
 0x21b   : > { %v712_v53 = vadd.f32 %v711_v45, %v10918_v47  ;;  %v1504_v60 = vsel %vm698_vm3, %v10911_v44, 0.0 }
 0x21c   : > { %705 = vadd.xlane.f32.xlu0 %v704_v42  ;;  %1502 = vadd.xlane.f32.xlu1 %v1501_v43  ;;  %v657_v48 = vpop.f32.mrb[8].mxu0  ;;  %v1505_v14 = vadd.f32 %v1504_v60, %v10931_v63 }
 0x21d   : > { %v1451_v49 = vpop.f32.mrb[8].mxu1  ;;  %v659_v50 = vpop.f32.mrb[9].mxu0  ;;  %v10942_v11 = vadd.f32 %v657_v48, %v10845_v1 }
 0x21e   : > { %v1453_v51 = vpop.f32.mrb[9].mxu1  ;;  %v661_v52 = vpop.f32.mrb[10].mxu0  ;;  %v10923_v55 = vadd.f32 %v659_v50, %v10848_v2  ;;  %v10934_v4 = vadd.f32 %v1451_v49, %v10854_v5 }
 0x21f   : > { %v10926_v56 = vadd.f32 %v1453_v51, %v10851_v3  ;;  %v1455_v57 = vpop.f32.mrb[10].mxu1  ;;  %v663_v58 = vpop.f32.mrb[11].mxu0  ;;  %v10954_v20 = vadd.f32 %v661_v52, %v10845_v1 }
 0x220   : > { %v10937_v7 = vadd.f32 %v663_v58, %v10848_v2  ;;  %v1457_v8 = vpop.f32.mrb[11].mxu1  ;;  %713 = vadd.xlane.f32.xlu0 %v712_v53  ;;  %709 = vadd.xlane.f32.xlu1 %v708_v54  ;;  %v715_v19 = vsel %vm698_vm3, %v10923_v55, 0.0  ;;  %v10967_v40 = vadd.f32 %v1455_v57, %v10854_v5 }
 0x221   : > { %v1508_v10 = vsel %vm698_vm3, %v10926_v56, 0.0  ;;  %v10947_v16 = vadd.f32 %v1457_v8, %v10851_v3  ;;  %v716_v29 = vadd.f32 %v715_v19, %v10942_v11 }
 0x222   : > { %v1509_v13 = vadd.f32 %v1508_v10, %v10934_v4  ;;  %v719_v17 = vsel %vm698_vm3, %v10937_v7, 0.0 }
 0x223   : > { %v720_v28 = vadd.f32 %v719_v17, %v10954_v20  ;;  %v1512_v38 = vsel %vm698_vm3, %v10947_v16, 0.0 }
 0x224   : > { %1510 = vadd.xlane.f32.xlu0 %v1509_v13  ;;  %1506 = vadd.xlane.f32.xlu1 %v1505_v14  ;;  %v667_v21 = vpop.f32.mrb[12].mxu0  ;;  %v1513_v50 = vadd.f32 %v1512_v38, %v10967_v40 }
 0x225   : > { %v1461_v23 = vpop.f32.mrb[12].mxu1  ;;  %v669_v25 = vpop.f32.mrb[13].mxu0  ;;  %v10978_v48 = vadd.f32 %v667_v21, %v10845_v1 }
 0x226   : > { %v1463_v26 = vpop.f32.mrb[13].mxu1  ;;  %v671_v27 = vpop.f32.mrb[14].mxu0  ;;  %v10959_v30 = vadd.f32 %v669_v25, %v10848_v2  ;;  %v10970_v42 = vadd.f32 %v1461_v23, %v10854_v5 }
 0x227   : > { %v10962_v33 = vadd.f32 %v1463_v26, %v10851_v3  ;;  %v1465_v34 = vpop.f32.mrb[14].mxu1  ;;  %v673_v35 = vpop.f32.mrb[15].mxu0  ;;  %14076 = vst [vmem:[#allocation33_spill] sm:$0xff] %v10978_v48  ;;  %v10990_v54 = vadd.f32 %v671_v27, %v10845_v1 }
 0x228   : > { %v10973_v43 = vadd.f32 %v673_v35, %v10848_v2  ;;  %v1467_v45 = vpop.f32.mrb[15].mxu1  ;;  %721 = vadd.xlane.f32.xlu0 %v720_v28  ;;  %717 = vadd.xlane.f32.xlu1 %v716_v29  ;;  %v723_v53 = vsel %vm698_vm3, %v10959_v30, 0.0  ;;  %v10993_v8 = vadd.f32 %v1465_v34, %v10854_v5 }
 0x229   : > { %v1516_v46 = vsel %vm698_vm3, %v10962_v33, 0.0  ;;  %v10983_v51 = vadd.f32 %v1467_v45, %v10851_v3  ;;  %14077 = vst [vmem:[#allocation34_spill] sm:$0xff] %v10990_v54  ;;  %v724_v14 = vadd.f32 %v723_v53, %v10978_v48 }
 0x22a   : > { %14075 = vst [vmem:[#allocation32_spill] sm:$0xff] %v10973_v43  ;;  %v1517_v49 = vadd.f32 %v1516_v46, %v10970_v42  ;;  %v727_v52 = vsel %vm698_vm3, %v10973_v43, 0.0 }
 0x22b   : > { %v728_v13 = vadd.f32 %v727_v52, %v10990_v54  ;;  %v1520_v26 = vsel %vm698_vm3, %v10983_v51, 0.0 }
 0x22c   : > { %1518 = vadd.xlane.f32.xlu0 %v1517_v49  ;;  %1514 = vadd.xlane.f32.xlu1 %v1513_v50  ;;  %v677_v57 = vpop.f32.mrb[16].mxu0  ;;  %v1521_v52 = vadd.f32 %v1520_v26, %v10993_v8 }
 0x22d   : > { %v1471_v58 = vpop.f32.mrb[16].mxu1  ;;  %v679_v60 = vpop.f32.mrb[17].mxu0  ;;  %v11004_v25 = vadd.f32 %v677_v57, %v10845_v1 }
 0x22e   : > { %v1473_v10 = vpop.f32.mrb[17].mxu1  ;;  %v10998_v17 = vadd.f32 %v679_v60, %v10848_v2  ;;  %v681_v19 = vpop.f32.mrb[18].mxu0  ;;  %v11012_v29 = vadd.f32 %v1471_v58, %v10854_v5 }
 0x22f   : > { %v11001_v21 = vadd.f32 %v1473_v10, %v10851_v3  ;;  %v1475_v23 = vpop.f32.mrb[18].mxu1  ;;  %14079 = vst [vmem:[#allocation36_spill] sm:$0xff] %v11004_v25  ;;  %v11009_v27 = vadd.f32 %v681_v19, %v10845_v1  ;;  %v683_v28 = vpop.f32.mrb[19].mxu0 }
 0x230   : > { %14080 = vst [vmem:[#allocation37_spill] sm:$0xff] %v11012_v29  ;;  %v11015_v34 = vadd.f32 %v1475_v23, %v10854_v5  ;;  %v1477_v35 = vpop.f32.mrb[19].mxu1  ;;  %729 = vadd.xlane.f32.xlu0 %v728_v13  ;;  %725 = vadd.xlane.f32.xlu1 %v724_v14  ;;  %v11018_v38 = vadd.f32 %v683_v28, %v10848_v2  ;;  %v731_v49 = vsel %vm698_vm3, %v10998_v17, 0.0 }
 0x231   : > { %14078 = vst [vmem:[#allocation35_spill] sm:$0xff] %v11001_v21  ;;  %v11021_v45 = vadd.f32 %v1477_v35, %v10851_v3  ;;  %v1524_v46 = vsel %vm698_vm3, %v11001_v21, 0.0  ;;  %v732_v53 = vadd.f32 %v731_v49, %v11004_v25 }
 0x232   : > { %14081 = vst [vmem:[#allocation38_spill] sm:$0xff] %v11015_v34  ;;  %v1525_v50 = vadd.f32 %v1524_v46, %v11012_v29  ;;  %v2885_v46 = vld [vmem:[#allocation9] sm:$0x3] }
 0x233   : > { %14082 = vst [vmem:[#allocation39_spill] sm:$0xff] %v11021_v45 }
 0x234   : > { %1526 = vadd.xlane.f32.xlu0 %v1525_v50  ;;  %1522 = vadd.xlane.f32.xlu1 %v1521_v52  ;;  %v687_v57 = vpop.f32.mrb[20].mxu0 }
 0x235   : > { %v1481_v58 = vpop.f32.mrb[20].mxu1  ;;  %v11031_v60 = vadd.f32 %v687_v57, %v10845_v1  ;;  %v689_v10 = vpop.f32.mrb[21].mxu0 }
 0x236   : > { %v11034_v13 = vadd.f32 %v1481_v58, %v10854_v5  ;;  %v1483_v14 = vpop.f32.mrb[21].mxu1  ;;  %v11037_v19 = vadd.f32 %v689_v10, %v10848_v2  ;;  %v691_v23 = vpop.f32.mrb[22].mxu0  ;;  %v2099_v10 = vld [vmem:[#allocation9] sm:$0x3] }
 0x237   : > { %14083 = vst [vmem:[#allocation40_spill] sm:$0xff] %v11031_v60  ;;  %v11040_v26 = vadd.f32 %v1483_v14, %v10851_v3  ;;  %v1485_v28 = vpop.f32.mrb[22].mxu1  ;;  %v11043_v35 = vadd.f32 %v691_v23, %v10845_v1  ;;  %v693_v49 = vpop.f32.mrb[23].mxu0  ;;  %v11055_v14 = vrot.slane %v2885_v46, %v10842_v62  ;;  %v11058_v1 = vrot.slane %v2885_v46, %v10839_v61 }
 0x238   : > { %14084 = vst [vmem:[#allocation41_spill] sm:$0xff] %v11034_v13  ;;  %14085 = vst [vmem:[#allocation42_spill] sm:$0xff] %v11037_v19  ;;  %733 = vadd.xlane.f32.xlu1 %v732_v53  ;;  %v11046_v50 = vadd.f32 %v1485_v28, %v10854_v5  ;;  %v1487_v52 = vpop.f32.mrb[23].mxu1  ;;  %v11049_v57 = vadd.f32 %v693_v49, %v10848_v2  ;;  %v11061_v23 = vrot.slane %v2099_v10, %v10842_v62 }
 0x239   : > { %14086 = vst [vmem:[#allocation43_spill] sm:$0xff] %v11040_v26  ;;  %14087 = vst [vmem:[#allocation44_spill] sm:$0xff] %v11043_v35  ;;  %v11052_v58 = vadd.f32 %v1487_v52, %v10851_v3  ;;  %v11066_v5 = vrot.slane %v2099_v10, %v10839_v61 }
 0x23a   : > { %14088 = vst [vmem:[#allocation45_spill] sm:$0xff] %v11046_v50  ;;  %14089 = vst [vmem:[#allocation46_spill] sm:$0xff] %v11049_v57 }
 0x23b   : > { %14090 = vst [vmem:[#allocation47_spill] sm:$0xff] %v11052_v58  ;;  %14091 = vst [vmem:[#allocation48_spill] sm:$0xff] %v11055_v14 }
 0x23c   : > { %14092 = vst [vmem:[#allocation49_spill] sm:$0xff] %v11058_v1  ;;  %14093 = vst [vmem:[#allocation50_spill] sm:$0xff] %v11061_v23  ;;  %v11063_v53 = vpop.f32.mrb[24].mxu0 }
 0x23d   : > { %14094 = vst [vmem:[#allocation51_spill] sm:$0xff] %v11066_v5  ;;  %v3003_v2 = vpop.f32.mrb[24].mxu1  ;;  %v11068_v28 = vpop.f32.mrb[25].mxu0 }
 0x23e   : > { %v11071_v3 = vadd.f32 %v3003_v2, %v11055_v14  ;;  %v3005_v49 = vpop.f32.mrb[25].mxu1  ;;  %v2221_v52 = vpop.f32.mrb[26].mxu0 }
 0x23f   : > { %v11074_v0 = vadd.f32 %v3005_v49, %v11058_v1  ;;  %v2223_v46 = vpop.f32.mrb[27].mxu0  ;;  %v3007_v59 = vpop.f32.mrb[26].mxu1  ;;  %v11077_v57 = vadd.f32 %v2221_v52, %v11061_v23 }
 0x240   : > { %14095 = vst [vmem:[#allocation52_spill] sm:$0xff] %v11071_v3  ;;  %v11080_v35 = vadd.f32 %v2223_v46, %v11066_v5  ;;  %v3009_v10 = vpop.f32.mrb[27].mxu1  ;;  %v11091_v13 = vadd.f32 %v3007_v59, %v11055_v14 }
 0x241   : > { %14096 = vst [vmem:[#allocation53_spill] sm:$0xff] %v11074_v0  ;;  %14097 = vst [vmem:[#allocation54_spill] sm:$0xff] %v11077_v57  ;;  %v3064_v58 = vsel %vm698_vm3, %v11074_v0, 0.0  ;;  %v11085_v2 = vadd.f32 %v3009_v10, %v11058_v1 }
 0x242   : > { %14098 = vst [vmem:[#allocation55_spill] sm:$0xff] %v11080_v35  ;;  %v3065_v50 = vadd.f32 %v3064_v58, %v11071_v3  ;;  %v2282_v49 = vsel %vm698_vm3, %v11080_v35, 0.0  ;;  %14100 = vst [vmem:[#allocation57_spill] sm:$0xff] %v11091_v13 }
 0x243   : > { %14099 = vst [vmem:[#allocation56_spill] sm:$0xff] %v11085_v2  ;;  %v2283_v52 = vadd.f32 %v2282_v49, %v11077_v57  ;;  %v3068_v45 = vsel %vm698_vm3, %v11085_v2, 0.0 }
 0x244   : > { %3066 = vadd.xlane.f32.xlu1 %v3065_v50  ;;  %v2227_v46 = vpop.f32.mrb[28].mxu0  ;;  %v1111_v50 = vld [vmem:[#allocation6 + $0x8] sm:$0xff]  ;;  %v3069_v60 = vadd.f32 %v3068_v45, %v11091_v13 }
 0x245   : > { %v2229_v26 = vpop.f32.mrb[29].mxu0  ;;  %v11094_v34 = vpop.f32.mrb[28].mxu1  ;;  %v11108_v49 = vadd.f32 %v2227_v46, %v11061_v23 }
 0x246   : > { %v11099_v10 = vadd.f32 %v2229_v26, %v11066_v5  ;;  %v11101_v58 = vpop.f32.mrb[29].mxu1  ;;  %v11103_v61 = vpop.f32.mrb[30].mxu0 }
 0x247   : > { %v3017_v3 = vpop.f32.mrb[30].mxu1  ;;  %v11105_v59 = vpop.f32.mrb[31].mxu0  ;;  %14102 = vst [vmem:[#allocation59_spill] sm:$0xff] %v11108_v49 }
 0x248   : > { %14101 = vst [vmem:[#allocation58_spill] sm:$0xff] %v11099_v10  ;;  %2284 = vadd.xlane.f32.xlu1 %v2283_v52  ;;  %v3019_v62 = vpop.f32.mrb[31].mxu1  ;;  %v2286_v26 = vsel %vm698_vm3, %v11099_v10, 0.0  ;;  %v11117_v0 = vadd.f32 %v3017_v3, %v11055_v14 }
 0x249   : > { %v11112_v19 = vadd.f32 %v3019_v62, %v11058_v1  ;;  %v2287_v2 = vadd.f32 %v2286_v26, %v11108_v49 }
 0x24a   : > { %1129 = vperm.xlu0 %9208, %v1111_v50   ;;  %14104 = vst [vmem:[#allocation61_spill] sm:$0xff] %v11117_v0 }
 0x24b   : > { %14103 = vst [vmem:[#allocation60_spill] sm:$0xff] %v11112_v19  ;;  %v3076_v46 = vsel %vm698_vm3, %v11112_v19, 0.0 }
 0x24c   : > { %3070 = vadd.xlane.f32.xlu1 %v3069_v60  ;;  %v2237_v52 = vpop.f32.mrb[32].mxu0  ;;  %v3077_v26 = vadd.f32 %v3076_v46, %v11117_v0 }
 0x24d   : > { %v2239_v57 = vpop.f32.mrb[33].mxu0  ;;  %v11122_v45 = vpop.f32.mrb[32].mxu1  ;;  %v11130_v3 = vadd.f32 %v2237_v52, %v11061_v23 }
 0x24e   : > { %v11125_v62 = vadd.f32 %v2239_v57, %v11066_v5  ;;  %v2241_v13 = vpop.f32.mrb[34].mxu0  ;;  %v11127_v35 = vpop.f32.mrb[33].mxu1 }
 0x24f   : > { %v2243_v50 = vpop.f32.mrb[35].mxu0  ;;  %v3027_v60 = vpop.f32.mrb[34].mxu1  ;;  %14106 = vst [vmem:[#allocation63_spill] sm:$0xff] %v11130_v3 }
 0x250   : > { %14105 = vst [vmem:[#allocation62_spill] sm:$0xff] %v11125_v62  ;;  %2288 = vadd.xlane.f32.xlu1 %v2287_v2  ;;  %v3029_v49 = vpop.f32.mrb[35].mxu1  ;;  %v2294_v10 = vsel %vm698_vm3, %v11125_v62, 0.0 }
 0x251   : > { %v2295_v57 = vadd.f32 %v2294_v10, %v11130_v3  ;;  %v11150_v3 = vadd.f32 %v3029_v49, %v11058_v1 }
 0x254   : > { %3078 = vadd.xlane.f32.xlu1 %v3077_v26  ;;  %v2247_v19 = vpop.f32.mrb[36].mxu0 }
 0x255   : > { %v11137_v29 = vadd.f32 %v2247_v19, %v11061_v23  ;;  %v2249_v21 = vpop.f32.mrb[37].mxu0  ;;  %v3033_v54 = vpop.f32.mrb[36].mxu1 }
 0x256   : > { %v11140_v2 = vadd.f32 %v2249_v21, %v11066_v5  ;;  %v2251_v52 = vpop.f32.mrb[38].mxu0  ;;  %v3035_v43 = vpop.f32.mrb[37].mxu1 }
 0x257   : > { %14107 = vst [vmem:[#allocation64_spill] sm:$0xff] %v11137_v29  ;;  %v2253_v48 = vpop.f32.mrb[39].mxu0  ;;  %v11142_v46 = vpop.f32.mrb[38].mxu1  ;;  %v11168_v49 = vadd.f32 %v3035_v43, %v11058_v1 }
 0x258   : > { %14108 = vst [vmem:[#allocation65_spill] sm:$0xff] %v11140_v2  ;;  %14109 = vst [vmem:[#allocation66_spill] sm:$0xff] %v11142_v46  ;;  %2296 = vadd.xlane.f32.xlu1 %v2295_v57  ;;  %v2302_v26 = vsel %vm698_vm3, %v11140_v2, 0.0  ;;  %v11146_v62 = vpop.f32.mrb[39].mxu1  ;;  %v11161_v2 = vadd.f32 %v3027_v60, %v11055_v14  ;;  %v11178_v60 = vadd.f32 %v3033_v54, %v11055_v14 }
 0x259   : > { %v2303_v10 = vadd.f32 %v2302_v26, %v11137_v29  ;;  %14112 = vst [vmem:[#allocation69_spill] sm:$0xff] %v11168_v49  ;;  %v3088_v43 = vsel %vm698_vm3, %v11168_v49, 0.0  ;;  %v11204_v49 = vadd.f32 %v11105_v59, %v11066_v5  ;;  %v11219_v59 = vadd.f32 %v2241_v13, %v11061_v23 }
 0x25c   : > { %2304 = vadd.xlane.f32.xlu1 %v2303_v10  ;;  %v2257_v19 = vpop.f32.mrb[40].mxu0  ;;  %v3084_v10 = vsel %vm698_vm3, %v11150_v3, 0.0 }
 0x25d   : > { %v11153_v21 = vadd.f32 %v2257_v19, %v11061_v23  ;;  %v2259_v0 = vpop.f32.mrb[41].mxu0  ;;  %v3085_v29 = vadd.f32 %v3084_v10, %v11161_v2  ;;  %v3089_v10 = vadd.f32 %v3088_v43, %v11178_v60  ;;  %v2290_v43 = vsel %vm698_vm3, %v11204_v49, 0.0 }
 0x25e   : > { %v11156_v25 = vadd.f32 %v2259_v0, %v11066_v5  ;;  %v11158_v57 = vpop.f32.mrb[42].mxu0  ;;  %v11175_v0 = vadd.f32 %v11068_v28, %v11066_v5  ;;  %v11191_v28 = vadd.f32 %v11101_v58, %v11058_v1 }
 0x25f   : > { %14111 = vst [vmem:[#allocation68_spill] sm:$0xff] %v11158_v57  ;;  %v11163_v46 = vpop.f32.mrb[43].mxu0  ;;  %v11187_v57 = vadd.f32 %v11063_v53, %v11061_v23 }
 0x260   : > { %14110 = vst [vmem:[#allocation67_spill] sm:$0xff] %v11156_v25  ;;  %v2310_v26 = vsel %vm698_vm3, %v11156_v25, 0.0  ;;  %v735_v25 = vsel %vm698_vm3, %v11018_v38, 0.0  ;;  %v2278_v54 = vsel %vm698_vm3, %v11175_v0, 0.0  ;;  %v3072_v58 = vsel %vm698_vm3, %v11191_v28, 0.0 }
 0x261   : > { %v2311_v19 = vadd.f32 %v2310_v26, %v11153_v21  ;;  %v736_v26 = vadd.f32 %v735_v25, %v11009_v27  ;;  %v2279_v53 = vadd.f32 %v2278_v54, %v11187_v57  ;;  %v11210_v25 = vadd.f32 %v11103_v61, %v11061_v23 }
 0x263   : > { %2312 = vadd.xlane.f32.xlu1 %v2311_v19  ;;  %v11199_v19 = vadd.f32 %v11094_v34, %v11055_v14  ;;  %v11214_v34 = vadd.f32 %v2243_v50, %v11066_v5  ;;  %v2291_v54 = vadd.f32 %v2290_v43, %v11210_v25  ;;  %v11245_v43 = vpop.permute.xlu0 %1915 }
 0x264   : > { %14117 = vst [vmem:[#allocation74_spill] sm:$0xff] %v11245_v43 }
 0x265   : > { %14113 = vst [vmem:[#allocation70_spill] sm:$0xff] %v11199_v19  ;;  %v2298_v61 = vsel %vm698_vm3, %v11214_v34, 0.0 }
 0x266   : > { %v2299_v50 = vadd.f32 %v2298_v61, %v11219_v59 }
 0x267   : > { %3086 = vadd.xlane.f32.xlu1 %v3085_v29  ;;  %v3073_v29 = vadd.f32 %v3072_v58, %v11199_v19 }
 0x269   : > { %737 = vadd.xlane.f32.xlu0 %v736_v26  ;;  %v11223_v26 = vadd.f32 %v2253_v48, %v11066_v5  ;;  %v11239_v48 = vadd.f32 %v11122_v45, %v11055_v14 }
 0x26b   : > { %3090 = vadd.xlane.f32.xlu1 %v3089_v10  ;;  %v11228_v10 = vadd.f32 %v2251_v52, %v11061_v23  ;;  %v2306_v13 = vsel %vm698_vm3, %v11223_v26, 0.0  ;;  %14116 = vst [vmem:[#allocation73_spill] sm:$0xff] %v11239_v48 }
 0x26d   : > { %2280 = vadd.xlane.f32.xlu0 %v2279_v53  ;;  %14114 = vst [vmem:[#allocation71_spill] sm:$0xff] %v11228_v10  ;;  %v11233_v53 = vadd.f32 %v11127_v35, %v11058_v1  ;;  %v2307_v58 = vadd.f32 %v2306_v13, %v11228_v10  ;;  %v11247_v35 = vpop.permute.xlu1 %1920 }
 0x26e   : > { %14118 = vst [vmem:[#allocation75_spill] sm:$0xff] %v11247_v35 }
 0x26f   : > { %14115 = vst [vmem:[#allocation72_spill] sm:$0xff] %v11233_v53  ;;  %v3080_v52 = vsel %vm698_vm3, %v11233_v53, 0.0 }
 0x271   : > { %3074 = vadd.xlane.f32.xlu0 %v3073_v29  ;;  %v3081_v29 = vadd.f32 %v3080_v52, %v11239_v48  ;;  %v11251_v61 = vpop.permute.xlu1 %1925 }
 0x272   : > { %14120 = vst [vmem:[#allocation77_spill] sm:$0xff] %v11251_v61 }
 0x275   : > { %2292 = vadd.xlane.f32.xlu0 %v2291_v54  ;;  %v11249_v54 = vpop.permute.xlu0 %1930  ;;  %v11257_v13 = vpop.permute.xlu1 %1935 }
 0x276   : > { %14119 = vst [vmem:[#allocation76_spill] sm:$0xff] %v11249_v54  ;;  %14122 = vst [vmem:[#allocation79_spill] sm:$0xff] %v11257_v13 }
 0x279   : > { %2300 = vadd.xlane.f32.xlu0 %v2299_v50  ;;  %v11253_v45 = vpop.permute.xlu0 %1940  ;;  %v11255_v50 = vpop.f32.mrb[40].mxu1 }
 0x27a   : > { %14121 = vst [vmem:[#allocation78_spill] sm:$0xff] %v11253_v45  ;;  %v11259_v10 = vpop.f32.mrb[41].mxu1  ;;  %v11263_v52 = vpop.permute.xlu1 %1950 }
 0x27b   : > { %14124 = vst [vmem:[#allocation81_spill] sm:$0xff] %v11263_v52  ;;  %v11270_v45 = vpop.f32.mrb[42].mxu1 }
 0x27c   : > { %14127 = vst [vmem:[#allocation84_spill] sm:$0xff] %v11270_v45  ;;  %v11287_v45 = vpop.f32.mrb[43].mxu1 }
 0x27d   : > { %2308 = vadd.xlane.f32.xlu0 %v2307_v58  ;;  %v11261_v58 = vpop.permute.xlu0 %1945  ;;  %14131 = vst [vmem:[#allocation88_spill] sm:$0xff] %v11287_v45 }
 0x27e   : > { %14123 = vst [vmem:[#allocation80_spill] sm:$0xff] %v11261_v58 }
 0x281   : > { %3082 = vadd.xlane.f32.xlu0 %v3081_v29  ;;  %v11265_v29 = vpop.permute.xlu0 %1955 }
 0x282   : > { %14125 = vst [vmem:[#allocation82_spill] sm:$0xff] %v11265_v29 }
 0x2a0   : > { %v702_v43 = vpop.xlane.xlu1 %701 }
 0x2a1   : > { %v1495_v35 = vpop.xlane.xlu0 %1494  ;;  %v751_v48 = vmul.f32 0.0069444445, %v702_v43 }
 0x2a2   : > { %v1541_v54 = vmul.f32 0.0069444445, %v1495_v35 }
 0x2a3   : > { %v11268_v61 = vsub.f32 %v10860_v9, %v751_v48  ;;  %v11279_v58 = vsub.f32 %v10857_v6, %v751_v48 }
 0x2a4   : > { %v11273_v53 = vsub.f32 %v10866_v15, %v1541_v54  ;;  %v11276_v13 = vsub.f32 %v10863_v12, %v1541_v54 }
 0x2a5   : > { %14126 = vst [vmem:[#allocation83_spill] sm:$0xff] %v11268_v61  ;;  %14130 = vst [vmem:[#allocation87_spill] sm:$0xff] %v11279_v58  ;;  %v1499_v52 = vpop.xlane.xlu0 %1498  ;;  %v788_v29 = vmul.f32 %v11268_v61, %v11268_v61 }
 0x2a6   : > { %14128 = vst [vmem:[#allocation85_spill] sm:$0xff] %v11273_v53  ;;  %14129 = vst [vmem:[#allocation86_spill] sm:$0xff] %v11276_v13  ;;  %v1542_v43 = vmul.f32 0.0069444445, %v1499_v52  ;;  %v1577_v9 = vmul.f32 %v11273_v53, %v11273_v53  ;;  %v1578_v35 = vmul.f32 %v11276_v13, %v11276_v13  ;;  %v787_v52 = vmul.f32 %v11279_v58, %v11279_v58 }
 0x2a7   : > { %v811_v53 = vsel %vm698_vm3, %v788_v29, 0.0 }
 0x2a8   : > { %v11290_v15 = vsub.f32 %v10883_v24, %v1542_v43  ;;  %v11293_v12 = vsub.f32 %v10871_v18, %v1542_v43  ;;  %v1601_v6 = vsel %vm698_vm3, %v1578_v35, 0.0 }
 0x2a9   : > { %v706_v48 = vpop.xlane.xlu0 %705  ;;  %v1503_v54 = vpop.xlane.xlu1 %1502  ;;  %v1602_v61 = vadd.f32 %v1601_v6, %v1577_v9 }
 0x2aa   : > { %14132 = vst [vmem:[#allocation89_spill] sm:$0xff] %v11293_v12  ;;  %v752_v19 = vmul.f32 0.0069444445, %v706_v48  ;;  %v1543_v13 = vmul.f32 0.0069444445, %v1503_v54  ;;  %v1579_v45 = vmul.f32 %v11290_v15, %v11290_v15  ;;  %v1580_v24 = vmul.f32 %v11293_v12, %v11293_v12 }
 0x2ab   : > { %1603 = vadd.xlane.f32.xlu0 %v1602_v61  ;;  %v812_v54 = vadd.f32 %v811_v53, %v787_v52 }
 0x2ac   : > { %v11304_v18 = vsub.f32 %v10895_v36, %v752_v19  ;;  %v11307_v43 = vsub.f32 %v10878_v22, %v752_v19  ;;  %v11310_v9 = vsub.f32 %v10898_v37, %v1543_v13  ;;  %v11313_v29 = vsub.f32 %v10890_v32, %v1543_v13 }
 0x2ad   : > { %v714_v35 = vpop.xlane.xlu0 %713  ;;  %v710_v6 = vpop.xlane.xlu1 %709  ;;  %v1605_v48 = vsel %vm698_vm3, %v1580_v24, 0.0 }
 0x2ae   : > { %14133 = vst [vmem:[#allocation90_spill] sm:$0xff] %v11307_v43  ;;  %v753_v58 = vmul.f32 0.0069444445, %v710_v6  ;;  %v1606_v12 = vadd.f32 %v1605_v48, %v1579_v45  ;;  %v789_v36 = vmul.f32 %v11304_v18, %v11304_v18  ;;  %v754_v61 = vmul.f32 0.0069444445, %v714_v35 }
 0x2af   : > { %813 = vadd.xlane.f32.xlu0 %v812_v54  ;;  %v790_v22 = vmul.f32 %v11307_v43, %v11307_v43  ;;  %v1581_v37 = vmul.f32 %v11310_v9, %v11310_v9  ;;  %v1582_v32 = vmul.f32 %v11313_v29, %v11313_v29 }
 0x2b0   : > { %v11325_v19 = vsub.f32 %v10906_v41, %v753_v58  ;;  %v11328_v53 = vsub.f32 %v10887_v31, %v753_v58  ;;  %1607 = vadd.xlane.f32.xlu1 %v1606_v12  ;;  %v11333_v43 = vsub.f32 %v10901_v39, %v754_v61 }
 0x2b1   : > { %v1511_v45 = vpop.xlane.xlu0 %1510  ;;  %v1507_v13 = vpop.xlane.xlu1 %1506  ;;  %v815_v52 = vsel %vm698_vm3, %v790_v22, 0.0  ;;  %v1609_v24 = vsel %vm698_vm3, %v1582_v32, 0.0  ;;  %v11353_v32 = vsub.f32 %v10918_v47, %v754_v61 }
 0x2b2   : > { %14134 = vst [vmem:[#allocation91_spill] sm:$0xff] %v11325_v19  ;;  %14135 = vst [vmem:[#allocation92_spill] sm:$0xff] %v11328_v53  ;;  %v1545_v35 = vmul.f32 0.0069444445, %v1511_v45  ;;  %v1544_v6 = vmul.f32 0.0069444445, %v1507_v13  ;;  %v816_v48 = vadd.f32 %v815_v52, %v789_v36  ;;  %v1610_v54 = vadd.f32 %v1609_v24, %v1581_v37 }
 0x2b3   : > { %v791_v41 = vmul.f32 %v11325_v19, %v11325_v19  ;;  %v792_v31 = vmul.f32 %v11328_v53, %v11328_v53  ;;  %v794_v24 = vmul.f32 %v11333_v43, %v11333_v43 }
 0x2b4   : > { %v11340_v58 = vsub.f32 %v10934_v4, %v1545_v35  ;;  %v11343_v12 = vsub.f32 %v10926_v56, %v1545_v35  ;;  %v11346_v22 = vsub.f32 %v10931_v63, %v1544_v6  ;;  %v11349_v36 = vsub.f32 %v10911_v44, %v1544_v6  ;;  %817 = vadd.xlane.f32.xlu1 %v816_v48 }
 0x2b5   : > { %1611 = vadd.xlane.f32.xlu0 %v1610_v54  ;;  %v718_v39 = vpop.xlane.xlu1 %717  ;;  %v819_v37 = vsel %vm698_vm3, %v792_v31, 0.0  ;;  %v722_v45 = vpop.xlane.xlu0 %721  ;;  %v793_v31 = vmul.f32 %v11353_v32, %v11353_v32  ;;  %v823_v53 = vsel %vm698_vm3, %v794_v24, 0.0 }
 0x2b6   : > { %v755_v4 = vmul.f32 0.0069444445, %v718_v39  ;;  %v820_v13 = vadd.f32 %v819_v37, %v791_v41  ;;  %v1585_v56 = vmul.f32 %v11340_v58, %v11340_v58  ;;  %v1586_v63 = vmul.f32 %v11343_v12, %v11343_v12 }
 0x2b7   : > { %v1583_v44 = vmul.f32 %v11346_v22, %v11346_v22  ;;  %v1584_v52 = vmul.f32 %v11349_v36, %v11349_v36  ;;  %v756_v39 = vmul.f32 0.0069444445, %v722_v45 }
 0x2b8   : > { %v11366_v47 = vsub.f32 %v10923_v55, %v755_v4  ;;  %821 = vadd.xlane.f32.xlu1 %v820_v13  ;;  %v1617_v35 = vsel %vm698_vm3, %v1586_v63, 0.0  ;;  %v11373_v37 = vsub.f32 %v10942_v11, %v755_v4 }
 0x2b9   : > { %v1515_v61 = vpop.xlane.xlu1 %1514  ;;  %v1613_v6 = vsel %vm698_vm3, %v1584_v52, 0.0  ;;  %v1618_v54 = vadd.f32 %v1617_v35, %v1585_v56  ;;  %v1519_v55 = vpop.xlane.xlu0 %1518  ;;  %v11382_v52 = vsub.f32 %v10937_v7, %v756_v39  ;;  %v11393_v35 = vsub.f32 %v10954_v20, %v756_v39 }
 0x2ba   : > { %14136 = vst [vmem:[#allocation93_spill] sm:$0xff] %v11366_v47  ;;  %v1546_v48 = vmul.f32 0.0069444445, %v1515_v61  ;;  %v1614_v41 = vadd.f32 %v1613_v6, %v1583_v44  ;;  %14137 = vst [vmem:[#allocation94_spill] sm:$0xff] %v11373_v37  ;;  %v796_v63 = vmul.f32 %v11366_v47, %v11366_v47  ;;  %v824_v44 = vadd.f32 %v823_v53, %v793_v31 }
 0x2bb   : > { %1619 = vadd.xlane.f32.xlu0 %v1618_v54  ;;  %14138 = vst [vmem:[#allocation95_spill] sm:$0xff] %v11382_v52  ;;  %v1547_v45 = vmul.f32 0.0069444445, %v1519_v55  ;;  %v795_v4 = vmul.f32 %v11373_v37, %v11373_v37  ;;  %14139 = vst [vmem:[#allocation96_spill] sm:$0xff] %v11393_v35  ;;  %v798_v54 = vmul.f32 %v11382_v52, %v11382_v52  ;;  %v14147_v37 = vld [vmem:[#allocation32_spill] sm:$0xff] }
 0x2bc   : > { %v11377_v13 = vsub.f32 %v10947_v16, %v1546_v48  ;;  %1615 = vadd.xlane.f32.xlu1 %v1614_v41  ;;  %v11385_v11 = vsub.f32 %v10967_v40, %v1546_v48  ;;  %v827_v16 = vsel %vm698_vm3, %v796_v63, 0.0 }
 0x2bd   : > { %v726_v56 = vpop.xlane.xlu1 %725  ;;  %v11396_v7 = vsub.f32 %v10962_v33, %v1547_v45  ;;  %v730_v6 = vpop.xlane.xlu0 %729  ;;  %v828_v40 = vadd.f32 %v827_v16, %v795_v4  ;;  %v11411_v33 = vadd.f32 %v11146_v62, %v11058_v1  ;;  %v831_v62 = vsel %vm698_vm3, %v798_v54, 0.0  ;;  %v14145_v54 = vld [vmem:[#allocation33_spill] sm:$0xff] }
 0x2be   : > { %v1588_v24 = vmul.f32 %v11377_v13, %v11377_v13  ;;  %v1587_v48 = vmul.f32 %v11385_v11, %v11385_v11  ;;  %v757_v41 = vmul.f32 0.0069444445, %v726_v56  ;;  %v758_v4 = vmul.f32 0.0069444445, %v730_v6 }
 0x2c0   : > { %825 = vadd.xlane.f32.xlu1 %v824_v44  ;;  %v1621_v20 = vsel %vm698_vm3, %v1588_v24, 0.0  ;;  %v797_v44 = vmul.f32 %v11393_v35, %v11393_v35  ;;  %v11424_v24 = vsub.f32 %v10959_v30, %v757_v41  ;;  %v3092_v30 = vsel %vm698_vm3, %v11411_v33, 0.0 }
 0x2c1   : > { %v1523_v61 = vpop.xlane.xlu1 %1522  ;;  %v1622_v16 = vadd.f32 %v1621_v20, %v1587_v48  ;;  %v11444_v20 = vsub.f32 %v14145_v54, %v757_v41  ;;  %v11449_v19 = vsub.f32 %v14147_v37, %v758_v4 }
 0x2c2   : > { %v1548_v53 = vmul.f32 0.0069444445, %v1523_v61  ;;  %14140 = vst [vmem:[#allocation97_spill] sm:$0xff] %v11424_v24 }
 0x2c3   : > { %14148 = vst [vmem:[#allocation33_spill] sm:$0xff] %v11449_v19  ;;  %v799_v37 = vmul.f32 %v11444_v20, %v11444_v20 }
 0x2c4   : > { %v11403_v31 = vsub.f32 %v10993_v8, %v1548_v53  ;;  %v11406_v55 = vsub.f32 %v10983_v51, %v1548_v53  ;;  %829 = vadd.xlane.f32.xlu1 %v828_v40  ;;  %v11420_v51 = vsub.f32 %v10970_v42, %v1547_v45  ;;  %v1590_v40 = vmul.f32 %v11396_v7, %v11396_v7  ;;  %v1527_v42 = vpop.xlane.xlu0 %1526  ;;  %v14143_v45 = vld [vmem:[#allocation36_spill] sm:$0xff] }
 0x2c5   : > { %v734_v39 = vpop.xlane.xlu1 %733  ;;  %14146 = vst [vmem:[#allocation36_spill] sm:$0xff] %v11444_v20 }
 0x2c6   : > { %v759_v63 = vmul.f32 0.0069444445, %v734_v39  ;;  %v1591_v56 = vmul.f32 %v11403_v31, %v11403_v31  ;;  %v1592_v8 = vmul.f32 %v11406_v55, %v11406_v55  ;;  %v14142_v39 = vld [vmem:[#allocation66_spill] sm:$0xff] }
 0x2c7   : > { %v11434_v47 = vadd.f32 %v14142_v39, %v11055_v14  ;;  %v1589_v39 = vmul.f32 %v11420_v51, %v11420_v51 }
 0x2c8   : > { %v11427_v61 = vsub.f32 %v10998_v17, %v759_v63  ;;  %v1629_v53 = vsel %vm698_vm3, %v1592_v8, 0.0  ;;  %v11437_v6 = vsub.f32 %v14143_v45, %v759_v63  ;;  %1623 = vadd.xlane.f32.xlu1 %v1622_v16  ;;  %v832_v8 = vadd.f32 %v831_v62, %v797_v44  ;;  %v14149_v62 = vld [vmem:[#allocation34_spill] sm:$0xff] }
 0x2c9   : > { %v1630_v48 = vadd.f32 %v1629_v53, %v1591_v56  ;;  %v1549_v63 = vmul.f32 0.0069444445, %v1527_v42  ;;  %v1625_v56 = vsel %vm698_vm3, %v1590_v40, 0.0  ;;  %v800_v16 = vmul.f32 %v11424_v24, %v11424_v24  ;;  %v14151_v40 = vld [vmem:[#allocation35_spill] sm:$0xff]  ;;  %v14162_v24 = vld [vmem:[#allocation54_spill] sm:$0xff] }
 0x2ca   : > { %14141 = vst [vmem:[#allocation98_spill] sm:$0xff] %v11427_v61  ;;  %14144 = vst [vmem:[#allocation66_spill] sm:$0xff] %v11437_v6  ;;  %v804_v17 = vmul.f32 %v11427_v61, %v11427_v61  ;;  %v3093_v53 = vadd.f32 %v3092_v30, %v11434_v47  ;;  %v803_v41 = vmul.f32 %v11437_v6, %v11437_v6  ;;  %v9245_v61 = vld [vmem:[#allocation14 + $0xdc] ss:$12 sps:$4 sm:$0xff]   ;;  %v9246_v6 = vld [vmem:[#allocation14 + $0xe0] ss:$12 sps:$4 sm:$0xff]  }
 0x2cb   : > { %1631 = vadd.xlane.f32.xlu0 %v1630_v48  ;;  %v11459_v45 = vsub.f32 %v14149_v62, %v758_v4  ;;  %v1626_v48 = vadd.f32 %v1625_v56, %v1589_v39  ;;  %v11464_v42 = vsub.f32 %v14151_v40, %v1549_v63  ;;  %v835_v54 = vsel %vm698_vm3, %v800_v16, 0.0  ;;  %v14153_v4 = vld [vmem:[#allocation37_spill] sm:$0xff]  ;;  %3946 = vmatprep.subr.bf16.mxu0 %v9245_v61  ;;  %v9247_v40 = vld [vmem:[#allocation14 + $0xf0] ss:$12 sps:$4 sm:$0xff]  }
 0x2cc   : > { %833 = vadd.xlane.f32.xlu1 %v832_v8  ;;  %v843_v44 = vsel %vm698_vm3, %v804_v17, 0.0  ;;  %v802_v30 = vmul.f32 %v11449_v19, %v11449_v19  ;;  %v9243_v17 = vld [vmem:[#allocation14 + $0xd8] ss:$12 sps:$4 sm:$0xff]   ;;  %v11470_v62 = vsub.f32 %v14153_v4, %v1549_v63  ;;  %v836_v39 = vadd.f32 %v835_v54, %v799_v37  ;;  %4028 = vmatpush1.bf16.msra.mxu1 %v9246_v6  ;;  %v9249_v37 = vld [vmem:[#allocation14 + $0xf4] ss:$12 sps:$4 sm:$0xff]  }
 0x2cd   : > { %14150 = vst [vmem:[#allocation32_spill] sm:$0xff] %v11459_v45  ;;  %14152 = vst [vmem:[#allocation34_spill] sm:$0xff] %v11464_v42  ;;  %v844_v8 = vadd.f32 %v843_v44, %v803_v41  ;;  %v801_v56 = vmul.f32 %v11459_v45, %v11459_v45  ;;  %v1594_v16 = vmul.f32 %v11464_v42, %v11464_v42  ;;  %3947 = vmatpush1.bf16.msra.mxu0 %v9243_v17  ;;  %v14155_v41 = vmov 0   ;;  %v9250_v61 = vld [vmem:[#allocation14 + $0xf8] ss:$12 sps:$4 sm:$0xff]  }
 0x2ce   : > { %14154 = vst [vmem:[#allocation35_spill] sm:$0xff] %v11470_v62  ;;  %4029 = vmatprep.subr.bf16.mxu1 %v14155_v41  ;;  %v1593_v63 = vmul.f32 %v11470_v62, %v11470_v62  ;;  %3948 = vmatprep.subr.bf16.mxu0 %v9249_v37  ;;  %v9251_v6 = vld [vmem:[#allocation14 + $0x108] ss:$12 sps:$4 sm:$0xff]   ;;  %v9257_v17 = vld [vmem:[#allocation14 + $0x124] ss:$12 sps:$4 sm:$0xff]  }
 0x2cf   : > { %3094 = vadd.xlane.f32.xlu0 %v3093_v53  ;;  %v839_v53 = vsel %vm698_vm3, %v802_v30, 0.0  ;;  %v9253_v30 = vld [vmem:[#allocation14 + $0x10c] ss:$12 sps:$4 sm:$0xff]   ;;  %v9263_v37 = vld [vmem:[#allocation14 + $0x150] ss:$12 sps:$4 sm:$0xff]  }
 0x2d0   : > { %1627 = vadd.xlane.f32.xlu1 %v1626_v48  ;;  %v840_v44 = vadd.f32 %v839_v53, %v801_v56  ;;  %v1633_v48 = vsel %vm698_vm3, %v1594_v16, 0.0  ;;  %4030 = vmatpush1.bf16.msra.mxu1 %v9250_v61  ;;  %v9255_v4 = vld [vmem:[#allocation14 + $0x120] ss:$12 sps:$4 sm:$0xff]   ;;  %v9261_v56 = vld [vmem:[#allocation14 + $0x13c] ss:$12 sps:$4 sm:$0xff]   ;;  %v11485_v61 = vpop.permute.xlu0 %1129 }
 0x2d1   : > { %v1634_v54 = vadd.f32 %v1633_v48, %v1593_v63  ;;  %3949 = vmatpush1.bf16.msra.mxu0 %v9247_v40  ;;  %4031 = vmatprep.subr.bf16.mxu1 %v14155_v41  ;;  %v9259_v53 = vld [vmem:[#allocation14 + $0x138] ss:$12 sps:$4 sm:$0xff]   ;;  %v9262_v16 = vld [vmem:[#allocation14 + $0x140] ss:$12 sps:$4 sm:$0xff]  }
 0x2d2   : > { %3950 = vmatprep.subr.bf16.mxu0 %v9253_v30  ;;  %v1113_v63 = vld [vmem:[#allocation6 + $0x18] sm:$0xff] }
 0x2d3   : > { %845 = vadd.xlane.f32.xlu0 %v844_v8  ;;  %v9254_v8 = vld [vmem:[#allocation14 + $0x110] ss:$12 sps:$4 sm:$0xff]   ;;  %v9265_v48 = vld [vmem:[#allocation14 + $0x154] ss:$12 sps:$4 sm:$0xff]   ;;  %v9266_v40 = vld [vmem:[#allocation14 + $0x158] ss:$12 sps:$4 sm:$0xff]  }
 0x2d4   : > { %837 = vadd.xlane.f32.xlu1 %v836_v39  ;;  %4032 = vmatpush1.bf16.msra.mxu1 %v9254_v8  ;;  %v9258_v39 = vld [vmem:[#allocation14 + $0x128] ss:$12 sps:$4 sm:$0xff]   ;;  %v9269_v30 = vld [vmem:[#allocation14 + $0x16c] ss:$12 sps:$4 sm:$0xff]  }
 0x2d5   : > { %3951 = vmatpush1.bf16.msra.mxu0 %v9251_v6  ;;  %4033 = vmatprep.subr.bf16.mxu1 %v14155_v41  ;;  %v11487_v6 = vpop.xlane.xlu1 %3066  ;;  %v9267_v8 = vld [vmem:[#allocation14 + $0x168] ss:$12 sps:$4 sm:$0xff]  }
 0x2d6   : > { %3952 = vmatprep.subr.bf16.mxu0 %v9257_v17  ;;  %v9270_v17 = vld [vmem:[#allocation14 + $0x170] ss:$12 sps:$4 sm:$0xff]  }
 0x2d8   : > { %841 = vadd.xlane.f32.xlu1 %v840_v44  ;;  %4034 = vmatpush1.bf16.msra.mxu1 %v9258_v39  ;;  %v1110_v44 = vld [vmem:[#allocation6] sm:$0xff] }
 0x2d9   : > { %3953 = vmatpush1.bf16.msra.mxu0 %v9255_v4  ;;  %4035 = vmatprep.subr.bf16.mxu1 %v14155_v41 }
 0x2da   : > { %3954 = vmatprep.subr.bf16.mxu0 %v9261_v56  ;;  %v1117_v56 = vld [vmem:[#allocation6 + $0x38] sm:$0xff] }
 0x2dc   : > { %1635 = vadd.xlane.f32.xlu1 %v1634_v54  ;;  %4036 = vmatpush1.bf16.msra.mxu1 %v9262_v16  ;;  %v1115_v54 = vld [vmem:[#allocation6 + $0x28] sm:$0xff]  ;;  %v9272_v16 = vld [vmem:[%s10739_s29 + $0xb8] sm:$0x1f]  }
 0x2dd   : > { %3955 = vmatpush1.bf16.msra.mxu0 %v9259_v53  ;;  %4037 = vmatprep.subr.bf16.mxu1 %v14155_v41  ;;  %v9271_v53 = vld [vmem:[%s10739_s29 + $0x88] sm:$0x1f]  }
 0x2de   : > { %3956 = vmatprep.subr.bf16.mxu0 %v9265_v48  ;;  %8409 = vmatmul.mubr.msk.bf16.gmra.mrb[44].mxu0 %vm574_vm2, %v9271_v53 }
 0x2df   : > { %8449 = vmatmul.mubr.msk.bf16.gmra.mrb[44].mxu1 %vm574_vm2, %v9272_v16 }
 0x2e0   : > { %4038 = vmatpush1.bf16.msra.mxu1 %v9266_v40  ;;  %v9276_v40 = vld [vmem:[#allocation14 + $0x188] ss:$12 sps:$4 sm:$0xff]  }
 0x2e1   : > { %3957 = vmatpush1.bf16.msra.mxu0 %v9263_v37  ;;  %4039 = vmatprep.subr.bf16.mxu1 %v14155_v41  ;;  %v9273_v37 = vld [vmem:[#allocation14 + $0x180] ss:$12 sps:$4 sm:$0xff]  }
 0x2e2   : > { %3958 = vmatprep.subr.bf16.mxu0 %v9269_v30  ;;  %v2285_v30 = vpop.xlane.xlu1 %2284 }
 0x2e4   : > { %4040 = vmatpush1.bf16.msra.mxu1 %v9270_v17 }
 0x2e5   : > { %3959 = vmatpush1.bf16.msra.mxu0 %v9267_v8  ;;  %4041 = vmatprep.subr.bf16.mxu1 %v14155_v41 }
 0x2e6   : > { %v3071_v17 = vpop.xlane.xlu1 %3070 }
 0x2e8   : > { %4042 = vmatpush1.bf16.msra.mxu1 %v9276_v40  ;;  %v1112_v40 = vld [vmem:[#allocation6 + $0x10] sm:$0xff] }
 0x2e9   : > { %4043 = vmatprep.subr.bf16.mxu1 %v14155_v41 }
 0x2ed   : > { %1124 = vperm.xlu1 %9209, %v1110_v44   ;;  %v9275_v44 = vld [vmem:[#allocation14 + $0x184] ss:$12 sps:$4 sm:$0xff]  }
 0x2ee   : > { %3960 = vmatprep.subr.bf16.mxu0 %v9275_v44  ;;  %v2328_v44 = vmul.f32 0.0069444445, %v2285_v30 }
 0x2ef   : > { %3961 = vmatpush1.bf16.msra.mxu0 %v9273_v37  ;;  %v11517_v37 = vadd.f32 %v11259_v10, %v11058_v1  ;;  %v1114_v10 = vld [vmem:[#allocation6 + $0x20] sm:$0xff] }
 0x2f0   : > { %v11529_v20 = vsub.f32 %v14162_v24, %v2328_v44  ;;  %v9279_v1 = vld [vmem:[#allocation14 + $0x19c] ss:$12 sps:$4 sm:$0xff]  }
 0x2f1   : > { %1139 = vperm.xlu1 %9209, %v1113_v63   ;;  %14158 = vst [vmem:[#allocation100_spill] sm:$0xff] %v11517_v37  ;;  %v3096_v30 = vsel %vm698_vm3, %v11517_v37, 0.0  ;;  %3962 = vmatprep.subr.bf16.mxu0 %v9279_v1  ;;  %v1116_v37 = vld [vmem:[#allocation6 + $0x30] sm:$0xff] }
 0x2f2   : > { %14163 = vst [vmem:[#allocation54_spill] sm:$0xff] %v11529_v20 }
 0x2f5   : > { %1149 = vperm.xlu1 %9209, %v1115_v54  }
 0x2f6   : > { %v738_v4 = vpop.xlane.xlu0 %737 }
 0x2f7   : > { %v760_v39 = vmul.f32 0.0069444445, %v738_v4 }
 0x2f9   : > { %v11494_v63 = vsub.f32 %v11009_v27, %v760_v39  ;;  %v11497_v48 = vsub.f32 %v11018_v38, %v760_v39  ;;  %1159 = vperm.xlu1 %9209, %v1117_v56   ;;  %v11509_v39 = vpop.xlane.xlu1 %2288 }
 0x2fa   : > { %v11507_v4 = vpop.xlane.xlu0 %2280 }
 0x2fb   : > { %14156 = vst [vmem:[#allocation37_spill] sm:$0xff] %v11494_v63  ;;  %14157 = vst [vmem:[#allocation99_spill] sm:$0xff] %v11497_v48  ;;  %v805_v54 = vmul.f32 %v11494_v63, %v11494_v63  ;;  %v806_v8 = vmul.f32 %v11497_v48, %v11497_v48  ;;  %v11524_v48 = vadd.f32 %v11255_v50, %v11055_v14  ;;  %v9277_v50 = vld [vmem:[#allocation14 + $0x198] ss:$12 sps:$4 sm:$0xff]   ;;  %v9280_v14 = vld [vmem:[#allocation14 + $0x1a0] ss:$12 sps:$4 sm:$0xff]  }
 0x2fc   : > { %3963 = vmatpush1.bf16.msra.mxu0 %v9277_v50  ;;  %4044 = vmatpush1.bf16.msra.mxu1 %v9280_v14 }
 0x2fd   : > { %v847_v27 = vsel %vm698_vm3, %v806_v8, 0.0  ;;  %v3079_v53 = vpop.xlane.xlu1 %3078  ;;  %v14159_v8 = vld [vmem:[#allocation55_spill] sm:$0xff]  ;;  %14161 = vst [vmem:[#allocation101_spill] sm:$0xff] %v11524_v48  ;;  %4381 = vmatprep.subr.bf16.mxu1 %v14155_v41 }
 0x2fe   : > { %v848_v38 = vadd.f32 %v847_v27, %v805_v54  ;;  %v11511_v56 = vpop.xlane.xlu0 %3074  ;;  %v11520_v54 = vsub.f32 %v14159_v8, %v2328_v44 }
 0x300   : > { %849 = vadd.xlane.f32.xlu0 %v848_v38  ;;  %14160 = vst [vmem:[#allocation55_spill] sm:$0xff] %v11520_v54  ;;  %v2366_v62 = vmul.f32 %v11520_v54, %v11520_v54 }
 0x301   : > { %v11513_v63 = vpop.xlane.xlu1 %2296 }
 0x302   : > { %v2293_v16 = vpop.xlane.xlu0 %2292  ;;  %v2391_v19 = vsel %vm698_vm3, %v2366_v62, 0.0 }
 0x303   : > { %v2330_v27 = vmul.f32 0.0069444445, %v2293_v16 }
 0x305   : > { %v11531_v42 = vpop.xlane.xlu1 %2304  ;;  %v11534_v8 = vsub.f32 %v11204_v49, %v2330_v27  ;;  %v11542_v44 = vsub.f32 %v11210_v25, %v2330_v27  ;;  %v2365_v49 = vmul.f32 %v11529_v20, %v11529_v20 }
 0x306   : > { %v2301_v38 = vpop.xlane.xlu0 %2300 }
 0x307   : > { %14164 = vst [vmem:[#allocation102_spill] sm:$0xff] %v11534_v8  ;;  %v2332_v16 = vmul.f32 0.0069444445, %v2301_v38  ;;  %14165 = vst [vmem:[#allocation103_spill] sm:$0xff] %v11542_v44  ;;  %v3114_v38 = vmul.f32 0.0069444445, %v3071_v17  ;;  %v2370_v1 = vmul.f32 %v11534_v8, %v11534_v8  ;;  %v2392_v27 = vadd.f32 %v2391_v19, %v2365_v49 }
 0x308   : > { %v2369_v14 = vmul.f32 %v11542_v44, %v11542_v44  ;;  %v14168_v17 = vld [vmem:[#allocation56_spill] sm:$0xff] }
 0x309   : > { %v11539_v24 = vpop.xlane.xlu1 %2312  ;;  %v11547_v54 = vsub.f32 %v11214_v34, %v2332_v16  ;;  %v11554_v25 = vsub.f32 %v11219_v59, %v2332_v16  ;;  %v11559_v34 = vsub.f32 %v14168_v17, %v3114_v38  ;;  %v2399_v62 = vsel %vm698_vm3, %v2370_v1, 0.0 }
 0x30a   : > { %v2400_v19 = vadd.f32 %v2399_v62, %v2369_v14 }
 0x30b   : > { %14166 = vst [vmem:[#allocation104_spill] sm:$0xff] %v11547_v54  ;;  %14167 = vst [vmem:[#allocation105_spill] sm:$0xff] %v11554_v25  ;;  %v2374_v50 = vmul.f32 %v11547_v54, %v11547_v54  ;;  %v2373_v16 = vmul.f32 %v11554_v25, %v11554_v25  ;;  %v3152_v1 = vmul.f32 %v11559_v34, %v11559_v34  ;;  %v9289_v54 = vld [vmem:[#allocation14 + $0x4] ss:$12 sps:$4 sm:$0xff]  }
 0x30c   : > { %14169 = vst [vmem:[#allocation56_spill] sm:$0xff] %v11559_v34  ;;  %4300 = vmatprep.subr.bf16.mxu0 %v9289_v54 }
 0x30d   : > { %v3087_v8 = vpop.xlane.xlu1 %3086 }
 0x30e   : > { %v3118_v17 = vmul.f32 0.0069444445, %v3087_v8  ;;  %v3177_v8 = vsel %vm698_vm3, %v3152_v1, 0.0 }
 0x310   : > { %v11581_v62 = vsub.f32 %v11150_v3, %v3118_v17  ;;  %v11596_v3 = vadd.f32 %v11163_v46, %v11066_v5 }
 0x312   : > { %14176 = vst [vmem:[#allocation106_spill] sm:$0xff] %v11581_v62  ;;  %v3160_v54 = vmul.f32 %v11581_v62, %v11581_v62  ;;  %14178 = vst [vmem:[#allocation108_spill] sm:$0xff] %v11596_v3  ;;  %v1491_v62 = vld [vmem:[#allocation12] sm:$0x3] }
 0x314   : > { %v3193_v46 = vsel %vm698_vm3, %v3160_v54, 0.0 }
 0x316   : > { %1134 = vperm.xlu0 %9208, %v1112_v40   ;;  %v3097_v40 = vadd.f32 %v3096_v30, %v11524_v48  ;;  %v1118_v30 = vld [vmem:[#allocation6 + $0x40] sm:$0xff] }
 0x31a   : > { %1144 = vperm.xlu0 %9208, %v1114_v10   ;;  %v3116_v10 = vmul.f32 0.0069444445, %v3079_v53  ;;  %v2407_v53 = vsel %vm698_vm3, %v2374_v50, 0.0 }
 0x31d   : > { %3098 = vadd.xlane.f32.xlu1 %v3097_v40  ;;  %v14172_v40 = vld [vmem:[#allocation60_spill] sm:$0xff] }
 0x31e   : > { %1154 = vperm.xlu0 %9208, %v1116_v37   ;;  %v14170_v37 = vld [vmem:[#allocation57_spill] sm:$0xff]  ;;  %v11570_v49 = vsub.f32 %v14172_v40, %v3116_v10  ;;  %v3113_v40 = vmul.f32 0.0069444445, %v11487_v6  ;;  %v1490_v6 = vld [vmem:[#allocation11] sm:$0x3] }
 0x31f   : > { %v11565_v59 = vsub.f32 %v14170_v37, %v3114_v38  ;;  %v2408_v38 = vadd.f32 %v2407_v53, %v2373_v16  ;;  %v11587_v37 = vsub.f32 %v11161_v2, %v3118_v17  ;;  %v11599_v53 = vpop.xlane.xlu0 %2308  ;;  %v2329_v2 = vmul.f32 0.0069444445, %v11509_v39 }
 0x320   : > { %14173 = vst [vmem:[#allocation60_spill] sm:$0xff] %v11570_v49  ;;  %v3156_v50 = vmul.f32 %v11570_v49, %v11570_v49  ;;  %v2314_v39 = vsel %vm698_vm3, %v11596_v3, 0.0  ;;  %v14194_v3 = vld [vmem:[#allocation59_spill] sm:$0xff] }
 0x321   : > { %2393 = vadd.xlane.f32.xlu1 %v2392_v27  ;;  %14171 = vst [vmem:[#allocation57_spill] sm:$0xff] %v11565_v59  ;;  %v14174_v27 = vld [vmem:[#allocation61_spill] sm:$0xff]  ;;  %v3151_v14 = vmul.f32 %v11565_v59, %v11565_v59  ;;  %14177 = vst [vmem:[#allocation107_spill] sm:$0xff] %v11587_v37  ;;  %v3159_v1 = vmul.f32 %v11587_v37, %v11587_v37  ;;  %v696_v37 = vld [vmem:[#allocation11] sm:$0x3]  ;;  %v11643_v25 = vsub.f32 %v14194_v3, %v2329_v2 }
 0x322   : > { %1164 = vperm.xlu0 %9208, %v1118_v30   ;;  %v11576_v30 = vsub.f32 %v14174_v27, %v3116_v10  ;;  %v3185_v16 = vsel %vm698_vm3, %v3156_v50, 0.0  ;;  %v14179_v27 = vld [vmem:[#allocation68_spill] sm:$0xff] }
 0x323   : > { %14195 = vst [vmem:[#allocation59_spill] sm:$0xff] %v11643_v25 }
 0x324   : > { %14175 = vst [vmem:[#allocation61_spill] sm:$0xff] %v11576_v30  ;;  %v3155_v10 = vmul.f32 %v11576_v30, %v11576_v30  ;;  %v14189_v30 = vld [vmem:[#allocation40_spill] sm:$0xff] }
 0x325   : > { %2401 = vadd.xlane.f32.xlu1 %v2400_v19  ;;  %v3178_v19 = vadd.f32 %v3177_v8, %v3151_v14  ;;  %v2327_v14 = vmul.f32 0.0069444445, %v11507_v4  ;;  %v14181_v8 = vld [vmem:[#allocation53_spill] sm:$0xff]  ;;  %v3194_v4 = vadd.f32 %v3193_v46, %v3159_v1  ;;  %v14192_v1 = vld [vmem:[#allocation30_spill] sm:$0xff] }
 0x326   : > { %v3186_v17 = vadd.f32 %v3185_v16, %v3155_v10  ;;  %v11611_v50 = vsub.f32 %v14181_v8, %v3113_v40  ;;  %v14184_v16 = vld [vmem:[#allocation58_spill] sm:$0xff]  ;;  %v14187_v8 = vld [vmem:[#allocation31_spill] sm:$0xff]  ;;  %v11638_v46 = vrot.slane %v1490_v6, %v14192_v1  ;;  %v11663_v3 = vrot.slane %v696_v37, %v14192_v1 }
 0x327   : > { %v11618_v5 = vsub.f32 %v14184_v16, %v2329_v2  ;;  %v11622_v54 = vsub.f32 %v11175_v0, %v2327_v14  ;;  %v14190_v16 = vld [vmem:[#allocation52_spill] sm:$0xff]  ;;  %v697_v0 = vld [vmem:[#allocation12] sm:$0x3]  ;;  %v3091_v2 = vpop.xlane.xlu1 %3090 }
 0x328   : > { %14182 = vst [vmem:[#allocation53_spill] sm:$0xff] %v11611_v50  ;;  %v11634_v34 = vsub.f32 %v14190_v16, %v3113_v40  ;;  %14193 = vst [vmem:[#allocation111_spill] sm:$0xff] %v11638_v46  ;;  %v3150_v59 = vmul.f32 %v11611_v50, %v11611_v50  ;;  %v14198_v40 = vld [vmem:[#allocation62_spill] sm:$0xff] }
 0x329   : > { %2409 = vadd.xlane.f32.xlu1 %v2408_v38  ;;  %v11606_v38 = vadd.f32 %v14179_v27, %v11061_v23  ;;  %14185 = vst [vmem:[#allocation58_spill] sm:$0xff] %v11618_v5  ;;  %v2331_v27 = vmul.f32 0.0069444445, %v11513_v63  ;;  %v3083_v23 = vpop.xlane.xlu0 %3082  ;;  %14186 = vst [vmem:[#allocation109_spill] sm:$0xff] %v11622_v54  ;;  %v2333_v63 = vmul.f32 0.0069444445, %v11531_v42  ;;  %v2368_v42 = vmul.f32 %v11618_v5, %v11618_v5 }
 0x32a   : > { %14191 = vst [vmem:[#allocation52_spill] sm:$0xff] %v11634_v34  ;;  %14202 = vst [vmem:[#allocation116_spill] sm:$0xff] %v11663_v3  ;;  %v11669_v5 = vrot.slane %v697_v0, %v14192_v1  ;;  %v3173_v44 = vsel %vm698_vm3, %v3150_v59, 0.0 }
 0x32b   : > { %14180 = vst [vmem:[#allocation68_spill] sm:$0xff] %v11606_v38  ;;  %v11628_v49 = vadd.f32 %v2314_v39, %v11606_v38  ;;  %v11646_v39 = vrot.slane %v1491_v62, %v14187_v8  ;;  %v2335_v38 = vmul.f32 0.0069444445, %v11539_v24 }
 0x32c   : > { %14204 = vst [vmem:[#allocation118_spill] sm:$0xff] %v11669_v5 }
 0x32d   : > { %3179 = vadd.xlane.f32.xlu1 %v3178_v19  ;;  %v14183_v19 = vld [vmem:[#allocation42_spill] sm:$0xff]  ;;  %14196 = vst [vmem:[#allocation112_spill] sm:$0xff] %v11646_v39 }
 0x32e   : > { %v739_v10 = vsel %vm698_vm3, %v14183_v19, 0.0 }
 0x32f   : > { %v11631_v19 = vadd.f32 %v739_v10, %v14189_v30  ;;  %v11649_v10 = vrot.slane %v1491_v62, %v14192_v1  ;;  %v11660_v30 = vrot.slane %v696_v37, %v14187_v8  ;;  %v11666_v62 = vrot.slane %v697_v0, %v14187_v8 }
 0x330   : > { %v3149_v37 = vmul.f32 %v11634_v34, %v11634_v34  ;;  %v2367_v0 = vmul.f32 %v11643_v25, %v11643_v25  ;;  %v2395_v1 = vsel %vm698_vm3, %v2368_v42, 0.0  ;;  %v14210_v25 = vld [vmem:[#allocation67_spill] sm:$0xff] }
 0x331   : > { %3187 = vadd.xlane.f32.xlu1 %v3186_v17  ;;  %v11625_v17 = vrot.slane %v1490_v6, %v14187_v8  ;;  %14197 = vst [vmem:[#allocation113_spill] sm:$0xff] %v11649_v10  ;;  %v11657_v6 = vsub.f32 %v11187_v57, %v2327_v14  ;;  %14201 = vst [vmem:[#allocation115_spill] sm:$0xff] %v11660_v30  ;;  %v14205_v57 = vld [vmem:[#allocation65_spill] sm:$0xff]  ;;  %v11696_v42 = vsub.f32 %v14210_v25, %v2335_v38 }
 0x332   : > { %14203 = vst [vmem:[#allocation117_spill] sm:$0xff] %v11666_v62  ;;  %v11674_v14 = vsub.f32 %v14205_v57, %v2333_v63  ;;  %v3119_v57 = vmul.f32 0.0069444445, %v3091_v2  ;;  %v11700_v2 = vadd.f32 %v3173_v44, %v3149_v37  ;;  %v3117_v44 = vmul.f32 0.0069444445, %v3083_v23 }
 0x333   : > { %14188 = vst [vmem:[#allocation110_spill] sm:$0xff] %v11625_v17  ;;  %14200 = vst [vmem:[#allocation114_spill] sm:$0xff] %v11657_v6  ;;  %v2363_v24 = vmul.f32 %v11657_v6, %v11657_v6  ;;  %v2334_v6 = vmul.f32 0.0069444445, %v11599_v53 }
 0x334   : > { %14206 = vst [vmem:[#allocation65_spill] sm:$0xff] %v11674_v14 }
 0x335   : > { %3195 = vadd.xlane.f32.xlu1 %v3194_v4  ;;  %v11654_v4 = vsub.f32 %v14198_v40, %v2331_v27  ;;  %v2364_v40 = vmul.f32 %v11622_v54, %v11622_v54  ;;  %v14208_v54 = vld [vmem:[#allocation64_spill] sm:$0xff]  ;;  %v11724_v23 = vsub.f32 %v11223_v26, %v2334_v6 }
 0x336   : > { %v11687_v48 = vsub.f32 %v14208_v54, %v2333_v63  ;;  %14211 = vst [vmem:[#allocation64_spill] sm:$0xff] %v11696_v42  ;;  %v2376_v63 = vmul.f32 %v11674_v14, %v11674_v14 }
 0x337   : > { %14199 = vst [vmem:[#allocation62_spill] sm:$0xff] %v11654_v4  ;;  %v2372_v59 = vmul.f32 %v11654_v4, %v11654_v4  ;;  %v2387_v34 = vsel %vm698_vm3, %v2364_v40, 0.0  ;;  %v2396_v4 = vadd.f32 %v2395_v1, %v2367_v0  ;;  %14217 = vst [vmem:[#allocation121_spill] sm:$0xff] %v11724_v23 }
 0x338   : > { %v1604_v16 = vpop.xlane.xlu0 %1603  ;;  %v2375_v1 = vmul.f32 %v11687_v48, %v11687_v48 }
 0x339   : > { %v1650_v50 = vmul.f32 0.0069444445, %v1604_v16  ;;  %v14207_v16 = vld [vmem:[#allocation63_spill] sm:$0xff]  ;;  %v2403_v53 = vsel %vm698_vm3, %v2372_v59, 0.0 }
 0x33a   : > { %v11681_v20 = vsub.f32 %v14207_v16, %v2331_v27  ;;  %14209 = vst [vmem:[#allocation63_spill] sm:$0xff] %v11687_v48  ;;  %v3115_v27 = vmul.f32 0.0069444445, %v11511_v56 }
 0x33b   : > { %v1662_v8 = vadd.f32 1e-06, %v1650_v50 }
 0x33c   : > { %v814_v45 = vpop.xlane.xlu0 %813  ;;  %v2371_v56 = vmul.f32 %v11681_v20, %v11681_v20  ;;  %v11712_v35 = vsub.f32 %v11191_v28, %v3115_v27 }
 0x33d   : > { %9668 = vrsqrt.f32 %v1662_v8  ;;  %v860_v50 = vmul.f32 0.0069444445, %v814_v45  ;;  %v1608_v16 = vpop.xlane.xlu1 %1607  ;;  %v11706_v45 = vsub.f32 %v11153_v21, %v2335_v38  ;;  %v14213_v8 = vld [vmem:[#allocation69_spill] sm:$0xff]  ;;  %v2411_v21 = vsel %vm698_vm3, %v2376_v63, 0.0  ;;  %v14218_v63 = vld [vmem:[#allocation70_spill] sm:$0xff] }
 0x33e   : > { %v1651_v54 = vmul.f32 0.0069444445, %v1608_v16  ;;  %v11709_v40 = vsub.f32 %v14213_v8, %v3119_v57  ;;  %v2388_v16 = vadd.f32 %v2387_v34, %v2363_v24  ;;  %14215 = vst [vmem:[#allocation119_spill] sm:$0xff] %v11712_v35  ;;  %v2380_v38 = vmul.f32 %v11696_v42, %v11696_v42 }
 0x33f   : > { %v872_v52 = vadd.f32 1e-06, %v860_v50  ;;  %14212 = vst [vmem:[#allocation67_spill] sm:$0xff] %v11706_v45  ;;  %v11721_v34 = vsub.f32 %v11178_v60, %v3119_v57  ;;  %v2404_v59 = vadd.f32 %v2403_v53, %v2371_v56  ;;  %v3154_v26 = vmul.f32 %v11712_v35, %v11712_v35 }
 0x340   : > { %14214 = vst [vmem:[#allocation69_spill] sm:$0xff] %v11709_v40  ;;  %v1663_v25 = vadd.f32 1e-06, %v1651_v54  ;;  %v2379_v54 = vmul.f32 %v11706_v45, %v11706_v45  ;;  %v3162_v8 = vmul.f32 %v11709_v40, %v11709_v40  ;;  %v2412_v56 = vadd.f32 %v2411_v21, %v2375_v1 }
 0x341   : > { %v818_v37 = vpop.xlane.xlu1 %817  ;;  %2389 = vadd.xlane.f32.xlu0 %v2388_v16  ;;  %14216 = vst [vmem:[#allocation120_spill] sm:$0xff] %v11721_v34  ;;  %v14220_v16 = vld [vmem:[#allocation72_spill] sm:$0xff]  ;;  %v2419_v53 = vsel %vm698_vm3, %v2380_v38, 0.0 }
 0x342   : > { %9670 = vrsqrt.f32 %v1663_v25  ;;  %v1612_v0 = vpop.xlane.xlu0 %1611  ;;  %v861_v50 = vmul.f32 0.0069444445, %v818_v37  ;;  %v11731_v25 = vsub.f32 %v14218_v63, %v3115_v27  ;;  %v11734_v37 = vsub.f32 %v14220_v16, %v3117_v44  ;;  %v14224_v63 = vld [vmem:[#allocation73_spill] sm:$0xff] }
 0x343   : > { %9672 = vrsqrt.f32 %v872_v52  ;;  %v1652_v28 = vmul.f32 0.0069444445, %v1612_v0  ;;  %v2378_v27 = vmul.f32 %v11724_v23, %v11724_v23  ;;  %v11747_v16 = vsub.f32 %v14224_v63, %v3117_v44 }
 0x344   : > { %v873_v24 = vadd.f32 1e-06, %v861_v50  ;;  %14219 = vst [vmem:[#allocation70_spill] sm:$0xff] %v11731_v25  ;;  %14221 = vst [vmem:[#allocation72_spill] sm:$0xff] %v11734_v37  ;;  %v14222_v50 = vld [vmem:[#allocation71_spill] sm:$0xff]  ;;  %v3197_v21 = vsel %vm698_vm3, %v3162_v8, 0.0  ;;  %v11752_v35 = vadd.f32 %v2419_v53, %v2379_v54 }
 0x345   : > { %v1664_v60 = vadd.f32 1e-06, %v1652_v28  ;;  %v822_v57 = vpop.xlane.xlu1 %821  ;;  %2397 = vadd.xlane.f32.xlu0 %v2396_v4  ;;  %v11740_v40 = vsub.f32 %v14222_v50, %v2334_v6  ;;  %v3161_v28 = vmul.f32 %v11721_v34, %v11721_v34  ;;  %14225 = vst [vmem:[#allocation73_spill] sm:$0xff] %v11747_v16  ;;  %v14227_v4 = vld [vmem:[#allocation86_spill] sm:$0xff]  ;;  %v3153_v6 = vmul.f32 %v11731_v25, %v11731_v25 }
 0x346   : > { %9674 = vrsqrt.f32 %v873_v24  ;;  %v862_v52 = vmul.f32 0.0069444445, %v822_v57  ;;  %v14226_v24 = vld [vmem:[#allocation85_spill] sm:$0xff]  ;;  %v3158_v50 = vmul.f32 %v11734_v37, %v11734_v37  ;;  %v2415_v53 = vsel %vm698_vm3, %v2378_v27, 0.0 }
 0x347   : > { %v9669_v0 = vpop.eup %9668  ;;  %14223 = vst [vmem:[#allocation71_spill] sm:$0xff] %v11740_v40  ;;  %9676 = vrsqrt.f32 %v1664_v60  ;;  %v3181_v60 = vsel %vm698_vm3, %v3154_v26, 0.0  ;;  %v2377_v54 = vmul.f32 %v11740_v40, %v11740_v40 }
 0x348   : > { %v1686_v57 = vmul.f32 %v9669_v0, %v14226_v24  ;;  %v1687_v1 = vmul.f32 %v9669_v0, %v14227_v4  ;;  %v1620_v38 = vpop.xlane.xlu0 %1619  ;;  %v874_v24 = vadd.f32 1e-06, %v862_v52  ;;  %v11764_v4 = vadd.f32 %v3197_v21, %v3161_v28 }
 0x349   : > { %v1654_v34 = vmul.f32 0.0069444445, %v1620_v38  ;;  %v1616_v0 = vpop.xlane.xlu1 %1615  ;;  %2405 = vadd.xlane.f32.xlu0 %v2404_v59  ;;  %v3157_v52 = vmul.f32 %v11747_v16, %v11747_v16  ;;  %v14228_v38 = vld [vmem:[#allocation89_spill] sm:$0xff]  ;;  %v11772_v42 = vadd.f32 %v3181_v60, %v3153_v6  ;;  %v3189_v27 = vsel %vm698_vm3, %v3158_v50, 0.0  ;;  %v14229_v60 = vld [vmem:[#allocation87_spill] sm:$0xff] }
 0x34a   : > { %v1721_v44 = vmul.f32 %v11625_v17, %v1686_v57  ;;  %v1722_v63 = vmul.f32 %v11638_v46, %v1687_v1  ;;  %v1653_v8 = vmul.f32 0.0069444445, %v1616_v0  ;;  %9678 = vrsqrt.f32 %v874_v24 }
 0x34b   : > { %v1666_v57 = vadd.f32 1e-06, %v1654_v34  ;;  %v2416_v16 = vadd.f32 %v2415_v53, %v2377_v54  ;;  %v11778_v6 = vadd.f32 %v3189_v27, %v3157_v52  ;;  %v14230_v54 = vld [vmem:[#allocation90_spill] sm:$0xff] }
 0x34c   : > { %v9671_v26 = vpop.eup %9670  ;;  %v1756_v25 = vadd.f32 %v11646_v39, %v1721_v44  ;;  %v1757_v37 = vadd.f32 %v11649_v10, %v1722_v63  ;;  %v1665_v45 = vadd.f32 1e-06, %v1653_v8 }
 0x34d   : > { %v9673_v1 = vpop.eup %9672  ;;  %v1688_v59 = vmul.f32 %v9671_v26, %v11290_v15  ;;  %v1689_v0 = vmul.f32 %v9671_v26, %v14228_v38  ;;  %v826_v44 = vpop.xlane.xlu1 %825  ;;  %2316 = vadd.xlane.f32.xlu0 %v11628_v49  ;;  %9680 = vrsqrt.f32 %v1666_v57 }
 0x34e   : > { %v1804_v28 = vmul.f32 0.70710677, %v1756_v25  ;;  %v1805_v21 = vmul.f32 0.70710677, %v1757_v37  ;;  %v863_v26 = vmul.f32 0.0069444445, %v826_v44  ;;  %v896_v50 = vmul.f32 %v9673_v1, %v14229_v60 }
 0x34f   : > { %v1723_v34 = vmul.f32 %v11625_v17, %v1688_v59  ;;  %v1724_v63 = vmul.f32 %v11638_v46, %v1689_v0  ;;  %v1780_v52 = vmul.f32 0.5, %v1756_v25  ;;  %v14231_v44 = vld [vmem:[#allocation83_spill] sm:$0xff] }
 0x350   : > { %v9675_v15 = vpop.eup %9674  ;;  %9682 = verf.f32 %v1804_v28 }
 0x351   : > { %v9677_v38 = vpop.eup %9676  ;;  %9684 = verf.f32 %v1805_v21  ;;  %v1758_v24 = vadd.f32 %v11646_v39, %v1723_v34  ;;  %v1759_v8 = vadd.f32 %v11649_v10, %v1724_v63  ;;  %v898_v49 = vmul.f32 %v9675_v15, %v11304_v18  ;;  %v830_v0 = vpop.xlane.xlu1 %829  ;;  %2413 = vadd.xlane.f32.xlu0 %v2412_v56 }
 0x352   : > { %v1690_v59 = vmul.f32 %v9677_v38, %v11310_v9  ;;  %v1691_v57 = vmul.f32 %v9677_v38, %v11313_v29  ;;  %v899_v53 = vmul.f32 %v9675_v15, %v14230_v54  ;;  %9686 = vrsqrt.f32 %v1665_v45 }
 0x353   : > { %v1806_v27 = vmul.f32 0.70710677, %v1758_v24  ;;  %v1807_v28 = vmul.f32 0.70710677, %v1759_v8  ;;  %v897_v21 = vmul.f32 %v9673_v1, %v14231_v44  ;;  %v933_v18 = vmul.f32 %v11660_v30, %v898_v49 }
 0x354   : > { %v1725_v34 = vmul.f32 %v11625_v17, %v1690_v59  ;;  %v1726_v63 = vmul.f32 %v11638_v46, %v1691_v57  ;;  %v934_v9 = vmul.f32 %v11663_v3, %v899_v53  ;;  %v875_v29 = vadd.f32 1e-06, %v863_v26  ;;  %v11800_v57 = vpop.eup %9678 }
 0x355   : > { %9688 = verf.f32 %v1806_v27  ;;  %v864_v60 = vmul.f32 0.0069444445, %v830_v0  ;;  %v931_v45 = vmul.f32 %v11660_v30, %v896_v50  ;;  %v968_v1 = vadd.f32 %v11666_v62, %v933_v18  ;;  %v1624_v15 = vpop.xlane.xlu1 %1623  ;;  %2417 = vadd.xlane.f32.xlu0 %v2416_v16 }
 0x356   : > { %9690 = verf.f32 %v1807_v28  ;;  %v1760_v25 = vadd.f32 %v11646_v39, %v1725_v34  ;;  %v1761_v56 = vadd.f32 %v11649_v10, %v1726_v63  ;;  %v1781_v38 = vmul.f32 0.5, %v1757_v37 }
 0x357   : > { %v969_v49 = vadd.f32 %v11669_v5, %v934_v9  ;;  %v1655_v59 = vmul.f32 0.0069444445, %v1624_v15  ;;  %v11798_v26 = vmul.f32 %v11663_v3, %v897_v21  ;;  %v1782_v50 = vmul.f32 0.5, %v1758_v24  ;;  %v9681_v27 = vpop.eup %9680 }
 0x358   : > { %v1783_v54 = vmul.f32 0.5, %v1759_v8  ;;  %v1808_v53 = vmul.f32 0.70710677, %v1760_v25  ;;  %v1809_v0 = vmul.f32 0.70710677, %v1761_v56  ;;  %9692 = vrsqrt.f32 %v875_v29  ;;  %v1632_v15 = vpop.xlane.xlu0 %1631 }
 0x359   : > { %v1016_v28 = vmul.f32 0.70710677, %v968_v1  ;;  %v1017_v44 = vmul.f32 0.70710677, %v969_v49  ;;  %v11803_v34 = vadd.f32 %v11666_v62, %v931_v45  ;;  %v1694_v16 = vmul.f32 %v9681_v27, %v11340_v58  ;;  %v834_v18 = vpop.xlane.xlu1 %833  ;;  %2421 = vadd.xlane.f32.xlu0 %v11752_v35 }
 0x35a   : > { %v9683_v37 = vpop.eup %9682  ;;  %9694 = verf.f32 %v1808_v53  ;;  %v1695_v21 = vmul.f32 %v9681_v27, %v11343_v12  ;;  %v11807_v63 = vadd.f32 1e-06, %v864_v60  ;;  %v11810_v9 = vmul.f32 0.5, %v1760_v25 }
 0x35b   : > { %v9685_v24 = vpop.eup %9684  ;;  %v1852_v8 = vadd.f32 1.0, %v9683_v37  ;;  %9696 = verf.f32 %v1809_v0  ;;  %v1667_v29 = vadd.f32 1e-06, %v1655_v59  ;;  %v1729_v53 = vmul.f32 %v11625_v17, %v1694_v16 }
 0x35c   : > { %v9687_v45 = vpop.eup %9686  ;;  %v1853_v23 = vadd.f32 1.0, %v9685_v24  ;;  %9698 = verf.f32 %v1016_v28  ;;  %v1730_v58 = vmul.f32 %v11638_v46, %v1695_v21  ;;  %v1657_v59 = vmul.f32 0.0069444445, %v1632_v15  ;;  %v14232_v24 = vld [vmem:[#allocation74_spill] sm:$0xff] }
 0x35d   : > { %v1876_v12 = vmul.f32 %v1852_v8, %v1780_v52  ;;  %9700 = verf.f32 %v1017_v44  ;;  %v1692_v60 = vmul.f32 %v9687_v45, %v11346_v22  ;;  %v1693_v35 = vmul.f32 %v9687_v45, %v11349_v36  ;;  %v1628_v37 = vpop.xlane.xlu1 %1627  ;;  %3175 = vadd.xlane.f32.xlu0 %v11700_v2 }
 0x35e   : > { %v1877_v27 = vmul.f32 %v1853_v23, %v1781_v38  ;;  %v1764_v25 = vadd.f32 %v11646_v39, %v1729_v53  ;;  %v1765_v0 = vadd.f32 %v11649_v10, %v1730_v58  ;;  %9702 = vrsqrt.f32 %v1667_v29 }
 0x35f   : > { %v9689_v28 = vpop.eup %9688  ;;  %v1973_v16 = vmul.f32 %v14232_v24, %v1876_v12  ;;  %v1727_v21 = vmul.f32 %v11625_v17, %v1692_v60  ;;  %v1728_v52 = vmul.f32 %v11638_v46, %v1693_v35  ;;  %v1785_v38 = vmul.f32 0.5, %v1761_v56  ;;  %v3095_v35 = vpop.xlane.xlu0 %3094 }
 0x360   : > { %v9691_v22 = vpop.eup %9690  ;;  %v1974_v36 = vmul.f32 %v14232_v24, %v1877_v27  ;;  %v1854_v23 = vadd.f32 1.0, %v9689_v28  ;;  %v992_v44 = vmul.f32 0.5, %v968_v1  ;;  %v1812_v15 = vmul.f32 0.70710677, %v1764_v25 }
 0x361   : > { %v1855_v2 = vadd.f32 1.0, %v9691_v22  ;;  %v1813_v45 = vmul.f32 0.70710677, %v1765_v0  ;;  %v1762_v53 = vadd.f32 %v11646_v39, %v1727_v21  ;;  %v993_v29 = vmul.f32 0.5, %v969_v49  ;;  %3183 = vadd.xlane.f32.xlu0 %v11772_v42  ;;  %v14235_v22 = vld [vmem:[#allocation75_spill] sm:$0xff] }
 0x362   : > { %v8892_v58 = vpack.c.bf16 %v1974_v36, %v1973_v16  ;;  %v1878_v12 = vmul.f32 %v1854_v23, %v1782_v50  ;;  %v1763_v60 = vadd.f32 %v11649_v10, %v1728_v52  ;;  %v11832_v56 = vpop.eup %9692  ;;  %9704 = verf.f32 %v1812_v15  ;;  %v838_v16 = vpop.xlane.xlu1 %837 }
 0x363   : > { %v1879_v1 = vmul.f32 %v1855_v2, %v1783_v54  ;;  %v1810_v27 = vmul.f32 0.70710677, %v1762_v53  ;;  %v1669_v28 = vadd.f32 1e-06, %v1657_v59  ;;  %9706 = verf.f32 %v1813_v45 }
 0x364   : > { %v9695_v24 = vpop.eup %9694  ;;  %2070 = vst.msk [vmem:[#allocation2 + $0x60] sm:$0xff] %vm11825_vm6, %v8892_v58  ;;  %v1975_v21 = vmul.f32 %v14235_v22, %v1878_v12  ;;  %v1811_v50 = vmul.f32 0.70710677, %v1763_v60  ;;  %v865_v49 = vmul.f32 0.0069444445, %v834_v18  ;;  %v1788_v23 = vmul.f32 0.5, %v1764_v25 }
 0x365   : > { %v9697_v52 = vpop.eup %9696  ;;  %v1976_v36 = vmul.f32 %v14235_v22, %v1879_v1  ;;  %v1856_v42 = vadd.f32 1.0, %v9695_v24  ;;  %9708 = verf.f32 %v1810_v27  ;;  %v3120_v59 = vmul.f32 0.0069444445, %v3095_v35  ;;  %3191 = vadd.xlane.f32.xlu0 %v11778_v6  ;;  %v846_v24 = vpop.xlane.xlu0 %845  ;;  %v14236_v27 = vld [vmem:[#allocation77_spill] sm:$0xff] }
 0x366   : > { %v9699_v54 = vpop.eup %9698  ;;  %v1857_v2 = vadd.f32 1.0, %v9697_v52  ;;  %9710 = verf.f32 %v1811_v50  ;;  %v1656_v15 = vmul.f32 0.0069444445, %v1628_v37  ;;  %v1789_v48 = vmul.f32 0.5, %v1765_v0 }
 0x367   : > { %v9701_v58 = vpop.eup %9700  ;;  %v8893_v40 = vpack.c.bf16 %v1976_v36, %v1975_v21  ;;  %v1880_v45 = vmul.f32 %v1856_v42, %v11810_v9  ;;  %v1064_v12 = vadd.f32 1.0, %v9699_v54  ;;  %9712 = vrsqrt.f32 %v1669_v28  ;;  %v842_v28 = vpop.xlane.xlu1 %841 }
 0x368   : > { %v1881_v18 = vmul.f32 %v1857_v2, %v1785_v38  ;;  %v1065_v14 = vadd.f32 1.0, %v9701_v58  ;;  %v877_v1 = vadd.f32 1e-06, %v865_v49  ;;  %v9703_v25 = vpop.eup %9702  ;;  %v11844_v6 = vsub.f32 %v11434_v47, %v3120_v59 }
 0x369   : > { %2071 = vst.msk [vmem:[#allocation2 + $0x68] sm:$0xff] %vm11825_vm6, %v8893_v40  ;;  %v1977_v35 = vmul.f32 %v14236_v27, %v1880_v45  ;;  %v1088_v37 = vmul.f32 %v1064_v12, %v992_v44  ;;  %v1668_v22 = vadd.f32 1e-06, %v1656_v15  ;;  %v1696_v38 = vmul.f32 %v9703_v25, %v11385_v11  ;;  %741 = vadd.xlane.f32.xlu0 %v11631_v19 }
 0x36a   : > { %14237 = vst [vmem:[#allocation85_spill] sm:$0xff] %v11844_v6  ;;  %v1978_v9 = vmul.f32 %v14236_v27, %v1881_v18  ;;  %v1089_v21 = vmul.f32 %v1065_v14, %v993_v29  ;;  %v1697_v0 = vmul.f32 %v9703_v25, %v11377_v13  ;;  %v11852_v40 = vsub.f32 %v11411_v33, %v3120_v59 }
 0x36b   : > { %v1184_v50 = vmul.f32 %v11485_v61, %v1088_v37  ;;  %9714 = vrsqrt.f32 %v1668_v22  ;;  %v868_v44 = vmul.f32 0.0069444445, %v846_v24  ;;  %v1731_v52 = vmul.f32 %v11625_v17, %v1696_v38  ;;  %v14239_v37 = vld [vmem:[#allocation79_spill] sm:$0xff] }
 0x36c   : > { %14238 = vst [vmem:[#allocation86_spill] sm:$0xff] %v11852_v40  ;;  %v8894_v47 = vpack.c.bf16 %v1978_v9, %v1977_v35  ;;  %v1185_v49 = vmul.f32 %v11485_v61, %v1089_v21  ;;  %v1732_v14 = vmul.f32 %v11638_v46, %v1697_v0  ;;  %v9705_v11 = vpop.eup %9704  ;;  %v1786_v29 = vmul.f32 0.5, %v1762_v53  ;;  %v9287_v0 = vld [vmem:[#allocation14] ss:$12 sps:$4 sm:$0xff]  }
 0x36d   : > { %v1787_v13 = vmul.f32 0.5, %v1763_v60  ;;  %9716 = vrsqrt.f32 %v877_v1  ;;  %v867_v36 = vmul.f32 0.0069444445, %v842_v28  ;;  %v9707_v19 = vpop.eup %9706  ;;  %v1860_v42 = vadd.f32 1.0, %v9705_v11  ;;  %3199 = vadd.xlane.f32.xlu0 %v11764_v4  ;;  %v1636_v11 = vpop.xlane.xlu1 %1635 }
 0x36e   : > { %2072 = vst.msk [vmem:[#allocation2 + $0x70] sm:$0xff] %vm11825_vm6, %v8894_v47  ;;  %v8881_v33 = vpack.c.bf16 %v1185_v49, %v1184_v50  ;;  %v1766_v54 = vadd.f32 %v11646_v39, %v1731_v52  ;;  %v11861_v2 = vadd.f32 %v11649_v10, %v1732_v14  ;;  %v1861_v59 = vadd.f32 1.0, %v9707_v19  ;;  %v14240_v47 = vld [vmem:[#allocation76_spill] sm:$0xff] }
 0x36f   : > { %v9709_v61 = vpop.eup %9708  ;;  %v880_v15 = vadd.f32 1e-06, %v868_v44  ;;  %v866_v53 = vmul.f32 0.0069444445, %v838_v16  ;;  %v3164_v60 = vmul.f32 %v11852_v40, %v11852_v40  ;;  %v1884_v45 = vmul.f32 %v1860_v42, %v1788_v23 }
 0x370   : > { %v9711_v58 = vpop.eup %9710  ;;  %1282 = vst.msk [vmem:[#allocation2 + $0x8] sm:$0xff] %vm11825_vm6, %v8881_v33  ;;  %v1858_v12 = vadd.f32 1.0, %v9709_v61  ;;  %v879_v18 = vadd.f32 1e-06, %v867_v36  ;;  %v3163_v1 = vmul.f32 %v11844_v6, %v11844_v6  ;;  %v9281_v24 = vld [vmem:[#allocation2 + $0x60] ss:$8 sps:$4 sm:$0xff]   ;;  %v1885_v4 = vmul.f32 %v1861_v59, %v1789_v48 }
 0x371   : > { %v9713_v25 = vpop.eup %9712  ;;  %v1859_v27 = vadd.f32 1.0, %v9711_v58  ;;  %v1814_v35 = vmul.f32 0.70710677, %v1766_v54  ;;  %v1815_v16 = vmul.f32 0.70710677, %v11861_v2  ;;  %v1981_v22 = vmul.f32 %v14239_v37, %v1884_v45 }
 0x372   : > { %v1882_v9 = vmul.f32 %v1858_v12, %v1786_v29  ;;  %v1700_v21 = vmul.f32 %v9713_v25, %v11403_v31  ;;  %v1701_v38 = vmul.f32 %v9713_v25, %v11406_v55  ;;  %v9283_v23 = vld [vmem:[#allocation2 + $0x64] ss:$8 sps:$4 sm:$0xff]   ;;  %v1982_v28 = vmul.f32 %v14239_v37, %v1885_v4 }
 0x373   : > { %v1883_v50 = vmul.f32 %v1859_v27, %v1787_v13  ;;  %9718 = verf.f32 %v1814_v35  ;;  %v3201_v44 = vsel %vm698_vm3, %v3164_v60, 0.0  ;;  %v9290_v48 = vld [vmem:[#allocation14 + $0x8] ss:$12 sps:$4 sm:$0xff]   ;;  %8499 = vmatprep.mubr.msk.bf16.mxu0 %vm698_vm3, %v9283_v23  ;;  %8504 = vmatprep.mubr.msk.bf16.mxu1 %vm698_vm3, %v9283_v23  ;;  %v9291_v59 = vld [vmem:[#allocation14 + $0x18] ss:$12 sps:$4 sm:$0xff]  }
 0x374   : > { %v1979_v49 = vmul.f32 %v14240_v47, %v1882_v9  ;;  %9720 = verf.f32 %v1815_v16  ;;  %v1735_v52 = vmul.f32 %v11625_v17, %v1700_v21  ;;  %v1736_v14 = vmul.f32 %v11638_v46, %v1701_v38  ;;  %v9293_v31 = vld [vmem:[#allocation14 + $0x1c] ss:$12 sps:$4 sm:$0xff]   ;;  %3979 = vmatmul.mubr.bf16.vlgmr.msra.gmra.mrb[48].mxu0 %v9281_v24  ;;  %4060 = vmatmul.mubr.bf16.vlgmr.msra.gmra.mrb[48].mxu1 %v9281_v24  ;;  %v9294_v60 = vld [vmem:[#allocation14 + $0x20] ss:$12 sps:$4 sm:$0xff]  }
 0x375   : > { %v9715_v55 = vpop.eup %9714  ;;  %v8896_v29 = vpack.c.bf16 %v1982_v28, %v1981_v22  ;;  %v1980_v13 = vmul.f32 %v14240_v47, %v1883_v50  ;;  %9722 = vrsqrt.f32 %v11807_v63  ;;  %v3202_v36 = vadd.f32 %v3201_v44, %v3163_v1  ;;  %4301 = vmatpush1.bf16.msra.mxu0 %v9287_v0  ;;  %v9300_v58 = vld [vmem:[#allocation14 + $0x34] ss:$12 sps:$4 sm:$0xff]   ;;  %4382 = vmatpush1.bf16.msra.mxu1 %v9290_v48  ;;  %v9298_v35 = vld [vmem:[#allocation14 + $0x30] ss:$12 sps:$4 sm:$0xff]   ;;  %v14242_v23 = vld [vmem:[#allocation95_spill] sm:$0xff] }
 0x376   : > { %v1770_v19 = vadd.f32 %v11646_v39, %v1735_v52  ;;  %v11885_v33 = vadd.f32 %v11649_v10, %v1736_v14  ;;  %v1698_v42 = vmul.f32 %v9715_v55, %v11420_v51  ;;  %v1699_v61 = vmul.f32 %v9715_v55, %v11396_v7  ;;  %4302 = vmatprep.subr.bf16.mxu0 %v9293_v31  ;;  %v14241_v21 = vld [vmem:[#allocation96_spill] sm:$0xff]  ;;  %v2687_v31 = vld [vmem:[#allocation6 + $0xc0] sm:$0xff]  ;;  %v9302_v55 = vld [vmem:[#allocation14 + $0x48] ss:$12 sps:$4 sm:$0xff]  }
 0x377   : > { %v9717_v45 = vpop.eup %9716  ;;  %2074 = vst.msk [vmem:[#allocation2 + $0x80] sm:$0xff] %vm11825_vm6, %v8896_v29  ;;  %v8895_v63 = vpack.c.bf16 %v1980_v13, %v1979_v49  ;;  %v878_v12 = vadd.f32 1e-06, %v866_v53  ;;  %9724 = vrsqrt.f32 %v879_v18  ;;  %3203 = vadd.xlane.f32.xlu1 %v3202_v36  ;;  %v1658_v1 = vmul.f32 0.0069444445, %v1636_v11  ;;  %4383 = vmatprep.subr.bf16.mxu1 %v14155_v41 }
 0x378   : > { %v1790_v24 = vmul.f32 0.5, %v1766_v54  ;;  %v1818_v25 = vmul.f32 0.70710677, %v1770_v19  ;;  %v1819_v51 = vmul.f32 0.70710677, %v11885_v33  ;;  %9726 = vrsqrt.f32 %v880_v15 }
 0x379   : > { %2073 = vst.msk [vmem:[#allocation2 + $0x78] sm:$0xff] %vm11825_vm6, %v8895_v63  ;;  %v1733_v7 = vmul.f32 %v11625_v17, %v1698_v42  ;;  %v1734_v4 = vmul.f32 %v11638_v46, %v1699_v61  ;;  %v1670_v53 = vadd.f32 1e-06, %v1658_v1  ;;  %v967_v18 = vadd.f32 %v11669_v5, %v11798_v26  ;;  %4303 = vmatpush1.bf16.msra.mxu0 %v9291_v59  ;;  %v9301_v26 = vld [vmem:[#allocation14 + $0x38] ss:$12 sps:$4 sm:$0xff]   ;;  %v14243_v1 = vld [vmem:[#allocation78_spill] sm:$0xff] }
 0x37a   : > { %v1791_v54 = vmul.f32 0.5, %v11861_v2  ;;  %v11900_v27 = vmul.f32 0.5, %v1770_v19  ;;  %9728 = verf.f32 %v1818_v25  ;;  %v1014_v15 = vmul.f32 0.70710677, %v11803_v34  ;;  %4384 = vmatpush1.bf16.msra.mxu1 %v9294_v60  ;;  %4304 = vmatprep.subr.bf16.mxu0 %v9300_v58  ;;  %v9304_v2 = vld [vmem:[#allocation14 + $0x4c] ss:$12 sps:$4 sm:$0xff]  }
 0x37b   : > { %9730 = verf.f32 %v1819_v51  ;;  %v1768_v16 = vadd.f32 %v11646_v39, %v1733_v7  ;;  %v11905_v37 = vadd.f32 %v11649_v10, %v1734_v4  ;;  %v902_v22 = vmul.f32 %v11832_v56, %v11353_v32  ;;  %4385 = vmatprep.subr.bf16.mxu1 %v14155_v41  ;;  %v9311_v63 = vld [vmem:[#allocation14 + $0x64] ss:$12 sps:$4 sm:$0xff]   ;;  %v9408_v6 = vld [vmem:[#allocation14 + $0x320] ss:$12 sps:$4 sm:$0xff]  }
 0x37c   : > { %9732 = vrsqrt.f32 %v1670_v53  ;;  %v903_v9 = vmul.f32 %v11832_v56, %v11333_v43  ;;  %v906_v38 = vmul.f32 %v9717_v45, %v14241_v21  ;;  %v907_v0 = vmul.f32 %v9717_v45, %v14242_v23  ;;  %v9305_v45 = vld [vmem:[#allocation14 + $0x50] ss:$12 sps:$4 sm:$0xff]   ;;  %v2688_v23 = vld [vmem:[#allocation6 + $0xc8] sm:$0xff] }
 0x37d   : > { %v9719_v28 = vpop.eup %9718  ;;  %v1816_v50 = vmul.f32 0.70710677, %v1768_v16  ;;  %v1817_v44 = vmul.f32 0.70710677, %v11905_v37  ;;  %9734 = vrsqrt.f32 %v878_v12  ;;  %v1015_v32 = vmul.f32 0.70710677, %v967_v18  ;;  %4305 = vmatpush1.bf16.msra.mxu0 %v9298_v35 }
 0x37e   : > { %v9721_v48 = vpop.eup %9720  ;;  %v1862_v47 = vadd.f32 1.0, %v9719_v28  ;;  %9736 = verf.f32 %v1014_v15  ;;  %v937_v49 = vmul.f32 %v11660_v30, %v902_v22  ;;  %v938_v52 = vmul.f32 %v11663_v3, %v903_v9  ;;  %4386 = vmatpush1.bf16.msra.mxu1 %v9301_v26  ;;  %4306 = vmatprep.subr.bf16.mxu0 %v9304_v2  ;;  %v1119_v22 = vld [vmem:[#allocation6 + $0x48] sm:$0xff]  ;;  %v14244_v26 = vld [vmem:[#allocation32_spill] sm:$0xff] }
 0x37f   : > { %v11917_v43 = vpop.eup %9722  ;;  %v1863_v56 = vadd.f32 1.0, %v9721_v48  ;;  %9738 = verf.f32 %v1816_v50  ;;  %v941_v14 = vmul.f32 %v11660_v30, %v906_v38  ;;  %v942_v11 = vmul.f32 %v11663_v3, %v907_v0  ;;  %4387 = vmatprep.subr.bf16.mxu1 %v14155_v41  ;;  %v9309_v0 = vld [vmem:[#allocation14 + $0x60] ss:$12 sps:$4 sm:$0xff]   ;;  %v9312_v28 = vld [vmem:[#allocation14 + $0x68] ss:$12 sps:$4 sm:$0xff]  }
 0x380   : > { %v1886_v29 = vmul.f32 %v1862_v47, %v1790_v24  ;;  %9740 = verf.f32 %v1817_v44  ;;  %v972_v13 = vadd.f32 %v11666_v62, %v937_v49  ;;  %v973_v36 = vadd.f32 %v11669_v5, %v938_v52  ;;  %v9284_v19 = vld [vmem:[#allocation2 + $0x74] ss:$8 sps:$4 sm:$0xff]   ;;  %v9286_v42 = vld [vmem:[#allocation2 + $0x70] ss:$8 sps:$4 sm:$0xff]  }
 0x381   : > { %v9725_v61 = vpop.eup %9724  ;;  %v1887_v59 = vmul.f32 %v1863_v56, %v1791_v54  ;;  %9742 = verf.f32 %v1015_v32  ;;  %v11925_v60 = vadd.f32 %v11666_v62, %v941_v14  ;;  %v11928_v58 = vadd.f32 %v11669_v5, %v942_v11  ;;  %8500 = vmatprep.mubr.msk.bf16.mxu0 %vm698_vm3, %v9284_v19  ;;  %8505 = vmatprep.mubr.msk.bf16.mxu1 %vm698_vm3, %v9284_v19  ;;  %v9315_v47 = vld [vmem:[#allocation14 + $0x7c] ss:$12 sps:$4 sm:$0xff]  }
 0x382   : > { %v11930_v12 = vpop.eup %9726  ;;  %v1983_v24 = vmul.f32 %v14243_v1, %v1886_v29  ;;  %v1795_v25 = vmul.f32 0.5, %v11885_v33  ;;  %v11935_v51 = vmul.f32 0.5, %v11803_v34  ;;  %v1020_v7 = vmul.f32 0.70710677, %v972_v13  ;;  %3989 = vmatmul.mubr.bf16.gmra.mrb[52].mxu0 %v9286_v42  ;;  %4068 = vmatmul.mubr.bf16.gmra.mrb[52].mxu1 %v9286_v42  ;;  %v14246_v56 = vld [vmem:[#allocation35_spill] sm:$0xff]  ;;  %v14247_v11 = vld [vmem:[#allocation34_spill] sm:$0xff]  ;;  %v11958_v29 = vpop.permute.xlu1 %1124 }
 0x383   : > { %v1984_v4 = vmul.f32 %v14243_v1, %v1887_v59  ;;  %v11940_v53 = vmul.f32 0.5, %v1768_v16  ;;  %v11942_v54 = vmul.f32 0.5, %v967_v18  ;;  %v1021_v15 = vmul.f32 0.70710677, %v973_v36  ;;  %2701 = vperm.xlu0 %9208, %v2687_v31   ;;  %4307 = vmatpush1.bf16.msra.mxu0 %v9302_v55  ;;  %v14245_v18 = vld [vmem:[#allocation33_spill] sm:$0xff]  ;;  %v2689_v59 = vld [vmem:[#allocation6 + $0xd0] sm:$0xff] }
 0x384   : > { %v9729_v35 = vpop.eup %9728  ;;  %9744 = verf.f32 %v1020_v7  ;;  %v1024_v33 = vmul.f32 0.70710677, %v11925_v60  ;;  %v1025_v34 = vmul.f32 0.70710677, %v11928_v58  ;;  %v910_v2 = vmul.f32 %v9725_v61, %v14244_v26  ;;  %4388 = vmatpush1.bf16.msra.mxu1 %v9305_v45  ;;  %4308 = vmatprep.subr.bf16.mxu0 %v9311_v63 }
 0x385   : > { %v9731_v9 = vpop.eup %9730  ;;  %v8897_v21 = vpack.c.bf16 %v1984_v4, %v1983_v24  ;;  %v1866_v16 = vadd.f32 1.0, %v9729_v35  ;;  %9746 = verf.f32 %v1021_v15  ;;  %v911_v38 = vmul.f32 %v9725_v61, %v14245_v18  ;;  %4389 = vmatprep.subr.bf16.mxu1 %v14155_v41  ;;  %v9316_v4 = vld [vmem:[#allocation14 + $0x80] ss:$12 sps:$4 sm:$0xff]  }
 0x386   : > { %v9733_v50 = vpop.eup %9732  ;;  %v1867_v44 = vadd.f32 1.0, %v9731_v9  ;;  %v1793_v32 = vmul.f32 0.5, %v11905_v37  ;;  %9748 = verf.f32 %v1024_v33  ;;  %v945_v48 = vmul.f32 %v11660_v30, %v910_v2 }
 0x387   : > { %v11951_v49 = vpop.eup %9734  ;;  %2075 = vst.msk [vmem:[#allocation2 + $0x88] sm:$0xff] %vm11825_vm6, %v8897_v21  ;;  %v1890_v52 = vmul.f32 %v1866_v16, %v11900_v27  ;;  %v1702_v14 = vmul.f32 %v9733_v50, %v14246_v56  ;;  %v1703_v31 = vmul.f32 %v9733_v50, %v14247_v11  ;;  %9750 = verf.f32 %v1025_v34  ;;  %2706 = vperm.xlu0 %9208, %v2688_v23   ;;  %v14248_v27 = vld [vmem:[#allocation81_spill] sm:$0xff] }
 0x388   : > { %v9737_v55 = vpop.eup %9736  ;;  %v1891_v37 = vmul.f32 %v1867_v44, %v1795_v25  ;;  %v11960_v19 = vmul.f32 0.5, %v972_v13  ;;  %v11962_v42 = vmul.f32 0.5, %v973_v36  ;;  %1169 = vperm.xlu1 %9209, %v1119_v22   ;;  %v946_v61 = vmul.f32 %v11663_v3, %v911_v38  ;;  %v2691_v25 = vld [vmem:[#allocation6 + $0xe0] sm:$0xff]  ;;  %4309 = vmatpush1.bf16.msra.mxu0 %v9309_v0  ;;  %v2690_v44 = vld [vmem:[#allocation6 + $0xd8] sm:$0xff] }
 0x389   : > { %v9739_v45 = vpop.eup %9738  ;;  %v1987_v63 = vmul.f32 %v14248_v27, %v1890_v52  ;;  %v1737_v1 = vmul.f32 %v11625_v17, %v1702_v14  ;;  %v1738_v24 = vmul.f32 %v11638_v46, %v1703_v31  ;;  %v1062_v7 = vadd.f32 1.0, %v9737_v55  ;;  %4390 = vmatpush1.bf16.msra.mxu1 %v9312_v28  ;;  %v9313_v13 = vld [vmem:[#allocation14 + $0x78] ss:$12 sps:$4 sm:$0xff]   ;;  %4310 = vmatprep.subr.bf16.mxu0 %v9315_v47  ;;  %v9319_v22 = vld [vmem:[#allocation14 + $0x94] ss:$12 sps:$4 sm:$0xff]   ;;  %v1140_v31 = vpop.permute.xlu1 %1139 }
 0x38a   : > { %v9741_v36 = vpop.eup %9740  ;;  %v1988_v15 = vmul.f32 %v14248_v27, %v1891_v37  ;;  %v1864_v35 = vadd.f32 1.0, %v9739_v45  ;;  %v11970_v33 = vmul.f32 0.5, %v11925_v60  ;;  %v11973_v34 = vadd.f32 %v11666_v62, %v945_v48  ;;  %4391 = vmatprep.subr.bf16.mxu1 %v14155_v41  ;;  %v14249_v48 = vld [vmem:[#allocation91_spill] sm:$0xff]  ;;  %v9317_v52 = vld [vmem:[#allocation14 + $0x90] ss:$12 sps:$4 sm:$0xff]  }
 0x38b   : > { %v9743_v26 = vpop.eup %9742  ;;  %v1865_v2 = vadd.f32 1.0, %v9741_v36  ;;  %v11977_v9 = vadd.f32 %v11646_v39, %v1737_v1  ;;  %v11980_v21 = vadd.f32 %v11649_v10, %v1738_v24  ;;  %v11983_v16 = vadd.f32 %v11669_v5, %v946_v61  ;;  %2721 = vperm.xlu0 %9208, %v2691_v25   ;;  %v9320_v56 = vld [vmem:[#allocation14 + $0x98] ss:$12 sps:$4 sm:$0xff]  }
 0x38c   : > { %v8899_v60 = vpack.c.bf16 %v1988_v15, %v1987_v63  ;;  %v1888_v18 = vmul.f32 %v1864_v35, %v11940_v53  ;;  %v1063_v38 = vadd.f32 1.0, %v9743_v26  ;;  %v1086_v23 = vmul.f32 %v1062_v7, %v11935_v51  ;;  %2711 = vperm.xlu1 %9209, %v2689_v59   ;;  %4311 = vmatpush1.bf16.msra.mxu0 %v9313_v13  ;;  %v14250_v51 = vld [vmem:[#allocation80_spill] sm:$0xff]  ;;  %v2692_v37 = vld [vmem:[#allocation6 + $0xe8] sm:$0xff] }
 0x38d   : > { %v1889_v0 = vmul.f32 %v1865_v2, %v1793_v32  ;;  %v1820_v28 = vmul.f32 0.70710677, %v11977_v9  ;;  %v1001_v50 = vmul.f32 0.5, %v11928_v58  ;;  %v900_v47 = vmul.f32 %v11800_v57, %v14249_v48  ;;  %4392 = vmatpush1.bf16.msra.mxu1 %v9316_v4  ;;  %4312 = vmatprep.subr.bf16.mxu0 %v9319_v22  ;;  %v2693_v15 = vld [vmem:[#allocation6 + $0xf0] sm:$0xff] }
 0x38e   : > { %v9745_v14 = vpop.eup %9744  ;;  %2077 = vst.msk [vmem:[#allocation2 + $0x98] sm:$0xff] %vm11825_vm6, %v8899_v60  ;;  %v1985_v53 = vmul.f32 %v14250_v51, %v1888_v18  ;;  %v1821_v32 = vmul.f32 0.70710677, %v11980_v21  ;;  %v1087_v11 = vmul.f32 %v1063_v38, %v11942_v54  ;;  %v1182_v58 = vmul.f32 %v11958_v29, %v1086_v23  ;;  %v9295_v55 = vld [vmem:[#allocation2 + $0x84] ss:$8 sps:$4 sm:$0xff]   ;;  %4393 = vmatprep.subr.bf16.mxu1 %v14155_v41  ;;  %v14251_v18 = vld [vmem:[#allocation92_spill] sm:$0xff] }
 0x38f   : > { %v9747_v61 = vpop.eup %9746  ;;  %v1986_v59 = vmul.f32 %v14250_v51, %v1889_v0  ;;  %9752 = verf.f32 %v1820_v28  ;;  %v1068_v45 = vadd.f32 1.0, %v9745_v14  ;;  %v1028_v27 = vmul.f32 0.70710677, %v11973_v34  ;;  %v9297_v63 = vld [vmem:[#allocation2 + $0x80] ss:$8 sps:$4 sm:$0xff]   ;;  %8501 = vmatprep.mubr.msk.bf16.mxu0 %vm698_vm3, %v9295_v55  ;;  %8506 = vmatprep.mubr.msk.bf16.mxu1 %vm698_vm3, %v9295_v55 }
 0x390   : > { %v9749_v1 = vpop.eup %9748  ;;  %9754 = verf.f32 %v1821_v32  ;;  %v1183_v54 = vmul.f32 %v11958_v29, %v1087_v11  ;;  %v1069_v24 = vadd.f32 1.0, %v9747_v61  ;;  %v1029_v7 = vmul.f32 0.70710677, %v11983_v16  ;;  %2716 = vperm.xlu1 %9209, %v2690_v44   ;;  %3999 = vmatmul.mubr.bf16.gmra.mrb[56].mxu0 %v9297_v63  ;;  %v9325_v35 = vld [vmem:[#allocation14 + $0xac] ss:$12 sps:$4 sm:$0xff]   ;;  %v1150_v44 = vpop.permute.xlu1 %1149  ;;  %v14252_v14 = vld [vmem:[#allocation94_spill] sm:$0xff] }
 0x391   : > { %v9751_v25 = vpop.eup %9750  ;;  %v8898_v13 = vpack.c.bf16 %v1986_v59, %v1985_v53  ;;  %v1092_v4 = vmul.f32 %v1068_v45, %v11960_v19  ;;  %v1072_v36 = vadd.f32 1.0, %v9749_v1  ;;  %9756 = verf.f32 %v1028_v27  ;;  %4076 = vmatmul.mubr.bf16.gmra.mrb[56].mxu1 %v9297_v63  ;;  %2726 = vperm.xlu0 %9208, %v2692_v37   ;;  %v2695_v60 = vld [vmem:[#allocation6 + $0x100] sm:$0xff]  ;;  %v9323_v23 = vld [vmem:[#allocation14 + $0xa8] ss:$12 sps:$4 sm:$0xff]   ;;  %v9332_v51 = vld [vmem:[#allocation14 + $0xc4] ss:$12 sps:$4 sm:$0xff]  }
 0x392   : > { %v8880_v22 = vpack.c.bf16 %v1183_v54, %v1182_v58  ;;  %v1093_v29 = vmul.f32 %v1069_v24, %v11962_v42  ;;  %v1073_v26 = vadd.f32 1.0, %v9751_v25  ;;  %9758 = verf.f32 %v1029_v7  ;;  %4313 = vmatpush1.bf16.msra.mxu0 %v9317_v52  ;;  %4394 = vmatpush1.bf16.msra.mxu1 %v9320_v56  ;;  %v9329_v0 = vld [vmem:[#allocation14 + $0xb0] ss:$12 sps:$4 sm:$0xff]   ;;  %v14253_v32 = vld [vmem:[#allocation93_spill] sm:$0xff]  ;;  %v9330_v45 = vld [vmem:[#allocation14 + $0xc0] ss:$12 sps:$4 sm:$0xff]  }
 0x393   : > { %2076 = vst.msk [vmem:[#allocation2 + $0x90] sm:$0xff] %vm11825_vm6, %v8898_v13  ;;  %v1188_v2 = vmul.f32 %v1140_v31, %v1092_v4  ;;  %v1096_v19 = vmul.f32 %v1072_v36, %v11970_v33  ;;  %v901_v38 = vmul.f32 %v11800_v57, %v14251_v18  ;;  %v935_v48 = vmul.f32 %v11660_v30, %v900_v47  ;;  %v2694_v52 = vld [vmem:[#allocation6 + $0xf8] sm:$0xff]  ;;  %v3473_v37 = vld [vmem:[#allocation6 + $0x120] sm:$0xff]  ;;  %v3474_v18 = vld [vmem:[#allocation6 + $0x128] sm:$0xff] }
 0x394   : > { %1281 = vst.msk [vmem:[#allocation2] sm:$0xff] %vm11825_vm6, %v8880_v22  ;;  %v1189_v42 = vmul.f32 %v1140_v31, %v1093_v29  ;;  %v1097_v28 = vmul.f32 %v1073_v26, %v1001_v50  ;;  %2731 = vperm.xlu1 %9209, %v2693_v15   ;;  %v904_v33 = vmul.f32 %v11917_v43, %v14252_v14  ;;  %v12017_v57 = vmul.f32 0.5, %v11973_v34  ;;  %v9333_v27 = vld [vmem:[#allocation14 + $0xc8] ss:$12 sps:$4 sm:$0xff]  }
 0x395   : > { %v1192_v53 = vmul.f32 %v1150_v44, %v1096_v19  ;;  %v936_v56 = vmul.f32 %v11663_v3, %v901_v38  ;;  %v905_v11 = vmul.f32 %v11917_v43, %v14253_v32  ;;  %4314 = vmatprep.subr.bf16.mxu0 %v9325_v35  ;;  %4395 = vmatprep.subr.bf16.mxu1 %v14155_v41  ;;  %v1005_v34 = vmul.f32 0.5, %v11983_v16  ;;  %v14254_v43 = vld [vmem:[#allocation36_spill] sm:$0xff]  ;;  %v850_v16 = vpop.xlane.xlu0 %849  ;;  %v9338_v15 = vld [vmem:[#allocation14 + $0x1b4] ss:$12 sps:$4 sm:$0xff]   ;;  %v14280_v10 = vld [vmem:[#allocation103_spill] sm:$0xff] }
 0x396   : > { %v8883_v50 = vpack.c.bf16 %v1189_v42, %v1188_v2  ;;  %v1193_v58 = vmul.f32 %v1150_v44, %v1097_v28  ;;  %2741 = vperm.xlu0 %9208, %v2695_v60   ;;  %v12024_v47 = vadd.f32 %v11666_v62, %v935_v48  ;;  %v939_v31 = vmul.f32 %v11660_v30, %v904_v33  ;;  %v14258_v32 = vld [vmem:[#allocation98_spill] sm:$0xff] }
 0x397   : > { %v12029_v55 = vadd.f32 %v11669_v5, %v936_v56  ;;  %v940_v61 = vmul.f32 %v11663_v3, %v905_v11  ;;  %v908_v59 = vmul.f32 %v11951_v49, %v14254_v43  ;;  %4315 = vmatpush1.bf16.msra.mxu0 %v9323_v23  ;;  %4396 = vmatpush1.bf16.msra.mxu1 %v9329_v0  ;;  %v1796_v63 = vmul.f32 0.5, %v11977_v9  ;;  %v14255_v9 = vld [vmem:[#allocation97_spill] sm:$0xff] }
 0x398   : > { %1284 = vst.msk [vmem:[#allocation2 + $0x18] sm:$0xff] %vm11825_vm6, %v8883_v50  ;;  %v8885_v1 = vpack.c.bf16 %v1193_v58, %v1192_v53  ;;  %2736 = vperm.xlu1 %9209, %v2694_v52   ;;  %v1018_v54 = vmul.f32 0.70710677, %v12024_v47  ;;  %v12039_v24 = vadd.f32 %v11666_v62, %v939_v31  ;;  %4316 = vmatprep.subr.bf16.mxu0 %v9332_v51  ;;  %v1797_v25 = vmul.f32 0.5, %v11980_v21  ;;  %v14257_v53 = vld [vmem:[#allocation82_spill] sm:$0xff]  ;;  %v1160_v31 = vpop.permute.xlu1 %1159 }
 0x399   : > { %v9753_v7 = vpop.eup %9752  ;;  %v1019_v13 = vmul.f32 0.70710677, %v12029_v55  ;;  %v12044_v4 = vadd.f32 %v11669_v5, %v940_v61  ;;  %v909_v36 = vmul.f32 %v11951_v49, %v14255_v9  ;;  %4397 = vmatprep.subr.bf16.mxu1 %v14155_v41  ;;  %v943_v21 = vmul.f32 %v11660_v30, %v908_v59  ;;  %v14256_v49 = vld [vmem:[#allocation66_spill] sm:$0xff]  ;;  %v3475_v61 = vld [vmem:[#allocation6 + $0x130] sm:$0xff] }
 0x39a   : > { %v9755_v35 = vpop.eup %9754  ;;  %v1868_v22 = vadd.f32 1.0, %v9753_v7  ;;  %1286 = vst.msk [vmem:[#allocation2 + $0x28] sm:$0xff] %vm11825_vm6, %v8885_v1  ;;  %v9306_v29 = vld [vmem:[#allocation2 + $0x94] ss:$8 sps:$4 sm:$0xff]   ;;  %v9308_v26 = vld [vmem:[#allocation2 + $0x90] ss:$8 sps:$4 sm:$0xff]   ;;  %9760 = verf.f32 %v1018_v54  ;;  %3487 = vperm.xlu0 %9208, %v3473_v37   ;;  %v912_v38 = vmul.f32 %v11930_v12, %v14256_v49  ;;  %v913_v11 = vmul.f32 %v11930_v12, %v14258_v32 }
 0x39b   : > { %v9757_v2 = vpop.eup %9756  ;;  %v1869_v19 = vadd.f32 1.0, %v9755_v35  ;;  %v869_v60 = vmul.f32 0.0069444445, %v850_v16  ;;  %9762 = verf.f32 %v1019_v13  ;;  %4317 = vmatpush1.bf16.msra.mxu0 %v9330_v45  ;;  %4398 = vmatpush1.bf16.msra.mxu1 %v9333_v27  ;;  %v1022_v28 = vmul.f32 0.70710677, %v12039_v24  ;;  %v3476_v7 = vld [vmem:[#allocation6 + $0x138] sm:$0xff] }
 0x39c   : > { %v9759_v23 = vpop.eup %9758  ;;  %v1892_v0 = vmul.f32 %v1868_v22, %v1796_v63  ;;  %v1076_v42 = vadd.f32 1.0, %v9757_v2  ;;  %8502 = vmatprep.mubr.msk.bf16.mxu0 %vm698_vm3, %v9306_v29  ;;  %8507 = vmatprep.mubr.msk.bf16.mxu1 %vm698_vm3, %v9306_v29  ;;  %v1023_v44 = vmul.f32 0.70710677, %v12044_v4  ;;  %v944_v33 = vmul.f32 %v11663_v3, %v909_v36 }
 0x39d   : > { %v1893_v48 = vmul.f32 %v1869_v19, %v1797_v25  ;;  %v1077_v14 = vadd.f32 1.0, %v9759_v23  ;;  %4009 = vmatmul.mubr.bf16.gmra.mrb[60].mxu0 %v9308_v26  ;;  %4084 = vmatmul.mubr.bf16.gmra.mrb[60].mxu1 %v9308_v26  ;;  %v12060_v51 = vadd.f32 %v11666_v62, %v943_v21  ;;  %9764 = verf.f32 %v1022_v28 }
 0x39e   : > { %v1989_v52 = vmul.f32 %v14257_v53, %v1892_v0  ;;  %v1100_v56 = vmul.f32 %v1076_v42, %v12017_v57  ;;  %3492 = vperm.xlu0 %9208, %v3474_v18   ;;  %4783 = vmatprep.subr.bf16.mxu0 %v9338_v15  ;;  %9766 = verf.f32 %v1023_v44  ;;  %v12068_v37 = vadd.f32 %v11669_v5, %v944_v33  ;;  %v1135_v57 = vpop.permute.xlu0 %1134 }
 0x39f   : > { %v1990_v50 = vmul.f32 %v14257_v53, %v1893_v48  ;;  %v1101_v58 = vmul.f32 %v1077_v14, %v1005_v34  ;;  %4864 = vmatprep.subr.bf16.mxu1 %v14155_v41  ;;  %v881_v59 = vadd.f32 1e-06, %v869_v60  ;;  %v1026_v45 = vmul.f32 0.70710677, %v12060_v51 }
 0x3a0   : > { %v1196_v43 = vmul.f32 %v1160_v31, %v1100_v56  ;;  %v947_v27 = vmul.f32 %v11660_v30, %v912_v38  ;;  %v1027_v1 = vmul.f32 0.70710677, %v12068_v37  ;;  %v948_v34 = vmul.f32 %v11663_v3, %v913_v11 }
 0x3a1   : > { %v8900_v12 = vpack.c.bf16 %v1990_v50, %v1989_v52  ;;  %v1197_v63 = vmul.f32 %v1160_v31, %v1101_v58  ;;  %9768 = verf.f32 %v1026_v45  ;;  %v994_v15 = vmul.f32 0.5, %v12024_v47 }
 0x3a2   : > { %3497 = vperm.xlu0 %9208, %v3475_v61   ;;  %v982_v16 = vadd.f32 %v11666_v62, %v947_v27  ;;  %9770 = verf.f32 %v1027_v1  ;;  %v983_v13 = vadd.f32 %v11669_v5, %v948_v34  ;;  %v995_v22 = vmul.f32 0.5, %v12029_v55  ;;  %v1145_v26 = vpop.permute.xlu0 %1144  ;;  %v14259_v34 = vld [vmem:[#allocation37_spill] sm:$0xff] }
 0x3a3   : > { %2078 = vst.msk [vmem:[#allocation2 + $0xa0] sm:$0xff] %vm11825_vm6, %v8900_v12  ;;  %v8887_v54 = vpack.c.bf16 %v1197_v63, %v1196_v43  ;;  %9772 = vrsqrt.f32 %v881_v59  ;;  %v998_v38 = vmul.f32 0.5, %v12039_v24  ;;  %v999_v47 = vmul.f32 0.5, %v12044_v4  ;;  %v12088_v24 = vld [vmem:[#allocation2 + $0x4] ss:$8 sps:$4 sm:$0xff]  }
 0x3a4   : > { %v9761_v25 = vpop.eup %9760  ;;  %v1030_v9 = vmul.f32 0.70710677, %v982_v16  ;;  %v1031_v21 = vmul.f32 0.70710677, %v983_v13  ;;  %v1002_v50 = vmul.f32 0.5, %v12060_v51  ;;  %v1003_v61 = vmul.f32 0.5, %v12068_v37 }
 0x3a5   : > { %v9763_v36 = vpop.eup %9762  ;;  %1288 = vst.msk [vmem:[#allocation2 + $0x38] sm:$0xff] %vm11825_vm6, %v8887_v54  ;;  %v1066_v35 = vadd.f32 1.0, %v9761_v25  ;;  %v1006_v63 = vmul.f32 0.5, %v982_v16  ;;  %v9339_v16 = vld [vmem:[#allocation14 + $0x1b8] ss:$12 sps:$4 sm:$0xff]  }
 0x3a6   : > { %v1067_v29 = vadd.f32 1.0, %v9763_v36  ;;  %9774 = verf.f32 %v1030_v9  ;;  %3502 = vperm.xlu0 %9208, %v3476_v7   ;;  %v1155_v56 = vpop.permute.xlu0 %1154  ;;  %v14260_v9 = vld [vmem:[#allocation100_spill] sm:$0xff] }
 0x3a7   : > { %v1090_v2 = vmul.f32 %v1066_v35, %v994_v15  ;;  %v9765_v19 = vpop.eup %9764  ;;  %9776 = verf.f32 %v1031_v21  ;;  %v1007_v15 = vmul.f32 0.5, %v983_v13  ;;  %v9336_v21 = vld [vmem:[#allocation14 + $0x1b0] ss:$12 sps:$4 sm:$0xff]  }
 0x3a8   : > { %v1091_v60 = vmul.f32 %v1067_v29, %v995_v22  ;;  %v9767_v18 = vpop.eup %9766  ;;  %v1070_v23 = vadd.f32 1.0, %v9765_v19 }
 0x3a9   : > { %v1186_v49 = vmul.f32 %v1135_v57, %v1090_v2  ;;  %v1071_v42 = vadd.f32 1.0, %v9767_v18  ;;  %v14262_v18 = vld [vmem:[#allocation101_spill] sm:$0xff] }
 0x3aa   : > { %v1187_v0 = vmul.f32 %v1135_v57, %v1091_v60  ;;  %v3707_v28 = vld [vmem:[#allocation2 + $0xa0] sm:$0xff]  ;;  %v1094_v55 = vmul.f32 %v1070_v23, %v998_v38  ;;  %v3099_v14 = vpop.xlane.xlu1 %3098  ;;  %v1165_v25 = vpop.permute.xlu0 %1164 }
 0x3ab   : > { %v8471_v44 = vcombine.high %v3707_v28, %v3707_v28  ;;  %v8470_v48 = vcombine.low %v3707_v28, %v3707_v28  ;;  %v9769_v33 = vpop.eup %9768  ;;  %v1095_v52 = vmul.f32 %v1071_v42, %v999_v47  ;;  %v3121_v59 = vmul.f32 0.0069444445, %v3099_v14  ;;  %v9343_v23 = vld [vmem:[#allocation14 + $0x1cc] ss:$12 sps:$4 sm:$0xff]   ;;  %v9341_v42 = vld [vmem:[#allocation14 + $0x1c8] ss:$12 sps:$4 sm:$0xff]  }
 0x3ac   : > { %v8882_v53 = vpack.c.bf16 %v1187_v0, %v1186_v49  ;;  %v9771_v32 = vpop.eup %9770  ;;  %v1190_v11 = vmul.f32 %v1145_v26, %v1094_v55  ;;  %v1074_v58 = vadd.f32 1.0, %v9769_v33  ;;  %v9346_v28 = vld [vmem:[#allocation14 + $0x1d0] ss:$12 sps:$4 sm:$0xff]   ;;  %v14264_v55 = vld [vmem:[#allocation99_spill] sm:$0xff] }
 0x3ad   : > { %8503 = vmatprep.mubr.msk.bf16.mxu0 %vm698_vm3, %v8471_v44  ;;  %8508 = vmatprep.mubr.msk.bf16.mxu1 %vm698_vm3, %v8471_v44  ;;  %v9773_v4 = vpop.eup %9772  ;;  %v1191_v31 = vmul.f32 %v1145_v26, %v1095_v52  ;;  %v1075_v43 = vadd.f32 1.0, %v9771_v32  ;;  %v12101_v36 = vsub.f32 %v14260_v9, %v3121_v59  ;;  %v12103_v26 = vld [vmem:[#allocation2] ss:$8 sps:$4 sm:$0xff]   ;;  %v12108_v49 = vsub.f32 %v14262_v18, %v3121_v59 }
 0x3ae   : > { %1283 = vst.msk [vmem:[#allocation2 + $0x10] sm:$0xff] %vm11825_vm6, %v8882_v53  ;;  %4019 = vmatmul.mubr.bf16.gmra.mrb[64].mxu0 %v8470_v48  ;;  %4092 = vmatmul.mubr.bf16.gmra.mrb[64].mxu1 %v8470_v48  ;;  %v1098_v57 = vmul.f32 %v1074_v58, %v1002_v50  ;;  %v914_v54 = vmul.f32 %v9773_v4, %v14259_v34  ;;  %v2394_v38 = vpop.xlane.xlu1 %2393  ;;  %v9349_v33 = vld [vmem:[#allocation14 + $0x1e4] ss:$12 sps:$4 sm:$0xff]   ;;  %v9347_v32 = vld [vmem:[#allocation14 + $0x1e0] ss:$12 sps:$4 sm:$0xff]  }
 0x3af   : > { %8546 = vmatprep.mubr.msk.bf16.mxu0 %vm698_vm3, %v12088_v24  ;;  %8551 = vmatprep.mubr.msk.bf16.mxu1 %vm698_vm3, %v12088_v24  ;;  %v8884_v45 = vpack.c.bf16 %v1191_v31, %v1190_v11  ;;  %v1099_v27 = vmul.f32 %v1075_v43, %v1003_v61  ;;  %14261 = vst [vmem:[#allocation89_spill] sm:$0xff] %v12101_v36  ;;  %14263 = vst [vmem:[#allocation87_spill] sm:$0xff] %v12108_v49  ;;  %v9350_v11 = vld [vmem:[#allocation14 + $0x1e8] ss:$12 sps:$4 sm:$0xff]   ;;  %v2437_v50 = vmul.f32 0.0069444445, %v2394_v38 }
 0x3b0   : > { %v9775_v51 = vpop.eup %9774  ;;  %v1194_v12 = vmul.f32 %v1155_v56, %v1098_v57  ;;  %v949_v0 = vmul.f32 %v11660_v30, %v914_v54  ;;  %v3166_v13 = vmul.f32 %v12101_v36, %v12101_v36  ;;  %v915_v44 = vmul.f32 %v9773_v4, %v14264_v55  ;;  %v9354_v4 = vld [vmem:[#allocation14 + $0x1fc] ss:$12 sps:$4 sm:$0xff]  }
 0x3b1   : > { %v1078_v1 = vadd.f32 1.0, %v9775_v51  ;;  %v9777_v37 = vpop.eup %9776  ;;  %1285 = vst.msk [vmem:[#allocation2 + $0x20] sm:$0xff] %vm11825_vm6, %v8884_v45  ;;  %v1195_v7 = vmul.f32 %v1155_v56, %v1099_v27  ;;  %v3165_v14 = vmul.f32 %v12108_v49, %v12108_v49  ;;  %v14265_v51 = vld [vmem:[#allocation39_spill] sm:$0xff]  ;;  %v2449_v27 = vadd.f32 1e-06, %v2437_v50 }
 0x3b2   : > { %v1079_v35 = vadd.f32 1.0, %v9777_v37  ;;  %v12126_v53 = vadd.f32 %v11666_v62, %v949_v0  ;;  %v3205_v52 = vsel %vm698_vm3, %v3166_v13, 0.0  ;;  %v2402_v56 = vpop.xlane.xlu1 %2401  ;;  %v950_v43 = vmul.f32 %v11663_v3, %v915_v44  ;;  %v14267_v9 = vld [vmem:[#allocation43_spill] sm:$0xff]  ;;  %v9367_v0 = vld [vmem:[#allocation14 + $0x230] ss:$12 sps:$4 sm:$0xff]   ;;  %v12223_v39 = vpop.f32.mrb[44].mxu1 }
 0x3b3   : > { %v1102_v22 = vmul.f32 %v1078_v1, %v1006_v63  ;;  %v8886_v29 = vpack.c.bf16 %v1195_v7, %v1194_v12  ;;  %v3206_v61 = vadd.f32 %v3205_v52, %v3165_v14  ;;  %v2439_v57 = vmul.f32 0.0069444445, %v2402_v56  ;;  %v9352_v12 = vld [vmem:[#allocation14 + $0x1f8] ss:$12 sps:$4 sm:$0xff]   ;;  %v9357_v63 = vld [vmem:[#allocation14 + $0x200] ss:$12 sps:$4 sm:$0xff]  }
 0x3b4   : > { %v1103_v2 = vmul.f32 %v1079_v35, %v1007_v15  ;;  %v1032_v59 = vmul.f32 0.70710677, %v12126_v53  ;;  %v1528_v45 = vsel %vm698_vm3, %v14265_v51, 0.0  ;;  %v9360_v1 = vld [vmem:[#allocation14 + $0x214] ss:$12 sps:$4 sm:$0xff]   ;;  %v985_v34 = vadd.f32 %v11669_v5, %v950_v43  ;;  %14281 = vst [vmem:[#allocation95_spill] sm:$0xff] %v12223_v39 }
 0x3b5   : > { %v1198_v19 = vmul.f32 %v1165_v25, %v1102_v22  ;;  %v12105_v60 = vld [vmem:[#allocation2 + $0x14] ss:$8 sps:$4 sm:$0xff]   ;;  %1287 = vst.msk [vmem:[#allocation2 + $0x30] sm:$0xff] %vm11825_vm6, %v8886_v29  ;;  %v12131_v58 = vld [vmem:[#allocation2 + $0x10] ss:$8 sps:$4 sm:$0xff]   ;;  %v4556_v37 = vshll.u32 %v12088_v24, 16 }
 0x3b6   : > { %4333 = vmatmul.mubr.bf16.vlgmr.msra.gmra.mrb[48].mxu0 %v12103_v26  ;;  %4414 = vmatmul.mubr.bf16.vlgmr.msra.gmra.mrb[68].mxu1 %v12103_v26  ;;  %v1199_v47 = vmul.f32 %v1165_v25, %v1103_v2  ;;  %9778 = verf.f32 %v1032_v59  ;;  %v2451_v54 = vadd.f32 1e-06, %v2439_v57  ;;  %v14266_v7 = vld [vmem:[#allocation38_spill] sm:$0xff]  ;;  %v1532_v15 = vsel %vm698_vm3, %v14267_v9, 0.0  ;;  %v2410_v22 = vpop.xlane.xlu1 %2409  ;;  %v9370_v14 = vld [vmem:[#allocation14 + $0x244] ss:$12 sps:$4 sm:$0xff]  }
 0x3b7   : > { %8547 = vmatprep.mubr.msk.bf16.mxu0 %vm698_vm3, %v12105_v60  ;;  %8552 = vmatprep.mubr.msk.bf16.mxu1 %vm698_vm3, %v12105_v60  ;;  %v1529_v25 = vadd.f32 %v1528_v45, %v14266_v7  ;;  %v4544_v35 = vshll.u32 %v12103_v26, 16  ;;  %9780 = vrsqrt.f32 %v2449_v27  ;;  %v1033_v18 = vmul.f32 0.70710677, %v985_v34  ;;  %v2277_v56 = vld [vmem:[#allocation12] sm:$0x3]  ;;  %v14269_v57 = vld [vmem:[#allocation31_spill] sm:$0xff] }
 0x3b8   : > { %4784 = vmatpush1.bf16.msra.mxu0 %v9336_v21  ;;  %4865 = vmatpush1.bf16.msra.mxu1 %v9339_v16  ;;  %v8888_v48 = vpack.c.bf16 %v1199_v47, %v1198_v19  ;;  %v12133_v31 = vld [vmem:[#allocation2 + $0x24] ss:$8 sps:$4 sm:$0xff]   ;;  %v12153_v29 = vld [vmem:[#allocation2 + $0x20] ss:$8 sps:$4 sm:$0xff]   ;;  %9782 = vrsqrt.f32 %v2451_v54  ;;  %v4558_v38 = vrot.slane %v4556_v37, 1  ;;  %v4554_v55 = vshrl.u32 %v12088_v24, 16 }
 0x3b9   : > { %4785 = vmatprep.subr.bf16.mxu0 %v9343_v23  ;;  %4866 = vmatprep.subr.bf16.mxu1 %v14155_v41  ;;  %v9358_v21 = vld [vmem:[#allocation14 + $0x210] ss:$12 sps:$4 sm:$0xff]   ;;  %v9361_v16 = vld [vmem:[#allocation14 + $0x218] ss:$12 sps:$4 sm:$0xff]   ;;  %v9363_v23 = vld [vmem:[#allocation14 + $0x228] ss:$12 sps:$4 sm:$0xff]   ;;  %9784 = verf.f32 %v1033_v18 }
 0x3ba   : > { %1289 = vst.msk [vmem:[#allocation2 + $0x40] sm:$0xff] %vm11825_vm6, %v8888_v48  ;;  %v9365_v19 = vld [vmem:[#allocation14 + $0x22c] ss:$12 sps:$4 sm:$0xff]   ;;  %v4546_v13 = vrot.slane %v4544_v35, 1  ;;  %v4561_v44 = vshll.u32 %v12105_v60, 16  ;;  %v4549_v52 = vshll.u32 %v12131_v58, 16  ;;  %v4559_v24 = vor.u32 %v4558_v38, %v4554_v55 }
 0x3bb   : > { %v14268_v47 = vld [vmem:[#allocation41_spill] sm:$0xff]  ;;  %v2276_v48 = vld [vmem:[#allocation11] sm:$0x3]  ;;  %v9368_v50 = vld [vmem:[#allocation14 + $0x240] ss:$12 sps:$4 sm:$0xff]   ;;  %v1008_v59 = vmul.f32 0.5, %v12126_v53 }
 0x3bc   : > { %4786 = vmatpush1.bf16.msra.mxu0 %v9341_v42  ;;  %4867 = vmatpush1.bf16.msra.mxu1 %v9346_v28  ;;  %v12155_v2 = vld [vmem:[#allocation2 + $0x34] ss:$8 sps:$4 sm:$0xff]   ;;  %v1533_v42 = vadd.f32 %v1532_v15, %v14268_v47  ;;  %v2441_v28 = vmul.f32 0.0069444445, %v2410_v22  ;;  %v14271_v45 = vld [vmem:[#allocation30_spill] sm:$0xff]  ;;  %v4563_v37 = vrot.slane %v4561_v44, 1  ;;  %v12184_v15 = vrot.slane %v2277_v56, %v14269_v57 }
 0x3bd   : > { %4787 = vmatprep.subr.bf16.mxu0 %v9349_v33  ;;  %4868 = vmatprep.subr.bf16.mxu1 %v14155_v41  ;;  %v4542_v33 = vshrl.u32 %v12103_v26, 16  ;;  %v12174_v26 = vrot.slane %v2276_v48, %v14269_v57  ;;  %v12177_v27 = vrot.slane %v2276_v48, %v14271_v45  ;;  %v12179_v54 = vld [vmem:[#allocation2 + $0x30] ss:$8 sps:$4 sm:$0xff]  }
 0x3be   : > { %4343 = vmatmul.mubr.bf16.gmra.mrb[52].mxu0 %v12131_v58  ;;  %4422 = vmatmul.mubr.bf16.gmra.mrb[72].mxu1 %v12131_v58  ;;  %14273 = vst [vmem:[#allocation74_spill] sm:$0xff] %v12184_v15  ;;  %v9375_v22 = vld [vmem:[#allocation14 + $0x25c] ss:$12 sps:$4 sm:$0xff]   ;;  %v9418_v51 = vld [vmem:[#allocation14 + $0x34c] ss:$12 sps:$4 sm:$0xff]  }
 0x3bf   : > { %8548 = vmatprep.mubr.msk.bf16.mxu0 %vm698_vm3, %v12133_v31  ;;  %8553 = vmatprep.mubr.msk.bf16.mxu1 %vm698_vm3, %v12133_v31  ;;  %v4547_v43 = vor.u32 %v4546_v13, %v4542_v33  ;;  %14270 = vst [vmem:[#allocation90_spill] sm:$0xff] %v12174_v26  ;;  %14272 = vst [vmem:[#allocation83_spill] sm:$0xff] %v12177_v27  ;;  %v4573_v13 = vshrl.u32 %v12105_v60, 16  ;;  %v4564_v33 = vsel %vm4540_vm7, %v4559_v24, %v4563_v37 }
 0x3c0   : > { %4788 = vmatpush1.bf16.msra.mxu0 %v9347_v32  ;;  %4869 = vmatpush1.bf16.msra.mxu1 %v9350_v11  ;;  %v3180_v32 = vpop.xlane.xlu1 %3179  ;;  %v4569_v60 = vshll.u32 %v12153_v29, 16 }
 0x3c1   : > { %3207 = vadd.xlane.f32.xlu1 %v3206_v61  ;;  %4789 = vmatprep.subr.bf16.mxu0 %v9354_v4  ;;  %v12170_v11 = vld [vmem:[#allocation2 + $0x40] sm:$0xff]  ;;  %v9779_v4 = vpop.eup %9778  ;;  %v9371_v61 = vld [vmem:[#allocation14 + $0x248] ss:$12 sps:$4 sm:$0xff]   ;;  %v3223_v35 = vmul.f32 0.0069444445, %v3180_v32 }
 0x3c2   : > { %4870 = vmatprep.subr.bf16.mxu1 %v14155_v41  ;;  %v8518_v53 = vcombine.high %v12170_v11, %v12170_v11  ;;  %v1080_v18 = vadd.f32 1.0, %v9779_v4  ;;  %v9379_v32 = vld [vmem:[#allocation14 + $0x274] ss:$12 sps:$4 sm:$0xff]  }
 0x3c4   : > { %4790 = vmatpush1.bf16.msra.mxu0 %v9352_v12  ;;  %4871 = vmatpush1.bf16.msra.mxu1 %v9357_v63  ;;  %v3062_v12 = vld [vmem:[#allocation11] sm:$0x3]  ;;  %v3063_v63 = vld [vmem:[#allocation12] sm:$0x3]  ;;  %v3188_v48 = vpop.xlane.xlu1 %3187  ;;  %v12218_v24 = vmul.f32 %v1080_v18, %v1008_v59  ;;  %v4571_v59 = vrot.slane %v4569_v60, 1  ;;  %v4589_v60 = vshrl.u32 %v12133_v31, 16 }
 0x3c5   : > { %1530 = vadd.xlane.f32.xlu1 %v1529_v25  ;;  %4791 = vmatprep.subr.bf16.mxu0 %v9360_v1  ;;  %v2453_v1 = vadd.f32 1e-06, %v2441_v28  ;;  %v12181_v25 = vmul.f32 0.5, %v985_v34  ;;  %v4577_v34 = vshll.u32 %v12133_v31, 16  ;;  %v12195_v38 = vrot.slane %v3062_v12, %v14269_v57  ;;  %v9380_v18 = vld [vmem:[#allocation14 + $0x278] ss:$12 sps:$4 sm:$0xff]  }
 0x3c6   : > { %4353 = vmatmul.mubr.bf16.gmra.mrb[56].mxu0 %v12153_v29  ;;  %4430 = vmatmul.mubr.bf16.gmra.mrb[76].mxu1 %v12153_v29  ;;  %v12205_v28 = vrot.slane %v3063_v63, %v14269_v57  ;;  %v12208_v55 = vrot.slane %v3063_v63, %v14271_v45  ;;  %v14279_v63 = vld [vmem:[#allocation54_spill] sm:$0xff]  ;;  %v3225_v57 = vmul.f32 0.0069444445, %v3188_v48 }
 0x3c7   : > { %8549 = vmatprep.mubr.msk.bf16.mxu0 %vm698_vm3, %v12155_v2  ;;  %8554 = vmatprep.mubr.msk.bf16.mxu1 %vm698_vm3, %v12155_v2  ;;  %14275 = vst [vmem:[#allocation77_spill] sm:$0xff] %v12195_v38  ;;  %9786 = vrsqrt.f32 %v2453_v1  ;;  %v14283_v48 = vld [vmem:[#allocation102_spill] sm:$0xff] }
 0x3c8   : > { %4872 = vmatprep.subr.bf16.mxu1 %v14155_v41  ;;  %4792 = vmatpush1.bf16.msra.mxu0 %v9358_v21  ;;  %v4551_v21 = vrot.slane %v4549_v52, 1  ;;  %14277 = vst [vmem:[#allocation76_spill] sm:$0xff] %v12205_v28  ;;  %14278 = vst [vmem:[#allocation96_spill] sm:$0xff] %v12208_v55 }
 0x3c9   : > { %4873 = vmatpush1.bf16.msra.mxu1 %v9361_v16  ;;  %4793 = vmatprep.subr.bf16.mxu0 %v9365_v19  ;;  %v12189_v16 = vrot.slane %v2277_v56, %v14271_v45  ;;  %v9781_v19 = vpop.eup %9780  ;;  %v3235_v56 = vadd.f32 1e-06, %v3223_v35 }
 0x3ca   : > { %4874 = vmatprep.subr.bf16.mxu1 %v14155_v41  ;;  %1534 = vadd.xlane.f32.xlu0 %v1533_v42  ;;  %v4565_v42 = vshrl.u32 %v12131_v58, 16  ;;  %v9783_v44 = vpop.eup %9782  ;;  %v9376_v58 = vld [vmem:[#allocation14 + $0x260] ss:$12 sps:$4 sm:$0xff]   ;;  %v12214_v4 = vsel %vm4540_vm7, %v4547_v43, %v4551_v21  ;;  %v2474_v1 = vmul.f32 %v9781_v19, %v14279_v63 }
 0x3cb   : > { %14274 = vst [vmem:[#allocation75_spill] sm:$0xff] %v12189_v16  ;;  %v2478_v43 = vmul.f32 %v9783_v44, %v14280_v10  ;;  %v14284_v10 = vld [vmem:[#allocation55_spill] sm:$0xff] }
 0x3cc   : > { %4794 = vmatpush1.bf16.msra.mxu0 %v9363_v23  ;;  %v12198_v23 = vrot.slane %v3062_v12, %v14271_v45  ;;  %v4575_v12 = vor.u32 %v4573_v13, %v4563_v37  ;;  %v4567_v45 = vor.u32 %v4565_v42, %v4551_v21  ;;  %v8517_v37 = vcombine.low %v12170_v11, %v12170_v11  ;;  %v9377_v13 = vld [vmem:[#allocation14 + $0x270] ss:$12 sps:$4 sm:$0xff]   ;;  %v9383_v42 = vld [vmem:[#allocation14 + $0x28c] ss:$12 sps:$4 sm:$0xff]  }
 0x3cd   : > { %4875 = vmatpush1.bf16.msra.mxu1 %v9367_v0  ;;  %4795 = vmatprep.subr.bf16.mxu0 %v9370_v14  ;;  %v9373_v14 = vld [vmem:[#allocation14 + $0x258] ss:$12 sps:$4 sm:$0xff]   ;;  %v2475_v63 = vmul.f32 %v9781_v19, %v14284_v10  ;;  %v2509_v46 = vmul.f32 %v12174_v26, %v2474_v1  ;;  %v9384_v10 = vld [vmem:[#allocation14 + $0x290] ss:$12 sps:$4 sm:$0xff]  }
 0x3ce   : > { %4363 = vmatmul.mubr.bf16.gmra.mrb[60].mxu0 %v12179_v54  ;;  %4438 = vmatmul.mubr.bf16.gmra.mrb[80].mxu1 %v12179_v54  ;;  %14276 = vst [vmem:[#allocation79_spill] sm:$0xff] %v12198_v23  ;;  %v2390_v0 = vpop.xlane.xlu0 %2389 }
 0x3cf   : > { %8550 = vmatprep.mubr.msk.bf16.mxu0 %vm698_vm3, %v8518_v53  ;;  %8555 = vmatprep.mubr.msk.bf16.mxu1 %vm698_vm3, %v8518_v53  ;;  %v2436_v52 = vmul.f32 0.0069444445, %v2390_v0  ;;  %v4579_v53 = vrot.slane %v4577_v34, 1  ;;  %v9785_v0 = vpop.eup %9784  ;;  %v12227_v34 = vpop.f32.mrb[45].mxu1 }
 0x3d0   : > { %4876 = vmatprep.subr.bf16.mxu1 %v14155_v41  ;;  %4796 = vmatpush1.bf16.msra.mxu0 %v9368_v50  ;;  %14282 = vst [vmem:[#allocation78_spill] sm:$0xff] %v12227_v34  ;;  %v12232_v17 = vpop.f32.mrb[46].mxu1 }
 0x3d1   : > { %4877 = vmatpush1.bf16.msra.mxu1 %v9371_v61  ;;  %4797 = vmatprep.subr.bf16.mxu0 %v9375_v22  ;;  %v2448_v50 = vadd.f32 1e-06, %v2436_v52  ;;  %v4593_v61 = vshll.u32 %v12155_v2, 16  ;;  %v4585_v22 = vshll.u32 %v12179_v54, 16  ;;  %v2479_v52 = vmul.f32 %v9783_v44, %v14283_v48  ;;  %14285 = vst [vmem:[#allocation32_spill] sm:$0xff] %v12232_v17  ;;  %v14303_v17 = vld [vmem:[#allocation65_spill] sm:$0xff] }
 0x3d2   : > { %4878 = vmatprep.subr.bf16.mxu1 %v14155_v41  ;;  %v2398_v35 = vpop.xlane.xlu0 %2397  ;;  %v4580_v31 = vsel %vm4540_vm7, %v4575_v12, %v4579_v53  ;;  %v4605_v12 = vshrl.u32 %v12155_v2, 16  ;;  %v9381_v48 = vld [vmem:[#allocation14 + $0x288] ss:$12 sps:$4 sm:$0xff]   ;;  %v9387_v2 = vld [vmem:[#allocation14 + $0x2a4] ss:$12 sps:$4 sm:$0xff]  }
 0x3d3   : > { %9788 = vrsqrt.f32 %v2448_v50  ;;  %v2438_v21 = vmul.f32 0.0069444445, %v2398_v35  ;;  %v4581_v50 = vshrl.u32 %v12153_v29, 16  ;;  %v4595_v44 = vrot.slane %v4593_v61, 1 }
 0x3d4   : > { %4798 = vmatpush1.bf16.msra.mxu0 %v9373_v14  ;;  %9790 = vrsqrt.f32 %v3235_v56  ;;  %v1081_v56 = vadd.f32 1.0, %v9785_v0  ;;  %v4587_v1 = vrot.slane %v4585_v22, 1  ;;  %v2513_v35 = vmul.f32 %v12174_v26, %v2478_v43  ;;  %v9787_v22 = vpop.eup %9786 }
 0x3d5   : > { %4879 = vmatpush1.bf16.msra.mxu1 %v9376_v58  ;;  %4799 = vmatprep.subr.bf16.mxu0 %v9379_v32  ;;  %v2450_v14 = vadd.f32 1e-06, %v2438_v21  ;;  %v12236_v58 = vpop.f32.mrb[47].mxu1  ;;  %v3237_v32 = vadd.f32 1e-06, %v3225_v57  ;;  %v4591_v29 = vor.u32 %v4589_v60, %v4579_v53  ;;  %v4583_v0 = vor.u32 %v4581_v50, %v4571_v59  ;;  %v14287_v50 = vld [vmem:[#allocation105_spill] sm:$0xff] }
 0x3d6   : > { %4373 = vmatmul.mubr.bf16.gmra.mrb[68].mxu0 %v8517_v37  ;;  %4446 = vmatmul.mubr.bf16.gmra.mrb[84].mxu1 %v8517_v37  ;;  %14286 = vst [vmem:[#allocation33_spill] sm:$0xff] %v12236_v58  ;;  %v2406_v19 = vpop.xlane.xlu0 %2405  ;;  %v2514_v57 = vmul.f32 %v12177_v27, %v2479_v52  ;;  %v2544_v61 = vadd.f32 %v12184_v15, %v2509_v46  ;;  %v4597_v52 = vshrl.u32 %v12179_v54, 16  ;;  %v14292_v54 = vld [vmem:[#allocation104_spill] sm:$0xff] }
 0x3d7   : > { %8593 = vmatprep.mubr.msk.bf16.mxu0 %vm698_vm3, %v4564_v33  ;;  %8598 = vmatprep.mubr.msk.bf16.mxu1 %vm698_vm3, %v4564_v33  ;;  %v2440_v37 = vmul.f32 0.0069444445, %v2406_v19  ;;  %9792 = vrsqrt.f32 %v2450_v14  ;;  %v2510_v33 = vmul.f32 %v12177_v27, %v2475_v63  ;;  %v12247_v43 = vsel %vm4540_vm7, %v4567_v45, %v4571_v59  ;;  %v3481_v45 = vld [vmem:[#allocation6 + $0x160] sm:$0xff]  ;;  %v14288_v19 = vld [vmem:[#allocation68_spill] sm:$0xff] }
 0x3d8   : > { %4880 = vmatprep.subr.bf16.mxu1 %v14155_v41  ;;  %4800 = vmatpush1.bf16.msra.mxu0 %v9377_v13  ;;  %v12250_v13 = vmul.f32 %v1081_v56, %v12181_v25  ;;  %9794 = vrsqrt.f32 %v3237_v32  ;;  %v12255_v53 = vsel %vm4540_vm7, %v4591_v29, %v4595_v44  ;;  %v2548_v46 = vadd.f32 %v12184_v15, %v2513_v35 }
 0x3d9   : > { %4881 = vmatpush1.bf16.msra.mxu1 %v9380_v18  ;;  %5210 = vmatprep.subr.bf16.mxu0 %v9383_v42  ;;  %v2452_v21 = vadd.f32 1e-06, %v2440_v37  ;;  %v12258_v42 = vsel %vm4540_vm7, %v4583_v0, %v4587_v1  ;;  %v12261_v25 = vor.u32 %v4605_v12, %v4595_v44  ;;  %v2549_v63 = vadd.f32 %v12189_v16, %v2514_v57  ;;  %v14290_v44 = vld [vmem:[#allocation108_spill] sm:$0xff] }
 0x3da   : > { %5291 = vmatprep.subr.bf16.mxu1 %v14155_v41  ;;  %v2317_v18 = vpop.xlane.xlu0 %2316  ;;  %v2545_v14 = vadd.f32 %v12189_v16, %v2510_v33  ;;  %v2592_v60 = vmul.f32 0.70710677, %v2544_v61  ;;  %v2482_v56 = vmul.f32 %v9787_v22, %v14287_v50  ;;  %v2483_v29 = vmul.f32 %v9787_v22, %v14292_v54  ;;  %v2696_v50 = vld [vmem:[#allocation6 + $0x108] sm:$0xff] }
 0x3db   : > { %9796 = vrsqrt.f32 %v2452_v21  ;;  %v2336_v59 = vmul.f32 0.0069444445, %v2317_v18  ;;  %v2596_v33 = vmul.f32 0.70710677, %v2548_v46  ;;  %v14293_v21 = vld [vmem:[#allocation114_spill] sm:$0xff]  ;;  %v12279_v18 = vmul.f32 0.5, %v2544_v61 }
 0x3dc   : > { %v2597_v61 = vmul.f32 0.70710677, %v2549_v63  ;;  %v2593_v5 = vmul.f32 0.70710677, %v2545_v14  ;;  %9798 = verf.f32 %v2592_v60  ;;  %v2518_v62 = vmul.f32 %v12177_v27, %v2483_v29 }
 0x3dd   : > { %v9789_v32 = vpop.eup %9788  ;;  %v12270_v35 = vsub.f32 %v14288_v19, %v2336_v59  ;;  %v12273_v37 = vsub.f32 %v14290_v44, %v2336_v59  ;;  %v9385_v44 = vld [vmem:[#allocation14 + $0x2a0] ss:$12 sps:$4 sm:$0xff]   ;;  %9800 = verf.f32 %v2596_v33  ;;  %v9389_v33 = vld [vmem:[#allocation14 + $0x2b8] ss:$12 sps:$4 sm:$0xff]  }
 0x3de   : > { %4816 = vmatmul.mubr.bf16.vlgmr.msra.gmra.mrb[48].mxu0 %v12214_v4  ;;  %4897 = vmatmul.mubr.bf16.vlgmr.msra.gmra.mrb[88].mxu1 %v12214_v4  ;;  %v9791_v0 = vpop.eup %9790  ;;  %v2414_v57 = vpop.xlane.xlu0 %2413  ;;  %v2472_v12 = vmul.f32 %v9789_v32, %v14293_v21  ;;  %v12281_v4 = vor.u32 %v4597_v52, %v4587_v1  ;;  %v9388_v21 = vld [vmem:[#allocation14 + $0x2a8] ss:$12 sps:$4 sm:$0xff]   ;;  %v2517_v1 = vmul.f32 %v12174_v26, %v2482_v56 }
 0x3df   : > { %14289 = vst [vmem:[#allocation35_spill] sm:$0xff] %v12270_v35  ;;  %14291 = vst [vmem:[#allocation34_spill] sm:$0xff] %v12273_v37  ;;  %8594 = vmatprep.mubr.msk.bf16.mxu0 %vm698_vm3, %v4580_v31  ;;  %8599 = vmatprep.mubr.msk.bf16.mxu1 %vm698_vm3, %v4580_v31  ;;  %v2381_v59 = vmul.f32 %v12270_v35, %v12270_v35  ;;  %v2382_v22 = vmul.f32 %v12273_v37, %v12273_v37  ;;  %v2442_v19 = vmul.f32 0.0069444445, %v2414_v57  ;;  %v14294_v31 = vld [vmem:[#allocation109_spill] sm:$0xff] }
 0x3e0   : > { %3527 = vperm.xlu0 %9208, %v3481_v45   ;;  %5211 = vmatpush1.bf16.msra.mxu0 %v9381_v48  ;;  %v2473_v54 = vmul.f32 %v9789_v32, %v14294_v31  ;;  %v14295_v57 = vld [vmem:[#allocation57_spill] sm:$0xff]  ;;  %v9391_v56 = vld [vmem:[#allocation14 + $0x2bc] ss:$12 sps:$4 sm:$0xff]  }
 0x3e1   : > { %5292 = vmatpush1.bf16.msra.mxu1 %v9384_v10  ;;  %5212 = vmatprep.subr.bf16.mxu0 %v9387_v2  ;;  %v2454_v45 = vadd.f32 1e-06, %v2442_v19  ;;  %v2423_v52 = vsel %vm698_vm3, %v2382_v22, 0.0  ;;  %v3260_v48 = vmul.f32 %v9791_v0, %v14295_v57  ;;  %v9793_v3 = vpop.eup %9792  ;;  %v2507_v10 = vmul.f32 %v12174_v26, %v2472_v12  ;;  %v14296_v2 = vld [vmem:[#allocation56_spill] sm:$0xff]  ;;  %v14306_v37 = vld [vmem:[#allocation121_spill] sm:$0xff] }
 0x3e2   : > { %5293 = vmatprep.subr.bf16.mxu1 %v14155_v41  ;;  %v2418_v30 = vpop.xlane.xlu0 %2417  ;;  %v2424_v32 = vadd.f32 %v2423_v52, %v2381_v59  ;;  %v3261_v31 = vmul.f32 %v9791_v0, %v14296_v2  ;;  %v2508_v22 = vmul.f32 %v12177_v27, %v2473_v54  ;;  %v12296_v19 = vmul.f32 0.5, %v2545_v14  ;;  %v9795_v29 = vpop.eup %9794  ;;  %v9392_v12 = vld [vmem:[#allocation14 + $0x2c0] ss:$12 sps:$4 sm:$0xff]   ;;  %v14297_v14 = vld [vmem:[#allocation59_spill] sm:$0xff] }
 0x3e3   : > { %9802 = vrsqrt.f32 %v2454_v45  ;;  %v2443_v60 = vmul.f32 0.0069444445, %v2418_v30  ;;  %v12298_v57 = vmul.f32 0.5, %v2548_v46  ;;  %v12300_v59 = vmul.f32 0.5, %v2549_v63  ;;  %v9395_v54 = vld [vmem:[#allocation14 + $0x2d4] ss:$12 sps:$4 sm:$0xff]  }
 0x3e4   : > { %2746 = vperm.xlu0 %9208, %v2696_v50   ;;  %5213 = vmatpush1.bf16.msra.mxu0 %v9385_v44  ;;  %9804 = verf.f32 %v2597_v61  ;;  %v2552_v0 = vadd.f32 %v12184_v15, %v2517_v1  ;;  %v2476_v44 = vmul.f32 %v9793_v3, %v14297_v14  ;;  %v3295_v46 = vmul.f32 %v12195_v38, %v3260_v48  ;;  %v14298_v61 = vld [vmem:[#allocation58_spill] sm:$0xff]  ;;  %v9405_v35 = vld [vmem:[#allocation14 + $0x318] ss:$12 sps:$4 sm:$0xff]  }
 0x3e5   : > { %2425 = vadd.xlane.f32.xlu1 %v2424_v32  ;;  %5294 = vmatpush1.bf16.msra.mxu1 %v9388_v21  ;;  %v9797_v50 = vpop.eup %9796  ;;  %v2455_v30 = vadd.f32 1e-06, %v2443_v60  ;;  %v12307_v21 = vadd.f32 %v12189_v16, %v2518_v62  ;;  %v2477_v1 = vmul.f32 %v9793_v3, %v14298_v61  ;;  %9806 = verf.f32 %v2593_v5  ;;  %v9396_v3 = vld [vmem:[#allocation14 + $0x2d8] ss:$12 sps:$4 sm:$0xff]   ;;  %v14299_v32 = vld [vmem:[#allocation62_spill] sm:$0xff] }
 0x3e6   : > { %4826 = vmatmul.mubr.bf16.gmra.mrb[52].mxu0 %v12247_v43  ;;  %4905 = vmatmul.mubr.bf16.gmra.mrb[92].mxu1 %v12247_v43  ;;  %v2422_v63 = vpop.xlane.xlu0 %2421  ;;  %v12316_v43 = vadd.f32 %v12184_v15, %v2507_v10  ;;  %v3296_v45 = vmul.f32 %v12198_v23, %v3261_v31  ;;  %v12321_v52 = vadd.f32 %v12189_v16, %v2508_v22  ;;  %v2600_v2 = vmul.f32 0.70710677, %v2552_v0  ;;  %v14300_v5 = vld [vmem:[#allocation61_spill] sm:$0xff]  ;;  %v14301_v31 = vld [vmem:[#allocation60_spill] sm:$0xff] }
 0x3e7   : > { %8595 = vmatprep.mubr.msk.bf16.mxu0 %vm698_vm3, %v12255_v53  ;;  %8600 = vmatprep.mubr.msk.bf16.mxu1 %vm698_vm3, %v12255_v53  ;;  %9808 = vrsqrt.f32 %v2455_v30  ;;  %v2444_v62 = vmul.f32 0.0069444445, %v2422_v63  ;;  %v2480_v48 = vmul.f32 %v9797_v50, %v11681_v20  ;;  %v9393_v53 = vld [vmem:[#allocation14 + $0x2d0] ss:$12 sps:$4 sm:$0xff]   ;;  %v2481_v10 = vmul.f32 %v9797_v50, %v14299_v32  ;;  %v9399_v61 = vld [vmem:[#allocation14 + $0x2ec] ss:$12 sps:$4 sm:$0xff]  }
 0x3e8   : > { %5214 = vmatprep.subr.bf16.mxu0 %v9391_v56  ;;  %5295 = vmatprep.subr.bf16.mxu1 %v14155_v41  ;;  %v3264_v60 = vmul.f32 %v9795_v29, %v14300_v5  ;;  %v3265_v30 = vmul.f32 %v9795_v29, %v14301_v31  ;;  %v2511_v56 = vmul.f32 %v12174_v26, %v2476_v44  ;;  %v2601_v22 = vmul.f32 0.70710677, %v12307_v21  ;;  %v9397_v5 = vld [vmem:[#allocation14 + $0x2e8] ss:$12 sps:$4 sm:$0xff]   ;;  %v9400_v31 = vld [vmem:[#allocation14 + $0x2f0] ss:$12 sps:$4 sm:$0xff]  }
 0x3e9   : > { %5215 = vmatpush1.bf16.msra.mxu0 %v9389_v33  ;;  %5296 = vmatpush1.bf16.msra.mxu1 %v9392_v12  ;;  %v2456_v14 = vadd.f32 1e-06, %v2444_v62  ;;  %v12331_v20 = vadd.f32 %v12205_v28, %v3295_v46  ;;  %v12333_v33 = vpop.eup %9798  ;;  %v2512_v50 = vmul.f32 %v12177_v27, %v2477_v1  ;;  %v2590_v63 = vmul.f32 0.70710677, %v12316_v43 }
 0x3ea   : > { %5216 = vmatprep.subr.bf16.mxu0 %v9395_v54  ;;  %5297 = vmatprep.subr.bf16.mxu1 %v14155_v41  ;;  %v3176_v12 = vpop.xlane.xlu0 %3175  ;;  %v12337_v29 = vmul.f32 0.5, %v2552_v0  ;;  %v12340_v44 = vadd.f32 %v12208_v55, %v3296_v45  ;;  %v2591_v62 = vmul.f32 0.70710677, %v12321_v52  ;;  %v2515_v46 = vmul.f32 %v12174_v26, %v2480_v48  ;;  %v9801_v32 = vpop.eup %9800 }
 0x3eb   : > { %9810 = vrsqrt.f32 %v2456_v14  ;;  %v3222_v54 = vmul.f32 0.0069444445, %v3176_v12  ;;  %v2516_v1 = vmul.f32 %v12177_v27, %v2481_v10  ;;  %v3299_v0 = vmul.f32 %v12195_v38, %v3264_v60  ;;  %v14302_v60 = vld [vmem:[#allocation63_spill] sm:$0xff] }
 0x3ec   : > { %9812 = verf.f32 %v2600_v2  ;;  %v3300_v58 = vmul.f32 %v12198_v23, %v3265_v30  ;;  %v12350_v48 = vadd.f32 %v12184_v15, %v2511_v56  ;;  %v12354_v2 = vadd.f32 %v12189_v16, %v2512_v50 }
 0x3ed   : > { %5217 = vmatpush1.bf16.msra.mxu0 %v9393_v53  ;;  %5298 = vmatpush1.bf16.msra.mxu1 %v9396_v3  ;;  %v9803_v45 = vpop.eup %9802  ;;  %v3234_v14 = vadd.f32 1e-06, %v3222_v54  ;;  %v9403_v53 = vld [vmem:[#allocation14 + $0x304] ss:$12 sps:$4 sm:$0xff]   ;;  %9814 = verf.f32 %v2601_v22  ;;  %v3378_v3 = vmul.f32 0.70710677, %v12331_v20  ;;  %v12360_v56 = vadd.f32 %v12184_v15, %v2515_v46 }
 0x3ee   : > { %4836 = vmatmul.mubr.bf16.gmra.mrb[56].mxu0 %v12258_v42  ;;  %4913 = vmatmul.mubr.bf16.gmra.mrb[96].mxu1 %v12258_v42  ;;  %v9805_v12 = vpop.eup %9804  ;;  %v3184_v10 = vpop.xlane.xlu0 %3183  ;;  %9816 = verf.f32 %v2590_v63  ;;  %v2484_v30 = vmul.f32 %v9803_v45, %v14302_v60  ;;  %v2485_v39 = vmul.f32 %v9803_v45, %v14303_v17  ;;  %v3379_v22 = vmul.f32 0.70710677, %v12340_v44  ;;  %v9401_v63 = vld [vmem:[#allocation14 + $0x300] ss:$12 sps:$4 sm:$0xff]   ;;  %v9404_v60 = vld [vmem:[#allocation14 + $0x308] ss:$12 sps:$4 sm:$0xff]  }
 0x3ef   : > { %5218 = vmatprep.subr.bf16.mxu0 %v9399_v61  ;;  %5299 = vmatprep.subr.bf16.mxu1 %v14155_v41  ;;  %v3224_v42 = vmul.f32 0.0069444445, %v3184_v10  ;;  %9818 = verf.f32 %v2591_v62  ;;  %v9807_v54 = vpop.eup %9806  ;;  %v12364_v50 = vadd.f32 %v12189_v16, %v2516_v1  ;;  %v12367_v17 = vadd.f32 %v12205_v28, %v3299_v0  ;;  %v3477_v1 = vld [vmem:[#allocation6 + $0x140] sm:$0xff] }
 0x3f0   : > { %9820 = vrsqrt.f32 %v3234_v14  ;;  %v12370_v61 = vadd.f32 %v12208_v55, %v3300_v58  ;;  %v2594_v45 = vmul.f32 0.70710677, %v12350_v48  ;;  %v2519_v10 = vmul.f32 %v12174_v26, %v2484_v30  ;;  %v14305_v58 = vld [vmem:[#allocation71_spill] sm:$0xff] }
 0x3f1   : > { %5219 = vmatpush1.bf16.msra.mxu0 %v9397_v5  ;;  %5300 = vmatpush1.bf16.msra.mxu1 %v9400_v31  ;;  %v9809_v62 = vpop.eup %9808  ;;  %v3236_v46 = vadd.f32 1e-06, %v3224_v42  ;;  %v9407_v5 = vld [vmem:[#allocation14 + $0x31c] ss:$12 sps:$4 sm:$0xff]   ;;  %9822 = verf.f32 %v3378_v3  ;;  %v2595_v0 = vmul.f32 0.70710677, %v12354_v2  ;;  %v2520_v14 = vmul.f32 %v12177_v27, %v2485_v39 }
 0x3f2   : > { %5220 = vmatprep.subr.bf16.mxu0 %v9403_v53  ;;  %5301 = vmatprep.subr.bf16.mxu1 %v14155_v41  ;;  %v12375_v31 = vpop.xlane.xlu0 %3191  ;;  %v2486_v34 = vmul.f32 %v9809_v62, %v14305_v58  ;;  %v2487_v42 = vmul.f32 %v9809_v62, %v14306_v37  ;;  %v2644_v40 = vadd.f32 1.0, %v9801_v32  ;;  %v2640_v53 = vadd.f32 1.0, %v12333_v33 }
 0x3f3   : > { %14304 = vst [vmem:[#allocation81_spill] sm:$0xff] %v12375_v31  ;;  %9824 = vrsqrt.f32 %v3236_v46  ;;  %v2598_v30 = vmul.f32 0.70710677, %v12360_v56  ;;  %v2599_v3 = vmul.f32 0.70710677, %v12364_v50  ;;  %v2645_v37 = vadd.f32 1.0, %v9805_v12 }
 0x3f4   : > { %9826 = verf.f32 %v3379_v22  ;;  %v3382_v36 = vmul.f32 0.70710677, %v12367_v17  ;;  %v3383_v39 = vmul.f32 0.70710677, %v12370_v61  ;;  %v12387_v32 = vadd.f32 %v12184_v15, %v2519_v10  ;;  %v3478_v46 = vld [vmem:[#allocation6 + $0x148] sm:$0xff] }
 0x3f5   : > { %5221 = vmatpush1.bf16.msra.mxu0 %v9401_v63  ;;  %5302 = vmatpush1.bf16.msra.mxu1 %v9404_v60  ;;  %v9811_v58 = vpop.eup %9810  ;;  %9828 = verf.f32 %v2594_v45  ;;  %v2521_v33 = vmul.f32 %v12174_v26, %v2486_v34  ;;  %v12391_v63 = vadd.f32 %v12189_v16, %v2520_v14  ;;  %v2522_v22 = vmul.f32 %v12177_v27, %v2487_v42  ;;  %v14307_v60 = vld [vmem:[#allocation67_spill] sm:$0xff]  ;;  %v9411_v45 = vld [vmem:[#allocation14 + $0x334] ss:$12 sps:$4 sm:$0xff]  }
 0x3f6   : > { %3507 = vperm.xlu1 %9209, %v3477_v1   ;;  %5222 = vmatprep.subr.bf16.mxu0 %v9407_v5  ;;  %v9813_v62 = vpop.eup %9812  ;;  %9830 = verf.f32 %v2595_v0  ;;  %v2488_v1 = vmul.f32 %v9811_v58, %v14307_v60  ;;  %v2641_v49 = vadd.f32 1.0, %v9807_v54  ;;  %v12397_v10 = vmul.f32 0.5, %v12307_v21  ;;  %v12402_v0 = vpop.xlane.xlu0 %741  ;;  %v14308_v54 = vld [vmem:[#allocation64_spill] sm:$0xff]  ;;  %v9415_v21 = vld [vmem:[#allocation14 + $0x338] ss:$12 sps:$4 sm:$0xff]  }
 0x3f7   : > { %5303 = vmatprep.subr.bf16.mxu1 %v14155_v41  ;;  %v9815_v12 = vpop.eup %9814  ;;  %9832 = verf.f32 %v2598_v30  ;;  %v12400_v34 = vmul.f32 0.5, %v12331_v20  ;;  %v12405_v14 = vadd.f32 %v12184_v15, %v2521_v33  ;;  %v12408_v42 = vadd.f32 %v12189_v16, %v2522_v22  ;;  %v9409_v60 = vld [vmem:[#allocation14 + $0x330] ss:$12 sps:$4 sm:$0xff]   ;;  %v12416_v22 = vpop.f32.mrb[44].mxu0 }
 0x3f8   : > { %v9817_v5 = vpop.eup %9816  ;;  %9834 = verf.f32 %v2599_v3  ;;  %v2489_v30 = vmul.f32 %v9811_v58, %v14308_v54  ;;  %v2602_v20 = vmul.f32 0.70710677, %v12387_v32  ;;  %v12413_v47 = vmul.f32 %v2640_v53, %v12279_v18  ;;  %14309 = vst [vmem:[#allocation91_spill] sm:$0xff] %v12416_v22  ;;  %v9416_v18 = vld [vmem:[#allocation14 + $0x348] ss:$12 sps:$4 sm:$0xff]  }
 0x3f9   : > { %5223 = vmatpush1.bf16.msra.mxu0 %v9405_v35  ;;  %5304 = vmatpush1.bf16.msra.mxu1 %v9408_v6  ;;  %v9819_v9 = vpop.eup %9818  ;;  %v2523_v33 = vmul.f32 %v12174_v26, %v2488_v1  ;;  %9836 = verf.f32 %v3382_v36  ;;  %v3479_v35 = vld [vmem:[#allocation6 + $0x150] sm:$0xff]  ;;  %v12419_v6 = vmul.f32 %v2644_v40, %v12298_v57  ;;  %v12422_v58 = vmul.f32 %v2645_v37, %v12300_v59  ;;  %v12432_v57 = vpop.f32.mrb[45].mxu0 }
 0x3fa   : > { %3512 = vperm.xlu1 %9209, %v3478_v46   ;;  %v9821_v3 = vpop.eup %9820  ;;  %v2603_v46 = vmul.f32 0.70710677, %v12391_v63  ;;  %5224 = vmatprep.subr.bf16.mxu0 %v9411_v45  ;;  %9838 = verf.f32 %v3383_v39  ;;  %v12429_v36 = vmul.f32 %v2641_v49, %v12296_v19  ;;  %v2604_v1 = vmul.f32 0.70710677, %v12405_v14  ;;  %14310 = vst [vmem:[#allocation80_spill] sm:$0xff] %v12432_v57  ;;  %v12439_v26 = vpop.f32.mrb[46].mxu0 }
 0x3fb   : > { %5305 = vmatprep.subr.bf16.mxu1 %v14155_v41  ;;  %v12426_v53 = vpop.eup %9822  ;;  %v2648_v54 = vadd.f32 1.0, %v9813_v62  ;;  %v2649_v40 = vadd.f32 1.0, %v9815_v12  ;;  %v2638_v59 = vadd.f32 1.0, %v9817_v5  ;;  %v2605_v37 = vmul.f32 0.70710677, %v12408_v42  ;;  %14311 = vst [vmem:[#allocation92_spill] sm:$0xff] %v12439_v26 }
 0x3fc   : > { %v2524_v45 = vmul.f32 %v12177_v27, %v2489_v30  ;;  %v12437_v22 = vadd.f32 %v12184_v15, %v2523_v33  ;;  %v9419_v39 = vld [vmem:[#allocation14 + $0x350] ss:$12 sps:$4 sm:$0xff]   ;;  %v2566_v19 = vmul.f32 0.5, %v12316_v43  ;;  %v2639_v62 = vadd.f32 1.0, %v9819_v9  ;;  %v12443_v7 = vpop.f32.mrb[47].mxu0  ;;  %v12447_v33 = vpop.xlane.xlu0 %3199 }
 0x3fd   : > { %5225 = vmatpush1.bf16.msra.mxu0 %v9409_v60  ;;  %5306 = vmatpush1.bf16.msra.mxu1 %v9415_v21  ;;  %v9825_v49 = vpop.eup %9824  ;;  %9840 = verf.f32 %v2602_v20  ;;  %v14312_v12 = vld [vmem:[#allocation52_spill] sm:$0xff]  ;;  %14313 = vst [vmem:[#allocation94_spill] sm:$0xff] %v12443_v7  ;;  %14314 = vst [vmem:[#allocation93_spill] sm:$0xff] %v12447_v33  ;;  %v2567_v21 = vmul.f32 0.5, %v12321_v52  ;;  %v14315_v20 = vld [vmem:[#allocation53_spill] sm:$0xff] }
 0x3fe   : > { %3517 = vperm.xlu1 %9209, %v3479_v35   ;;  %v3258_v5 = vmul.f32 %v9821_v3, %v14312_v12  ;;  %5226 = vmatprep.subr.bf16.mxu0 %v9418_v51  ;;  %v9424_v57 = vld [vmem:[#allocation14 + $0x364] ss:$12 sps:$4 sm:$0xff]   ;;  %v12445_v30 = vpop.eup %9826  ;;  %9842 = verf.f32 %v2603_v46  ;;  %v12451_v35 = vadd.f32 %v12189_v16, %v2524_v45  ;;  %v2606_v9 = vmul.f32 0.70710677, %v12437_v22  ;;  %v12455_v51 = vpop.xlane.xlu1 %3195  ;;  %v14316_v26 = vld [vmem:[#allocation70_spill] sm:$0xff] }
 0x3ff   : > { %v3480_v60 = vld [vmem:[#allocation6 + $0x158] sm:$0xff]  ;;  %5307 = vmatprep.subr.bf16.mxu1 %v14155_v41  ;;  %v9829_v43 = vpop.eup %9828  ;;  %9844 = verf.f32 %v2604_v1  ;;  %v3259_v12 = vmul.f32 %v9821_v3, %v14315_v20  ;;  %v3262_v15 = vmul.f32 %v9825_v49, %v14316_v26  ;;  %v2662_v52 = vmul.f32 %v2638_v59, %v2566_v19  ;;  %v14317_v45 = vld [vmem:[#allocation119_spill] sm:$0xff] }
 0x400   : > { %v3293_v7 = vmul.f32 %v12195_v38, %v3258_v5  ;;  %v9831_v27 = vpop.eup %9830  ;;  %9846 = verf.f32 %v2605_v37  ;;  %v2607_v46 = vmul.f32 0.70710677, %v12451_v35  ;;  %v3263_v16 = vmul.f32 %v9825_v49, %v14317_v45 }
 0x401   : > { %5227 = vmatpush1.bf16.msra.mxu0 %v9416_v18  ;;  %5308 = vmatpush1.bf16.msra.mxu1 %v9419_v39  ;;  %v9833_v33 = vpop.eup %9832  ;;  %v2663_v31 = vmul.f32 %v2639_v62, %v2567_v21  ;;  %9848 = verf.f32 %v2606_v9  ;;  %v3294_v1 = vmul.f32 %v12198_v23, %v3259_v12  ;;  %v12467_v59 = vmul.f32 %v2648_v54, %v12337_v29 }
 0x402   : > { %3522 = vperm.xlu1 %9209, %v3480_v60   ;;  %v12464_v3 = vadd.f32 %v12205_v28, %v3293_v7  ;;  %5637 = vmatprep.subr.bf16.mxu0 %v9424_v57  ;;  %v9835_v26 = vpop.eup %9834  ;;  %v2702_v5 = vpop.permute.xlu0 %2701  ;;  %9850 = verf.f32 %v2607_v46  ;;  %v3297_v18 = vmul.f32 %v12195_v38, %v3262_v15  ;;  %v3298_v37 = vmul.f32 %v12198_v23, %v3263_v16 }
 0x403   : > { %5718 = vmatprep.subr.bf16.mxu1 %v14155_v41  ;;  %v12472_v39 = vpop.eup %9836  ;;  %v2759_v19 = vmul.f32 %v2702_v5, %v2662_v52  ;;  %v2760_v7 = vmul.f32 %v2702_v5, %v2663_v31  ;;  %v12477_v57 = vmul.f32 %v2649_v40, %v12397_v10  ;;  %v12480_v62 = vadd.f32 1.0, %v12426_v53 }
 0x404   : > { %v12474_v49 = vpop.xlane.xlu1 %3203  ;;  %v12482_v29 = vpop.eup %9838  ;;  %v2570_v15 = vmul.f32 0.5, %v12350_v48  ;;  %v2642_v54 = vadd.f32 1.0, %v9829_v43  ;;  %v12486_v16 = vadd.f32 %v12208_v55, %v3294_v1  ;;  %v3376_v60 = vmul.f32 0.70710677, %v12464_v3 }
 0x405   : > { %v2643_v21 = vadd.f32 1.0, %v9831_v27  ;;  %v8904_v9 = vpack.c.bf16 %v2760_v7, %v2759_v19  ;;  %v2646_v20 = vadd.f32 1.0, %v9833_v33  ;;  %v2647_v31 = vadd.f32 1.0, %v9835_v26 }
 0x406   : > { %v2707_v12 = vpop.permute.xlu0 %2706  ;;  %v3377_v10 = vmul.f32 0.70710677, %v12486_v16  ;;  %9852 = verf.f32 %v3376_v60  ;;  %v12491_v53 = vadd.f32 %v12205_v28, %v3297_v18  ;;  %v12494_v40 = vadd.f32 %v12208_v55, %v3298_v37 }
 0x407   : > { %v9841_v48 = vpop.eup %9840  ;;  %2856 = vst.msk [vmem:[#allocation2 + $0xc0] sm:$0xff] %vm11825_vm6, %v8904_v9  ;;  %v2761_v27 = vmul.f32 %v2707_v12, %v12413_v47  ;;  %v2762_v33 = vmul.f32 %v2707_v12, %v12429_v36  ;;  %v2574_v52 = vmul.f32 0.5, %v12360_v56  ;;  %v2575_v46 = vmul.f32 0.5, %v12364_v50 }
 0x408   : > { %v1170_v43 = vpop.permute.xlu1 %1169  ;;  %v9843_v45 = vpop.eup %9842  ;;  %v2571_v5 = vmul.f32 0.5, %v12354_v2  ;;  %v2666_v18 = vmul.f32 %v2642_v54, %v2570_v15  ;;  %9854 = verf.f32 %v3377_v10  ;;  %v3380_v56 = vmul.f32 0.70710677, %v12491_v53 }
 0x409   : > { %v1200_v1 = vmul.f32 %v1170_v43, %v12218_v24  ;;  %v1201_v26 = vmul.f32 %v1170_v43, %v12250_v13  ;;  %v9845_v37 = vpop.eup %9844  ;;  %v8905_v19 = vpack.c.bf16 %v2762_v33, %v2761_v27  ;;  %v2670_v7 = vmul.f32 %v2646_v20, %v2574_v52 }
 0x40a   : > { %v2671_v60 = vmul.f32 %v2647_v31, %v2575_v46  ;;  %v9847_v47 = vpop.eup %9846  ;;  %v2667_v36 = vmul.f32 %v2643_v21, %v2571_v5  ;;  %v2722_v12 = vpop.permute.xlu0 %2721  ;;  %v3381_v50 = vmul.f32 0.70710677, %v12494_v40  ;;  %v2578_v13 = vmul.f32 0.5, %v12387_v32 }
 0x40b   : > { %v8889_v9 = vpack.c.bf16 %v1201_v26, %v1200_v1  ;;  %v9849_v55 = vpop.eup %9848  ;;  %2857 = vst.msk [vmem:[#allocation2 + $0xc8] sm:$0xff] %vm11825_vm6, %v8905_v19  ;;  %v2767_v2 = vmul.f32 %v2722_v12, %v2670_v7  ;;  %v12511_v54 = vadd.f32 1.0, %v12445_v30  ;;  %v2650_v10 = vadd.f32 1.0, %v9841_v48 }
 0x40c   : > { %v2712_v24 = vpop.permute.xlu1 %2711  ;;  %v2768_v15 = vmul.f32 %v2722_v12, %v2671_v60  ;;  %v9851_v20 = vpop.eup %9850  ;;  %v2651_v43 = vadd.f32 1.0, %v9843_v45  ;;  %v12516_v27 = vmul.f32 0.0069444445, %v12402_v0  ;;  %v2579_v32 = vmul.f32 0.5, %v12391_v63 }
 0x40d   : > { %1290 = vst.msk [vmem:[#allocation2 + $0x48] sm:$0xff] %vm11825_vm6, %v8889_v9  ;;  %v2763_v21 = vmul.f32 %v2712_v24, %v2666_v18  ;;  %v2764_v31 = vmul.f32 %v2712_v24, %v2667_v36  ;;  %9856 = verf.f32 %v3380_v56  ;;  %v2652_v46 = vadd.f32 1.0, %v9845_v37 }
 0x40e   : > { %v8908_v33 = vpack.c.bf16 %v2768_v15, %v2767_v2  ;;  %v2653_v1 = vadd.f32 1.0, %v9847_v47  ;;  %9858 = verf.f32 %v3381_v50  ;;  %v2580_v26 = vmul.f32 0.5, %v12405_v14 }
 0x40f   : > { %v8906_v52 = vpack.c.bf16 %v2764_v31, %v2763_v21  ;;  %v2581_v5 = vmul.f32 0.5, %v12408_v42  ;;  %v2654_v48 = vadd.f32 1.0, %v9849_v55  ;;  %v2655_v45 = vadd.f32 1.0, %v9851_v20 }
 0x410   : > { %v2717_v30 = vpop.permute.xlu1 %2716  ;;  %2860 = vst.msk [vmem:[#allocation2 + $0xe0] sm:$0xff] %vm11825_vm6, %v8908_v33  ;;  %v9853_v0 = vpop.eup %9852  ;;  %v2674_v37 = vmul.f32 %v2650_v10, %v2578_v13  ;;  %v2675_v19 = vmul.f32 %v2651_v43, %v2579_v32  ;;  %v2582_v60 = vmul.f32 0.5, %v12437_v22  ;;  %v2583_v55 = vmul.f32 0.5, %v12451_v35  ;;  %v14318_v10 = vld [vmem:[#allocation42_spill] sm:$0xff] }
 0x411   : > { %2858 = vst.msk [vmem:[#allocation2 + $0xd0] sm:$0xff] %vm11825_vm6, %v8906_v52  ;;  %v2765_v63 = vmul.f32 %v2717_v30, %v12419_v6  ;;  %v2766_v18 = vmul.f32 %v2717_v30, %v12422_v58  ;;  %v2727_v7 = vpop.permute.xlu0 %2726  ;;  %v2676_v9 = vmul.f32 %v2652_v46, %v2580_v26  ;;  %v2677_v36 = vmul.f32 %v2653_v1, %v2581_v5 }
 0x412   : > { %v2769_v14 = vmul.f32 %v2727_v7, %v12467_v59  ;;  %v2770_v42 = vmul.f32 %v2727_v7, %v12477_v57  ;;  %v3352_v12 = vmul.f32 0.5, %v12464_v3  ;;  %v9855_v56 = vpop.eup %9854  ;;  %v2678_v24 = vmul.f32 %v2654_v48, %v2582_v60 }
 0x413   : > { %v8907_v47 = vpack.c.bf16 %v2766_v18, %v2765_v63  ;;  %v2679_v13 = vmul.f32 %v2655_v45, %v2583_v55  ;;  %v3424_v2 = vadd.f32 1.0, %v9853_v0  ;;  %v3353_v21 = vmul.f32 0.5, %v12486_v16 }
 0x414   : > { %v2732_v6 = vpop.permute.xlu1 %2731  ;;  %v4462_v50 = vld [vmem:[#allocation2 + $0x48] sm:$0x11]  ;;  %v8909_v58 = vpack.c.bf16 %v2770_v42, %v2769_v14  ;;  %v3425_v31 = vadd.f32 1.0, %v9855_v56  ;;  %v12543_v43 = vsub.f32 %v14318_v10, %v12516_v27  ;;  %v3355_v7 = vmul.f32 0.5, %v12340_v44  ;;  %v14319_v56 = vld [vmem:[#allocation40_spill] sm:$0xff] }
 0x415   : > { %2859 = vst.msk [vmem:[#allocation2 + $0xd8] sm:$0xff] %vm11825_vm6, %v8907_v47  ;;  %v2771_v59 = vmul.f32 %v2732_v6, %v2674_v37  ;;  %v2772_v57 = vmul.f32 %v2732_v6, %v2675_v19  ;;  %v8565_v22 = vcombine.high %v12170_v11, %v4462_v50  ;;  %v12536_v35 = vcombine.low %v12170_v11, %v4462_v50  ;;  %v2742_v15 = vpop.permute.xlu0 %2741 }
 0x416   : > { %2861 = vst.msk [vmem:[#allocation2 + $0xe8] sm:$0xff] %vm11825_vm6, %v8909_v58  ;;  %v2775_v3 = vmul.f32 %v2742_v15, %v2678_v24  ;;  %v2776_v20 = vmul.f32 %v2742_v15, %v2679_v13  ;;  %v3448_v26 = vmul.f32 %v3424_v2, %v3352_v12  ;;  %v3449_v5 = vmul.f32 %v3425_v31, %v3353_v21 }
 0x417   : > { %v8910_v32 = vpack.c.bf16 %v2772_v57, %v2771_v59  ;;  %v4609_v33 = vshll.u32 %v8565_v22, 16  ;;  %v4601_v52 = vshll.u32 %v12536_v35, 16  ;;  %v9857_v46 = vpop.eup %9856  ;;  %v4616_v1 = vshrl.u32 %v8565_v22, 16 }
 0x418   : > { %v2737_v11 = vpop.permute.xlu1 %2736  ;;  %v8912_v30 = vpack.c.bf16 %v2776_v20, %v2775_v3  ;;  %v9859_v48 = vpop.eup %9858  ;;  %v3450_v14 = vmul.f32 %v12480_v62, %v12400_v34  ;;  %v3428_v12 = vadd.f32 1.0, %v9857_v46  ;;  %v12562_v34 = vsub.f32 %v14319_v56, %v12516_v27  ;;  %v9414_v3 = vld [vmem:[#allocation2 + $0xc4] ss:$8 sps:$4 sm:$0xff]  }
 0x419   : > { %2862 = vst.msk [vmem:[#allocation2 + $0xf0] sm:$0xff] %vm11825_vm6, %v8910_v32  ;;  %v2773_v16 = vmul.f32 %v2737_v11, %v2676_v9  ;;  %v2774_v45 = vmul.f32 %v2737_v11, %v2677_v36  ;;  %v4611_v0 = vrot.slane %v4609_v33, 1  ;;  %v4603_v63 = vrot.slane %v4601_v52, 1  ;;  %v3488_v18 = vpop.permute.xlu0 %3487  ;;  %v9412_v52 = vld [vmem:[#allocation2 + $0xc0] ss:$8 sps:$4 sm:$0xff]  }
 0x41a   : > { %2864 = vst.msk [vmem:[#allocation2 + $0x100] sm:$0xff] %vm11825_vm6, %v8912_v30  ;;  %v3545_v37 = vmul.f32 %v3488_v18, %v3448_v26  ;;  %v3546_v19 = vmul.f32 %v3488_v18, %v3449_v5  ;;  %v3451_v36 = vmul.f32 %v12511_v54, %v3355_v7  ;;  %v3429_v44 = vadd.f32 1.0, %v9859_v48  ;;  %v9422_v46 = vld [vmem:[#allocation14 + $0x360] ss:$12 sps:$4 sm:$0xff]   ;;  %v9425_v11 = vld [vmem:[#allocation14 + $0x368] ss:$12 sps:$4 sm:$0xff]  }
 0x41b   : > { %v8911_v42 = vpack.c.bf16 %v2774_v45, %v2773_v16  ;;  %v4612_v60 = vsel %vm4540_vm7, %v12261_v25, %v4611_v0  ;;  %v4604_v55 = vsel %vm4540_vm7, %v12281_v4, %v4603_v63  ;;  %v4618_v47 = vor.u32 %v4616_v1, %v4611_v0  ;;  %v9428_v30 = vld [vmem:[#allocation14 + $0x37c] ss:$12 sps:$4 sm:$0xff]   ;;  %v9426_v26 = vld [vmem:[#allocation14 + $0x378] ss:$12 sps:$4 sm:$0xff]   ;;  %v9431_v5 = vld [vmem:[#allocation14 + $0x380] ss:$12 sps:$4 sm:$0xff]  }
 0x41c   : > { %8596 = vmatprep.mubr.msk.bf16.mxu0 %vm698_vm3, %v4612_v60  ;;  %8601 = vmatprep.mubr.msk.bf16.mxu1 %vm698_vm3, %v4612_v60  ;;  %v8916_v9 = vpack.c.bf16 %v3546_v19, %v3545_v37  ;;  %v808_v25 = vmul.f32 %v12543_v43, %v12543_v43  ;;  %v3356_v27 = vmul.f32 0.5, %v12491_v53  ;;  %v3357_v6 = vmul.f32 0.5, %v12494_v40  ;;  %v9420_v1 = vld [vmem:[#allocation2 + $0xd4] ss:$8 sps:$4 sm:$0xff]   ;;  %v9450_v56 = vld [vmem:[#allocation14 + $0x3dc] ss:$12 sps:$4 sm:$0xff]  }
 0x41d   : > { %2863 = vst.msk [vmem:[#allocation2 + $0xf8] sm:$0xff] %vm11825_vm6, %v8911_v42  ;;  %4846 = vmatmul.mubr.bf16.gmra.mrb[60].mxu0 %v4604_v55  ;;  %4921 = vmatmul.mubr.bf16.gmra.mrb[100].mxu1 %v4604_v55  ;;  %v3493_v4 = vpop.permute.xlu0 %3492  ;;  %v3430_v50 = vadd.f32 1.0, %v12472_v39  ;;  %v3431_v2 = vadd.f32 1.0, %v12482_v29  ;;  %v807_v59 = vmul.f32 %v12562_v34, %v12562_v34  ;;  %v4613_v57 = vshrl.u32 %v12536_v35, 16  ;;  %v4966_v48 = vld [vmem:[#allocation2 + $0xd8] sm:$0xff]  ;;  %v4965_v45 = vld [vmem:[#allocation2 + $0xd0] sm:$0xff] }
 0x41e   : > { %8597 = vmatprep.mubr.msk.bf16.mxu0 %vm698_vm3, %v4618_v47  ;;  %8602 = vmatprep.mubr.msk.bf16.mxu1 %vm698_vm3, %v4618_v47  ;;  %3642 = vst.msk [vmem:[#allocation2 + $0x120] sm:$0xff] %vm11825_vm6, %v8916_v9  ;;  %v3547_v62 = vmul.f32 %v3493_v4, %v3450_v14  ;;  %v3548_v54 = vmul.f32 %v3493_v4, %v3451_v36  ;;  %v3358_v15 = vmul.f32 0.5, %v12367_v17  ;;  %v3359_v39 = vmul.f32 0.5, %v12370_v61  ;;  %v9434_v16 = vld [vmem:[#allocation14 + $0x394] ss:$12 sps:$4 sm:$0xff]  }
 0x41f   : > { %v3452_v24 = vmul.f32 %v3428_v12, %v3356_v27  ;;  %v3453_v13 = vmul.f32 %v3429_v44, %v3357_v6  ;;  %v851_v20 = vsel %vm698_vm3, %v808_v25, 0.0  ;;  %v4615_v21 = vor.u32 %v4613_v57, %v4603_v63  ;;  %v9432_v63 = vld [vmem:[#allocation14 + $0x390] ss:$12 sps:$4 sm:$0xff]   ;;  %v9435_v18 = vld [vmem:[#allocation14 + $0x398] ss:$12 sps:$4 sm:$0xff]  }
 0x420   : > { %v8917_v58 = vpack.c.bf16 %v3548_v54, %v3547_v62  ;;  %v3454_v31 = vmul.f32 %v3430_v50, %v3358_v15  ;;  %v3455_v10 = vmul.f32 %v3431_v2, %v3359_v39  ;;  %v852_v32 = vadd.f32 %v851_v20, %v807_v59  ;;  %v9429_v37 = vld [vmem:[#allocation2 + $0xe4] ss:$8 sps:$4 sm:$0xff]   ;;  %v9439_v19 = vld [vmem:[#allocation14 + $0x3ac] ss:$12 sps:$4 sm:$0xff]  }
 0x421   : > { %v3498_v22 = vpop.permute.xlu0 %3497  ;;  %v8605_v0 = vcombine.low %v4965_v45, %v4966_v48  ;;  %v9437_v7 = vld [vmem:[#allocation14 + $0x3a8] ss:$12 sps:$4 sm:$0xff]   ;;  %v9442_v14 = vld [vmem:[#allocation14 + $0x3b0] ss:$12 sps:$4 sm:$0xff]   ;;  %v9443_v60 = vld [vmem:[#allocation14 + $0x3c0] ss:$12 sps:$4 sm:$0xff]  }
 0x422   : > { %3643 = vst.msk [vmem:[#allocation2 + $0x128] sm:$0xff] %vm11825_vm6, %v8917_v58  ;;  %v3549_v53 = vmul.f32 %v3498_v22, %v3452_v24  ;;  %v3550_v40 = vmul.f32 %v3498_v22, %v3453_v13  ;;  %v9445_v42 = vld [vmem:[#allocation14 + $0x3c4] ss:$12 sps:$4 sm:$0xff]   ;;  %v3227_v55 = vmul.f32 0.0069444445, %v12455_v51  ;;  %v14320_v36 = vld [vmem:[#allocation81_spill] sm:$0xff] }
 0x423   : > { %v9436_v47 = vld [vmem:[#allocation2 + $0xe0] ss:$8 sps:$4 sm:$0xff]   ;;  %v9446_v9 = vld [vmem:[#allocation14 + $0x3c8] ss:$12 sps:$4 sm:$0xff]   ;;  %v3226_v12 = vmul.f32 0.0069444445, %v14320_v36 }
 0x424   : > { %v8918_v29 = vpack.c.bf16 %v3550_v40, %v3549_v53  ;;  %v9440_v44 = vld [vmem:[#allocation2 + $0xf4] ss:$8 sps:$4 sm:$0xff]   ;;  %v3239_v25 = vadd.f32 1e-06, %v3227_v55  ;;  %v4971_v27 = vld [vmem:[#allocation2 + $0x100] sm:$0xff]  ;;  %v14323_v45 = vld [vmem:[#allocation107_spill] sm:$0xff] }
 0x425   : > { %4856 = vmatmul.mubr.bf16.gmra.mrb[72].mxu0 %v4615_v21  ;;  %4929 = vmatmul.mubr.bf16.gmra.mrb[104].mxu1 %v4615_v21  ;;  %v3503_v35 = vpop.permute.xlu0 %3502  ;;  %v9448_v51 = vld [vmem:[#allocation14 + $0x3d8] ss:$12 sps:$4 sm:$0xff]   ;;  %v9452_v4 = vld [vmem:[#allocation14 + $0x3e0] ss:$12 sps:$4 sm:$0xff]   ;;  %v3238_v62 = vadd.f32 1e-06, %v3226_v12  ;;  %v8612_v24 = vcombine.high %v4971_v27, %v4971_v27  ;;  %v8611_v20 = vcombine.low %v4971_v27, %v4971_v27 }
 0x426   : > { %8640 = vmatprep.mubr.msk.bf16.mxu0 %vm698_vm3, %v9414_v3  ;;  %8645 = vmatprep.mubr.msk.bf16.mxu1 %vm698_vm3, %v9414_v3  ;;  %3644 = vst.msk [vmem:[#allocation2 + $0x130] sm:$0xff] %vm11825_vm6, %v8918_v29  ;;  %v3551_v17 = vmul.f32 %v3503_v35, %v3454_v31  ;;  %v3552_v33 = vmul.f32 %v3503_v35, %v3455_v10  ;;  %v9455_v54 = vld [vmem:[#allocation14 + $0x3f4] ss:$12 sps:$4 sm:$0xff]   ;;  %9860 = vrsqrt.f32 %v3239_v25  ;;  %v9453_v50 = vld [vmem:[#allocation14 + $0x3f0] ss:$12 sps:$4 sm:$0xff]  }
 0x427   : > { %853 = vadd.xlane.f32.xlu1 %v852_v32  ;;  %v9447_v6 = vld [vmem:[#allocation2 + $0xf0] ss:$8 sps:$4 sm:$0xff]   ;;  %v9456_v58 = vld [vmem:[#allocation14 + $0x3f8] ss:$12 sps:$4 sm:$0xff]   ;;  %9862 = vrsqrt.f32 %v3238_v62  ;;  %v3229_v10 = vmul.f32 0.0069444445, %v12474_v49 }
 0x428   : > { %v8919_v61 = vpack.c.bf16 %v3552_v33, %v3551_v17  ;;  %v9460_v13 = vld [vmem:[#allocation14 + $0x40c] ss:$12 sps:$4 sm:$0xff]   ;;  %v9458_v57 = vld [vmem:[#allocation14 + $0x408] ss:$12 sps:$4 sm:$0xff]   ;;  %v9464_v22 = vld [vmem:[#allocation14 + $0x410] ss:$12 sps:$4 sm:$0xff]  }
 0x429   : > { %v14321_v2 = vld [vmem:[#allocation93_spill] sm:$0xff]  ;;  %v9467_v15 = vld [vmem:[#allocation14 + $0x424] ss:$12 sps:$4 sm:$0xff]   ;;  %v9465_v21 = vld [vmem:[#allocation14 + $0x420] ss:$12 sps:$4 sm:$0xff]  }
 0x42a   : > { %3645 = vst.msk [vmem:[#allocation2 + $0x138] sm:$0xff] %vm11825_vm6, %v8919_v61  ;;  %v3228_v59 = vmul.f32 0.0069444445, %v14321_v2  ;;  %v9468_v29 = vld [vmem:[#allocation14 + $0x428] ss:$12 sps:$4 sm:$0xff]  }
 0x42b   : > { %v9463_v35 = vld [vmem:[#allocation2 + $0x124] ss:$8 sps:$4 sm:$0xff]   ;;  %v12614_v33 = vld [vmem:[#allocation2 + $0x18] ss:$8 sps:$4 sm:$0xff]   ;;  %v9574_v61 = vld [vmem:[#allocation2 + $0x28] ss:$8 sps:$4 sm:$0xff]  }
 0x42c   : > { %v3240_v53 = vadd.f32 1e-06, %v3228_v59  ;;  %v9474_v32 = vld [vmem:[#allocation14 + $0x43c] ss:$12 sps:$4 sm:$0xff]   ;;  %v14322_v48 = vld [vmem:[#allocation73_spill] sm:$0xff] }
 0x42d   : > { %5243 = vmatmul.mubr.bf16.vlgmr.msra.gmra.mrb[48].mxu0 %v9412_v52  ;;  %5324 = vmatmul.mubr.bf16.vlgmr.msra.gmra.mrb[108].mxu1 %v9412_v52  ;;  %v12620_v49 = vld [vmem:[#allocation2 + $0x3c] ss:$8 sps:$4 sm:$0xff]   ;;  %v9461_v55 = vld [vmem:[#allocation2 + $0x120] ss:$8 sps:$4 sm:$0xff]  }
 0x42e   : > { %8641 = vmatprep.mubr.msk.bf16.mxu0 %vm698_vm3, %v9420_v1  ;;  %8646 = vmatprep.mubr.msk.bf16.mxu1 %vm698_vm3, %v9420_v1  ;;  %9864 = vrsqrt.f32 %v3240_v53  ;;  %v12622_v1 = vld [vmem:[#allocation2 + $0x38] ss:$8 sps:$4 sm:$0xff]  }
 0x42f   : > { %5638 = vmatpush1.bf16.msra.mxu0 %v9422_v46  ;;  %5719 = vmatpush1.bf16.msra.mxu1 %v9425_v11  ;;  %v12618_v11 = vld [vmem:[#allocation2 + $0x2c] ss:$8 sps:$4 sm:$0xff]   ;;  %v9478_v25 = vld [vmem:[#allocation14 + $0x454] ss:$12 sps:$4 sm:$0xff]  }
 0x430   : > { %5639 = vmatprep.subr.bf16.mxu0 %v9428_v30  ;;  %5720 = vmatprep.subr.bf16.mxu1 %v14155_v41  ;;  %v9861_v17 = vpop.eup %9860 }
 0x431   : > { %v9863_v52 = vpop.eup %9862  ;;  %v9469_v12 = vld [vmem:[#allocation2 + $0x134] ss:$8 sps:$4 sm:$0xff]  }
 0x433   : > { %5640 = vmatpush1.bf16.msra.mxu0 %v9426_v26  ;;  %5721 = vmatpush1.bf16.msra.mxu1 %v9431_v5  ;;  %v3241_v26 = vadd.f32 1e-06, %v3229_v10 }
 0x434   : > { %5641 = vmatprep.subr.bf16.mxu0 %v9434_v16  ;;  %5722 = vmatprep.subr.bf16.mxu1 %v14155_v41  ;;  %v3266_v16 = vmul.f32 %v9863_v52, %v14322_v48 }
 0x435   : > { %5253 = vmatmul.mubr.bf16.gmra.mrb[52].mxu0 %v8605_v0  ;;  %5332 = vmatmul.mubr.bf16.gmra.mrb[112].mxu1 %v8605_v0  ;;  %v3268_v0 = vmul.f32 %v9861_v17, %v14323_v45 }
 0x436   : > { %8642 = vmatprep.mubr.msk.bf16.mxu0 %vm698_vm3, %v9429_v37  ;;  %8647 = vmatprep.mubr.msk.bf16.mxu1 %vm698_vm3, %v9429_v37 }
 0x437   : > { %5642 = vmatpush1.bf16.msra.mxu0 %v9432_v63  ;;  %5723 = vmatpush1.bf16.msra.mxu1 %v9435_v18  ;;  %v9472_v63 = vld [vmem:[#allocation14 + $0x438] ss:$12 sps:$4 sm:$0xff]   ;;  %v7394_v18 = vrot.slane %v9574_v61, 1 }
 0x438   : > { %5643 = vmatprep.subr.bf16.mxu0 %v9439_v19  ;;  %5724 = vmatprep.subr.bf16.mxu1 %v14155_v41  ;;  %v9475_v19 = vld [vmem:[#allocation14 + $0x440] ss:$12 sps:$4 sm:$0xff]   ;;  %v9865_v2 = vpop.eup %9864 }
 0x43b   : > { %5644 = vmatpush1.bf16.msra.mxu0 %v9437_v7  ;;  %5725 = vmatpush1.bf16.msra.mxu1 %v9442_v14  ;;  %v14023_v7 = vrot.slane %v12614_v33, 1  ;;  %v14022_v14 = vrot.slane %v12618_v11, 1 }
 0x43c   : > { %5645 = vmatprep.subr.bf16.mxu0 %v9445_v42  ;;  %5726 = vmatprep.subr.bf16.mxu1 %v14155_v41  ;;  %v14025_v42 = vrot.slane %v12620_v49, 1 }
 0x43d   : > { %5263 = vmatmul.mubr.bf16.gmra.mrb[56].mxu0 %v9436_v47  ;;  %5340 = vmatmul.mubr.bf16.gmra.mrb[116].mxu1 %v9436_v47 }
 0x43e   : > { %8643 = vmatprep.mubr.msk.bf16.mxu0 %vm698_vm3, %v9440_v44  ;;  %8648 = vmatprep.mubr.msk.bf16.mxu1 %vm698_vm3, %v9440_v44  ;;  %v14325_v44 = vld [vmem:[#allocation106_spill] sm:$0xff] }
 0x43f   : > { %5646 = vmatpush1.bf16.msra.mxu0 %v9443_v60  ;;  %5727 = vmatpush1.bf16.msra.mxu1 %v9446_v9  ;;  %v14024_v60 = vrot.slane %v12622_v1, 1  ;;  %v14324_v9 = vld [vmem:[#allocation72_spill] sm:$0xff] }
 0x440   : > { %5647 = vmatprep.subr.bf16.mxu0 %v9450_v56  ;;  %5728 = vmatprep.subr.bf16.mxu1 %v14155_v41  ;;  %v3267_v36 = vmul.f32 %v9863_v52, %v14324_v9  ;;  %v3269_v56 = vmul.f32 %v9861_v17, %v14325_v44  ;;  %v14328_v52 = vld [vmem:[#allocation41_spill] sm:$0xff] }
 0x441   : > { %v12648_v62 = vsel %vm7387_vm8, %v7394_v18, %v14024_v60 }
 0x442   : > { %v3302_v53 = vmul.f32 %v12198_v23, %v3267_v36  ;;  %v9489_v36 = vld [vmem:[#allocation14 + $0x484] ss:$12 sps:$4 sm:$0xff]  }
 0x443   : > { %5648 = vmatpush1.bf16.msra.mxu0 %v9448_v51  ;;  %5729 = vmatpush1.bf16.msra.mxu1 %v9452_v4  ;;  %v12636_v51 = vsel %vm7387_vm8, %v14023_v7, %v7394_v18  ;;  %v12643_v4 = vsel %vm7387_vm8, %v14022_v14, %v14025_v42  ;;  %v9480_v18 = vld [vmem:[#allocation14 + $0x468] ss:$12 sps:$4 sm:$0xff]   ;;  %v9518_v14 = vld [vmem:[#allocation14 + $0x4f8] ss:$12 sps:$4 sm:$0xff]  }
 0x444   : > { %5649 = vmatprep.subr.bf16.mxu0 %v9455_v54  ;;  %5730 = vmatprep.subr.bf16.mxu1 %v14155_v41  ;;  %v14326_v54 = vld [vmem:[#allocation38_spill] sm:$0xff]  ;;  %v12826_v42 = vld [vmem:[#allocation2 + $0xd4] ss:$8 sps:$4 sm:$0xff]  }
 0x445   : > { %5273 = vmatmul.mubr.bf16.gmra.mrb[60].mxu0 %v9447_v6  ;;  %5348 = vmatmul.mubr.bf16.gmra.mrb[120].mxu1 %v9447_v6  ;;  %v14327_v6 = vld [vmem:[#allocation39_spill] sm:$0xff] }
 0x446   : > { %8644 = vmatprep.mubr.msk.bf16.mxu0 %vm698_vm3, %v8612_v24  ;;  %8649 = vmatprep.mubr.msk.bf16.mxu1 %vm698_vm3, %v8612_v24 }
 0x447   : > { %5650 = vmatpush1.bf16.msra.mxu0 %v9453_v50  ;;  %5731 = vmatpush1.bf16.msra.mxu1 %v9456_v58  ;;  %v12608_v3 = vpop.f32.mrb[48].mxu1  ;;  %v3303_v58 = vmul.f32 %v12195_v38, %v3268_v0  ;;  %v14331_v0 = vld [vmem:[#allocation96_spill] sm:$0xff] }
 0x448   : > { %5651 = vmatprep.subr.bf16.mxu0 %v9460_v13  ;;  %5732 = vmatprep.subr.bf16.mxu1 %v14155_v41  ;;  %v4063_v40 = vpop.f32.mrb[49].mxu1  ;;  %v3301_v13 = vmul.f32 %v12195_v38, %v3266_v16  ;;  %v9471_v16 = vld [vmem:[#allocation2 + $0x130] ss:$8 sps:$4 sm:$0xff]  }
 0x449   : > { %v12610_v39 = vpop.f32.mrb[50].mxu1  ;;  %v9476_v40 = vld [vmem:[#allocation14 + $0x450] ss:$12 sps:$4 sm:$0xff]   ;;  %v12673_v17 = vadd.f32 %v12205_v28, %v3303_v58 }
 0x44a   : > { %v4066_v31 = vpop.f32.mrb[51].mxu1  ;;  %v12683_v45 = vadd.f32 %v12205_v28, %v3301_v13 }
 0x44b   : > { %5652 = vmatpush1.bf16.msra.mxu0 %v9458_v57  ;;  %5733 = vmatpush1.bf16.msra.mxu1 %v9464_v22  ;;  %v9482_v31 = vld [vmem:[#allocation14 + $0x46c] ss:$12 sps:$4 sm:$0xff]  }
 0x44c   : > { %5653 = vmatprep.subr.bf16.mxu0 %v9467_v15  ;;  %5734 = vmatprep.subr.bf16.mxu1 %v14155_v41 }
 0x44d   : > { %5283 = vmatmul.mubr.bf16.gmra.mrb[76].mxu0 %v8611_v20  ;;  %5356 = vmatmul.mubr.bf16.gmra.mrb[124].mxu1 %v8611_v20  ;;  %v9479_v20 = vld [vmem:[#allocation14 + $0x458] ss:$12 sps:$4 sm:$0xff]  }
 0x44e   : > { %8687 = vmatprep.mubr.msk.bf16.mxu0 %vm698_vm3, %v9463_v35  ;;  %8692 = vmatprep.mubr.msk.bf16.mxu1 %vm698_vm3, %v9463_v35  ;;  %v3208_v46 = vpop.xlane.xlu1 %3207 }
 0x44f   : > { %v3230_v30 = vmul.f32 0.0069444445, %v3208_v46  ;;  %5654 = vmatpush1.bf16.msra.mxu0 %v9465_v21  ;;  %5735 = vmatpush1.bf16.msra.mxu1 %v9468_v29 }
 0x450   : > { %6146 = vmatprep.subr.bf16.mxu0 %v9474_v32  ;;  %6227 = vmatprep.subr.bf16.mxu1 %v14155_v41  ;;  %v3304_v32 = vmul.f32 %v12198_v23, %v3269_v56  ;;  %v3386_v56 = vmul.f32 0.70710677, %v12673_v17 }
 0x451   : > { %v3242_v5 = vadd.f32 1e-06, %v3230_v30  ;;  %v14329_v30 = vld [vmem:[#allocation43_spill] sm:$0xff] }
 0x452   : > { %v1531_v37 = vpop.xlane.xlu1 %1530  ;;  %v12694_v44 = vadd.f32 %v14331_v0, %v3304_v32 }
 0x453   : > { %9866 = vrsqrt.f32 %v3242_v5  ;;  %v1550_v47 = vmul.f32 0.0069444445, %v1531_v37  ;;  %v14330_v5 = vld [vmem:[#allocation120_spill] sm:$0xff] }
 0x454   : > { %9868 = vrsqrt.f32 %v3241_v26  ;;  %v3270_v48 = vmul.f32 %v9865_v2, %v14330_v5  ;;  %v9483_v37 = vld [vmem:[#allocation14 + $0x470] ss:$12 sps:$4 sm:$0xff]  }
 0x455   : > { %5670 = vmatmul.mubr.bf16.vlgmr.msra.gmra.mrb[48].mxu0 %v9461_v55  ;;  %5751 = vmatmul.mubr.bf16.vlgmr.msra.gmra.mrb[128].mxu1 %v9461_v55  ;;  %v12651_v27 = vsub.f32 %v14326_v54, %v1550_v47  ;;  %v12654_v50 = vsub.f32 %v14327_v6, %v1550_v47  ;;  %v12659_v24 = vpop.f32.mrb[52].mxu1  ;;  %v14332_v47 = vld [vmem:[#allocation69_spill] sm:$0xff]  ;;  %9870 = verf.f32 %v3386_v56 }
 0x456   : > { %8688 = vmatprep.mubr.msk.bf16.mxu0 %vm698_vm3, %v9469_v12  ;;  %8693 = vmatprep.mubr.msk.bf16.mxu1 %vm698_vm3, %v9469_v12  ;;  %v4071_v15 = vpop.f32.mrb[53].mxu1  ;;  %v3271_v9 = vmul.f32 %v9865_v2, %v14332_v47  ;;  %v14334_v6 = vld [vmem:[#allocation89_spill] sm:$0xff] }
 0x457   : > { %v1595_v59 = vmul.f32 %v12651_v27, %v12651_v27  ;;  %v1596_v57 = vmul.f32 %v12654_v50, %v12654_v50  ;;  %v1535_v22 = vpop.xlane.xlu0 %1534  ;;  %6147 = vmatpush1.bf16.msra.mxu0 %v9472_v63  ;;  %6228 = vmatpush1.bf16.msra.mxu1 %v9475_v19  ;;  %v12667_v29 = vpop.f32.mrb[54].mxu1  ;;  %v12686_v63 = vadd.f32 %v14331_v0, %v3302_v53  ;;  %v9487_v15 = vld [vmem:[#allocation14 + $0x480] ss:$12 sps:$4 sm:$0xff]   ;;  %v9490_v53 = vld [vmem:[#allocation14 + $0x488] ss:$12 sps:$4 sm:$0xff]  }
 0x458   : > { %v1551_v21 = vmul.f32 0.0069444445, %v1535_v22  ;;  %6148 = vmatprep.subr.bf16.mxu0 %v9478_v25  ;;  %6229 = vmatprep.subr.bf16.mxu1 %v14155_v41  ;;  %v4074_v35 = vpop.f32.mrb[55].mxu1  ;;  %v14333_v25 = vld [vmem:[#allocation87_spill] sm:$0xff]  ;;  %v3384_v22 = vmul.f32 0.70710677, %v12683_v45 }
 0x459   : > { %v1637_v10 = vsel %vm698_vm3, %v1596_v57, 0.0  ;;  %v3387_v35 = vmul.f32 0.70710677, %v12694_v44 }
 0x45a   : > { %v1638_v61 = vadd.f32 %v1637_v10, %v1595_v59  ;;  %v12676_v46 = vsub.f32 %v14328_v52, %v1551_v21  ;;  %v12679_v26 = vsub.f32 %v14329_v30, %v1551_v21  ;;  %v3305_v59 = vmul.f32 %v12195_v38, %v3270_v48  ;;  %v9493_v10 = vld [vmem:[#allocation14 + $0x49c] ss:$12 sps:$4 sm:$0xff]   ;;  %v14335_v30 = vld [vmem:[#allocation85_spill] sm:$0xff] }
 0x45b   : > { %6149 = vmatpush1.bf16.msra.mxu0 %v9476_v40  ;;  %6230 = vmatpush1.bf16.msra.mxu1 %v9479_v20  ;;  %v3385_v21 = vmul.f32 0.70710677, %v12686_v63  ;;  %9872 = verf.f32 %v3384_v22  ;;  %v14336_v48 = vld [vmem:[#allocation86_spill] sm:$0xff] }
 0x45c   : > { %1639 = vadd.xlane.f32.xlu0 %v1638_v61  ;;  %v1597_v19 = vmul.f32 %v12676_v46, %v12676_v46  ;;  %v1598_v55 = vmul.f32 %v12679_v26, %v12679_v26  ;;  %6150 = vmatprep.subr.bf16.mxu0 %v9482_v31  ;;  %v3306_v31 = vmul.f32 %v12198_v23, %v3271_v9  ;;  %v9500_v9 = vld [vmem:[#allocation14 + $0x4b4] ss:$12 sps:$4 sm:$0xff]  }
 0x45d   : > { %v9867_v12 = vpop.eup %9866  ;;  %5680 = vmatmul.mubr.bf16.gmra.mrb[52].mxu0 %v9471_v16  ;;  %5759 = vmatmul.mubr.bf16.gmra.mrb[132].mxu1 %v9471_v16  ;;  %v12716_v52 = vadd.f32 %v12205_v28, %v3305_v59  ;;  %9874 = verf.f32 %v3385_v21  ;;  %v9510_v21 = vld [vmem:[#allocation14 + $0x4e4] ss:$12 sps:$4 sm:$0xff]  }
 0x45e   : > { %v3274_v54 = vmul.f32 %v9867_v12, %v14333_v25  ;;  %v3275_v58 = vmul.f32 %v9867_v12, %v14334_v6  ;;  %v1641_v13 = vsel %vm698_vm3, %v1598_v55, 0.0  ;;  %6231 = vmatprep.subr.bf16.mxu1 %v14155_v41  ;;  %v9869_v2 = vpop.eup %9868  ;;  %v12723_v47 = vadd.f32 %v14331_v0, %v3306_v31 }
 0x45f   : > { %v1642_v57 = vadd.f32 %v1641_v13, %v1597_v19  ;;  %6151 = vmatpush1.bf16.msra.mxu0 %v9480_v18  ;;  %6232 = vmatpush1.bf16.msra.mxu1 %v9483_v37  ;;  %v3272_v5 = vmul.f32 %v9869_v2, %v14335_v30  ;;  %v3273_v16 = vmul.f32 %v9869_v2, %v14336_v48  ;;  %v9491_v18 = vld [vmem:[#allocation14 + $0x498] ss:$12 sps:$4 sm:$0xff]   ;;  %v9494_v37 = vld [vmem:[#allocation14 + $0x4a0] ss:$12 sps:$4 sm:$0xff]   ;;  %9876 = verf.f32 %v3387_v35 }
 0x460   : > { %v3309_v40 = vmul.f32 %v12195_v38, %v3274_v54  ;;  %v3310_v20 = vmul.f32 %v12198_v23, %v3275_v58  ;;  %6152 = vmatprep.subr.bf16.mxu0 %v9489_v36  ;;  %6233 = vmatprep.subr.bf16.mxu1 %v14155_v41  ;;  %v3388_v56 = vmul.f32 0.70710677, %v12716_v52  ;;  %v9498_v58 = vld [vmem:[#allocation14 + $0x4b0] ss:$12 sps:$4 sm:$0xff]   ;;  %v9502_v13 = vld [vmem:[#allocation14 + $0x4b8] ss:$12 sps:$4 sm:$0xff]  }
 0x461   : > { %1643 = vadd.xlane.f32.xlu1 %v1642_v57  ;;  %v3307_v25 = vmul.f32 %v12195_v38, %v3272_v5  ;;  %v3308_v6 = vmul.f32 %v12198_v23, %v3273_v16  ;;  %v3389_v2 = vmul.f32 0.70710677, %v12723_v47  ;;  %v9505_v57 = vld [vmem:[#allocation14 + $0x4cc] ss:$12 sps:$4 sm:$0xff]   ;;  %v1910_v35 = vld [vmem:[#allocation6 + $0xa8] sm:$0xff] }
 0x462   : > { %v12710_v32 = vadd.f32 %v12205_v28, %v3309_v40  ;;  %v12713_v61 = vadd.f32 %v14331_v0, %v3310_v20  ;;  %v9503_v40 = vld [vmem:[#allocation14 + $0x4c8] ss:$12 sps:$4 sm:$0xff]   ;;  %v9506_v20 = vld [vmem:[#allocation14 + $0x4d0] ss:$12 sps:$4 sm:$0xff]  }
 0x463   : > { %6153 = vmatpush1.bf16.msra.mxu0 %v9487_v15  ;;  %6234 = vmatpush1.bf16.msra.mxu1 %v9490_v53  ;;  %v12736_v22 = vadd.f32 %v12205_v28, %v3307_v25  ;;  %v9871_v15 = vpop.eup %9870  ;;  %v12739_v53 = vadd.f32 %v14331_v0, %v3308_v6  ;;  %v1120_v30 = vld [vmem:[#allocation6 + $0x50] sm:$0xff] }
 0x464   : > { %v3392_v19 = vmul.f32 0.70710677, %v12710_v32  ;;  %v3393_v55 = vmul.f32 0.70710677, %v12713_v61  ;;  %6154 = vmatprep.subr.bf16.mxu0 %v9493_v10  ;;  %6235 = vmatprep.subr.bf16.mxu1 %v14155_v41  ;;  %v12726_v36 = vpop.f32.mrb[56].mxu1  ;;  %v14357_v23 = vld [vmem:[#allocation92_spill] sm:$0xff] }
 0x465   : > { %v4079_v12 = vpop.f32.mrb[57].mxu1  ;;  %v9873_v31 = vpop.eup %9872  ;;  %v3390_v5 = vmul.f32 0.70710677, %v12736_v22  ;;  %v3391_v16 = vmul.f32 0.70710677, %v12739_v53 }
 0x466   : > { %9878 = verf.f32 %v3392_v19  ;;  %v12730_v54 = vpop.f32.mrb[58].mxu1 }
 0x467   : > { %9880 = verf.f32 %v3393_v55  ;;  %6155 = vmatpush1.bf16.msra.mxu0 %v9491_v18  ;;  %6236 = vmatpush1.bf16.msra.mxu1 %v9494_v37  ;;  %v4082_v59 = vpop.f32.mrb[59].mxu1  ;;  %v9875_v10 = vpop.eup %9874  ;;  %v9508_v18 = vld [vmem:[#allocation14 + $0x4e0] ss:$12 sps:$4 sm:$0xff]   ;;  %v9517_v37 = vld [vmem:[#allocation14 + $0x4e8] ss:$12 sps:$4 sm:$0xff]  }
 0x468   : > { %6156 = vmatprep.subr.bf16.mxu0 %v9500_v9  ;;  %6237 = vmatprep.subr.bf16.mxu1 %v14155_v41  ;;  %9882 = verf.f32 %v3388_v56  ;;  %v9520_v9 = vld [vmem:[#allocation14 + $0x4fc] ss:$12 sps:$4 sm:$0xff]   ;;  %v3368_v56 = vmul.f32 0.5, %v12710_v32  ;;  %v3433_v59 = vadd.f32 1.0, %v9875_v10 }
 0x469   : > { %9884 = verf.f32 %v3389_v2  ;;  %v9877_v48 = vpop.eup %9876  ;;  %v3369_v2 = vmul.f32 0.5, %v12713_v61  ;;  %v3528_v61 = vpop.permute.xlu0 %3527 }
 0x46a   : > { %9886 = verf.f32 %v3390_v5 }
 0x46b   : > { %6157 = vmatpush1.bf16.msra.mxu0 %v9498_v58  ;;  %6238 = vmatpush1.bf16.msra.mxu1 %v9502_v13  ;;  %v1911_v58 = vld [vmem:[#allocation6 + $0xb0] sm:$0xff]  ;;  %v3432_v13 = vadd.f32 1.0, %v9873_v31  ;;  %9888 = verf.f32 %v3391_v16  ;;  %v3362_v16 = vmul.f32 0.5, %v12673_v17 }
 0x46c   : > { %6158 = vmatprep.subr.bf16.mxu0 %v9505_v57  ;;  %6239 = vmatprep.subr.bf16.mxu1 %v14155_v41  ;;  %v9521_v31 = vld [vmem:[#allocation14 + $0x500] ss:$12 sps:$4 sm:$0xff]  }
 0x46f   : > { %6159 = vmatpush1.bf16.msra.mxu0 %v9503_v40  ;;  %6240 = vmatpush1.bf16.msra.mxu1 %v9506_v20 }
 0x470   : > { %v9879_v19 = vpop.eup %9878  ;;  %v12744_v55 = vpop.f32.mrb[60].mxu1  ;;  %6160 = vmatprep.subr.bf16.mxu0 %v9510_v21  ;;  %6241 = vmatprep.subr.bf16.mxu1 %v14155_v41  ;;  %v3360_v21 = vmul.f32 0.5, %v12683_v45 }
 0x471   : > { %v9881_v12 = vpop.eup %9880  ;;  %v3440_v25 = vadd.f32 1.0, %v9879_v19  ;;  %v4087_v6 = vpop.f32.mrb[61].mxu1  ;;  %v3361_v19 = vmul.f32 0.5, %v12686_v63 }
 0x472   : > { %v3441_v57 = vadd.f32 1.0, %v9881_v12  ;;  %1960 = vperm.xlu0 %9208, %v1910_v35   ;;  %v12749_v40 = vpop.f32.mrb[62].mxu1  ;;  %1174 = vperm.xlu1 %9209, %v1120_v30   ;;  %v2426_v20 = vpop.xlane.xlu1 %2425  ;;  %v3434_v35 = vadd.f32 1.0, %v9871_v15  ;;  %v3435_v12 = vadd.f32 1.0, %v9877_v48  ;;  %v9526_v30 = vld [vmem:[#allocation14 + $0x514] ss:$12 sps:$4 sm:$0xff]  }
 0x473   : > { %v3464_v7 = vmul.f32 %v3440_v25, %v3368_v56  ;;  %v4090_v60 = vpop.f32.mrb[63].mxu1  ;;  %v2445_v32 = vmul.f32 0.0069444445, %v2426_v20  ;;  %6161 = vmatpush1.bf16.msra.mxu0 %v9508_v18  ;;  %6242 = vmatpush1.bf16.msra.mxu1 %v9517_v37  ;;  %v9883_v45 = vpop.eup %9882  ;;  %v3456_v56 = vmul.f32 %v3432_v13, %v3360_v21  ;;  %v3363_v15 = vmul.f32 0.5, %v12694_v44 }
 0x474   : > { %v3465_v10 = vmul.f32 %v3441_v57, %v3369_v2  ;;  %6162 = vmatprep.subr.bf16.mxu0 %v9520_v9  ;;  %6243 = vmatprep.subr.bf16.mxu1 %v14155_v41  ;;  %v3457_v60 = vmul.f32 %v3433_v59, %v3361_v19  ;;  %v9885_v25 = vpop.eup %9884  ;;  %v3458_v9 = vmul.f32 %v3434_v35, %v3362_v16  ;;  %v3436_v59 = vadd.f32 1.0, %v9883_v45 }
 0x475   : > { %v3561_v5 = vmul.f32 %v3528_v61, %v3464_v7  ;;  %v2457_v6 = vadd.f32 1e-06, %v2445_v32  ;;  %v3459_v13 = vmul.f32 %v3435_v12, %v3363_v15  ;;  %v3437_v2 = vadd.f32 1.0, %v9885_v25  ;;  %v9887_v21 = vpop.eup %9886  ;;  %v14338_v25 = vld [vmem:[#allocation34_spill] sm:$0xff] }
 0x476   : > { %v3562_v20 = vmul.f32 %v3528_v61, %v3465_v10  ;;  %1965 = vperm.xlu1 %9209, %v1911_v58   ;;  %v3508_v63 = vpop.permute.xlu1 %3507  ;;  %v3365_v57 = vmul.f32 0.5, %v12723_v47  ;;  %v9889_v32 = vpop.eup %9888  ;;  %v14337_v47 = vld [vmem:[#allocation35_spill] sm:$0xff] }
 0x477   : > { %9890 = vrsqrt.f32 %v2457_v6  ;;  %v3553_v18 = vmul.f32 %v3508_v63, %v3456_v56  ;;  %v3554_v37 = vmul.f32 %v3508_v63, %v3457_v60  ;;  %6163 = vmatpush1.bf16.msra.mxu0 %v9518_v14  ;;  %6244 = vmatpush1.bf16.msra.mxu1 %v9521_v31  ;;  %v3364_v14 = vmul.f32 0.5, %v12716_v52 }
 0x478   : > { %v8924_v48 = vpack.c.bf16 %v3562_v20, %v3561_v5  ;;  %6655 = vmatprep.subr.bf16.mxu0 %v9526_v30  ;;  %6736 = vmatprep.subr.bf16.mxu1 %v14155_v41  ;;  %v3461_v61 = vmul.f32 %v3437_v2, %v3365_v57  ;;  %v3438_v30 = vadd.f32 1.0, %v9887_v21  ;;  %v3439_v45 = vadd.f32 1.0, %v9889_v32  ;;  %v14341_v57 = vld [vmem:[#allocation74_spill] sm:$0xff]  ;;  %v14342_v32 = vld [vmem:[#allocation75_spill] sm:$0xff] }
 0x479   : > { %v8920_v7 = vpack.c.bf16 %v3554_v37, %v3553_v18  ;;  %v3460_v31 = vmul.f32 %v3436_v59, %v3364_v14  ;;  %v3366_v18 = vmul.f32 0.5, %v12736_v22  ;;  %v3367_v37 = vmul.f32 0.5, %v12739_v53 }
 0x47a   : > { %3650 = vst.msk [vmem:[#allocation2 + $0x160] sm:$0xff] %vm11825_vm6, %v8924_v48  ;;  %v3513_v17 = vpop.permute.xlu1 %3512 }
 0x47b   : > { %3646 = vst.msk [vmem:[#allocation2 + $0x140] sm:$0xff] %vm11825_vm6, %v8920_v7  ;;  %v3555_v58 = vmul.f32 %v3513_v17, %v3458_v9  ;;  %v3556_v44 = vmul.f32 %v3513_v17, %v3459_v13  ;;  %v14339_v9 = vld [vmem:[#allocation90_spill] sm:$0xff]  ;;  %v14340_v13 = vld [vmem:[#allocation83_spill] sm:$0xff] }
 0x47d   : > { %v8921_v19 = vpack.c.bf16 %v3556_v44, %v3555_v58  ;;  %v3462_v58 = vmul.f32 %v3438_v30, %v3366_v18  ;;  %v3463_v44 = vmul.f32 %v3439_v45, %v3367_v37  ;;  %v14343_v30 = vld [vmem:[#allocation49_spill] sm:$0xff]  ;;  %v14344_v45 = vld [vmem:[#allocation78_spill] sm:$0xff]  ;;  %v14347_v18 = vld [vmem:[#allocation47_spill] sm:$0xff] }
 0x47e   : > { %v3518_v10 = vpop.permute.xlu1 %3517  ;;  %v1537_v37 = vsel %vm745_vm10, %v14347_v18, 0.0 }
 0x47f   : > { %3647 = vst.msk [vmem:[#allocation2 + $0x148] sm:$0xff] %vm11825_vm6, %v8921_v19  ;;  %v3557_v35 = vmul.f32 %v3518_v10, %v3460_v31  ;;  %v3558_v12 = vmul.f32 %v3518_v10, %v3461_v61 }
 0x481   : > { %v9891_v5 = vpop.eup %9890  ;;  %v12765_v6 = vpop.f32.mrb[64].mxu0  ;;  %v8922_v52 = vpack.c.bf16 %v3558_v12, %v3557_v35 }
 0x482   : > { %v12767_v56 = vpop.f32.mrb[64].mxu1  ;;  %v2490_v60 = vmul.f32 %v9891_v5, %v14337_v47  ;;  %v2491_v20 = vmul.f32 %v9891_v5, %v14338_v25  ;;  %v12771_v63 = vpop.f32.mrb[65].mxu0 }
 0x483   : > { %v4095_v16 = vpop.f32.mrb[65].mxu1  ;;  %v4024_v15 = vpop.f32.mrb[66].mxu0  ;;  %3648 = vst.msk [vmem:[#allocation2 + $0x150] sm:$0xff] %vm11825_vm6, %v8922_v52  ;;  %v12785_v52 = vadd.f32 %v14344_v45, %v14343_v30  ;;  %v14353_v45 = vld [vmem:[#allocation44_spill] sm:$0xff] }
 0x484   : > { %v4096_v48 = vpop.f32.mrb[66].mxu1  ;;  %v2525_v7 = vmul.f32 %v14339_v9, %v2490_v60  ;;  %v2526_v59 = vmul.f32 %v14340_v13, %v2491_v20  ;;  %v4025_v2 = vpop.f32.mrb[67].mxu0  ;;  %v14346_v20 = vld [vmem:[#allocation45_spill] sm:$0xff] }
 0x485   : > { %v4097_v17 = vpop.f32.mrb[67].mxu1  ;;  %v3523_v14 = vpop.permute.xlu1 %3522  ;;  %14345 = vst [vmem:[#allocation36_spill] sm:$0xff] %v12785_v52  ;;  %v1536_v16 = vsel %vm743_vm9, %v14346_v20, 0.0  ;;  %v9513_v2 = vld [vmem:[#allocation2 + $0xc4] ss:$8 sps:$4 sm:$0xff]  }
 0x486   : > { %v2560_v21 = vadd.f32 %v14341_v57, %v2525_v7  ;;  %v2561_v22 = vadd.f32 %v14342_v32, %v2526_v59  ;;  %v3559_v19 = vmul.f32 %v3523_v14, %v3462_v58  ;;  %v3560_v53 = vmul.f32 %v3523_v14, %v3463_v44  ;;  %v9484_v31 = vld [vmem:[#allocation2 + $0x144] ss:$8 sps:$4 sm:$0xff]   ;;  %v9486_v61 = vld [vmem:[#allocation2 + $0x140] ss:$8 sps:$4 sm:$0xff]  }
 0x487   : > { %8689 = vmatprep.mubr.msk.bf16.mxu0 %vm698_vm3, %v9484_v31  ;;  %8694 = vmatprep.mubr.msk.bf16.mxu1 %vm698_vm3, %v9484_v31  ;;  %v14349_v7 = vld [vmem:[#allocation95_spill] sm:$0xff]  ;;  %v3104_v17 = vsel %vm698_vm3, %v12785_v52, 0.0  ;;  %v1538_v58 = vadd.f32 %v1537_v37, %v1536_v16  ;;  %v14354_v37 = vld [vmem:[#allocation46_spill] sm:$0xff] }
 0x488   : > { %v2608_v10 = vmul.f32 0.70710677, %v2560_v21  ;;  %v2609_v35 = vmul.f32 0.70710677, %v2561_v22  ;;  %v8923_v5 = vpack.c.bf16 %v3560_v53, %v3559_v19  ;;  %5690 = vmatmul.mubr.bf16.gmra.mrb[56].mxu0 %v9486_v61  ;;  %5767 = vmatmul.mubr.bf16.gmra.mrb[136].mxu1 %v9486_v61  ;;  %v14351_v14 = vld [vmem:[#allocation51_spill] sm:$0xff]  ;;  %v14352_v19 = vld [vmem:[#allocation80_spill] sm:$0xff] }
 0x489   : > { %v4415_v12 = vpop.f32.mrb[68].mxu1  ;;  %v12808_v53 = vadd.f32 %v14352_v19, %v14351_v14  ;;  %v5919_v61 = vshll.u32 %v9513_v2, 16  ;;  %v2584_v38 = vmul.f32 0.5, %v2560_v21  ;;  %v5917_v21 = vshrl.u32 %v9513_v2, 16 }
 0x48a   : > { %9892 = verf.f32 %v2608_v10  ;;  %v12788_v47 = vadd.f32 %v4415_v12, %v12608_v3  ;;  %v4417_v60 = vpop.f32.mrb[69].mxu1  ;;  %3649 = vst.msk [vmem:[#allocation2 + $0x158] sm:$0xff] %vm11825_vm6, %v8923_v5  ;;  %v14348_v3 = vld [vmem:[#allocation48_spill] sm:$0xff] }
 0x48b   : > { %9894 = verf.f32 %v2609_v35  ;;  %v4418_v25 = vpop.f32.mrb[70].mxu1  ;;  %v12801_v59 = vadd.f32 %v14349_v7, %v14348_v3  ;;  %v744_v60 = vsel %vm743_vm9, %v14353_v45, 0.0  ;;  %v14355_v7 = vld [vmem:[#allocation50_spill] sm:$0xff]  ;;  %v2318_v28 = vsel %vm698_vm3, %v12808_v53, 0.0 }
 0x48c   : > { %v12797_v15 = vadd.f32 %v4418_v25, %v12610_v39  ;;  %v4420_v48 = vpop.f32.mrb[71].mxu1  ;;  %v5398_v39 = vld [vmem:[#allocation2 + $0x160] sm:$0xff]  ;;  %v5921_v57 = vrot.slane %v5919_v61, 1 }
 0x48d   : > { %14350 = vst [vmem:[#allocation97_spill] sm:$0xff] %v12801_v59  ;;  %v3105_v44 = vadd.f32 %v3104_v17, %v12801_v59  ;;  %v746_v48 = vsel %vm745_vm10, %v14354_v37, 0.0  ;;  %v14356_v17 = vld [vmem:[#allocation91_spill] sm:$0xff] }
 0x48e   : > { %v12819_v19 = vadd.f32 %v14356_v17, %v14355_v7  ;;  %v12832_v17 = vadd.f32 %v14357_v23, %v14355_v7  ;;  %v747_v13 = vadd.f32 %v746_v48, %v744_v60  ;;  %v2747_v23 = vpop.permute.xlu0 %2746  ;;  %v5922_v2 = vor.u32 %v5921_v57, %v5917_v21  ;;  %v12851_v48 = vld [vmem:[#allocation2 + $0xe4] ss:$8 sps:$4 sm:$0xff]   ;;  %v14360_v21 = vld [vmem:[#allocation32_spill] sm:$0xff] }
 0x490   : > { %v2319_v59 = vadd.f32 %v2318_v28, %v12819_v19 }
 0x491   : > { %v4423_v31 = vpop.f32.mrb[72].mxu1  ;;  %1539 = vadd.xlane.f32.xlu0 %v1538_v58  ;;  %v9495_v12 = vld [vmem:[#allocation2 + $0x154] ss:$8 sps:$4 sm:$0xff]   ;;  %v9497_v5 = vld [vmem:[#allocation2 + $0x150] ss:$8 sps:$4 sm:$0xff]  }
 0x492   : > { %v12811_v10 = vadd.f32 %v4423_v31, %v12659_v24  ;;  %v4425_v35 = vpop.f32.mrb[73].mxu1  ;;  %8690 = vmatprep.mubr.msk.bf16.mxu0 %vm698_vm3, %v9495_v12  ;;  %8695 = vmatprep.mubr.msk.bf16.mxu1 %vm698_vm3, %v9495_v12  ;;  %v8659_v31 = vcombine.high %v5398_v39, %v5398_v39  ;;  %v2585_v12 = vmul.f32 0.5, %v2561_v22  ;;  %v2322_v22 = vsel %vm743_vm9, %v12832_v17, 0.0 }
 0x493   : > { %v4426_v25 = vpop.f32.mrb[74].mxu1  ;;  %v9511_v35 = vld [vmem:[#allocation2 + $0xc0] ss:$8 sps:$4 sm:$0xff]   ;;  %5700 = vmatmul.mubr.bf16.gmra.mrb[60].mxu0 %v9497_v5  ;;  %5775 = vmatmul.mubr.bf16.gmra.mrb[140].mxu1 %v9497_v5 }
 0x494   : > { %v9893_v16 = vpop.eup %9892  ;;  %v12822_v58 = vadd.f32 %v4426_v25, %v12667_v29  ;;  %v4428_v24 = vpop.f32.mrb[75].mxu1  ;;  %v14358_v25 = vld [vmem:[#allocation94_spill] sm:$0xff]  ;;  %8691 = vmatprep.mubr.msk.bf16.mxu0 %vm698_vm3, %v8659_v31  ;;  %8696 = vmatprep.mubr.msk.bf16.mxu1 %vm698_vm3, %v8659_v31  ;;  %v8658_v31 = vcombine.low %v5398_v39, %v5398_v39  ;;  %v5905_v57 = vshrl.u32 %v9511_v35, 16  ;;  %v5940_v39 = vshll.u32 %v12851_v48, 16 }
 0x495   : > { %v9895_v0 = vpop.eup %9894  ;;  %v2656_v29 = vadd.f32 1.0, %v9893_v16  ;;  %3106 = vadd.xlane.f32.xlu0 %v3105_v44  ;;  %v12836_v24 = vadd.f32 %v14358_v25, %v14351_v14  ;;  %v5924_v44 = vshll.u32 %v12826_v42, 16  ;;  %v5907_v16 = vshll.u32 %v9511_v35, 16  ;;  %v14364_v35 = vld [vmem:[#allocation84_spill] sm:$0xff] }
 0x496   : > { %v2657_v32 = vadd.f32 1.0, %v9895_v0 }
 0x497   : > { %v2680_v9 = vmul.f32 %v2656_v29, %v2584_v38  ;;  %v2323_v61 = vsel %vm745_vm10, %v12836_v24, 0.0  ;;  %v5909_v52 = vrot.slane %v5907_v16, 1  ;;  %v14362_v16 = vld [vmem:[#allocation33_spill] sm:$0xff] }
 0x498   : > { %v2681_v7 = vmul.f32 %v2657_v32, %v2585_v12  ;;  %v12849_v32 = vld [vmem:[#allocation2 + $0xd0] ss:$8 sps:$4 sm:$0xff]   ;;  %v5926_v12 = vrot.slane %v5924_v44, 1  ;;  %v12867_v44 = vadd.f32 %v14360_v21, %v14348_v3 }
 0x499   : > { %v2777_v0 = vmul.f32 %v2747_v23, %v2680_v9  ;;  %v4431_v14 = vpop.f32.mrb[76].mxu1  ;;  %v9531_v21 = vld [vmem:[#allocation14 + $0x52c] ss:$12 sps:$4 sm:$0xff]  }
 0x49a   : > { %v2778_v5 = vmul.f32 %v2747_v23, %v2681_v7  ;;  %v12847_v38 = vadd.f32 %v4431_v14, %v12726_v36  ;;  %v4433_v60 = vpop.f32.mrb[77].mxu1  ;;  %748 = vadd.xlane.f32.xlu1 %v747_v13  ;;  %v14359_v23 = vld [vmem:[#allocation88_spill] sm:$0xff]  ;;  %v2324_v7 = vadd.f32 %v2323_v61, %v2322_v22  ;;  %v5927_v13 = vsel %vm4540_vm7, %v5922_v2, %v5926_v12 }
 0x49b   : > { %v4434_v28 = vpop.f32.mrb[78].mxu1  ;;  %v12858_v36 = vadd.f32 %v14359_v23, %v14343_v30  ;;  %5710 = vmatmul.mubr.bf16.gmra.mrb[80].mxu0 %v8658_v31  ;;  %5783 = vmatmul.mubr.bf16.gmra.mrb[144].mxu1 %v8658_v31  ;;  %14361 = vst [vmem:[#allocation66_spill] sm:$0xff] %v12867_v44  ;;  %v12871_v22 = vadd.f32 %v14362_v16, %v14343_v30  ;;  %v5942_v31 = vrot.slane %v5940_v39, 1  ;;  %v12892_v23 = vld [vmem:[#allocation2 + $0xf4] ss:$8 sps:$4 sm:$0xff]  }
 0x49c   : > { %v8913_v29 = vpack.c.bf16 %v2778_v5, %v2777_v0  ;;  %v12854_v9 = vadd.f32 %v4434_v28, %v12730_v54  ;;  %v4436_v25 = vpop.f32.mrb[79].mxu1  ;;  %v5912_v54 = vshll.u32 %v12849_v32, 16  ;;  %8734 = vmatprep.mubr.msk.bf16.mxu0 %vm698_vm3, %v5927_v13  ;;  %8739 = vmatprep.mubr.msk.bf16.mxu1 %vm698_vm3, %v5927_v13  ;;  %v12879_v0 = vadd.f32 %v14364_v35, %v14348_v3  ;;  %v9527_v39 = vld [vmem:[#allocation14 + $0x518] ss:$12 sps:$4 sm:$0xff]  }
 0x49d   : > { %14363 = vst [vmem:[#allocation82_spill] sm:$0xff] %v12871_v22  ;;  %v5910_v14 = vor.u32 %v5909_v52, %v5905_v57  ;;  %v3100_v61 = vsel %vm698_vm3, %v12858_v36, 0.0  ;;  %v5936_v28 = vshrl.u32 %v12826_v42, 16  ;;  %v3109_v3 = vsel %vm745_vm10, %v12871_v22, 0.0 }
 0x49e   : > { %2865 = vst.msk [vmem:[#allocation2 + $0x108] sm:$0xff] %vm11825_vm6, %v8913_v29  ;;  %2320 = vadd.xlane.f32.xlu1 %v2319_v59  ;;  %v12875_v59 = vld [vmem:[#allocation2 + $0xe0] ss:$8 sps:$4 sm:$0xff]   ;;  %v5914_v2 = vrot.slane %v5912_v54, 1  ;;  %v3108_v29 = vsel %vm743_vm9, %v12867_v44, 0.0 }
 0x49f   : > { %v5932_v25 = vshll.u32 %v12875_v59, 16  ;;  %v5938_v57 = vor.u32 %v5936_v28, %v5926_v12  ;;  %v9524_v54 = vld [vmem:[#allocation14 + $0x510] ss:$12 sps:$4 sm:$0xff]   ;;  %v3110_v16 = vadd.f32 %v3109_v3, %v3108_v29  ;;  %v5956_v12 = vshll.u32 %v12892_v23, 16  ;;  %v9555_v44 = vld [vmem:[#allocation14 + $0x5a0] ss:$12 sps:$4 sm:$0xff]  }
 0x4a0   : > { %v5915_v42 = vsel %vm4540_vm7, %v5910_v14, %v5914_v2  ;;  %v9529_v14 = vld [vmem:[#allocation14 + $0x528] ss:$12 sps:$4 sm:$0xff]   ;;  %v9537_v28 = vld [vmem:[#allocation14 + $0x544] ss:$12 sps:$4 sm:$0xff]  }
 0x4a1   : > { %v4439_v5 = vpop.f32.mrb[80].mxu1  ;;  %v5943_v35 = vsel %vm4540_vm7, %v5938_v57, %v5942_v31  ;;  %v12914_v57 = vld [vmem:[#allocation2 + $0xf0] ss:$8 sps:$4 sm:$0xff]  }
 0x4a2   : > { %v12884_v60 = vadd.f32 %v4439_v5, %v12744_v55  ;;  %v4441_v30 = vpop.f32.mrb[81].mxu1  ;;  %2325 = vadd.xlane.f32.xlu1 %v2324_v7  ;;  %v3101_v55 = vadd.f32 %v3100_v61, %v12879_v0  ;;  %v5934_v61 = vrot.slane %v5932_v25, 1  ;;  %v5952_v5 = vshrl.u32 %v12851_v48, 16 }
 0x4a3   : > { %v4442_v52 = vpop.f32.mrb[82].mxu1  ;;  %6179 = vmatmul.mubr.bf16.vlgmr.msra.gmra.mrb[48].mxu0 %v5915_v42  ;;  %6260 = vmatmul.mubr.bf16.vlgmr.msra.gmra.mrb[148].mxu1 %v5915_v42  ;;  %v9534_v30 = vld [vmem:[#allocation14 + $0x530] ss:$12 sps:$4 sm:$0xff]  }
 0x4a4   : > { %v12896_v13 = vadd.f32 %v4442_v52, %v12749_v40  ;;  %v4444_v7 = vpop.f32.mrb[83].mxu1  ;;  %8735 = vmatprep.mubr.msk.bf16.mxu0 %vm698_vm3, %v5943_v35  ;;  %8740 = vmatprep.mubr.msk.bf16.mxu1 %vm698_vm3, %v5943_v35  ;;  %v5928_v40 = vshrl.u32 %v12849_v32, 16  ;;  %v5954_v52 = vor.u32 %v5952_v5, %v5942_v31  ;;  %v5958_v31 = vrot.slane %v5956_v12, 1 }
 0x4a5   : > { %6656 = vmatpush1.bf16.msra.mxu0 %v9524_v54  ;;  %6737 = vmatpush1.bf16.msra.mxu1 %v9527_v39  ;;  %v5948_v12 = vshll.u32 %v12914_v57, 16 }
 0x4a6   : > { %3102 = vadd.xlane.f32.xlu1 %v3101_v55  ;;  %6657 = vmatprep.subr.bf16.mxu0 %v9531_v21  ;;  %v12906_v55 = vld [vmem:[#allocation2 + $0x104] ss:$8 sps:$4 sm:$0x1f]   ;;  %v5930_v42 = vor.u32 %v5928_v40, %v5914_v2 }
 0x4a7   : > { %6738 = vmatprep.subr.bf16.mxu1 %v14155_v41  ;;  %v9542_v2 = vld [vmem:[#allocation14 + $0x55c] ss:$12 sps:$4 sm:$0xff]   ;;  %v5972_v40 = vshll.u32 %v12906_v55, 16 }
 0x4a9   : > { %v4374_v29 = vpop.f32.mrb[68].mxu0  ;;  %v4447_v3 = vpop.f32.mrb[84].mxu1  ;;  %6658 = vmatpush1.bf16.msra.mxu0 %v9529_v14  ;;  %6739 = vmatpush1.bf16.msra.mxu1 %v9534_v30  ;;  %v9540_v14 = vld [vmem:[#allocation14 + $0x558] ss:$12 sps:$4 sm:$0xff]  }
 0x4aa   : > { %v12909_v32 = vadd.f32 %v4374_v29, %v12765_v6  ;;  %v12912_v48 = vadd.f32 %v4447_v3, %v12767_v56  ;;  %v4376_v25 = vpop.f32.mrb[69].mxu0  ;;  %v4449_v7 = vpop.f32.mrb[85].mxu1  ;;  %3111 = vadd.xlane.f32.xlu1 %v3110_v16  ;;  %v5935_v6 = vsel %vm4540_vm7, %v5930_v42, %v5934_v61  ;;  %v9535_v56 = vld [vmem:[#allocation14 + $0x540] ss:$12 sps:$4 sm:$0xff]   ;;  %v9538_v29 = vld [vmem:[#allocation14 + $0x548] ss:$12 sps:$4 sm:$0xff]   ;;  %v5959_v16 = vsel %vm4540_vm7, %v5954_v52, %v5958_v31 }
 0x4ab   : > { %v12917_v54 = vadd.f32 %v4376_v25, %v12771_v63  ;;  %v4378_v39 = vpop.f32.mrb[70].mxu0  ;;  %v4450_v21 = vpop.f32.mrb[86].mxu1  ;;  %6189 = vmatmul.mubr.bf16.gmra.mrb[52].mxu0 %v5935_v6  ;;  %6659 = vmatprep.subr.bf16.mxu0 %v9537_v28  ;;  %v5944_v63 = vshrl.u32 %v12875_v59, 16  ;;  %v9545_v3 = vld [vmem:[#allocation14 + $0x560] ss:$12 sps:$4 sm:$0xff]   ;;  %v5968_v25 = vshrl.u32 %v12892_v23, 16 }
 0x4ac   : > { %v4379_v35 = vpop.f32.mrb[71].mxu0  ;;  %v4451_v5 = vpop.f32.mrb[87].mxu1  ;;  %6268 = vmatmul.mubr.bf16.gmra.mrb[152].mxu1 %v5935_v6  ;;  %8736 = vmatprep.mubr.msk.bf16.mxu0 %vm698_vm3, %v5959_v16  ;;  %v12927_v28 = vld [vmem:[#allocation2 + $0x100] ss:$8 sps:$4 sm:$0x1f]   ;;  %v5974_v59 = vrot.slane %v5972_v40, 1 }
 0x4ad   : > { %8741 = vmatprep.mubr.msk.bf16.mxu1 %vm698_vm3, %v5959_v16  ;;  %6740 = vmatprep.subr.bf16.mxu1 %v14155_v41  ;;  %v5946_v30 = vor.u32 %v5944_v63, %v5934_v61  ;;  %v9548_v7 = vld [vmem:[#allocation14 + $0x574] ss:$12 sps:$4 sm:$0xff]   ;;  %v5950_v21 = vrot.slane %v5948_v12, 1  ;;  %v12934_v35 = vld [vmem:[#allocation2 + $0x10] sm:$0xff]  ;;  %v5970_v61 = vor.u32 %v5968_v25, %v5958_v31  ;;  %v5960_v12 = vshrl.u32 %v12914_v57, 16 }
 0x4ae   : > { %6660 = vmatpush1.bf16.msra.mxu0 %v9535_v56  ;;  %6741 = vmatpush1.bf16.msra.mxu1 %v9538_v29  ;;  %v6326_v6 = vld [vmem:[#allocation2 + $0x8] sm:$0xff]  ;;  %v9546_v23 = vld [vmem:[#allocation14 + $0x570] ss:$12 sps:$4 sm:$0xff]   ;;  %v9553_v63 = vld [vmem:[#allocation14 + $0x58c] ss:$12 sps:$4 sm:$0xff]  }
 0x4af   : > { %6661 = vmatprep.subr.bf16.mxu0 %v9542_v2  ;;  %6742 = vmatprep.subr.bf16.mxu1 %v14155_v41  ;;  %v5951_v16 = vsel %vm4540_vm7, %v5946_v30, %v5950_v21  ;;  %v9549_v2 = vld [vmem:[#allocation14 + $0x578] ss:$12 sps:$4 sm:$0xff]   ;;  %v5975_v40 = vsel %vm4540_vm7, %v5970_v61, %v5974_v59  ;;  %v8745_v31 = vcombine.high %v6326_v6, %v12934_v35  ;;  %v9551_v30 = vld [vmem:[#allocation14 + $0x588] ss:$12 sps:$4 sm:$0xff]  }
 0x4b0   : > { %v9557_v25 = vld [vmem:[#allocation14 + $0x5a4] ss:$12 sps:$4 sm:$0xff]  }
 0x4b1   : > { %v4898_v52 = vpop.f32.mrb[88].mxu1 }
 0x4b2   : > { %v12932_v42 = vadd.f32 %v4898_v52, %v12788_v47  ;;  %v4900_v39 = vpop.f32.mrb[89].mxu1  ;;  %6662 = vmatpush1.bf16.msra.mxu0 %v9540_v14  ;;  %6743 = vmatpush1.bf16.msra.mxu1 %v9545_v3  ;;  %v5964_v47 = vshll.u32 %v12927_v28, 16  ;;  %v9554_v3 = vld [vmem:[#allocation14 + $0x590] ss:$12 sps:$4 sm:$0xff]  }
 0x4b3   : > { %v4901_v5 = vpop.f32.mrb[90].mxu1  ;;  %6199 = vmatmul.mubr.bf16.gmra.mrb[56].mxu0 %v5951_v16  ;;  %6663 = vmatprep.subr.bf16.mxu0 %v9548_v7  ;;  %v12948_v7 = vld [vmem:[#allocation2 + $0x1c] ss:$8 sps:$4 sm:$0xff]   ;;  %v6428_v39 = vshll.u32 %v8745_v31, 16 }
 0x4b4   : > { %v12937_v56 = vadd.f32 %v4901_v5, %v12797_v15  ;;  %v4903_v29 = vpop.f32.mrb[91].mxu1  ;;  %6276 = vmatmul.mubr.bf16.gmra.mrb[156].mxu1 %v5951_v16  ;;  %8737 = vmatprep.mubr.msk.bf16.mxu0 %vm698_vm3, %v5975_v40  ;;  %v854_v15 = vpop.xlane.xlu1 %853  ;;  %v5966_v14 = vrot.slane %v5964_v47, 1  ;;  %v5962_v16 = vor.u32 %v5960_v12, %v5950_v21 }
 0x4b5   : > { %8742 = vmatprep.mubr.msk.bf16.mxu1 %vm698_vm3, %v5975_v40  ;;  %6744 = vmatprep.subr.bf16.mxu1 %v14155_v41  ;;  %v870_v29 = vmul.f32 0.0069444445, %v854_v15  ;;  %v9561_v15 = vld [vmem:[#allocation14 + $0x5bc] ss:$12 sps:$4 sm:$0xff]   ;;  %v6430_v21 = vrot.slane %v6428_v39, 1 }
 0x4b6   : > { %6664 = vmatpush1.bf16.msra.mxu0 %v9546_v23  ;;  %6745 = vmatpush1.bf16.msra.mxu1 %v9549_v2  ;;  %v5979_v23 = vshrl.u32 %v12906_v55, 16  ;;  %v8744_v2 = vcombine.low %v6326_v6, %v12934_v35  ;;  %v6433_v55 = vshll.u32 %v12948_v7, 16  ;;  %v9559_v6 = vld [vmem:[#allocation14 + $0x5b8] ss:$12 sps:$4 sm:$0xff]  }
 0x4b7   : > { %6665 = vmatprep.subr.bf16.mxu0 %v9553_v63  ;;  %6746 = vmatprep.subr.bf16.mxu1 %v14155_v41  ;;  %v5967_v63 = vsel %vm4540_vm7, %v5962_v16, %v5966_v14  ;;  %v882_v12 = vadd.f32 1e-06, %v870_v29 }
 0x4b8   : > { %v5981_v22 = vor.u32 %v5979_v23, %v5974_v59  ;;  %v6416_v59 = vshll.u32 %v8744_v2, 16  ;;  %v6435_v39 = vrot.slane %v6433_v55, 1  ;;  %v9580_v55 = vld [vmem:[#allocation14 + $0x5ec] ss:$12 sps:$4 sm:$0xff]  }
 0x4b9   : > { %v4906_v52 = vpop.f32.mrb[92].mxu1  ;;  %9896 = vrsqrt.f32 %v882_v12 }
 0x4ba   : > { %v12951_v5 = vadd.f32 %v4906_v52, %v12811_v10  ;;  %v4908_v61 = vpop.f32.mrb[93].mxu1  ;;  %6666 = vmatpush1.bf16.msra.mxu0 %v9551_v30  ;;  %6747 = vmatpush1.bf16.msra.mxu1 %v9554_v3  ;;  %v9558_v10 = vld [vmem:[#allocation14 + $0x5a8] ss:$12 sps:$4 sm:$0xff]   ;;  %v9567_v30 = vld [vmem:[#allocation14 + $0x5c0] ss:$12 sps:$4 sm:$0xff]   ;;  %v5976_v52 = vshrl.u32 %v12927_v28, 16 }
 0x4bb   : > { %v4909_v57 = vpop.f32.mrb[94].mxu1  ;;  %6209 = vmatmul.mubr.bf16.gmra.mrb[60].mxu0 %v5967_v63  ;;  %6667 = vmatprep.subr.bf16.mxu0 %v9557_v25  ;;  %v9570_v61 = vld [vmem:[#allocation14 + $0x5d4] ss:$12 sps:$4 sm:$0xff]   ;;  %v9568_v28 = vld [vmem:[#allocation14 + $0x5d0] ss:$12 sps:$4 sm:$0xff]  }
 0x4bc   : > { %v12956_v47 = vadd.f32 %v4909_v57, %v12822_v58  ;;  %v4911_v40 = vpop.f32.mrb[95].mxu1  ;;  %6284 = vmatmul.mubr.bf16.gmra.mrb[160].mxu1 %v5967_v63  ;;  %8738 = vmatprep.mubr.msk.bf16.mxu0 %vm698_vm3, %v5981_v22  ;;  %v6426_v58 = vshrl.u32 %v8745_v31, 16  ;;  %v5978_v16 = vor.u32 %v5976_v52, %v5966_v14  ;;  %v9974_v63 = vld [vmem:[#allocation2 + $0x18] ss:$8 sps:$4 sm:$0xff]   ;;  %v6414_v14 = vshrl.u32 %v8744_v2, 16 }
 0x4bd   : > { %8743 = vmatprep.mubr.msk.bf16.mxu1 %vm698_vm3, %v5981_v22  ;;  %6748 = vmatprep.subr.bf16.mxu1 %v14155_v41  ;;  %v9571_v40 = vld [vmem:[#allocation14 + $0x5d8] ss:$12 sps:$4 sm:$0xff]  }
 0x4be   : > { %6668 = vmatpush1.bf16.msra.mxu0 %v9555_v44  ;;  %6749 = vmatpush1.bf16.msra.mxu1 %v9558_v10  ;;  %v6431_v25 = vor.u32 %v6430_v21, %v6426_v58  ;;  %v6418_v44 = vrot.slane %v6416_v59, 1  ;;  %v6421_v10 = vshll.u32 %v9974_v63, 16  ;;  %v6445_v58 = vshrl.u32 %v12948_v7, 16  ;;  %v9976_v2 = vld [vmem:[#allocation2 + $0x28] ss:$8 sps:$4 sm:$0xff]  }
 0x4bf   : > { %6669 = vmatprep.subr.bf16.mxu0 %v9561_v15  ;;  %6750 = vmatprep.subr.bf16.mxu1 %v14155_v41 }
 0x4c0   : > { %v6436_v15 = vsel %vm4540_vm7, %v6431_v25, %v6435_v39  ;;  %v6423_v12 = vrot.slane %v6421_v10, 1  ;;  %v6441_v25 = vshll.u32 %v9976_v2, 16 }
 0x4c1   : > { %v4914_v3 = vpop.f32.mrb[96].mxu1 }
 0x4c2   : > { %v12966_v29 = vadd.f32 %v4914_v3, %v12847_v38  ;;  %v4916_v22 = vpop.f32.mrb[97].mxu1  ;;  %6670 = vmatpush1.bf16.msra.mxu0 %v9559_v6  ;;  %6751 = vmatpush1.bf16.msra.mxu1 %v9567_v30  ;;  %v9975_v38 = vld [vmem:[#allocation2 + $0x2c] ss:$8 sps:$4 sm:$0xff]   ;;  %v6447_v6 = vor.u32 %v6445_v58, %v6435_v39 }
 0x4c3   : > { %v4917_v31 = vpop.f32.mrb[98].mxu1  ;;  %6219 = vmatmul.mubr.bf16.gmra.mrb[84].mxu0 %v5978_v16  ;;  %6671 = vmatprep.subr.bf16.mxu0 %v9570_v61  ;;  %v6449_v21 = vshll.u32 %v9975_v38, 16  ;;  %v9578_v30 = vld [vmem:[#allocation14 + $0x5e8] ss:$12 sps:$4 sm:$0xff]   ;;  %v9897_v3 = vpop.eup %9896  ;;  %v9581_v61 = vld [vmem:[#allocation14 + $0x5f0] ss:$12 sps:$4 sm:$0xff]  }
 0x4c4   : > { %v12969_v23 = vadd.f32 %v4917_v31, %v12854_v9  ;;  %v4919_v57 = vpop.f32.mrb[99].mxu1  ;;  %6292 = vmatmul.mubr.bf16.gmra.mrb[164].mxu1 %v5978_v16  ;;  %8781 = vmatprep.mubr.msk.bf16.mxu0 %vm698_vm3, %v6436_v15  ;;  %v6419_v9 = vor.u32 %v6418_v44, %v6414_v14  ;;  %v9584_v22 = vld [vmem:[#allocation14 + $0x604] ss:$12 sps:$4 sm:$0xff]   ;;  %v12979_v16 = vld [vmem:[#allocation2 + $0x3c] ss:$8 sps:$4 sm:$0xff]   ;;  %v916_v39 = vmul.f32 %v9897_v3, %v12562_v34 }
 0x4c5   : > { %8786 = vmatprep.mubr.msk.bf16.mxu1 %vm698_vm3, %v6436_v15  ;;  %6752 = vmatprep.subr.bf16.mxu1 %v14155_v41  ;;  %v6451_v59 = vrot.slane %v6449_v21, 1  ;;  %v6465_v44 = vshll.u32 %v12979_v16, 16  ;;  %v9582_v57 = vld [vmem:[#allocation14 + $0x600] ss:$12 sps:$4 sm:$0xff]   ;;  %v917_v10 = vmul.f32 %v9897_v3, %v12543_v43  ;;  %v9585_v15 = vld [vmem:[#allocation14 + $0x608] ss:$12 sps:$4 sm:$0xff]  }
 0x4c6   : > { %6672 = vmatpush1.bf16.msra.mxu0 %v9568_v28  ;;  %6753 = vmatpush1.bf16.msra.mxu1 %v9571_v40  ;;  %v6424_v52 = vsel %vm4540_vm7, %v6419_v9, %v6423_v12  ;;  %v6437_v28 = vshrl.u32 %v9974_v63, 16  ;;  %v6443_v40 = vrot.slane %v6441_v25, 1  ;;  %v9588_v21 = vld [vmem:[#allocation14 + $0x61c] ss:$12 sps:$4 sm:$0xff]   ;;  %v9586_v34 = vld [vmem:[#allocation14 + $0x618] ss:$12 sps:$4 sm:$0xff]  }
 0x4c7   : > { %7164 = vmatprep.subr.bf16.mxu0 %v9580_v55  ;;  %7245 = vmatprep.subr.bf16.mxu1 %v14155_v41  ;;  %v6452_v31 = vsel %vm4540_vm7, %v6447_v6, %v6451_v59  ;;  %v6461_v55 = vshrl.u32 %v9975_v38, 16  ;;  %v12986_v14 = vrot.slane %v6465_v44, 1  ;;  %v14365_v6 = vld [vmem:[#allocation115_spill] sm:$0xff]  ;;  %v14366_v3 = vld [vmem:[#allocation116_spill] sm:$0xff]  ;;  %v6453_v44 = vshrl.u32 %v9976_v2, 16 }
 0x4c8   : > { %v6439_v9 = vor.u32 %v6437_v28, %v6423_v12  ;;  %v952_v25 = vmul.f32 %v14366_v3, %v917_v10  ;;  %v9589_v38 = vld [vmem:[#allocation14 + $0x620] ss:$12 sps:$4 sm:$0xff]   ;;  %v9593_v10 = vld [vmem:[#allocation14 + $0x638] ss:$12 sps:$4 sm:$0xff]   ;;  %v9597_v2 = vld [vmem:[#allocation14 + $0x650] ss:$12 sps:$4 sm:$0xff]  }
 0x4c9   : > { %v6463_v58 = vor.u32 %v6461_v55, %v6451_v59  ;;  %v14367_v59 = vld [vmem:[#allocation117_spill] sm:$0xff] }
 0x4ca   : > { %v6444_v63 = vsel %vm4540_vm7, %v6439_v9, %v6443_v40  ;;  %v9594_v9 = vld [vmem:[#allocation14 + $0x648] ss:$12 sps:$4 sm:$0xff]  }
 0x4cb   : > { %6688 = vmatmul.mubr.bf16.vlgmr.msra.gmra.mrb[48].mxu0 %v6424_v52  ;;  %v6468_v12 = vsel %vm4540_vm7, %v6463_v58, %v12986_v14 }
 0x4cc   : > { %6769 = vmatmul.mubr.bf16.vlgmr.msra.gmra.mrb[168].mxu1 %v6424_v52  ;;  %8782 = vmatprep.mubr.msk.bf16.mxu0 %vm698_vm3, %v6452_v31  ;;  %v12991_v52 = vld [vmem:[#allocation2 + $0x38] ss:$8 sps:$4 sm:$0xff]  }
 0x4cd   : > { %8787 = vmatprep.mubr.msk.bf16.mxu1 %vm698_vm3, %v6452_v31  ;;  %7165 = vmatpush1.bf16.msra.mxu0 %v9578_v30  ;;  %v951_v30 = vmul.f32 %v14365_v6, %v916_v39  ;;  %v6457_v43 = vshll.u32 %v12991_v52, 16  ;;  %v9590_v31 = vld [vmem:[#allocation14 + $0x630] ss:$12 sps:$4 sm:$0xff]  }
 0x4ce   : > { %7246 = vmatpush1.bf16.msra.mxu1 %v9581_v61  ;;  %7166 = vmatprep.subr.bf16.mxu0 %v9584_v22  ;;  %v9592_v61 = vld [vmem:[#allocation14 + $0x634] ss:$12 sps:$4 sm:$0xff]  }
 0x4cf   : > { %7247 = vmatprep.subr.bf16.mxu1 %v14155_v41  ;;  %v13001_v22 = vadd.f32 %v14367_v59, %v951_v30  ;;  %v13003_v39 = vrot.slane %v6457_v43, 1  ;;  %v9607_v43 = vld [vmem:[#allocation14 + $0x67c] ss:$12 sps:$4 sm:$0xff]  }
 0x4d1   : > { %7167 = vmatpush1.bf16.msra.mxu0 %v9582_v57  ;;  %v14368_v57 = vld [vmem:[#allocation118_spill] sm:$0xff]  ;;  %v1034_v55 = vmul.f32 0.70710677, %v13001_v22 }
 0x4d2   : > { %7248 = vmatpush1.bf16.msra.mxu1 %v9585_v15  ;;  %7168 = vmatprep.subr.bf16.mxu0 %v9588_v21  ;;  %v987_v28 = vadd.f32 %v14368_v57, %v952_v25  ;;  %v9596_v15 = vld [vmem:[#allocation14 + $0x64c] ss:$12 sps:$4 sm:$0xff]   ;;  %v6455_v21 = vor.u32 %v6453_v44, %v6443_v40  ;;  %v9604_v40 = vld [vmem:[#allocation14 + $0x668] ss:$12 sps:$4 sm:$0xff]  }
 0x4d3   : > { %6698 = vmatmul.mubr.bf16.gmra.mrb[52].mxu0 %v6444_v63  ;;  %7249 = vmatprep.subr.bf16.mxu1 %v14155_v41  ;;  %9898 = verf.f32 %v1034_v55  ;;  %v9605_v25 = vld [vmem:[#allocation14 + $0x678] ss:$12 sps:$4 sm:$0xff]  }
 0x4d4   : > { %6777 = vmatmul.mubr.bf16.gmra.mrb[172].mxu1 %v6444_v63  ;;  %8783 = vmatprep.mubr.msk.bf16.mxu0 %vm698_vm3, %v6468_v12  ;;  %v6460_v58 = vsel %vm4540_vm7, %v6455_v21, %v13003_v39  ;;  %v1035_v30 = vmul.f32 0.70710677, %v987_v28  ;;  %v9598_v63 = vld [vmem:[#allocation14 + $0x660] ss:$12 sps:$4 sm:$0xff]  }
 0x4d5   : > { %8788 = vmatprep.mubr.msk.bf16.mxu1 %vm698_vm3, %v6468_v12  ;;  %7169 = vmatpush1.bf16.msra.mxu0 %v9586_v34  ;;  %v9600_v34 = vld [vmem:[#allocation14 + $0x664] ss:$12 sps:$4 sm:$0xff]   ;;  %v9621_v44 = vld [vmem:[#allocation14 + $0x6ac] ss:$12 sps:$4 sm:$0xff]  }
 0x4d6   : > { %7250 = vmatpush1.bf16.msra.mxu1 %v9589_v38  ;;  %7170 = vmatprep.subr.bf16.mxu0 %v9592_v61  ;;  %9900 = verf.f32 %v1035_v30  ;;  %v9608_v38 = vld [vmem:[#allocation14 + $0x680] ss:$12 sps:$4 sm:$0xff]   ;;  %v9609_v12 = vld [vmem:[#allocation14 + $0x690] ss:$12 sps:$4 sm:$0xff]  }
 0x4d7   : > { %7251 = vmatprep.subr.bf16.mxu1 %v14155_v41  ;;  %v9611_v61 = vld [vmem:[#allocation14 + $0x694] ss:$12 sps:$4 sm:$0xff]   ;;  %v9622_v30 = vld [vmem:[#allocation14 + $0x6b0] ss:$12 sps:$4 sm:$0xff]  }
 0x4d9   : > { %7171 = vmatpush1.bf16.msra.mxu0 %v9590_v31  ;;  %v9618_v31 = vld [vmem:[#allocation14 + $0x698] ss:$12 sps:$4 sm:$0xff]  }
 0x4da   : > { %7252 = vmatpush1.bf16.msra.mxu1 %v9593_v10  ;;  %7172 = vmatprep.subr.bf16.mxu0 %v9596_v15 }
 0x4db   : > { %6708 = vmatmul.mubr.bf16.gmra.mrb[56].mxu0 %v6460_v58  ;;  %7253 = vmatprep.subr.bf16.mxu1 %v14155_v41 }
 0x4dc   : > { %6785 = vmatmul.mubr.bf16.gmra.mrb[176].mxu1 %v6460_v58 }
 0x4dd   : > { %7173 = vmatpush1.bf16.msra.mxu0 %v9594_v9  ;;  %v9899_v10 = vpop.eup %9898  ;;  %v9619_v9 = vld [vmem:[#allocation14 + $0x6a8] ss:$12 sps:$4 sm:$0xff]  }
 0x4de   : > { %7254 = vmatpush1.bf16.msra.mxu1 %v9597_v2  ;;  %7174 = vmatprep.subr.bf16.mxu0 %v9600_v34  ;;  %v9625_v2 = vld [vmem:[#allocation14 + $0x6c4] ss:$12 sps:$4 sm:$0xff]   ;;  %v1082_v34 = vadd.f32 1.0, %v9899_v10 }
 0x4df   : > { %7255 = vmatprep.subr.bf16.mxu1 %v14155_v41 }
 0x4e0   : > { %v9901_v21 = vpop.eup %9900 }
 0x4e1   : > { %7175 = vmatpush1.bf16.msra.mxu0 %v9598_v63  ;;  %v1083_v63 = vadd.f32 1.0, %v9901_v21 }
 0x4e2   : > { %7256 = vmatpush1.bf16.msra.mxu1 %v9604_v40  ;;  %7176 = vmatprep.subr.bf16.mxu0 %v9607_v43 }
 0x4e3   : > { %7257 = vmatprep.subr.bf16.mxu1 %v14155_v41 }
 0x4e5   : > { %7177 = vmatpush1.bf16.msra.mxu0 %v9605_v25  ;;  %v1010_v25 = vmul.f32 0.5, %v13001_v22 }
 0x4e6   : > { %7258 = vmatpush1.bf16.msra.mxu1 %v9608_v38  ;;  %7178 = vmatprep.subr.bf16.mxu0 %v9611_v61  ;;  %v1011_v38 = vmul.f32 0.5, %v987_v28 }
 0x4e7   : > { %7259 = vmatprep.subr.bf16.mxu1 %v14155_v41 }
 0x4e8   : > { %v1107_v10 = vmul.f32 %v1083_v63, %v1011_v38 }
 0x4e9   : > { %v1640_v15 = vpop.xlane.xlu0 %1639  ;;  %7179 = vmatpush1.bf16.msra.mxu0 %v9609_v12 }
 0x4ea   : > { %v1659_v55 = vmul.f32 0.0069444445, %v1640_v15  ;;  %7260 = vmatpush1.bf16.msra.mxu1 %v9618_v31  ;;  %7180 = vmatprep.subr.bf16.mxu0 %v9621_v44  ;;  %v1106_v15 = vmul.f32 %v1082_v34, %v1010_v25 }
 0x4eb   : > { %7261 = vmatprep.subr.bf16.mxu1 %v14155_v41 }
 0x4ec   : > { %v1671_v58 = vadd.f32 1e-06, %v1659_v55 }
 0x4ed   : > { %7181 = vmatpush1.bf16.msra.mxu0 %v9619_v9 }
 0x4ee   : > { %9902 = vrsqrt.f32 %v1671_v58  ;;  %v1644_v40 = vpop.xlane.xlu1 %1643  ;;  %7262 = vmatpush1.bf16.msra.mxu1 %v9622_v30  ;;  %7570 = vmatprep.subr.bf16.mxu0 %v9625_v2 }
 0x4ef   : > { %v1660_v43 = vmul.f32 0.0069444445, %v1644_v40  ;;  %7651 = vmatprep.subr.bf16.mxu1 %v14155_v41 }
 0x4f0   : > { %v4922_v61 = vpop.f32.mrb[100].mxu1 }
 0x4f1   : > { %v13017_v12 = vadd.f32 %v4922_v61, %v12884_v60  ;;  %v4924_v31 = vpop.f32.mrb[101].mxu1  ;;  %v1672_v44 = vadd.f32 1e-06, %v1660_v43 }
 0x4f2   : > { %v4925_v21 = vpop.f32.mrb[102].mxu1  ;;  %v1175_v55 = vpop.permute.xlu1 %1174 }
 0x4f3   : > { %v13021_v58 = vadd.f32 %v4925_v21, %v12896_v13  ;;  %v4927_v22 = vpop.f32.mrb[103].mxu1  ;;  %9904 = vrsqrt.f32 %v1672_v44  ;;  %v1202_v28 = vmul.f32 %v1175_v55, %v1106_v15  ;;  %v1203_v9 = vmul.f32 %v1175_v55, %v1107_v10  ;;  %v14369_v15 = vld [vmem:[#allocation110_spill] sm:$0xff]  ;;  %v14370_v21 = vld [vmem:[#allocation111_spill] sm:$0xff] }
 0x4f5   : > { %v8890_v30 = vpack.c.bf16 %v1203_v9, %v1202_v28  ;;  %v14371_v28 = vld [vmem:[#allocation112_spill] sm:$0xff]  ;;  %v14372_v9 = vld [vmem:[#allocation113_spill] sm:$0xff] }
 0x4f7   : > { %1291 = vst.msk [vmem:[#allocation2 + $0x50] sm:$0xff] %vm11825_vm6, %v8890_v30 }
 0x4f8   : > { %v9903_v60 = vpop.eup %9902  ;;  %v4857_v2 = vpop.f32.mrb[72].mxu0 }
 0x4f9   : > { %v4930_v40 = vpop.f32.mrb[104].mxu1  ;;  %v1704_v34 = vmul.f32 %v9903_v60, %v12651_v27  ;;  %v1705_v63 = vmul.f32 %v9903_v60, %v12654_v50  ;;  %v13028_v43 = vadd.f32 %v4857_v2, %v12909_v32  ;;  %v4859_v25 = vpop.f32.mrb[73].mxu0 }
 0x4fa   : > { %v13031_v13 = vadd.f32 %v4930_v40, %v12912_v48  ;;  %v4932_v38 = vpop.f32.mrb[105].mxu1  ;;  %v13034_v61 = vadd.f32 %v4859_v25, %v12917_v54  ;;  %v4861_v31 = vpop.f32.mrb[74].mxu0 }
 0x4fb   : > { %v4933_v44 = vpop.f32.mrb[106].mxu1  ;;  %v1739_v10 = vmul.f32 %v14369_v15, %v1704_v34  ;;  %v1740_v55 = vmul.f32 %v14370_v21, %v1705_v63  ;;  %v4862_v27 = vpop.f32.mrb[75].mxu0  ;;  %v6477_v34 = vshrl.u32 %v12979_v16, 16 }
 0x4fc   : > { %v4934_v22 = vpop.f32.mrb[107].mxu1 }
 0x4fd   : > { %v9905_v50 = vpop.eup %9904  ;;  %v1774_v32 = vadd.f32 %v14371_v28, %v1739_v10  ;;  %v13040_v30 = vadd.f32 %v14372_v9, %v1740_v55  ;;  %v6469_v10 = vshrl.u32 %v12991_v52, 16  ;;  %v6479_v55 = vor.u32 %v6477_v34, %v12986_v14 }
 0x4fe   : > { %v1706_v48 = vmul.f32 %v9905_v50, %v12676_v46  ;;  %v1707_v60 = vmul.f32 %v9905_v50, %v12679_v26  ;;  %v9601_v54 = vld [vmem:[#allocation2 + $0x4c] ss:$8 sps:$4 sm:$0x1f]   ;;  %v9603_v44 = vld [vmem:[#allocation2 + $0x48] ss:$8 sps:$4 sm:$0x1f]  }
 0x4ff   : > { %v1822_v2 = vmul.f32 0.70710677, %v1774_v32  ;;  %v1823_v40 = vmul.f32 0.70710677, %v13040_v30  ;;  %v6481_v31 = vshll.u32 %v9601_v54, 16  ;;  %v13053_v27 = vrot.slane %v9601_v54, 1 }
 0x500   : > { %v1741_v63 = vmul.f32 %v14369_v15, %v1706_v48  ;;  %v1742_v25 = vmul.f32 %v14370_v21, %v1707_v60  ;;  %v5325_v38 = vpop.f32.mrb[108].mxu1  ;;  %v9614_v60 = vld [vmem:[#allocation2 + $0x6c] ss:$8 sps:$4 sm:$0xff]   ;;  %v14373_v14 = vrot.slane %v12620_v49, 1 }
 0x501   : > { %9906 = verf.f32 %v1822_v2  ;;  %v13050_v46 = vadd.f32 %v5325_v38, %v12932_v42  ;;  %v5327_v26 = vpop.f32.mrb[109].mxu1  ;;  %v6483_v48 = vrot.slane %v6481_v31, 1  ;;  %v6473_v2 = vshll.u32 %v9603_v44, 16  ;;  %v13073_v31 = vld [vmem:[#allocation2 + $0x7c] ss:$8 sps:$4 sm:$0xff]  }
 0x502   : > { %9908 = verf.f32 %v1823_v40  ;;  %v13056_v16 = vadd.f32 %v14371_v28, %v1741_v63  ;;  %v13059_v22 = vadd.f32 %v14372_v9, %v1742_v25  ;;  %v5328_v50 = vpop.f32.mrb[110].mxu1  ;;  %v6488_v38 = vshrl.u32 %v9601_v54, 16  ;;  %v13101_v21 = vld [vmem:[#allocation2 + $0x8c] ss:$8 sps:$4 sm:$0xff]  }
 0x503   : > { %v13062_v52 = vadd.f32 %v5328_v50, %v12937_v56  ;;  %v5330_v42 = vpop.f32.mrb[111].mxu1  ;;  %v13068_v40 = vsel %vm7387_vm8, %v14373_v14, %v13053_v27  ;;  %v6471_v25 = vor.u32 %v6469_v10, %v13003_v39  ;;  %v6484_v56 = vsel %vm4540_vm7, %v6479_v55, %v6483_v48  ;;  %v13081_v14 = vld [vmem:[#allocation2 + $0x68] ss:$8 sps:$4 sm:$0xff]  }
 0x504   : > { %v1824_v34 = vmul.f32 0.70710677, %v13056_v16  ;;  %v1825_v63 = vmul.f32 0.70710677, %v13059_v22  ;;  %v6475_v26 = vrot.slane %v6473_v2, 1  ;;  %v6490_v50 = vor.u32 %v6488_v38, %v6483_v48  ;;  %8784 = vmatprep.mubr.msk.bf16.mxu0 %vm698_vm3, %v6484_v56  ;;  %8789 = vmatprep.mubr.msk.bf16.mxu1 %vm698_vm3, %v6484_v56 }
 0x505   : > { %v13076_v42 = vrot.slane %v9603_v44, 1  ;;  %v6937_v49 = vshll.u32 %v9614_v60, 16  ;;  %v14375_v39 = vrot.slane %v12622_v1, 1  ;;  %v6942_v48 = vshll.u32 %v13073_v31, 16 }
 0x506   : > { %9910 = verf.f32 %v1824_v34  ;;  %v6476_v54 = vsel %vm4540_vm7, %v6471_v25, %v6475_v26  ;;  %v6925_v9 = vshll.u32 %v13081_v14, 16 }
 0x507   : > { %14374 = vst [vmem:[#allocation98_spill] sm:$0xff] %v13076_v42  ;;  %9912 = verf.f32 %v1825_v63  ;;  %v13087_v10 = vsel %vm7387_vm8, %v14375_v39, %v13076_v42  ;;  %6718 = vmatmul.mubr.bf16.gmra.mrb[60].mxu0 %v6476_v54  ;;  %6793 = vmatmul.mubr.bf16.gmra.mrb[180].mxu1 %v6476_v54  ;;  %v6939_v63 = vrot.slane %v6937_v49, 1  ;;  %v13098_v39 = vld [vmem:[#allocation2 + $0x78] ss:$8 sps:$4 sm:$0xff]   ;;  %v6935_v54 = vshrl.u32 %v9614_v60, 16 }
 0x508   : > { %v5333_v55 = vpop.f32.mrb[112].mxu1  ;;  %8785 = vmatprep.mubr.msk.bf16.mxu0 %vm698_vm3, %v6490_v50  ;;  %8790 = vmatprep.mubr.msk.bf16.mxu1 %vm698_vm3, %v6490_v50  ;;  %v6944_v28 = vrot.slane %v6942_v48, 1  ;;  %v1799_v50 = vmul.f32 0.5, %v13040_v30  ;;  %v6930_v15 = vshll.u32 %v13098_v39, 16  ;;  %v6958_v48 = vshll.u32 %v13101_v21, 16 }
 0x509   : > { %v13091_v2 = vadd.f32 %v5333_v55, %v12951_v5  ;;  %v5335_v38 = vpop.f32.mrb[113].mxu1  ;;  %v1798_v5 = vmul.f32 0.5, %v1774_v32 }
 0x50a   : > { %v5336_v34 = vpop.f32.mrb[114].mxu1  ;;  %v6485_v38 = vshrl.u32 %v9603_v44, 16  ;;  %v6927_v44 = vrot.slane %v6925_v9, 1  ;;  %v6923_v9 = vshrl.u32 %v13081_v14, 16 }
 0x50b   : > { %v9907_v25 = vpop.eup %9906  ;;  %v13096_v1 = vadd.f32 %v5336_v34, %v12956_v47  ;;  %v5338_v56 = vpop.f32.mrb[115].mxu1  ;;  %v6940_v47 = vor.u32 %v6939_v63, %v6935_v54 }
 0x50c   : > { %v9909_v57 = vpop.eup %9908  ;;  %v1870_v55 = vadd.f32 1.0, %v9907_v25  ;;  %v6487_v3 = vor.u32 %v6485_v38, %v6475_v26  ;;  %v1961_v56 = vpop.permute.xlu0 %1960  ;;  %v6928_v14 = vor.u32 %v6927_v44, %v6923_v9  ;;  %v9632_v9 = vld [vmem:[#allocation14 + $0x6e0] ss:$12 sps:$4 sm:$0xff]  }
 0x50d   : > { %v1871_v49 = vadd.f32 1.0, %v9909_v57  ;;  %v6945_v32 = vsel %vm4540_vm7, %v6940_v47, %v6944_v28  ;;  %v1800_v57 = vmul.f32 0.5, %v13056_v16  ;;  %v1966_v47 = vpop.permute.xlu1 %1965 }
 0x50e   : > { %v1894_v59 = vmul.f32 %v1870_v55, %v1798_v5 }
 0x50f   : > { %v1895_v34 = vmul.f32 %v1871_v49, %v1799_v50  ;;  %6728 = vmatmul.mubr.bf16.gmra.mrb[88].mxu0 %v6487_v3  ;;  %6801 = vmatmul.mubr.bf16.gmra.mrb[184].mxu1 %v6487_v3  ;;  %v1801_v3 = vmul.f32 0.5, %v13059_v22  ;;  %v6932_v49 = vrot.slane %v6930_v15, 1 }
 0x510   : > { %v9911_v60 = vpop.eup %9910  ;;  %v1991_v6 = vmul.f32 %v1961_v56, %v1894_v59  ;;  %v5341_v42 = vpop.f32.mrb[116].mxu1  ;;  %8828 = vmatprep.mubr.msk.bf16.mxu0 %vm698_vm3, %v6945_v32  ;;  %8833 = vmatprep.mubr.msk.bf16.mxu1 %vm698_vm3, %v6945_v32 }
 0x511   : > { %v9913_v25 = vpop.eup %9912  ;;  %v1992_v30 = vmul.f32 %v1961_v56, %v1895_v34  ;;  %v1872_v26 = vadd.f32 1.0, %v9911_v60  ;;  %v13109_v63 = vadd.f32 %v5341_v42, %v12966_v29  ;;  %v5343_v54 = vpop.f32.mrb[117].mxu1  ;;  %v13118_v29 = vld [vmem:[#allocation2 + $0x88] ss:$8 sps:$4 sm:$0xff]   ;;  %v6954_v34 = vshrl.u32 %v13073_v31, 16 }
 0x512   : > { %v1873_v59 = vadd.f32 1.0, %v9913_v25  ;;  %v5344_v5 = vpop.f32.mrb[118].mxu1  ;;  %v6960_v56 = vrot.slane %v6958_v48, 1  ;;  %v13121_v60 = vld [vmem:[#allocation2 + $0x9c] ss:$8 sps:$4 sm:$0xff]   ;;  %v6933_v15 = vsel %vm4540_vm7, %v6928_v14, %v6932_v49 }
 0x513   : > { %v8901_v55 = vpack.c.bf16 %v1992_v30, %v1991_v6  ;;  %v1896_v38 = vmul.f32 %v1872_v26, %v1800_v57  ;;  %v13116_v50 = vadd.f32 %v5344_v5, %v12969_v23  ;;  %v5346_v16 = vpop.f32.mrb[119].mxu1  ;;  %v9623_v6 = vld [vmem:[#allocation14 + $0x6c0] ss:$12 sps:$4 sm:$0xff]   ;;  %v6956_v23 = vor.u32 %v6954_v34, %v6944_v28  ;;  %v9628_v25 = vld [vmem:[#allocation14 + $0x6c8] ss:$12 sps:$4 sm:$0xff]  }
 0x514   : > { %v1897_v42 = vmul.f32 %v1873_v59, %v1801_v3  ;;  %v9631_v30 = vld [vmem:[#allocation14 + $0x6dc] ss:$12 sps:$4 sm:$0xff]   ;;  %v6950_v57 = vshll.u32 %v13118_v29, 16  ;;  %v6974_v48 = vshll.u32 %v13121_v60, 16  ;;  %v9629_v28 = vld [vmem:[#allocation14 + $0x6d8] ss:$12 sps:$4 sm:$0xff]  }
 0x515   : > { %2079 = vst.msk [vmem:[#allocation2 + $0xa8] sm:$0xff] %vm11825_vm6, %v8901_v55  ;;  %v1993_v22 = vmul.f32 %v1966_v47, %v1896_v38  ;;  %v6961_v31 = vsel %vm4540_vm7, %v6956_v23, %v6960_v56  ;;  %v13133_v59 = vld [vmem:[#allocation2 + $0x98] ss:$8 sps:$4 sm:$0xff]   ;;  %v6946_v16 = vshrl.u32 %v13098_v39, 16 }
 0x516   : > { %v1994_v32 = vmul.f32 %v1966_v47, %v1897_v42  ;;  %v9636_v55 = vld [vmem:[#allocation14 + $0x6f4] ss:$12 sps:$4 sm:$0xff]   ;;  %v6952_v42 = vrot.slane %v6950_v57, 1  ;;  %v6970_v47 = vshrl.u32 %v13101_v21, 16  ;;  %v6976_v8 = vrot.slane %v6974_v48, 1 }
 0x517   : > { %7197 = vmatmul.mubr.bf16.vlgmr.msra.gmra.mrb[48].mxu0 %v6933_v15  ;;  %7278 = vmatmul.mubr.bf16.vlgmr.msra.gmra.mrb[188].mxu1 %v6933_v15  ;;  %v6948_v34 = vor.u32 %v6946_v16, %v6932_v49  ;;  %v9642_v39 = vld [vmem:[#allocation14 + $0x70c] ss:$12 sps:$4 sm:$0xff]   ;;  %v9640_v49 = vld [vmem:[#allocation14 + $0x708] ss:$12 sps:$4 sm:$0xff]  }
 0x518   : > { %v8902_v26 = vpack.c.bf16 %v1994_v32, %v1993_v22  ;;  %v5349_v54 = vpop.f32.mrb[120].mxu1  ;;  %7571 = vmatpush1.bf16.msra.mxu0 %v9623_v6  ;;  %8829 = vmatprep.mubr.msk.bf16.mxu0 %vm698_vm3, %v6961_v31  ;;  %v9634_v6 = vld [vmem:[#allocation14 + $0x6f0] ss:$12 sps:$4 sm:$0xff]   ;;  %v6972_v14 = vor.u32 %v6970_v47, %v6960_v56 }
 0x519   : > { %v13130_v3 = vadd.f32 %v5349_v54, %v13017_v12  ;;  %v5351_v44 = vpop.f32.mrb[121].mxu1  ;;  %8834 = vmatprep.mubr.msk.bf16.mxu1 %vm698_vm3, %v6961_v31  ;;  %7652 = vmatpush1.bf16.msra.mxu1 %v9628_v25  ;;  %v6953_v23 = vsel %vm4540_vm7, %v6948_v34, %v6952_v42  ;;  %v9639_v25 = vld [vmem:[#allocation14 + $0x6f8] ss:$12 sps:$4 sm:$0xff]   ;;  %v6986_v34 = vshrl.u32 %v13121_v60, 16 }
 0x51a   : > { %2080 = vst.msk [vmem:[#allocation2 + $0xb0] sm:$0xff] %vm11825_vm6, %v8902_v26  ;;  %v5352_v5 = vpop.f32.mrb[122].mxu1  ;;  %7572 = vmatprep.subr.bf16.mxu0 %v9631_v30  ;;  %7653 = vmatprep.subr.bf16.mxu1 %v14155_v41  ;;  %v6977_v21 = vsel %vm4540_vm7, %v6972_v14, %v6976_v8  ;;  %v9644_v44 = vld [vmem:[#allocation14 + $0x710] ss:$12 sps:$4 sm:$0xff]  }
 0x51b   : > { %v13139_v38 = vadd.f32 %v5352_v5, %v13021_v58  ;;  %v5354_v12 = vpop.f32.mrb[123].mxu1  ;;  %v6966_v58 = vshll.u32 %v13133_v59, 16 }
 0x51c   : > { %7573 = vmatpush1.bf16.msra.mxu0 %v9629_v28  ;;  %v9649_v28 = vld [vmem:[#allocation14 + $0x724] ss:$12 sps:$4 sm:$0xff]  }
 0x51d   : > { %7654 = vmatpush1.bf16.msra.mxu1 %v9632_v9  ;;  %7574 = vmatprep.subr.bf16.mxu0 %v9636_v55 }
 0x51e   : > { %v1540_v22 = vpop.xlane.xlu0 %1539  ;;  %7655 = vmatprep.subr.bf16.mxu1 %v14155_v41 }
 0x51f   : > { %v1552_v32 = vmul.f32 0.0069444445, %v1540_v22  ;;  %7207 = vmatmul.mubr.bf16.gmra.mrb[52].mxu0 %v6953_v23  ;;  %7286 = vmatmul.mubr.bf16.gmra.mrb[192].mxu1 %v6953_v23  ;;  %v6988_v23 = vor.u32 %v6986_v34, %v6976_v8 }
 0x520   : > { %v5284_v15 = vpop.f32.mrb[76].mxu0  ;;  %v5357_v30 = vpop.f32.mrb[124].mxu1  ;;  %8830 = vmatprep.mubr.msk.bf16.mxu0 %vm698_vm3, %v6977_v21  ;;  %8835 = vmatprep.mubr.msk.bf16.mxu1 %vm698_vm3, %v6977_v21 }
 0x521   : > { %v13149_v57 = vadd.f32 %v5284_v15, %v13028_v43  ;;  %v13152_v56 = vadd.f32 %v5357_v30, %v13031_v13  ;;  %v5286_v26 = vpop.f32.mrb[77].mxu0  ;;  %v5359_v54 = vpop.f32.mrb[125].mxu1  ;;  %v13155_v31 = vsub.f32 %v14346_v20, %v1552_v32  ;;  %v13158_v48 = vsub.f32 %v14347_v18, %v1552_v32  ;;  %7575 = vmatpush1.bf16.msra.mxu0 %v9634_v6  ;;  %v13166_v55 = vld [vmem:[#allocation2 + $0xac] ss:$8 sps:$4 sm:$0x1f]  }
 0x522   : > { %v13162_v5 = vadd.f32 %v5286_v26, %v13034_v61  ;;  %v5288_v43 = vpop.f32.mrb[78].mxu0  ;;  %v5360_v9 = vpop.f32.mrb[126].mxu1  ;;  %v6962_v13 = vshrl.u32 %v13118_v29, 16  ;;  %7656 = vmatpush1.bf16.msra.mxu1 %v9639_v25  ;;  %7576 = vmatprep.subr.bf16.mxu0 %v9642_v39  ;;  %v6968_v61 = vrot.slane %v6966_v58, 1  ;;  %v6990_v29 = vshll.u32 %v13166_v55, 16 }
 0x523   : > { %v1599_v20 = vmul.f32 %v13155_v31, %v13155_v31  ;;  %v1600_v18 = vmul.f32 %v13158_v48, %v13158_v48  ;;  %v5289_v12 = vpop.f32.mrb[79].mxu0  ;;  %v5361_v16 = vpop.f32.mrb[127].mxu1  ;;  %v13172_v47 = vld [vmem:[#allocation2 + $0xa8] ss:$8 sps:$4 sm:$0x1f]   ;;  %7657 = vmatprep.subr.bf16.mxu1 %v14155_v41 }
 0x524   : > { %v6964_v14 = vor.u32 %v6962_v13, %v6952_v42  ;;  %v6992_v15 = vrot.slane %v6990_v29, 1  ;;  %v9647_v25 = vld [vmem:[#allocation14 + $0x720] ss:$12 sps:$4 sm:$0xff]   ;;  %v9653_v30 = vld [vmem:[#allocation14 + $0x73c] ss:$12 sps:$4 sm:$0xff]   ;;  %v6982_v60 = vshll.u32 %v13172_v47, 16 }
 0x525   : > { %v1645_v22 = vsel %vm743_vm9, %v1599_v20, 0.0  ;;  %v1646_v6 = vsel %vm745_vm10, %v1600_v18, 0.0  ;;  %7577 = vmatpush1.bf16.msra.mxu0 %v9640_v49  ;;  %v9650_v42 = vld [vmem:[#allocation14 + $0x728] ss:$12 sps:$4 sm:$0xff]   ;;  %v9651_v9 = vld [vmem:[#allocation14 + $0x738] ss:$12 sps:$4 sm:$0xff]  }
 0x526   : > { %v1647_v32 = vadd.f32 %v1646_v6, %v1645_v22  ;;  %v6969_v58 = vsel %vm4540_vm7, %v6964_v14, %v6968_v61  ;;  %7658 = vmatpush1.bf16.msra.mxu1 %v9644_v44  ;;  %7578 = vmatprep.subr.bf16.mxu0 %v9649_v28  ;;  %v6993_v54 = vsel %vm4540_vm7, %v6988_v23, %v6992_v15  ;;  %v6978_v18 = vshrl.u32 %v13133_v59, 16  ;;  %v9655_v29 = vld [vmem:[#allocation14 + $0x740] ss:$12 sps:$4 sm:$0xff]  }
 0x527   : > { %v749_v39 = vpop.xlane.xlu1 %748  ;;  %7217 = vmatmul.mubr.bf16.gmra.mrb[56].mxu0 %v6969_v58  ;;  %7294 = vmatmul.mubr.bf16.gmra.mrb[196].mxu1 %v6969_v58  ;;  %v6984_v12 = vrot.slane %v6982_v60, 1  ;;  %v6997_v22 = vshrl.u32 %v13166_v55, 16  ;;  %v13213_v55 = vld [vmem:[#allocation2 + $0x8] sm:$0xee] }
 0x528   : > { %v5752_v21 = vpop.f32.mrb[128].mxu1  ;;  %1648 = vadd.xlane.f32.xlu0 %v1647_v32  ;;  %v762_v26 = vmul.f32 0.0069444445, %v749_v39  ;;  %8831 = vmatprep.mubr.msk.bf16.mxu0 %vm698_vm3, %v6993_v54 }
 0x529   : > { %v13183_v49 = vadd.f32 %v5752_v21, %v13050_v46  ;;  %v5754_v8 = vpop.f32.mrb[129].mxu1  ;;  %8836 = vmatprep.mubr.msk.bf16.mxu1 %vm698_vm3, %v6993_v54  ;;  %7579 = vmatpush1.bf16.msra.mxu0 %v9647_v25  ;;  %v6999_v58 = vor.u32 %v6997_v22, %v6992_v15 }
 0x52a   : > { %v5755_v44 = vpop.f32.mrb[130].mxu1  ;;  %v13187_v28 = vsub.f32 %v14353_v45, %v762_v26  ;;  %v13190_v43 = vsub.f32 %v14354_v37, %v762_v26  ;;  %7659 = vmatprep.subr.bf16.mxu1 %v14155_v41  ;;  %7580 = vmatprep.subr.bf16.mxu0 %v9653_v30  ;;  %v9658_v45 = vld [vmem:[#allocation14 + $0x754] ss:$12 sps:$4 sm:$0xff]   ;;  %v9659_v30 = vld [vmem:[#allocation14 + $0x758] ss:$12 sps:$4 sm:$0xff]  }
 0x52b   : > { %v13194_v13 = vadd.f32 %v5755_v44, %v13062_v52  ;;  %v5757_v46 = vpop.f32.mrb[131].mxu1  ;;  %v2321_v20 = vpop.xlane.xlu1 %2320  ;;  %7660 = vmatpush1.bf16.msra.mxu1 %v9650_v42  ;;  %v6980_v52 = vor.u32 %v6978_v18, %v6968_v61  ;;  %v9656_v61 = vld [vmem:[#allocation14 + $0x750] ss:$12 sps:$4 sm:$0xff]   ;;  %v9662_v26 = vld [vmem:[#allocation14 + $0x76c] ss:$12 sps:$4 sm:$0xff]   ;;  %v8839_v42 = vcombine.high %v13213_v55, %v12934_v35 }
 0x52c   : > { %v809_v37 = vmul.f32 %v13187_v28, %v13187_v28  ;;  %v810_v16 = vmul.f32 %v13190_v43, %v13190_v43  ;;  %v2337_v34 = vmul.f32 0.0069444445, %v2321_v20  ;;  %7661 = vmatprep.subr.bf16.mxu1 %v14155_v41 }
 0x52d   : > { %7581 = vmatpush1.bf16.msra.mxu0 %v9651_v9  ;;  %v6985_v23 = vsel %vm4540_vm7, %v6980_v52, %v6984_v12  ;;  %v7391_v52 = vrot.slane %v8839_v42, 1 }
 0x52e   : > { %v13205_v6 = vsub.f32 %v12819_v19, %v2337_v34  ;;  %v13208_v59 = vsub.f32 %v12808_v53, %v2337_v34  ;;  %v855_v14 = vsel %vm743_vm9, %v809_v37, 0.0  ;;  %v856_v32 = vsel %vm745_vm10, %v810_v16, 0.0  ;;  %7582 = vmatprep.subr.bf16.mxu0 %v9658_v45  ;;  %v9660_v45 = vld [vmem:[#allocation14 + $0x768] ss:$12 sps:$4 sm:$0xff]   ;;  %v9663_v34 = vld [vmem:[#allocation14 + $0x770] ss:$12 sps:$4 sm:$0xff]  }
 0x52f   : > { %v2326_v25 = vpop.xlane.xlu1 %2325  ;;  %v857_v39 = vadd.f32 %v856_v32, %v855_v14  ;;  %7227 = vmatmul.mubr.bf16.gmra.mrb[60].mxu0 %v6985_v23  ;;  %7662 = vmatpush1.bf16.msra.mxu1 %v9655_v29 }
 0x530   : > { %v5760_v19 = vpop.f32.mrb[132].mxu1  ;;  %v2383_v53 = vmul.f32 %v13205_v6, %v13205_v6  ;;  %v2384_v60 = vmul.f32 %v13208_v59, %v13208_v59  ;;  %v2338_v21 = vmul.f32 0.0069444445, %v2326_v25  ;;  %7302 = vmatmul.mubr.bf16.gmra.mrb[200].mxu1 %v6985_v23  ;;  %8832 = vmatprep.mubr.msk.bf16.mxu0 %vm698_vm3, %v6999_v58  ;;  %v9666_v25 = vld [vmem:[#allocation14 + $0x784] ss:$12 sps:$4 sm:$0xff]  }
 0x531   : > { %v13220_v54 = vadd.f32 %v5760_v19, %v13091_v2  ;;  %v5762_v15 = vpop.f32.mrb[133].mxu1  ;;  %8837 = vmatprep.mubr.msk.bf16.mxu1 %vm698_vm3, %v6999_v58  ;;  %858 = vadd.xlane.f32.xlu1 %v857_v39  ;;  %v9667_v58 = vld [vmem:[#allocation14 + $0x788] ss:$12 sps:$4 sm:$0xff]  }
 0x532   : > { %v5763_v8 = vpop.f32.mrb[134].mxu1  ;;  %v13226_v44 = vsub.f32 %v12832_v17, %v2338_v21  ;;  %v13229_v9 = vsub.f32 %v12836_v24, %v2338_v21  ;;  %v2427_v2 = vsel %vm698_vm3, %v2384_v60, 0.0  ;;  %7583 = vmatpush1.bf16.msra.mxu0 %v9656_v61  ;;  %7663 = vmatprep.subr.bf16.mxu1 %v14155_v41  ;;  %v6994_v17 = vshrl.u32 %v13172_v47, 16  ;;  %v9979_v61 = vld [vmem:[#allocation2 + $0x10] sm:$0xff]  ;;  %v14378_v15 = vld [vmem:[#allocation98_spill] sm:$0xff] }
 0x533   : > { %v13234_v46 = vadd.f32 %v5763_v8, %v13096_v1  ;;  %v5765_v20 = vpop.f32.mrb[135].mxu1  ;;  %v3103_v35 = vpop.xlane.xlu1 %3102  ;;  %v2428_v18 = vadd.f32 %v2427_v2, %v2383_v53  ;;  %7664 = vmatpush1.bf16.msra.mxu1 %v9659_v30  ;;  %7584 = vmatprep.subr.bf16.mxu0 %v9662_v26  ;;  %v7392_v1 = vrot.slane %v12948_v7, 1  ;;  %v8838_v39 = vcombine.low %v13213_v55, %v9979_v61 }
 0x534   : > { %v2385_v24 = vmul.f32 %v13226_v44, %v13226_v44  ;;  %v2386_v37 = vmul.f32 %v13229_v9, %v13229_v9  ;;  %v3122_v16 = vmul.f32 0.0069444445, %v3103_v35  ;;  %v6996_v29 = vor.u32 %v6994_v17, %v6984_v12  ;;  %7665 = vmatprep.subr.bf16.mxu1 %v14155_v41 }
 0x535   : > { %2429 = vadd.xlane.f32.xlu1 %v2428_v18  ;;  %v7388_v53 = vrot.slane %v8838_v39, 1  ;;  %v14376_v60 = vrot.slane %v12614_v33, 1  ;;  %v14377_v55 = vrot.slane %v12618_v11, 1 }
 0x536   : > { %v13245_v22 = vsub.f32 %v12879_v0, %v3122_v16  ;;  %v13248_v47 = vsub.f32 %v12858_v36, %v3122_v16  ;;  %v2431_v14 = vsel %vm743_vm9, %v2385_v24, 0.0  ;;  %v2432_v32 = vsel %vm745_vm10, %v2386_v37, 0.0  ;;  %7585 = vmatpush1.bf16.msra.mxu0 %v9660_v45  ;;  %v9664_v36 = vld [vmem:[#allocation14 + $0x780] ss:$12 sps:$4 sm:$0xff]  }
 0x537   : > { %v2433_v23 = vadd.f32 %v2432_v32, %v2431_v14  ;;  %7237 = vmatmul.mubr.bf16.gmra.mrb[92].mxu0 %v6996_v29  ;;  %v7393_v0 = vsel %vm7387_vm8, %v7391_v52, %v7392_v1  ;;  %7666 = vmatpush1.bf16.msra.mxu1 %v9663_v34  ;;  %v7390_v21 = vsel %vm7387_vm8, %v7388_v53, %v14376_v60 }
 0x538   : > { %v3167_v7 = vmul.f32 %v13245_v22, %v13245_v22  ;;  %v3168_v12 = vmul.f32 %v13248_v47, %v13248_v47  ;;  %7310 = vmatmul.mubr.bf16.gmra.mrb[204].mxu1 %v6996_v29  ;;  %8867 = vmatprep.mubr.msk.bf16.mxu0 %vm698_vm3, %v7393_v0  ;;  %v7397_v26 = vsel %vm7387_vm8, %v7392_v1, %v14377_v55 }
 0x539   : > { %8872 = vmatprep.mubr.msk.bf16.mxu1 %vm698_vm3, %v7393_v0  ;;  %2434 = vadd.xlane.f32.xlu0 %v2433_v23 }
 0x53a   : > { %v3209_v30 = vsel %vm698_vm3, %v3168_v12, 0.0  ;;  %7586 = vmatprep.subr.bf16.mxu0 %v9666_v25  ;;  %7667 = vmatprep.subr.bf16.mxu1 %v14155_v41 }
 0x53b   : > { %v3210_v19 = vadd.f32 %v3209_v30, %v3167_v7  ;;  %7587 = vmatpush1.bf16.msra.mxu0 %v9664_v36  ;;  %7668 = vmatpush1.bf16.msra.mxu1 %v9667_v58 }
 0x53d   : > { %3211 = vadd.xlane.f32.xlu1 %v3210_v19 }
 0x53f   : > { %7603 = vmatmul.mubr.bf16.vlgmr.msra.gmra.mrb[48].mxu0 %v7390_v21 }
 0x540   : > { %7684 = vmatmul.mubr.bf16.vlgmr.msra.gmra.mrb[208].mxu1 %v7390_v21  ;;  %8868 = vmatprep.mubr.msk.bf16.mxu0 %vm698_vm3, %v7397_v26 }
 0x541   : > { %8873 = vmatprep.mubr.msk.bf16.mxu1 %vm698_vm3, %v7397_v26 }
 0x547   : > { %7613 = vmatmul.mubr.bf16.gmra.mrb[52].mxu0 %v12636_v51 }
 0x548   : > { %7692 = vmatmul.mubr.bf16.gmra.mrb[212].mxu1 %v12636_v51  ;;  %8869 = vmatprep.mubr.msk.bf16.mxu0 %vm698_vm3, %v12643_v4 }
 0x549   : > { %8874 = vmatprep.mubr.msk.bf16.mxu1 %vm698_vm3, %v12643_v4 }
 0x54f   : > { %7623 = vmatmul.mubr.bf16.gmra.mrb[56].mxu0 %v12648_v62 }
 0x550   : > { %7700 = vmatmul.mubr.bf16.gmra.mrb[216].mxu1 %v12648_v62  ;;  %8870 = vmatprep.mubr.msk.bf16.mxu0 %vm698_vm3, %v13068_v40 }
 0x551   : > { %8875 = vmatprep.mubr.msk.bf16.mxu1 %vm698_vm3, %v13068_v40 }
 0x557   : > { %7633 = vmatmul.mubr.bf16.gmra.mrb[60].mxu0 %v13087_v10 }
 0x558   : > { %7708 = vmatmul.mubr.bf16.gmra.mrb[220].mxu1 %v13087_v10  ;;  %8871 = vmatprep.mubr.msk.bf16.mxu0 %vm698_vm3, %v13053_v27 }
 0x559   : > { %8876 = vmatprep.mubr.msk.bf16.mxu1 %vm698_vm3, %v13053_v27 }
 0x55b   : > { %v5768_v41 = vpop.f32.mrb[136].mxu1 }
 0x55c   : > { %v5804_v33 = vadd.f32 %v5768_v41, %v13109_v63  ;;  %v5770_v11 = vpop.f32.mrb[137].mxu1 }
 0x55d   : > { %v5771_v51 = vpop.f32.mrb[138].mxu1 }
 0x55e   : > { %v5807_v4 = vadd.f32 %v5771_v51, %v13116_v50  ;;  %v5773_v62 = vpop.f32.mrb[139].mxu1 }
 0x55f   : > { %7643 = vmatmul.mubr.bf16.gmra.mrb[96].mxu0 %v14378_v15 }
 0x560   : > { %7716 = vmatmul.mubr.bf16.gmra.mrb[224].mxu1 %v14378_v15 }
 0x566   : > { %v5776_v40 = vpop.f32.mrb[140].mxu1 }
 0x567   : > { %v5810_v10 = vadd.f32 %v5776_v40, %v13130_v3  ;;  %v5778_v42 = vpop.f32.mrb[141].mxu1 }
 0x568   : > { %v5779_v8 = vpop.f32.mrb[142].mxu1 }
 0x569   : > { %v5813_v2 = vadd.f32 %v5779_v8, %v13139_v38  ;;  %v5781_v27 = vpop.f32.mrb[143].mxu1 }
 0x56e   : > { %v5711_v20 = vpop.f32.mrb[80].mxu0  ;;  %v5784_v35 = vpop.f32.mrb[144].mxu1 }
 0x56f   : > { %v5814_v63 = vadd.f32 %v5711_v20, %v13149_v57  ;;  %v5713_v18 = vpop.f32.mrb[81].mxu0  ;;  %v5816_v50 = vadd.f32 %v5784_v35, %v13152_v56  ;;  %v5786_v17 = vpop.f32.mrb[145].mxu1 }
 0x570   : > { %v5815_v45 = vadd.f32 %v5713_v18, %v13162_v5  ;;  %v5715_v24 = vpop.f32.mrb[82].mxu0  ;;  %v5787_v37 = vpop.f32.mrb[146].mxu1 }
 0x571   : > { %v5716_v16 = vpop.f32.mrb[83].mxu0  ;;  %v5788_v1 = vpop.f32.mrb[147].mxu1 }
 0x576   : > { %v6261_v3 = vpop.f32.mrb[148].mxu1 }
 0x577   : > { %v6301_v34 = vadd.f32 %v6261_v3, %v13183_v49  ;;  %v6263_v29 = vpop.f32.mrb[149].mxu1 }
 0x578   : > { %v6264_v38 = vpop.f32.mrb[150].mxu1 }
 0x579   : > { %v6304_v52 = vadd.f32 %v6264_v38, %v13194_v13  ;;  %v6266_v14 = vpop.f32.mrb[151].mxu1 }
 0x57f   : > { %v6269_v57 = vpop.f32.mrb[152].mxu1 }
 0x580   : > { %v6307_v32 = vadd.f32 %v6269_v57, %v13220_v54  ;;  %v6271_v23 = vpop.f32.mrb[153].mxu1 }
 0x581   : > { %v6272_v56 = vpop.f32.mrb[154].mxu1 }
 0x582   : > { %v6310_v5 = vadd.f32 %v6272_v56, %v13234_v46  ;;  %v6274_v25 = vpop.f32.mrb[155].mxu1 }
 0x587   : > { %v6277_v7 = vpop.f32.mrb[156].mxu1 }
 0x588   : > { %v6313_v12 = vadd.f32 %v6277_v7, %v5804_v33  ;;  %v6279_v0 = vpop.f32.mrb[157].mxu1 }
 0x589   : > { %v6280_v36 = vpop.f32.mrb[158].mxu1 }
 0x58a   : > { %v6316_v58 = vadd.f32 %v6280_v36, %v5807_v4  ;;  %v6282_v61 = vpop.f32.mrb[159].mxu1 }
 0x58f   : > { %v6285_v49 = vpop.f32.mrb[160].mxu1 }
 0x590   : > { %v6319_v39 = vadd.f32 %v6285_v49, %v5810_v10  ;;  %v6287_v30 = vpop.f32.mrb[161].mxu1 }
 0x591   : > { %v6288_v19 = vpop.f32.mrb[162].mxu1 }
 0x592   : > { %v6322_v13 = vadd.f32 %v6288_v19, %v5813_v2  ;;  %v6290_v53 = vpop.f32.mrb[163].mxu1 }
 0x596   : > { %v6220_v60 = vpop.f32.mrb[84].mxu0 }
 0x597   : > { %v6323_v21 = vadd.f32 %v6220_v60, %v5814_v63  ;;  %v6293_v54 = vpop.f32.mrb[164].mxu1  ;;  %v6222_v55 = vpop.f32.mrb[85].mxu0 }
 0x598   : > { %v6325_v26 = vadd.f32 %v6293_v54, %v5816_v50  ;;  %v6324_v41 = vadd.f32 %v6222_v55, %v5815_v45  ;;  %v6295_v46 = vpop.f32.mrb[165].mxu1  ;;  %v6224_v11 = vpop.f32.mrb[86].mxu0 }
 0x599   : > { %v6296_v51 = vpop.f32.mrb[166].mxu1  ;;  %v6225_v33 = vpop.f32.mrb[87].mxu0 }
 0x59a   : > { %v6297_v62 = vpop.f32.mrb[167].mxu1 }
 0x59f   : > { %v6770_v15 = vpop.f32.mrb[168].mxu1 }
 0x5a0   : > { %v6810_v4 = vadd.f32 %v6770_v15, %v6301_v34  ;;  %v6772_v40 = vpop.f32.mrb[169].mxu1 }
 0x5a1   : > { %v6773_v42 = vpop.f32.mrb[170].mxu1 }
 0x5a2   : > { %v6813_v10 = vadd.f32 %v6773_v42, %v6304_v52  ;;  %v6775_v8 = vpop.f32.mrb[171].mxu1 }
 0x5a7   : > { %v6778_v27 = vpop.f32.mrb[172].mxu1 }
 0x5a8   : > { %v6816_v2 = vadd.f32 %v6778_v27, %v6307_v32  ;;  %v6780_v20 = vpop.f32.mrb[173].mxu1 }
 0x5a9   : > { %v6781_v35 = vpop.f32.mrb[174].mxu1 }
 0x5aa   : > { %v6819_v63 = vadd.f32 %v6781_v35, %v6310_v5  ;;  %v6783_v18 = vpop.f32.mrb[175].mxu1 }
 0x5af   : > { %v6786_v17 = vpop.f32.mrb[176].mxu1 }
 0x5b0   : > { %v6822_v50 = vadd.f32 %v6786_v17, %v6313_v12  ;;  %v6788_v45 = vpop.f32.mrb[177].mxu1 }
 0x5b1   : > { %v6789_v24 = vpop.f32.mrb[178].mxu1 }
 0x5b2   : > { %v6825_v37 = vadd.f32 %v6789_v24, %v6316_v58  ;;  %v6791_v16 = vpop.f32.mrb[179].mxu1 }
 0x5b3   : > { %v14379_v16 = vld [vmem:[#allocation29_spill] sm:$0xff] }
 0x5da   : > { %v6794_v1 = vpop.f32.mrb[180].mxu1 }
 0x5db   : > { %v6828_v3 = vadd.f32 %v6794_v1, %v6319_v39  ;;  %v6796_v29 = vpop.f32.mrb[181].mxu1  ;;  %v13318_v1 = vsub.s32 2, %v14379_v16 }
 0x5dc   : > { %v6797_v34 = vpop.f32.mrb[182].mxu1 }
 0x5dd   : > { %v6831_v38 = vadd.f32 %v6797_v34, %v6322_v13  ;;  %v6799_v14 = vpop.f32.mrb[183].mxu1  ;;  %v14381_v34 = vld [vmem:[#allocation30_spill] sm:$0xff] }
 0x5e2   : > { %v6729_v52 = vpop.f32.mrb[88].mxu0  ;;  %v6802_v57 = vpop.f32.mrb[184].mxu1 }
 0x5e3   : > { %v6832_v23 = vadd.f32 %v6729_v52, %v6323_v21  ;;  %v6834_v32 = vadd.f32 %v6802_v57, %v6325_v26  ;;  %v6731_v56 = vpop.f32.mrb[89].mxu0  ;;  %v6804_v25 = vpop.f32.mrb[185].mxu1 }
 0x5e4   : > { %v6833_v5 = vadd.f32 %v6731_v56, %v6324_v41  ;;  %v6733_v7 = vpop.f32.mrb[90].mxu0  ;;  %v6805_v0 = vpop.f32.mrb[186].mxu1 }
 0x5e5   : > { %v6734_v12 = vpop.f32.mrb[91].mxu0  ;;  %v6806_v36 = vpop.f32.mrb[187].mxu1 }
 0x5ea   : > { %v7279_v61 = vpop.f32.mrb[188].mxu1 }
 0x5eb   : > { %v7319_v58 = vadd.f32 %v7279_v61, %v6810_v4  ;;  %v7281_v49 = vpop.f32.mrb[189].mxu1 }
 0x5ec   : > { %v7282_v30 = vpop.f32.mrb[190].mxu1 }
 0x5ed   : > { %v7322_v39 = vadd.f32 %v7282_v30, %v6813_v10  ;;  %v7284_v19 = vpop.f32.mrb[191].mxu1 }
 0x5f2   : > { %v7287_v53 = vpop.f32.mrb[192].mxu1 }
 0x5f3   : > { %v7325_v13 = vadd.f32 %v7287_v53, %v6816_v2  ;;  %v7289_v60 = vpop.f32.mrb[193].mxu1 }
 0x5f4   : > { %v7290_v54 = vpop.f32.mrb[194].mxu1 }
 0x5f5   : > { %v13301_v55 = vadd.f32 %v7290_v54, %v6819_v63  ;;  %v7292_v21 = vpop.f32.mrb[195].mxu1 }
 0x5fa   : > { %v7295_v26 = vpop.f32.mrb[196].mxu1 }
 0x5fb   : > { %v13303_v46 = vadd.f32 %v7295_v26, %v6822_v50  ;;  %v7297_v41 = vpop.f32.mrb[197].mxu1  ;;  %v7750_v50 = vld [vmem:[#allocation15] sm:$0x7] }
 0x5fc   : > { %v7298_v11 = vpop.f32.mrb[198].mxu1  ;;  %v13327_v52 = vrot.slane %v7750_v50, %v13318_v1 }
 0x5fd   : > { %v13305_v51 = vadd.f32 %v7298_v11, %v6825_v37  ;;  %v7300_v33 = vpop.f32.mrb[199].mxu1 }
 0x603   : > { %v7303_v62 = vpop.f32.mrb[200].mxu1 }
 0x604   : > { %v13307_v15 = vadd.f32 %v7303_v62, %v6828_v3  ;;  %v7305_v4 = vpop.f32.mrb[201].mxu1  ;;  %v14380_v3 = vld [vmem:[#allocation31_spill] sm:$0xff] }
 0x605   : > { %v7306_v40 = vpop.f32.mrb[202].mxu1  ;;  %v13321_v29 = vrot.slane %v7750_v50, %v14380_v3 }
 0x606   : > { %v13309_v42 = vadd.f32 %v7306_v40, %v6831_v38  ;;  %v7308_v10 = vpop.f32.mrb[203].mxu1  ;;  %v13324_v38 = vrot.slane %v7750_v50, %v14381_v34 }
 0x60a   : > { %v7238_v8 = vpop.f32.mrb[92].mxu0 }
 0x60b   : > { %v13311_v27 = vadd.f32 %v7238_v8, %v6832_v23  ;;  %v7311_v2 = vpop.f32.mrb[204].mxu1  ;;  %v7240_v20 = vpop.f32.mrb[93].mxu0 }
 0x60c   : > { %v13313_v35 = vadd.f32 %v7311_v2, %v6834_v32  ;;  %v13315_v63 = vadd.f32 %v7240_v20, %v6833_v5  ;;  %v7313_v18 = vpop.f32.mrb[205].mxu1  ;;  %v7242_v17 = vpop.f32.mrb[94].mxu0 }
 0x60d   : > { %v7314_v45 = vpop.f32.mrb[206].mxu1  ;;  %v7243_v24 = vpop.f32.mrb[95].mxu0 }
 0x60e   : > { %v7315_v37 = vpop.f32.mrb[207].mxu1 }
 0x612   : > { %v7604_v14 = vpop.f32.mrb[48].mxu0 }
 0x613   : > { %v13330_v57 = vadd.f32 %v13321_v29, %v7604_v14  ;;  %v7685_v23 = vpop.f32.mrb[208].mxu1  ;;  %v7606_v32 = vpop.f32.mrb[49].mxu0 }
 0x614   : > { %v7725_v56 = vadd.f32 %v7685_v23, %v7319_v58  ;;  %v13333_v25 = vadd.f32 %v13324_v38, %v7606_v32  ;;  %v7687_v5 = vpop.f32.mrb[209].mxu1  ;;  %v7608_v7 = vpop.f32.mrb[50].mxu0 }
 0x615   : > { %v13336_v0 = vadd.f32 %v13321_v29, %v7608_v7  ;;  %v7688_v12 = vpop.f32.mrb[210].mxu1  ;;  %v7610_v36 = vpop.f32.mrb[51].mxu0 }
 0x616   : > { %v13339_v61 = vadd.f32 %v13327_v52, %v7725_v56  ;;  %v7796_v49 = vadd.f32 %v13333_v25, %v13330_v57  ;;  %v7728_v30 = vadd.f32 %v7688_v12, %v7322_v39  ;;  %v13344_v58 = vadd.f32 %v13324_v38, %v7610_v36  ;;  %v7690_v19 = vpop.f32.mrb[211].mxu1  ;;  %v3112_v32 = vpop.xlane.xlu1 %3111 }
 0x618   : > { %v7798_v53 = vsel %vm7797_vm11, %v13339_v61, 0.0  ;;  %v13349_v60 = vadd.f32 %v13327_v52, %v7728_v30  ;;  %v7802_v54 = vadd.f32 %v13344_v58, %v13336_v0 }
 0x619   : > { %v7799_v21 = vadd.f32 %v7798_v53, %v7796_v49 }
 0x61a   : > { %v7803_v26 = vsel %vm7797_vm11, %v13349_v60, 0.0  ;;  %v7614_v41 = vpop.f32.mrb[52].mxu0 }
 0x61b   : > { %v13356_v39 = vadd.f32 %v13321_v29, %v7614_v41  ;;  %v7693_v11 = vpop.f32.mrb[212].mxu1  ;;  %7800 = vadd.xlane.f32.xlu0 %v7799_v21  ;;  %v7616_v33 = vpop.f32.mrb[53].mxu0  ;;  %v7804_v62 = vadd.f32 %v7803_v26, %v7802_v54 }
 0x61c   : > { %v7731_v4 = vadd.f32 %v7693_v11, %v7325_v13  ;;  %v13359_v40 = vadd.f32 %v13324_v38, %v7616_v33  ;;  %v7695_v10 = vpop.f32.mrb[213].mxu1  ;;  %v7618_v8 = vpop.f32.mrb[54].mxu0 }
 0x61d   : > { %v13362_v2 = vadd.f32 %v13321_v29, %v7618_v8  ;;  %v7696_v20 = vpop.f32.mrb[214].mxu1  ;;  %7805 = vadd.xlane.f32.xlu1 %v7804_v62  ;;  %v7620_v18 = vpop.f32.mrb[55].mxu0 }
 0x61e   : > { %v13365_v17 = vadd.f32 %v13327_v52, %v7731_v4  ;;  %v7807_v50 = vadd.f32 %v13359_v40, %v13356_v39  ;;  %v7734_v45 = vadd.f32 %v7696_v20, %v13301_v55  ;;  %v13371_v13 = vadd.f32 %v13324_v38, %v7620_v18  ;;  %v7698_v24 = vpop.f32.mrb[215].mxu1 }
 0x61f   : > { %v3124_v4 = vmul.f32 0.0069444445, %v3112_v32  ;;  %v14382_v24 = vld [vmem:[#allocation66_spill] sm:$0xff] }
 0x620   : > { %v7808_v37 = vsel %vm7797_vm11, %v13365_v17, 0.0  ;;  %v13376_v16 = vadd.f32 %v13327_v52, %v7734_v45  ;;  %v7812_v14 = vadd.f32 %v13371_v13, %v13362_v2 }
 0x621   : > { %v7809_v23 = vadd.f32 %v7808_v37, %v7807_v50  ;;  %v3107_v50 = vpop.xlane.xlu0 %3106  ;;  %v13411_v37 = vsub.f32 %v14382_v24, %v3124_v4 }
 0x622   : > { %v7813_v56 = vsel %vm7797_vm11, %v13376_v16, 0.0  ;;  %v7624_v5 = vpop.f32.mrb[56].mxu0 }
 0x623   : > { %v13383_v55 = vadd.f32 %v13321_v29, %v7624_v5  ;;  %v7701_v7 = vpop.f32.mrb[216].mxu1  ;;  %7810 = vadd.xlane.f32.xlu0 %v7809_v23  ;;  %v7626_v12 = vpop.f32.mrb[57].mxu0  ;;  %v7814_v36 = vadd.f32 %v7813_v56, %v7812_v14  ;;  %v14383_v5 = vld [vmem:[#allocation82_spill] sm:$0xff] }
 0x624   : > { %v7737_v49 = vadd.f32 %v7701_v7, %v13303_v46  ;;  %v13387_v30 = vadd.f32 %v13324_v38, %v7626_v12  ;;  %v7703_v19 = vpop.f32.mrb[217].mxu1  ;;  %v7628_v53 = vpop.f32.mrb[58].mxu0  ;;  %v13417_v7 = vsub.f32 %v14383_v5, %v3124_v4 }
 0x625   : > { %v13390_v54 = vadd.f32 %v13321_v29, %v7628_v53  ;;  %v7704_v21 = vpop.f32.mrb[218].mxu1  ;;  %7815 = vadd.xlane.f32.xlu1 %v7814_v36  ;;  %v7630_v26 = vpop.f32.mrb[59].mxu0 }
 0x626   : > { %v13393_v41 = vadd.f32 %v13327_v52, %v7737_v49  ;;  %v7817_v11 = vadd.f32 %v13387_v30, %v13383_v55  ;;  %v7740_v33 = vadd.f32 %v7704_v21, %v13305_v51  ;;  %v13399_v46 = vadd.f32 %v13324_v38, %v7630_v26  ;;  %v7706_v62 = vpop.f32.mrb[219].mxu1 }
 0x628   : > { %v7818_v10 = vsel %vm7797_vm11, %v13393_v41, 0.0  ;;  %v13404_v8 = vadd.f32 %v13327_v52, %v7740_v33  ;;  %v7822_v20 = vadd.f32 %v13399_v46, %v13390_v54 }
 0x629   : > { %v7819_v18 = vadd.f32 %v7818_v10, %v7817_v11  ;;  %v3123_v10 = vmul.f32 0.0069444445, %v3107_v50 }
 0x62a   : > { %v7823_v45 = vsel %vm7797_vm11, %v13404_v8, 0.0  ;;  %v7634_v51 = vpop.f32.mrb[60].mxu0 }
 0x62b   : > { %v13414_v14 = vadd.f32 %v13321_v29, %v7634_v51  ;;  %v7709_v23 = vpop.f32.mrb[220].mxu1  ;;  %7820 = vadd.xlane.f32.xlu0 %v7819_v18  ;;  %v7636_v32 = vpop.f32.mrb[61].mxu0  ;;  %v7824_v56 = vadd.f32 %v7823_v45, %v7822_v20  ;;  %v3171_v20 = vmul.f32 %v13411_v37, %v13411_v37  ;;  %v3172_v18 = vmul.f32 %v13417_v7, %v13417_v7 }
 0x62c   : > { %v7743_v12 = vadd.f32 %v7709_v23, %v13307_v15  ;;  %v13421_v36 = vadd.f32 %v13324_v38, %v7636_v32  ;;  %v7711_v49 = vpop.f32.mrb[221].mxu1  ;;  %v7638_v19 = vpop.f32.mrb[62].mxu0  ;;  %v14384_v32 = vld [vmem:[#allocation36_spill] sm:$0xff] }
 0x62d   : > { %v13424_v53 = vadd.f32 %v13321_v29, %v7638_v19  ;;  %v7712_v21 = vpop.f32.mrb[222].mxu1  ;;  %7825 = vadd.xlane.f32.xlu1 %v7824_v56  ;;  %v7640_v26 = vpop.f32.mrb[63].mxu0  ;;  %v13449_v56 = vsub.f32 %v14384_v32, %v3123_v10 }
 0x62e   : > { %v13427_v11 = vadd.f32 %v13327_v52, %v7743_v12  ;;  %v7827_v33 = vadd.f32 %v13421_v36, %v13414_v14  ;;  %v7746_v62 = vadd.f32 %v7712_v21, %v13309_v42  ;;  %v13433_v15 = vadd.f32 %v13324_v38, %v7640_v26  ;;  %v7714_v4 = vpop.f32.mrb[223].mxu1 }
 0x630   : > { %v7828_v45 = vsel %vm7797_vm11, %v13427_v11, 0.0  ;;  %v13442_v51 = vadd.f32 %v13327_v52, %v7746_v62  ;;  %v7832_v42 = vadd.f32 %v13433_v15, %v13424_v53 }
 0x631   : > { %v7829_v24 = vadd.f32 %v7828_v45, %v7827_v33  ;;  %v3217_v33 = vsel %vm743_vm9, %v3171_v20, 0.0  ;;  %v3218_v45 = vsel %vm745_vm10, %v3172_v18, 0.0  ;;  %v3170_v20 = vmul.f32 %v13449_v56, %v13449_v56 }
 0x632   : > { %v7833_v23 = vsel %vm7797_vm11, %v13442_v51, 0.0  ;;  %v7644_v50 = vpop.f32.mrb[96].mxu0  ;;  %v3219_v18 = vadd.f32 %v3218_v45, %v3217_v33 }
 0x633   : > { %v7747_v5 = vadd.f32 %v7644_v50, %v13311_v27  ;;  %v7717_v12 = vpop.f32.mrb[224].mxu1  ;;  %7830 = vadd.xlane.f32.xlu0 %v7829_v24  ;;  %v7646_v49 = vpop.f32.mrb[97].mxu0  ;;  %v7834_v19 = vadd.f32 %v7833_v23, %v7832_v42  ;;  %v14385_v50 = vld [vmem:[#allocation97_spill] sm:$0xff] }
 0x634   : > { %v7749_v21 = vadd.f32 %v7717_v12, %v13313_v35  ;;  %v7748_v26 = vadd.f32 %v7646_v49, %v13315_v63  ;;  %v7719_v62 = vpop.f32.mrb[225].mxu1  ;;  %v7648_v4 = vpop.f32.mrb[98].mxu0  ;;  %v13460_v24 = vsub.f32 %v14385_v50, %v3123_v10  ;;  %v1121_v12 = vld [vmem:[#allocation6 + $0x58] sm:$0x3]  ;;  %v2697_v49 = vld [vmem:[#allocation6 + $0x110] sm:$0xff] }
 0x635   : > { %v13457_v34 = vadd.f32 %v13321_v29, %v7747_v5  ;;  %v7720_v32 = vpop.f32.mrb[226].mxu1  ;;  %7835 = vadd.xlane.f32.xlu1 %v7834_v19  ;;  %v7649_v27 = vpop.f32.mrb[99].mxu0  ;;  %v3213_v5 = vsel %vm698_vm3, %v3170_v20, 0.0  ;;  %v2698_v19 = vld [vmem:[#allocation6 + $0x118] sm:$0x3] }
 0x636   : > { %v13463_v42 = vadd.f32 %v13327_v52, %v7749_v21  ;;  %v13466_v35 = vadd.f32 %v13324_v38, %v7748_v26  ;;  %v7721_v63 = vpop.f32.mrb[227].mxu1  ;;  %v3169_v10 = vmul.f32 %v13460_v24, %v13460_v24  ;;  %v1912_v21 = vld [vmem:[#allocation6 + $0xb8] sm:$0x3]  ;;  %v3482_v26 = vld [vmem:[#allocation6 + $0x168] sm:$0xff]  ;;  %v1649_v62 = vpop.xlane.xlu0 %1648 }
 0x637   : > { %v859_v4 = vpop.xlane.xlu1 %858  ;;  %v1661_v33 = vmul.f32 0.0069444445, %v1649_v62 }
 0x638   : > { %v7837_v29 = vadd.f32 %v13466_v35, %v13457_v34  ;;  %v7838_v23 = vsel %vm7797_vm11, %v13463_v42, 0.0  ;;  %v3214_v38 = vadd.f32 %v3213_v5, %v3169_v10  ;;  %v871_v45 = vmul.f32 0.0069444445, %v859_v4 }
 0x639   : > { %3220 = vadd.xlane.f32.xlu1 %v3219_v18  ;;  %v1673_v32 = vadd.f32 1e-06, %v1661_v33  ;;  %v14387_v33 = vld [vmem:[#allocation110_spill] sm:$0xff] }
 0x63a   : > { %v7839_v52 = vadd.f32 %v7838_v23, %v7837_v29  ;;  %v883_v50 = vadd.f32 1e-06, %v871_v45  ;;  %v2435_v20 = vpop.xlane.xlu0 %2434 }
 0x63b   : > { %v2430_v27 = vpop.xlane.xlu1 %2429  ;;  %9914 = vrsqrt.f32 %v1673_v32  ;;  %v2447_v29 = vmul.f32 0.0069444445, %v2435_v20 }
 0x63c   : > { %7840 = vadd.xlane.f32.xlu0 %v7839_v52  ;;  %v2446_v63 = vmul.f32 0.0069444445, %v2430_v27  ;;  %9916 = vrsqrt.f32 %v883_v50  ;;  %v14388_v27 = vld [vmem:[#allocation116_spill] sm:$0xff] }
 0x63d   : > { %v2459_v23 = vadd.f32 1e-06, %v2447_v29  ;;  %v14390_v29 = vld [vmem:[#allocation111_spill] sm:$0xff] }
 0x63e   : > { %v2458_v18 = vadd.f32 1e-06, %v2446_v63 }
 0x63f   : > { %v3212_v5 = vpop.xlane.xlu1 %3211 }
 0x640   : > { %3215 = vadd.xlane.f32.xlu0 %v3214_v38  ;;  %9918 = vrsqrt.f32 %v2458_v18  ;;  %v14389_v18 = vld [vmem:[#allocation117_spill] sm:$0xff] }
 0x641   : > { %9920 = vrsqrt.f32 %v2459_v23 }
 0x645   : > { %v9915_v10 = vpop.eup %9914 }
 0x646   : > { %v9917_v52 = vpop.eup %9916  ;;  %v1709_v4 = vmul.f32 %v9915_v10, %v13158_v48 }
 0x647   : > { %v918_v38 = vmul.f32 %v9917_v52, %v13187_v28 }
 0x648   : > { %v1744_v23 = vmul.f32 %v14390_v29, %v1709_v4 }
 0x64a   : > { %1179 = vperm.xlu1 %9209, %v1121_v12   ;;  %v1708_v12 = vmul.f32 %v9915_v10, %v13155_v31  ;;  %v14392_v10 = vld [vmem:[#allocation118_spill] sm:$0xff] }
 0x64c   : > { %v1743_v45 = vmul.f32 %v14387_v33, %v1708_v12 }
 0x64e   : > { %2751 = vperm.xlu1 %9209, %v2697_v49   ;;  %v3231_v49 = vmul.f32 0.0069444445, %v3212_v5 }
 0x650   : > { %v3243_v32 = vadd.f32 1e-06, %v3231_v49  ;;  %v14393_v49 = vld [vmem:[#allocation90_spill] sm:$0xff] }
 0x652   : > { %2756 = vperm.xlu1 %9209, %v2698_v19   ;;  %v919_v19 = vmul.f32 %v9917_v52, %v13190_v43  ;;  %v14391_v43 = vld [vmem:[#allocation112_spill] sm:$0xff]  ;;  %9922 = vrsqrt.f32 %v3243_v32  ;;  %v14395_v32 = vld [vmem:[#allocation113_spill] sm:$0xff] }
 0x653   : > { %v1778_v52 = vadd.f32 %v14391_v43, %v1743_v45  ;;  %v14399_v43 = vld [vmem:[#allocation75_spill] sm:$0xff] }
 0x654   : > { %v954_v50 = vmul.f32 %v14388_v27, %v919_v19  ;;  %v14394_v19 = vld [vmem:[#allocation83_spill] sm:$0xff]  ;;  %v1779_v27 = vadd.f32 %v14395_v32, %v1744_v23 }
 0x656   : > { %1970 = vperm.xlu0 %9208, %v1912_v21   ;;  %v9919_v21 = vpop.eup %9918  ;;  %v989_v12 = vadd.f32 %v14392_v10, %v954_v50  ;;  %v1826_v50 = vmul.f32 0.70710677, %v1778_v52 }
 0x657   : > { %v2492_v63 = vmul.f32 %v9919_v21, %v13205_v6  ;;  %v2493_v20 = vmul.f32 %v9919_v21, %v13208_v59  ;;  %v9921_v5 = vpop.eup %9920 }
 0x658   : > { %v2494_v45 = vmul.f32 %v9921_v5, %v13226_v44 }
 0x659   : > { %v2528_v33 = vmul.f32 %v14394_v19, %v2493_v20 }
 0x65a   : > { %3532 = vperm.xlu0 %9208, %v3482_v26   ;;  %v14386_v26 = vld [vmem:[#allocation115_spill] sm:$0xff]  ;;  %v2529_v10 = vmul.f32 %v14393_v49, %v2494_v45 }
 0x65b   : > { %v953_v62 = vmul.f32 %v14386_v26, %v918_v38  ;;  %v2527_v26 = vmul.f32 %v14393_v49, %v2492_v63  ;;  %v2563_v52 = vadd.f32 %v14399_v43, %v2528_v33  ;;  %v1827_v33 = vmul.f32 0.70710677, %v1779_v27 }
 0x65d   : > { %v988_v31 = vadd.f32 %v14389_v18, %v953_v62  ;;  %v14398_v18 = vld [vmem:[#allocation74_spill] sm:$0xff] }
 0x65f   : > { %v1036_v4 = vmul.f32 0.70710677, %v988_v31  ;;  %v2562_v31 = vadd.f32 %v14398_v18, %v2527_v26 }
 0x661   : > { %9924 = verf.f32 %v1036_v4  ;;  %v2611_v4 = vmul.f32 0.70710677, %v2563_v52 }
 0x6a8   : > { %v7801_v28 = vpop.xlane.xlu0 %7800 }
 0x6a9   : > { %v7843_v38 = vmul.f32 0.0034722222, %v7801_v28  ;;  %v1037_v28 = vmul.f32 0.70710677, %v989_v12 }
 0x6aa   : > { %v7806_v48 = vpop.xlane.xlu1 %7805 }
 0x6ab   : > { %v13493_v6 = vsub.f32 %v13330_v57, %v7843_v38  ;;  %v13496_v59 = vsub.f32 %v13333_v25, %v7843_v38  ;;  %v13499_v21 = vsub.f32 %v13339_v61, %v7843_v38  ;;  %v7844_v62 = vmul.f32 0.0034722222, %v7806_v48 }
 0x6ac   : > { %v2495_v48 = vmul.f32 %v9921_v5, %v13229_v9  ;;  %9926 = verf.f32 %v1037_v28  ;;  %v2564_v28 = vadd.f32 %v14398_v18, %v2529_v10  ;;  %v14400_v10 = vld [vmem:[#allocation77_spill] sm:$0xff] }
 0x6ad   : > { %v7879_v63 = vmul.f32 %v13493_v6, %v13493_v6  ;;  %v7880_v57 = vmul.f32 %v13496_v59, %v13496_v59  ;;  %v13508_v20 = vsub.f32 %v13336_v0, %v7844_v62  ;;  %v13511_v25 = vsub.f32 %v13344_v58, %v7844_v62 }
 0x6ae   : > { %v13514_v61 = vsub.f32 %v13349_v60, %v7844_v62  ;;  %v7881_v44 = vmul.f32 %v13499_v21, %v13499_v21  ;;  %v2530_v45 = vmul.f32 %v14394_v19, %v2495_v48  ;;  %9928 = verf.f32 %v1826_v50  ;;  %v14401_v50 = vld [vmem:[#allocation79_spill] sm:$0xff] }
 0x6af   : > { %14396 = vst [vmem:[#allocation37_spill] sm:$0xff] %v13511_v25  ;;  %v7882_v29 = vmul.f32 %v13508_v20, %v13508_v20  ;;  %v7883_v23 = vmul.f32 %v13511_v25, %v13511_v25  ;;  %v7906_v0 = vadd.f32 %v7880_v57, %v7879_v63  ;;  %v2610_v63 = vmul.f32 0.70710677, %v2562_v31  ;;  %v9923_v57 = vpop.eup %9922 }
 0x6b0   : > { %14397 = vst [vmem:[#allocation100_spill] sm:$0xff] %v13514_v61  ;;  %v7811_v58 = vpop.xlane.xlu0 %7810  ;;  %v7907_v38 = vsel %vm7797_vm11, %v7881_v44, 0.0  ;;  %v7884_v60 = vmul.f32 %v13514_v61, %v13514_v61  ;;  %v3277_v18 = vmul.f32 %v9923_v57, %v13248_v47  ;;  %v2565_v52 = vadd.f32 %v14399_v43, %v2530_v45 }
 0x6b1   : > { %v7845_v12 = vmul.f32 0.0034722222, %v7811_v58  ;;  %v7908_v26 = vadd.f32 %v7907_v38, %v7906_v0  ;;  %v7911_v62 = vadd.f32 %v7883_v23, %v7882_v29  ;;  %9930 = verf.f32 %v2610_v63 }
 0x6b2   : > { %v7816_v32 = vpop.xlane.xlu1 %7815  ;;  %v7912_v25 = vsel %vm7797_vm11, %v7884_v60, 0.0  ;;  %9932 = verf.f32 %v2611_v4  ;;  %v2612_v48 = vmul.f32 0.70710677, %v2564_v28  ;;  %v2613_v4 = vmul.f32 0.70710677, %v2565_v52 }
 0x6b3   : > { %v13531_v44 = vsub.f32 %v13356_v39, %v7845_v12  ;;  %v13534_v61 = vsub.f32 %v13359_v40, %v7845_v12  ;;  %v13537_v9 = vsub.f32 %v13365_v17, %v7845_v12  ;;  %v7846_v5 = vmul.f32 0.0034722222, %v7816_v32  ;;  %7909 = vadd.xlane.f32.xlu0 %v7908_v26 }
 0x6b4   : > { %v7913_v49 = vadd.f32 %v7912_v25, %v7911_v62  ;;  %v3276_v25 = vmul.f32 %v9923_v57, %v13245_v22  ;;  %v3312_v26 = vmul.f32 %v14401_v50, %v3277_v18  ;;  %v9925_v62 = vpop.eup %9924  ;;  %9934 = verf.f32 %v1827_v33  ;;  %v14402_v33 = vld [vmem:[#allocation76_spill] sm:$0xff] }
 0x6b5   : > { %v7885_v27 = vmul.f32 %v13531_v44, %v13531_v44  ;;  %v7886_v39 = vmul.f32 %v13534_v61, %v13534_v61  ;;  %v13546_v40 = vsub.f32 %v13362_v2, %v7846_v5  ;;  %v13549_v17 = vsub.f32 %v13371_v13, %v7846_v5 }
 0x6b6   : > { %v13552_v31 = vsub.f32 %v13376_v16, %v7846_v5  ;;  %7914 = vadd.xlane.f32.xlu1 %v7913_v49  ;;  %v7887_v19 = vmul.f32 %v13537_v9, %v13537_v9  ;;  %v3311_v12 = vmul.f32 %v14400_v10, %v3276_v25  ;;  %v9927_v5 = vpop.eup %9926  ;;  %9936 = verf.f32 %v2612_v48 }
 0x6b7   : > { %v7888_v29 = vmul.f32 %v13546_v40, %v13546_v40  ;;  %v7889_v2 = vmul.f32 %v13549_v17, %v13549_v17  ;;  %v7916_v23 = vadd.f32 %v7886_v39, %v7885_v27  ;;  %9938 = verf.f32 %v2613_v4 }
 0x6b8   : > { %v7821_v13 = vpop.xlane.xlu0 %7820  ;;  %v7917_v16 = vsel %vm7797_vm11, %v7887_v19, 0.0  ;;  %v7890_v0 = vmul.f32 %v13552_v31, %v13552_v31  ;;  %v3346_v39 = vadd.f32 %v14402_v33, %v3311_v12  ;;  %v14403_v19 = vld [vmem:[#allocation96_spill] sm:$0xff] }
 0x6b9   : > { %v7847_v22 = vmul.f32 0.0034722222, %v7821_v13  ;;  %v7918_v58 = vadd.f32 %v7917_v16, %v7916_v23  ;;  %v7921_v47 = vadd.f32 %v7889_v2, %v7888_v29  ;;  %v3347_v25 = vadd.f32 %v14403_v19, %v3312_v26  ;;  %v9929_v23 = vpop.eup %9928 }
 0x6ba   : > { %v7826_v38 = vpop.xlane.xlu1 %7825  ;;  %v7922_v60 = vsel %vm7797_vm11, %v7890_v0, 0.0 }
 0x6bb   : > { %v13570_v32 = vsub.f32 %v13383_v55, %v7847_v22  ;;  %v13573_v63 = vsub.f32 %v13387_v30, %v7847_v22  ;;  %v13576_v43 = vsub.f32 %v13393_v41, %v7847_v22  ;;  %v7848_v57 = vmul.f32 0.0034722222, %v7826_v38  ;;  %7919 = vadd.xlane.f32.xlu0 %v7918_v58  ;;  %v9931_v52 = vpop.eup %9930 }
 0x6bc   : > { %v7923_v49 = vadd.f32 %v7922_v60, %v7921_v47  ;;  %v3394_v47 = vmul.f32 0.70710677, %v3346_v39  ;;  %v3395_v38 = vmul.f32 0.70710677, %v3347_v25  ;;  %v9933_v60 = vpop.eup %9932 }
 0x6bd   : > { %v7891_v45 = vmul.f32 %v13570_v32, %v13570_v32  ;;  %v7892_v28 = vmul.f32 %v13573_v63, %v13573_v63  ;;  %v13583_v55 = vsub.f32 %v13390_v54, %v7848_v57  ;;  %v13586_v30 = vsub.f32 %v13399_v46, %v7848_v57 }
 0x6be   : > { %v13589_v41 = vsub.f32 %v13404_v8, %v7848_v57  ;;  %7924 = vadd.xlane.f32.xlu1 %v7923_v49  ;;  %v7893_v27 = vmul.f32 %v13576_v43, %v13576_v43  ;;  %9940 = verf.f32 %v3394_v47 }
 0x6bf   : > { %v7894_v18 = vmul.f32 %v13583_v55, %v13583_v55  ;;  %v7895_v54 = vmul.f32 %v13586_v30, %v13586_v30  ;;  %v7926_v29 = vadd.f32 %v7892_v28, %v7891_v45  ;;  %9942 = verf.f32 %v3395_v38 }
 0x6c0   : > { %v7831_v46 = vpop.xlane.xlu0 %7830  ;;  %v7927_v8 = vsel %vm7797_vm11, %v7893_v27, 0.0  ;;  %v7896_v2 = vmul.f32 %v13589_v41, %v13589_v41 }
 0x6c1   : > { %v7849_v13 = vmul.f32 0.0034722222, %v7831_v46  ;;  %v7928_v16 = vadd.f32 %v7927_v8, %v7926_v29  ;;  %v7931_v0 = vadd.f32 %v7895_v54, %v7894_v18 }
 0x6c2   : > { %v7836_v22 = vpop.xlane.xlu1 %7835  ;;  %v7932_v58 = vsel %vm7797_vm11, %v7896_v2, 0.0 }
 0x6c3   : > { %v13604_v48 = vsub.f32 %v13414_v14, %v7849_v13  ;;  %v13607_v12 = vsub.f32 %v13421_v36, %v7849_v13  ;;  %v13610_v26 = vsub.f32 %v13427_v11, %v7849_v13  ;;  %v7850_v62 = vmul.f32 0.0034722222, %v7836_v22  ;;  %7929 = vadd.xlane.f32.xlu0 %v7928_v16  ;;  %v9935_v36 = vpop.eup %9934 }
 0x6c4   : > { %v7933_v57 = vadd.f32 %v7932_v58, %v7931_v0  ;;  %v9937_v25 = vpop.eup %9936 }
 0x6c5   : > { %v7897_v5 = vmul.f32 %v13604_v48, %v13604_v48  ;;  %v7898_v49 = vmul.f32 %v13607_v12, %v13607_v12  ;;  %v13617_v4 = vsub.f32 %v13424_v53, %v7850_v62  ;;  %v13620_v14 = vsub.f32 %v13433_v15, %v7850_v62  ;;  %v9939_v46 = vpop.eup %9938 }
 0x6c6   : > { %v13623_v45 = vsub.f32 %v13442_v51, %v7850_v62  ;;  %7934 = vadd.xlane.f32.xlu1 %v7933_v57  ;;  %v3221_v11 = vpop.xlane.xlu1 %3220  ;;  %v7899_v28 = vmul.f32 %v13610_v26, %v13610_v26 }
 0x6c7   : > { %v7900_v27 = vmul.f32 %v13617_v4, %v13617_v4  ;;  %v7901_v53 = vmul.f32 %v13620_v14, %v13620_v14  ;;  %v7936_v39 = vadd.f32 %v7898_v49, %v7897_v5 }
 0x6c8   : > { %v7937_v15 = vsel %vm7797_vm11, %v7899_v28, 0.0  ;;  %v7902_v51 = vmul.f32 %v13623_v45, %v13623_v45  ;;  %v9941_v60 = vpop.eup %9940  ;;  %v3483_v28 = vld [vmem:[#allocation6 + $0x170] sm:$0xff] }
 0x6c9   : > { %v7841_v18 = vpop.xlane.xlu0 %7840  ;;  %v7938_v54 = vadd.f32 %v7937_v15, %v7936_v39  ;;  %v7941_v29 = vadd.f32 %v7901_v53, %v7900_v27  ;;  %v3484_v27 = vld [vmem:[#allocation6 + $0x178] sm:$0x3]  ;;  %v3233_v15 = vmul.f32 0.0069444445, %v3221_v11 }
 0x6ca   : > { %v7851_v8 = vmul.f32 0.0034722222, %v7841_v18  ;;  %v1180_v2 = vpop.permute.xlu1 %1179  ;;  %v7942_v23 = vsel %vm7797_vm11, %v7902_v51, 0.0 }
 0x6cb   : > { %7939 = vadd.xlane.f32.xlu0 %v7938_v54  ;;  %v7943_v13 = vadd.f32 %v7942_v23, %v7941_v29  ;;  %v3245_v51 = vadd.f32 1e-06, %v3233_v15 }
 0x6cc   : > { %v13636_v16 = vsub.f32 %v13457_v34, %v7851_v8  ;;  %v13639_v0 = vsub.f32 %v13466_v35, %v7851_v8  ;;  %v13642_v52 = vsub.f32 %v13463_v42, %v7851_v8  ;;  %v9943_v35 = vpop.eup %9942 }
 0x6cd   : > { %7944 = vadd.xlane.f32.xlu1 %v7943_v13  ;;  %v3216_v57 = vpop.xlane.xlu0 %3215 }
 0x6ce   : > { %v7903_v22 = vmul.f32 %v13636_v16, %v13636_v16  ;;  %v7904_v58 = vmul.f32 %v13639_v0, %v13639_v0  ;;  %v2752_v47 = vpop.permute.xlu1 %2751  ;;  %v7905_v38 = vmul.f32 %v13642_v52, %v13642_v52  ;;  %v3232_v53 = vmul.f32 0.0069444445, %v3216_v57 }
 0x6d0   : > { %v7946_v34 = vadd.f32 %v7904_v58, %v7903_v22  ;;  %v7947_v62 = vsel %vm7797_vm11, %v7905_v38, 0.0  ;;  %v3244_v39 = vadd.f32 1e-06, %v3232_v53 }
 0x6d2   : > { %v2757_v5 = vpop.permute.xlu1 %2756  ;;  %v7948_v42 = vadd.f32 %v7947_v62, %v7946_v34  ;;  %9944 = vrsqrt.f32 %v3244_v39  ;;  %v14404_v39 = vld [vmem:[#allocation30_spill] sm:$0xff] }
 0x6d3   : > { %9946 = vrsqrt.f32 %v3245_v51 }
 0x6d4   : > { %7949 = vadd.xlane.f32.xlu0 %v7948_v42 }
 0x6d5   : > { %v1971_v49 = vpop.permute.xlu0 %1970 }
 0x6d9   : > { %v3533_v36 = vpop.permute.xlu0 %3532 }
 0x6dc   : > { %v9945_v25 = vpop.eup %9944 }
 0x6dd   : > { %v3278_v18 = vmul.f32 %v9945_v25, %v13460_v24  ;;  %v3279_v54 = vmul.f32 %v9945_v25, %v13449_v56  ;;  %v9947_v46 = vpop.eup %9946 }
 0x6de   : > { %3537 = vperm.xlu1 %9209, %v3483_v28   ;;  %v3280_v22 = vmul.f32 %v9947_v46, %v13411_v37  ;;  %v3281_v56 = vmul.f32 %v9947_v46, %v13417_v7  ;;  %v7794_v37 = vld [vmem:[#allocation17] sm:$0x7]  ;;  %v7795_v28 = vld [vmem:[#allocation18] sm:$0x7] }
 0x6df   : > { %v3313_v29 = vmul.f32 %v14400_v10, %v3278_v18  ;;  %v3314_v2 = vmul.f32 %v14401_v50, %v3279_v54  ;;  %v13663_v7 = vrot.slane %v7794_v37, %v13318_v1  ;;  %v13667_v53 = vrot.slane %v7794_v37, %v14380_v3 }
 0x6e0   : > { %v3315_v34 = vmul.f32 %v14400_v10, %v3280_v22  ;;  %v3316_v5 = vmul.f32 %v14401_v50, %v3281_v56  ;;  %v13670_v50 = vrot.slane %v7794_v37, %v14404_v39  ;;  %v13673_v25 = vrot.slane %v7795_v28, %v13318_v1 }
 0x6e1   : > { %v3348_v13 = vadd.f32 %v14402_v33, %v3313_v29  ;;  %v3349_v38 = vadd.f32 %v14403_v19, %v3314_v2  ;;  %v13677_v18 = vrot.slane %v7795_v28, %v14380_v3  ;;  %v13680_v54 = vrot.slane %v7795_v28, %v14404_v39 }
 0x6e2   : > { %v3350_v42 = vadd.f32 %v14402_v33, %v3315_v34  ;;  %v3351_v10 = vadd.f32 %v14403_v19, %v3316_v5 }
 0x6e3   : > { %v3396_v24 = vmul.f32 0.70710677, %v3348_v13  ;;  %v3397_v35 = vmul.f32 0.70710677, %v3349_v38 }
 0x6e4   : > { %v3398_v51 = vmul.f32 0.70710677, %v3350_v42 }
 0x6ea   : > { %3542 = vperm.xlu0 %9208, %v3484_v27  }
 0x740   : > { %v7910_v8 = vpop.xlane.xlu0 %7909 }
 0x741   : > { %v7951_v23 = vmul.f32 0.0034722222, %v7910_v8 }
 0x743   : > { %v7960_v58 = vadd.f32 1e-06, %v7951_v23  ;;  %v7915_v11 = vpop.xlane.xlu1 %7914  ;;  %v3399_v23 = vmul.f32 0.70710677, %v3351_v10 }
 0x744   : > { %v7952_v47 = vmul.f32 0.0034722222, %v7915_v11 }
 0x745   : > { %9948 = vrsqrt.f32 %v7960_v58 }
 0x746   : > { %v7961_v60 = vadd.f32 1e-06, %v7952_v47 }
 0x748   : > { %9950 = vrsqrt.f32 %v7961_v60  ;;  %v7920_v62 = vpop.xlane.xlu0 %7919 }
 0x749   : > { %v7953_v57 = vmul.f32 0.0034722222, %v7920_v62  ;;  %9952 = verf.f32 %v3396_v24 }
 0x74a   : > { %9954 = verf.f32 %v3397_v35 }
 0x74b   : > { %v7962_v49 = vadd.f32 1e-06, %v7953_v57  ;;  %v7925_v36 = vpop.xlane.xlu1 %7924 }
 0x74c   : > { %v7954_v27 = vmul.f32 0.0034722222, %v7925_v36 }
 0x74d   : > { %9956 = vrsqrt.f32 %v7962_v49 }
 0x74e   : > { %v7963_v15 = vadd.f32 1e-06, %v7954_v27 }
 0x74f   : > { %v9949_v33 = vpop.eup %9948 }
 0x750   : > { %v7978_v19 = vmul.f32 %v9949_v33, %v13493_v6  ;;  %v7979_v29 = vmul.f32 %v9949_v33, %v13496_v59  ;;  %v7980_v46 = vmul.f32 %v9949_v33, %v13499_v21  ;;  %9958 = vrsqrt.f32 %v7963_v15  ;;  %v7930_v8 = vpop.xlane.xlu0 %7929  ;;  %v14405_v6 = vld [vmem:[#allocation37_spill] sm:$0xff]  ;;  %v14406_v59 = vld [vmem:[#allocation100_spill] sm:$0xff] }
 0x751   : > { %v7955_v2 = vmul.f32 0.0034722222, %v7930_v8  ;;  %9960 = verf.f32 %v3398_v51 }
 0x752   : > { %v9951_v13 = vpop.eup %9950  ;;  %v8021_v1 = vmul.f32 %v13667_v53, %v7978_v19  ;;  %v8022_v22 = vmul.f32 %v13670_v50, %v7979_v29  ;;  %v8023_v3 = vmul.f32 %v13663_v7, %v7980_v46 }
 0x753   : > { %v9953_v58 = vpop.eup %9952  ;;  %v7981_v11 = vmul.f32 %v9951_v13, %v13508_v20  ;;  %v7982_v47 = vmul.f32 %v9951_v13, %v14405_v6  ;;  %v7983_v38 = vmul.f32 %v9951_v13, %v14406_v59  ;;  %v7964_v21 = vadd.f32 1e-06, %v7955_v2  ;;  %v7935_v24 = vpop.xlane.xlu1 %7934 }
 0x754   : > { %v8064_v56 = vadd.f32 %v13677_v18, %v8021_v1  ;;  %v8065_v60 = vadd.f32 %v13680_v54, %v8022_v22  ;;  %v8066_v34 = vadd.f32 %v13673_v25, %v8023_v3  ;;  %v7956_v62 = vmul.f32 0.0034722222, %v7935_v24  ;;  %v9955_v20 = vpop.eup %9954 }
 0x755   : > { %v8024_v35 = vmul.f32 %v13667_v53, %v7981_v11  ;;  %v8025_v57 = vmul.f32 %v13670_v50, %v7982_v47  ;;  %v8026_v5 = vmul.f32 %v13663_v7, %v7983_v38  ;;  %9962 = vrsqrt.f32 %v7964_v21 }
 0x756   : > { %8091 = vst [vmem:[%s13697_s1] sm:$0xff] %v8064_v56  ;;  %8092 = vst [vmem:[%s13697_s1 + $0x8] sm:$0xff] %v8065_v60  ;;  %v7965_v37 = vadd.f32 1e-06, %v7956_v62  ;;  %9964 = verf.f32 %v3399_v23 }
 0x757   : > { %8093 = vst.msk [vmem:[%s13697_s1 + $0x10] sm:$0xff] %vm7797_vm11, %v8066_v34  ;;  %v9957_v42 = vpop.eup %9956  ;;  %v8067_v49 = vadd.f32 %v13677_v18, %v8024_v35  ;;  %v8068_v36 = vadd.f32 %v13680_v54, %v8025_v57  ;;  %v8069_v28 = vadd.f32 %v13673_v25, %v8026_v5 }
 0x758   : > { %v7984_v27 = vmul.f32 %v9957_v42, %v13531_v44  ;;  %v7985_v10 = vmul.f32 %v9957_v42, %v13534_v61  ;;  %v7986_v39 = vmul.f32 %v9957_v42, %v13537_v9  ;;  %9966 = vrsqrt.f32 %v7965_v37  ;;  %v7940_v15 = vpop.xlane.xlu0 %7939 }
 0x759   : > { %8094 = vst [vmem:[%s13697_s1 + $0x18] sm:$0xff] %v8067_v49  ;;  %8095 = vst [vmem:[%s13697_s1 + $0x20] sm:$0xff] %v8068_v36  ;;  %v7957_v51 = vmul.f32 0.0034722222, %v7940_v15 }
 0x75a   : > { %8096 = vst.msk [vmem:[%s13697_s1 + $0x28] sm:$0xff] %vm7797_vm11, %v8069_v28  ;;  %v9959_v33 = vpop.eup %9958  ;;  %v8027_v19 = vmul.f32 %v13667_v53, %v7984_v27  ;;  %v8028_v29 = vmul.f32 %v13670_v50, %v7985_v10  ;;  %v8029_v46 = vmul.f32 %v13663_v7, %v7986_v39  ;;  %v7945_v44 = vpop.xlane.xlu1 %7944 }
 0x75b   : > { %v7987_v61 = vmul.f32 %v9959_v33, %v13546_v40  ;;  %v7988_v9 = vmul.f32 %v9959_v33, %v13549_v17  ;;  %v7989_v8 = vmul.f32 %v9959_v33, %v13552_v31  ;;  %v7966_v2 = vadd.f32 1e-06, %v7957_v51  ;;  %v9961_v23 = vpop.eup %9960 }
 0x75c   : > { %v8070_v13 = vadd.f32 %v13677_v18, %v8027_v19  ;;  %v8071_v1 = vadd.f32 %v13680_v54, %v8028_v29  ;;  %v8072_v22 = vadd.f32 %v13673_v25, %v8029_v46  ;;  %v7958_v3 = vmul.f32 0.0034722222, %v7945_v44 }
 0x75d   : > { %v8030_v58 = vmul.f32 %v13667_v53, %v7987_v61  ;;  %v8031_v11 = vmul.f32 %v13670_v50, %v7988_v9  ;;  %v8032_v6 = vmul.f32 %v13663_v7, %v7989_v8  ;;  %9968 = vrsqrt.f32 %v7966_v2 }
 0x75e   : > { %8097 = vst [vmem:[%s13697_s1 + $0x30] sm:$0xff] %v8070_v13  ;;  %8098 = vst [vmem:[%s13697_s1 + $0x38] sm:$0xff] %v8071_v1  ;;  %v7967_v40 = vadd.f32 1e-06, %v7958_v3  ;;  %v3538_v17 = vpop.permute.xlu1 %3537 }
 0x75f   : > { %8099 = vst.msk [vmem:[%s13697_s1 + $0x40] sm:$0xff] %vm7797_vm11, %v8072_v22  ;;  %v9963_v31 = vpop.eup %9962  ;;  %v8073_v47 = vadd.f32 %v13677_v18, %v8030_v58  ;;  %v8074_v59 = vadd.f32 %v13680_v54, %v8031_v11  ;;  %v8075_v38 = vadd.f32 %v13673_v25, %v8032_v6 }
 0x760   : > { %v7990_v21 = vmul.f32 %v9963_v31, %v13570_v32  ;;  %v7991_v24 = vmul.f32 %v9963_v31, %v13573_v63  ;;  %v7992_v56 = vmul.f32 %v9963_v31, %v13576_v43  ;;  %9970 = vrsqrt.f32 %v7967_v40  ;;  %v9965_v60 = vpop.eup %9964 }
 0x761   : > { %8100 = vst [vmem:[%s13697_s1 + $0x48] sm:$0xff] %v8073_v47  ;;  %8101 = vst [vmem:[%s13697_s1 + $0x50] sm:$0xff] %v8074_v59  ;;  %v7950_v34 = vpop.xlane.xlu0 %7949 }
 0x762   : > { %8102 = vst.msk [vmem:[%s13697_s1 + $0x58] sm:$0xff] %vm7797_vm11, %v8075_v38  ;;  %v9967_v62 = vpop.eup %9966  ;;  %v8033_v35 = vmul.f32 %v13667_v53, %v7990_v21  ;;  %v8034_v57 = vmul.f32 %v13670_v50, %v7991_v24  ;;  %v8035_v32 = vmul.f32 %v13663_v7, %v7992_v56  ;;  %v7959_v63 = vmul.f32 0.0034722222, %v7950_v34 }
 0x763   : > { %v7993_v43 = vmul.f32 %v9967_v62, %v13583_v55  ;;  %v7994_v5 = vmul.f32 %v9967_v62, %v13586_v30  ;;  %v7995_v20 = vmul.f32 %v9967_v62, %v13589_v41 }
 0x764   : > { %v8076_v37 = vadd.f32 %v13677_v18, %v8033_v35  ;;  %v8077_v42 = vadd.f32 %v13680_v54, %v8034_v57  ;;  %v8078_v49 = vadd.f32 %v13673_v25, %v8035_v32  ;;  %v7968_v36 = vadd.f32 1e-06, %v7959_v63 }
 0x765   : > { %v8036_v28 = vmul.f32 %v13667_v53, %v7993_v43  ;;  %v8037_v27 = vmul.f32 %v13670_v50, %v7994_v5  ;;  %v8038_v55 = vmul.f32 %v13663_v7, %v7995_v20 }
 0x766   : > { %8103 = vst [vmem:[%s13697_s1 + $0x60] sm:$0xff] %v8076_v37  ;;  %8104 = vst [vmem:[%s13697_s1 + $0x68] sm:$0xff] %v8077_v42  ;;  %9972 = vrsqrt.f32 %v7968_v36 }
 0x767   : > { %8105 = vst.msk [vmem:[%s13697_s1 + $0x70] sm:$0xff] %vm7797_vm11, %v8078_v49  ;;  %v9969_v30 = vpop.eup %9968  ;;  %v8079_v41 = vadd.f32 %v13677_v18, %v8036_v28  ;;  %v8080_v10 = vadd.f32 %v13680_v54, %v8037_v27  ;;  %v8081_v39 = vadd.f32 %v13673_v25, %v8038_v55 }
 0x768   : > { %v7996_v15 = vmul.f32 %v9969_v30, %v13604_v48  ;;  %v7997_v51 = vmul.f32 %v9969_v30, %v13607_v12  ;;  %v7998_v33 = vmul.f32 %v9969_v30, %v13610_v26 }
 0x769   : > { %8106 = vst [vmem:[%s13697_s1 + $0x78] sm:$0xff] %v8079_v41  ;;  %8107 = vst [vmem:[%s13697_s1 + $0x80] sm:$0xff] %v8080_v10  ;;  %v3543_v19 = vpop.permute.xlu0 %3542 }
 0x76a   : > { %8108 = vst.msk [vmem:[%s13697_s1 + $0x88] sm:$0xff] %vm7797_vm11, %v8081_v39  ;;  %v9971_v29 = vpop.eup %9970  ;;  %v8039_v46 = vmul.f32 %v13667_v53, %v7996_v15  ;;  %v8040_v44 = vmul.f32 %v13670_v50, %v7997_v51  ;;  %v8041_v61 = vmul.f32 %v13663_v7, %v7998_v33 }
 0x76b   : > { %v7999_v48 = vmul.f32 %v9971_v29, %v13617_v4  ;;  %v8000_v12 = vmul.f32 %v9971_v29, %v13620_v14  ;;  %v8001_v26 = vmul.f32 %v9971_v29, %v13623_v45 }
 0x76c   : > { %v8082_v9 = vadd.f32 %v13677_v18, %v8039_v46  ;;  %v8083_v8 = vadd.f32 %v13680_v54, %v8040_v44  ;;  %v8084_v2 = vadd.f32 %v13673_v25, %v8041_v61 }
 0x76d   : > { %v8042_v23 = vmul.f32 %v13667_v53, %v7999_v48  ;;  %v8043_v13 = vmul.f32 %v13670_v50, %v8000_v12  ;;  %v8044_v4 = vmul.f32 %v13663_v7, %v8001_v26 }
 0x76e   : > { %8109 = vst [vmem:[%s13697_s1 + $0x90] sm:$0xff] %v8082_v9  ;;  %8110 = vst [vmem:[%s13697_s1 + $0x98] sm:$0xff] %v8083_v8 }
 0x76f   : > { %8111 = vst.msk [vmem:[%s13697_s1 + $0xa0] sm:$0xff] %vm7797_vm11, %v8084_v2  ;;  %v8085_v14 = vadd.f32 %v13677_v18, %v8042_v23  ;;  %v8086_v45 = vadd.f32 %v13680_v54, %v8043_v13  ;;  %v8087_v1 = vadd.f32 %v13673_v25, %v8044_v4 }
 0x770   : > { %v9973_v22 = vpop.eup %9972 }
 0x771   : > { %8112 = vst [vmem:[%s13697_s1 + $0xa8] sm:$0xff] %v8085_v14  ;;  %8113 = vst [vmem:[%s13697_s1 + $0xb0] sm:$0xff] %v8086_v45  ;;  %v8002_v3 = vmul.f32 %v9973_v22, %v13636_v16  ;;  %v8003_v58 = vmul.f32 %v9973_v22, %v13639_v0  ;;  %v8004_v11 = vmul.f32 %v9973_v22, %v13642_v52 }
 0x772   : > { %8114 = vst.msk [vmem:[%s13697_s1 + $0xb8] sm:$0xff] %vm7797_vm11, %v8087_v1 }
 0x773   : > { %v8045_v6 = vmul.f32 %v13667_v53, %v8002_v3  ;;  %v8046_v40 = vmul.f32 %v13670_v50, %v8003_v58  ;;  %v8047_v17 = vmul.f32 %v13663_v7, %v8004_v11 }
 0x775   : > { %v8088_v31 = vadd.f32 %v13677_v18, %v8045_v6  ;;  %v8089_v16 = vadd.f32 %v13680_v54, %v8046_v40  ;;  %v8090_v0 = vadd.f32 %v13673_v25, %v8047_v17 }
 0x777   : > { %8115 = vst [vmem:[%s13697_s1 + $0xc0] sm:$0xff] %v8088_v31  ;;  %8116 = vst [vmem:[%s13697_s1 + $0xc8] sm:$0xff] %v8089_v16 }
 0x778   : > { %8117 = vst.msk [vmem:[%s13697_s1 + $0xd0] sm:$0xff] %vm7797_vm11, %v8090_v0 }
 0x779   : > { %10275 = shalt.err (!%p10272_p0)
}
 0x77a   : > { %s10276_s29 = scalar_lea.hbm %s13799_s12, 3456  ;;  %s10280_s21 = scalar_lea.hbm %s14407_s27, 6912 }
 0x77b   : > { %p10277_p5 = scmp.ne.s32.totalorder %s13799_s12, %s10276_s29  ;;  %p10281_p4 = scmp.lt.u32.totalorder %s13799_s12, %s14407_s27 }
 0x77c   : > { %p10282_p12 = scmp.lt.u32.totalorder %s10280_s21, %s10276_s29  ;;  %p10284_p1 = scmp.lt.u32.totalorder %s10276_s29, %s13799_s12 }
 0x77d   : > { %p10278_p9 = pnand %p10277_p5, %p14408_p3 }
 0x77e   : > { %p10283_p13 = por %p10282_p12, %p10281_p4 }
 0x77f   : > { %p10279_p7 = pneg %p10278_p9 }
 0x780   : > { %p10285_p2 = por %p10284_p1, %p10283_p13 }
 0x782   : > { %p10286_p8 = pnand %p10285_p2, %p10279_p7 }
 0x784   : > { %10289 = shalt.err (!%p10286_p8)
}
 0x785   : > { %s10369_s24 = smov 384   ;;  %s10370_s28 = smov 24  }
 0x786   : > { %9099 = dma.vmem_to_hbm [thread:$0]  (%p14408_p3), %s13804_s22, 3456, %s13799_s12, %s8119_s11, %s10369_s24, %s10369_s24, %s10370_s28  }
 0x787 PF: > { %s8147_s17 = sand.u32 1, %s10336_s13   ;;  %p14409_p6 = scmp.ne.s32.totalorder %s14058_s26, 0 }
 0x788   : > { %p14410_p10 = scmp.ge.s32.totalorder %s10348_s16, 2  ;;  %s8148_s2 = scalar_lea.sflag [#allocation5], %s8147_s17 }
 0x78a   : > { %p9134_p11 = pnand %p14410_p10, %p14409_p6 }
 0x78c   : > { %10331 = dma.done.wait (!%p9134_p11), %s8148_s2, 3456  }
 0x78d   : > { %10333 = vsyncadd (!%p9134_p11), %s8148_s2, 4294963840  ;;  %p28_p0 = scmp.ge.s32.totalorder %s10662_s23, 4   ;;  %s14411_s13 = smov %s10340_s14 }
 0x78e   : > { %s14412_s14 = smov %s10344_s15  ;;  %s14413_s15 = smov %s10674_s25 }
 0x78f   : > { %s14414_s16 = smov %s10662_s23  ;;  %30 = sbr.rel (!%p28_p0) target bundleno = 14 (0xe), region = 158 }
 0x796   :  { %8153 = vsyncpa [#allocation4], 1 }
 0x797   :  { %8155 = vsyncpa [#allocation4 + $0x1], 1 }
 0x798   :  { %8156 = vsyncpa [#allocation7], 1 }
 0x799   :  { %8157 = vsyncpa [#allocation10], 1 }
 0x79a   :  { %8158 = vsyncpa [#allocation13], 1 }
 0x79b   :  { %8159 = vsyncpa [#allocation16], 1 }
 0x79c   :  { %8160 = vsyncpa [#allocation19], 1 }
 0x79d   :  { %8161 = vsyncpa [#allocation5], 1 }
 0x79e   :  { %8163 = vsyncpa [#allocation5 + $0x1], 1 }

</bundles_post_ra>
